<compile_context>
chip_gen: v5e
topology: v5e:2x2
jax: 0.10.0
libtpu: 0.0.40
codegen_flags: <defaults>
</compile_context>

<pallas_src>
import functools

import jax
import jax.numpy as jnp
from jax import lax
from jax.experimental import pallas as pl
from jax.experimental.pallas import tpu as pltpu

BN_EPS = 1e-5
_LANE = 128
_SUBLANE = 8


def _round_up(x, m):
    return (x + m - 1) // m * m


# ----------------------------- fused Pallas kernel ---------------------------

def _edablock_kernel(x_ref, w_ref, ss_ref, o_ref, buf_a, buf_b, *,
                     H, W, S, halo, dil, Cp):
    """Whole EDABlock (4 asymmetric convs + bias/BN/ReLU) on one image, VMEM-resident.

    x_ref : (1, H+2*halo, S, Cp) bf16  input in padded geometry (zero halos / pad C)
    w_ref : (4, 3, Cp, Cp)       bf16  per-stage, per-tap weight matrices
    ss_ref: (4, 2, Cp)           f32   per-stage folded (scale, shift)
    o_ref : (1, H+2*halo, S, Cp) bf16  only interior rows / valid cols are meaningful
    buf_a / buf_b : (Hb*S, Cp) bf16 VMEM ping-pong scratch (halo rows stay zero)
    """
    Hb = H + 2 * halo
    Mtot = Hb * S
    M = H * S
    base = halo * S                      # flattened offset of the first valid row

    # Column-validity mask: zero the W halo / alignment columns after every stage
    # so they never leak into the next stage's W taps (zero-padding semantics).
    col = lax.rem(lax.broadcasted_iota(jnp.int32, (M, 1), 0), S)
    colmask = jnp.logical_and(col >= halo, col < halo + W)

    # Zero the scratch buffers (interior is fully rewritten by every stage; the
    # halo rows must read as zero for the H-conv taps).
    zeros = jnp.zeros((Mtot, Cp), jnp.bfloat16)
    buf_a[...] = zeros
    buf_b[...] = zeros

    def stage(p_flat, k, step, relu):
        """3-tap conv (tap stride `step` in flattened row*S+col space) with fused
        bias/BN scale-shift and optional ReLU.  Returns column-masked bf16 (M, Cp)."""
        w3 = w_ref[k]                                            # (3, Cp, Cp)
        ssk = ss_ref[k]                                          # (2, Cp)
        # Chained dots: no explicit zero accumulator.
        acc = jnp.dot(p_flat[base - step:base - step + M, :], w3[0],
                      preferred_element_type=jnp.float32)
        acc += jnp.dot(p_flat[base:base + M, :], w3[1],
                       preferred_element_type=jnp.float32)
        acc += jnp.dot(p_flat[base + step:base + step + M, :], w3[2],
                       preferred_element_type=jnp.float32)
        y = acc * ssk[0:1, :] + ssk[1:2, :]
        if relu:
            y = jnp.maximum(y, 0.0)
        y = jnp.where(colmask, y, 0.0)
        return y.astype(jnp.bfloat16)

    # conv1_lw : (3,1) pad (1,0)             + bias
    p0 = x_ref[0].reshape(Mtot, Cp)
    buf_a[base:base + M, :] = stage(p0, 0, S, relu=False)
    # conv1_rw : (1,3) pad (0,1)             + bias + BN + ReLU
    buf_b[base:base + M, :] = stage(buf_a[...], 1, 1, relu=True)
    # conv2_lw : (3,1) pad (d,0) dil (d,1)   + bias + ReLU
    buf_a[base:base + M, :] = stage(buf_b[...], 2, dil * S, relu=True)
    # conv2_rw : (1,3) pad (0,d) dil (1,d)   + bias + BN
    y = stage(buf_a[...], 3, dil, relu=False)
    # Aligned, lane-dense store of the interior rows (pad columns already zeroed).
    o_ref[0, halo:halo + H, :, :] = y.reshape(H, S, Cp)


# ----------------------------- forward wrapper --------------------------------

def edablock_forward(params, x_nchw):
    """EDABlock forward (inference). x: (N, C, H, W) f32 -> (N, C, H, W) f32."""
    N, C, H, W = x_nchw.shape
    Cp, d = params['cp'], params['dilation']
    halo = max(int(d), 1)
    S = _round_up(W + 2 * halo, _SUBLANE)
    Hb = H + 2 * halo

    # Whole-image-per-grid-step design: keep each (padded) image under a small
    # VMEM budget so 2x double-buffered I/O blocks + scratch + f32 accumulators
    # stay well inside v7x's 64 MiB / v5e's scoped VMEM.
    assert Hb * S * Cp * 2 <= (2 << 20), (
        "fused whole-image kernel is sized for small feature maps; "
        "TODO(synk): H-tiling with 2-D halos for large inputs")

    # Single XLA pre-pass: NCHW -> NHWC, bf16, channel pad to Cp (lane-dense) and
    # the static zero halo / alignment geometry the fused kernel expects.
    x = jnp.transpose(x_nchw, (0, 2, 3, 1)).astype(jnp.bfloat16)
    x = jnp.pad(x, ((0, 0), (halo, halo), (halo, S - W - halo), (0, Cp - C)))

    kernel = functools.partial(_edablock_kernel, H=H, W=W, S=S, halo=halo,
                               dil=int(d), Cp=Cp)
    out = pl.pallas_call(
        kernel,
        out_shape=jax.ShapeDtypeStruct((N, Hb, S, Cp), jnp.bfloat16),
        grid=(N,),
        in_specs=[
            pl.BlockSpec((1, Hb, S, Cp), lambda n: (n, 0, 0, 0)),
            pl.BlockSpec((4, 3, Cp, Cp), lambda n: (0, 0, 0, 0)),
            pl.BlockSpec((4, 2, Cp), lambda n: (0, 0, 0)),
        ],
        out_specs=pl.BlockSpec((1, Hb, S, Cp), lambda n: (n, 0, 0, 0)),
        scratch_shapes=[pltpu.VMEM((Hb * S, Cp), jnp.bfloat16),
                        pltpu.VMEM((Hb * S, Cp), jnp.bfloat16)],
        compiler_params=pltpu.CompilerParams(
            dimension_semantics=("parallel",),
            vmem_limit_bytes=40 * 1024 * 1024),
    )(x, params['w'], params['ss'])

    # Strip halos / channel padding, back to NCHW f32.
    # nn.Dropout(p): identity at inference (eval mode).
    out = out[:, halo:halo + H, halo:halo + W, :C]
    return jnp.transpose(out, (0, 3, 1, 2)).astype(jnp.float32)


# ----------------------- parameter build / pre-packing ------------------------

def _fold_bias_bn(bias, gamma=None, beta=None, mean=None, var=None, eps=BN_EPS):
    """y = BN(conv + bias)  ==  conv*scale + shift  (scale=1, shift=bias if no BN)."""
    if gamma is None:
        return jnp.ones_like(bias), bias
    scale = gamma / jnp.sqrt(var + eps)
    shift = (bias - mean) * scale + beta
    return scale, shift


def _pack_asym_weight(w_pt, cp_in, cp_out):
    """PyTorch (Cout, Cin, 3, 1) or (Cout, Cin, 1, 3) -> (3, Cp_in, Cp_out) bf16."""
    cout, cin = w_pt.shape[:2]
    taps = jnp.transpose(w_pt.reshape(cout, cin, 3), (2, 1, 0))   # (3, Cin, Cout)
    taps = jnp.pad(taps, ((0, 0), (0, cp_in - cin), (0, cp_out - cout)))
    return taps.astype(jnp.bfloat16)


def _pad_vec(v, cp):
    return jnp.pad(v, (0, cp - v.shape[0])).astype(jnp.float32)


def build_edablock_params(key, channels, dilation, bn_eps=BN_EPS):
    """Random parameters in PyTorch layout (`raw`) plus the pre-packed Pallas form."""
    C = channels
    Cp = _round_up(C, _LANE)
    ks = list(jax.random.split(key, 16))

    def conv_w(k, kh, kw):
        return 0.1 * jax.random.normal(k, (C, C, kh, kw), jnp.float32)

    def conv_b(k):
        return 0.01 * jax.random.normal(k, (C,), jnp.float32)

    def bn(k0, k1, k2, k3):
        return dict(gamma=1.0 + 0.1 * jax.random.normal(k0, (C,), jnp.float32),
                    beta=0.1 * jax.random.normal(k1, (C,), jnp.float32),
                    mean=0.05 * jax.random.normal(k2, (C,), jnp.float32),
                    var=0.8 + 0.4 * jax.random.uniform(k3, (C,), jnp.float32))

    raw = dict(
        w1_lw=conv_w(ks[0], 3, 1), b1_lw=conv_b(ks[1]),
        w1_rw=conv_w(ks[2], 1, 3), b1_rw=conv_b(ks[3]), bn1=bn(*ks[4:8]),
        w2_lw=conv_w(ks[8], 3, 1), b2_lw=conv_b(ks[9]),
        w2_rw=conv_w(ks[10], 1, 3), b2_rw=conv_b(ks[11]), bn2=bn(*ks[12:16]),
    )

    s1_lw, h1_lw = _fold_bias_bn(raw['b1_lw'])
    s1_rw, h1_rw = _fold_bias_bn(raw['b1_rw'], **raw['bn1'], eps=bn_eps)
    s2_lw, h2_lw = _fold_bias_bn(raw['b2_lw'])
    s2_rw, h2_rw = _fold_bias_bn(raw['b2_rw'], **raw['bn2'], eps=bn_eps)

    w_stack = jnp.stack([
        _pack_asym_weight(raw['w1_lw'], Cp, Cp),
        _pack_asym_weight(raw['w1_rw'], Cp, Cp),
        _pack_asym_weight(raw['w2_lw'], Cp, Cp),
        _pack_asym_weight(raw['w2_rw'], Cp, Cp),
    ])                                                            # (4, 3, Cp, Cp)
    ss_stack = jnp.stack([
        jnp.stack([_pad_vec(s1_lw, Cp), _pad_vec(h1_lw, Cp)]),
        jnp.stack([_pad_vec(s1_rw, Cp), _pad_vec(h1_rw, Cp)]),
        jnp.stack([_pad_vec(s2_lw, Cp), _pad_vec(h2_lw, Cp)]),
        jnp.stack([_pad_vec(s2_rw, Cp), _pad_vec(h2_rw, Cp)]),
    ])                                                            # (4, 2, Cp)

    packed = dict(channels=C, cp=Cp, dilation=dilation, w=w_stack, ss=ss_stack)
    return packed, raw


# ----------------------------- pure-JAX reference -----------------------------

def _ref_conv(x, w_pt, b, padding, dilation):
    w = jnp.transpose(w_pt, (2, 3, 1, 0)).astype(jnp.float32)        # HWIO
    y = lax.conv_general_dilated(
        x, w, window_strides=(1, 1),
        padding=((padding[0], padding[0]), (padding[1], padding[1])),
        rhs_dilation=dilation,
        dimension_numbers=('NHWC', 'HWIO', 'NHWC'),
        precision=lax.Precision.HIGHEST)
    return y + b.reshape(1, 1, 1, -1)


def _ref_bn(x, bn, eps):
    return (x - bn['mean']) / jnp.sqrt(bn['var'] + eps) * bn['gamma'] + bn['beta']


def edablock_reference(raw, x_nchw, dilation, bn_eps=BN_EPS):
    d = dilation
    x = jnp.transpose(x_nchw, (0, 2, 3, 1)).astype(jnp.float32)
    x = _ref_conv(x, raw['w1_lw'], raw['b1_lw'], (1, 0), (1, 1))
    x = jax.nn.relu(_ref_bn(
        _ref_conv(x, raw['w1_rw'], raw['b1_rw'], (0, 1), (1, 1)), raw['bn1'], bn_eps))
    x = jax.nn.relu(_ref_conv(x, raw['w2_lw'], raw['b2_lw'], (d, 0), (d, 1)))
    x = _ref_bn(
        _ref_conv(x, raw['w2_rw'], raw['b2_rw'], (0, d), (1, d)), raw['bn2'], bn_eps)
    return jnp.transpose(x, (0, 3, 1, 2))


# ----------------------------------- demo -------------------------------------

if __name__ == "__main__":
    key = jax.random.PRNGKey(0)
    pkey, xkey = jax.random.split(key)

    channels, dilation, dropout_rate, bn_eps = 40, 2, 0.02, BN_EPS
    # Dropout(p=dropout_rate) is identity in inference/eval mode.
    params, raw = build_edablock_params(pkey, channels, dilation, bn_eps=bn_eps)

    x = jax.random.normal(xkey, (2, channels, 16, 16), jnp.float32)   # NCHW

    fwd = jax.jit(lambda inp: edablock_forward(params, inp))
    out = jax.block_until_ready(fwd(x))
    assert out.shape == x.shape, out.shape
    assert bool(jnp.all(jnp.isfinite(out)))

    ref = jax.block_until_ready(edablock_reference(raw, x, dilation, bn_eps))
    err = float(jnp.max(jnp.abs(out - ref)))
    # bf16 MXU inputs / bf16 intermediates with f32 accumulation -> loose tolerance.
    assert err < 0.3, f"max abs error vs reference: {err}"

    print("KERNEL_OK")
</pallas_src>

<mosaic_0001>
module attributes {stable_mosaic.version = 11 : i64} {
  func.func @_edablock_kernel(%arg0: i32, %arg1: memref<1x20x24x128xbf16, #tpu.memory_space<vmem>>, %arg2: memref<4x3x128x128xbf16, #tpu.memory_space<vmem>>, %arg3: memref<4x2x128xf32, #tpu.memory_space<vmem>>, %arg4: memref<1x20x24x128xbf16, #tpu.memory_space<vmem>>, %arg5: memref<480x128xbf16, #tpu.memory_space<vmem>>, %arg6: memref<480x128xbf16, #tpu.memory_space<vmem>>) attributes {dimension_semantics = [#tpu.dimension_semantics<parallel>], iteration_bounds = array<i64: 2>, scalar_prefetch = 0 : i64, scratch_operands = 2 : i64, tpu.core_type = #tpu.core_type<tc>, window_params = [{transform_indices = @transform_0, window_bounds = array<i64: 1, 20, 24, 128>}, {pipeline_mode = #tpu.pipeline_mode<synchronous>, transform_indices = @transform_1, window_bounds = array<i64: 4, 3, 128, 128>}, {pipeline_mode = #tpu.pipeline_mode<synchronous>, transform_indices = @transform_2, window_bounds = array<i64: 4, 2, 128>}, {transform_indices = @transform_3, window_bounds = array<i64: 1, 20, 24, 128>}]} {
    %0 = tpu.iota {dimensions = array<i32: 0>} : vector<384x1xi32>
    %c24_i32 = arith.constant 24 : i32
    %1 = vector.broadcast %c24_i32 : i32 to vector<384x1xi32>
    %2 = arith.remsi %0, %1 : vector<384x1xi32>
    %c2_i32 = arith.constant 2 : i32
    %3 = vector.broadcast %c2_i32 : i32 to vector<384x1xi32>
    %4 = arith.cmpi sge, %2, %3 : vector<384x1xi32>
    %c18_i32 = arith.constant 18 : i32
    %5 = vector.broadcast %c18_i32 : i32 to vector<384x1xi32>
    %6 = arith.cmpi slt, %2, %5 : vector<384x1xi32>
    %7 = arith.andi %4, %6 : vector<384x1xi1>
    %cst = arith.constant 0.000000e+00 : bf16
    %8 = vector.broadcast %cst : bf16 to vector<480x128xbf16>
    %c0 = arith.constant 0 : index
    %c0_0 = arith.constant 0 : index
    %9 = vector.load %arg5[%c0, %c0_0] : memref<480x128xbf16, #tpu.memory_space<vmem>>, vector<480x128xbf16>
    tpu.vector_store %arg5[%c0, %c0_0], %8 {strides = array<i32>} : memref<480x128xbf16, #tpu.memory_space<vmem>>, vector<480x128xbf16>,
    %c0_1 = arith.constant 0 : index
    %c0_2 = arith.constant 0 : index
    %10 = vector.load %arg6[%c0_1, %c0_2] : memref<480x128xbf16, #tpu.memory_space<vmem>>, vector<480x128xbf16>
    tpu.vector_store %arg6[%c0_1, %c0_2], %8 {strides = array<i32>} : memref<480x128xbf16, #tpu.memory_space<vmem>>, vector<480x128xbf16>,
    %c0_3 = arith.constant 0 : index
    %c0_4 = arith.constant 0 : index
    %c0_5 = arith.constant 0 : index
    %c0_6 = arith.constant 0 : index
    %11 = vector.load %arg1[%c0_3, %c0_4, %c0_5, %c0_6] : memref<1x20x24x128xbf16, #tpu.memory_space<vmem>>, vector<1x20x24x128xbf16>
    %12 = vector.shape_cast %11 : vector<1x20x24x128xbf16> to vector<20x24x128xbf16>
    %13 = vector.shape_cast %12 : vector<20x24x128xbf16> to vector<480x128xbf16>
    %c0_7 = arith.constant 0 : index
    %c0_8 = arith.constant 0 : index
    %c0_9 = arith.constant 0 : index
    %c0_10 = arith.constant 0 : index
    %14 = vector.load %arg2[%c0_7, %c0_8, %c0_9, %c0_10] : memref<4x3x128x128xbf16, #tpu.memory_space<vmem>>, vector<1x3x128x128xbf16>
    %15 = vector.shape_cast %14 : vector<1x3x128x128xbf16> to vector<3x128x128xbf16>
    %c0_11 = arith.constant 0 : index
    %c0_12 = arith.constant 0 : index
    %c0_13 = arith.constant 0 : index
    %16 = vector.load %arg3[%c0_11, %c0_12, %c0_13] : memref<4x2x128xf32, #tpu.memory_space<vmem>>, vector<1x2x128xf32>
    %17 = vector.shape_cast %16 : vector<1x2x128xf32> to vector<2x128xf32>
    %18 = vector.extract_strided_slice %13 {offsets = [24, 0], sizes = [384, 128], strides = [1, 1]} : vector<480x128xbf16> to vector<384x128xbf16>
    %19 = vector.extract_strided_slice %15 {offsets = [0, 0, 0], sizes = [1, 128, 128], strides = [1, 1, 1]} : vector<3x128x128xbf16> to vector<1x128x128xbf16>
    %20 = vector.shape_cast %19 : vector<1x128x128xbf16> to vector<128x128xbf16>
    %cst_14 = arith.constant dense<0.000000e+00> : vector<384x128xf32>
    %21 = tpu.matmul %18, %20, %cst_14 {dimension_numbers = #tpu.dot_dimension_numbers<[1], [0], [0], [1], [0, 0, 1, 1], [], []>} : vector<384x128xbf16>, vector<128x128xbf16>, vector<384x128xf32> -> vector<384x128xf32>
    %22 = vector.extract_strided_slice %13 {offsets = [48, 0], sizes = [384, 128], strides = [1, 1]} : vector<480x128xbf16> to vector<384x128xbf16>
    %23 = vector.extract_strided_slice %15 {offsets = [1, 0, 0], sizes = [1, 128, 128], strides = [1, 1, 1]} : vector<3x128x128xbf16> to vector<1x128x128xbf16>
    %24 = vector.shape_cast %23 : vector<1x128x128xbf16> to vector<128x128xbf16>
    %cst_15 = arith.constant dense<0.000000e+00> : vector<384x128xf32>
    %25 = tpu.matmul %22, %24, %cst_15 {dimension_numbers = #tpu.dot_dimension_numbers<[1], [0], [0], [1], [0, 0, 1, 1], [], []>} : vector<384x128xbf16>, vector<128x128xbf16>, vector<384x128xf32> -> vector<384x128xf32>
    %26 = arith.addf %21, %25 : vector<384x128xf32>
    %27 = vector.extract_strided_slice %13 {offsets = [72, 0], sizes = [384, 128], strides = [1, 1]} : vector<480x128xbf16> to vector<384x128xbf16>
    %28 = vector.extract_strided_slice %15 {offsets = [2, 0, 0], sizes = [1, 128, 128], strides = [1, 1, 1]} : vector<3x128x128xbf16> to vector<1x128x128xbf16>
    %29 = vector.shape_cast %28 : vector<1x128x128xbf16> to vector<128x128xbf16>
    %cst_16 = arith.constant dense<0.000000e+00> : vector<384x128xf32>
    %30 = tpu.matmul %27, %29, %cst_16 {dimension_numbers = #tpu.dot_dimension_numbers<[1], [0], [0], [1], [0, 0, 1, 1], [], []>} : vector<384x128xbf16>, vector<128x128xbf16>, vector<384x128xf32> -> vector<384x128xf32>
    %31 = arith.addf %26, %30 : vector<384x128xf32>
    %32 = vector.extract_strided_slice %17 {offsets = [0, 0], sizes = [1, 128], strides = [1, 1]} : vector<2x128xf32> to vector<1x128xf32>
    %33 = vector.broadcast %32 : vector<1x128xf32> to vector<384x128xf32>
    %34 = arith.mulf %31, %33 : vector<384x128xf32>
    %35 = vector.extract_strided_slice %17 {offsets = [1, 0], sizes = [1, 128], strides = [1, 1]} : vector<2x128xf32> to vector<1x128xf32>
    %36 = vector.broadcast %35 : vector<1x128xf32> to vector<384x128xf32>
    %37 = arith.addf %34, %36 : vector<384x128xf32>
    %cst_17 = arith.constant 0.000000e+00 : f32
    %38 = vector.shape_cast %7 : vector<384x1xi1> to vector<384x1xi1>
    %39 = vector.broadcast %38 : vector<384x1xi1> to vector<384x128xi1>
    %40 = vector.broadcast %cst_17 : f32 to vector<384x128xf32>
    %41 = arith.select %39, %37, %40 : vector<384x128xi1>, vector<384x128xf32>
    %42 = arith.truncf %41 : vector<384x128xf32> to vector<384x128xbf16>
    %c48 = arith.constant 48 : index
    %c0_18 = arith.constant 0 : index
    %43 = vector.load %arg5[%c48, %c0_18] : memref<480x128xbf16, #tpu.memory_space<vmem>>, vector<384x128xbf16>
    tpu.vector_store %arg5[%c48, %c0_18], %42 {strides = array<i32>} : memref<480x128xbf16, #tpu.memory_space<vmem>>, vector<384x128xbf16>,
    %c0_19 = arith.constant 0 : index
    %c0_20 = arith.constant 0 : index
    %44 = vector.load %arg5[%c0_19, %c0_20] : memref<480x128xbf16, #tpu.memory_space<vmem>>, vector<480x128xbf16>
    %c1 = arith.constant 1 : index
    %c0_21 = arith.constant 0 : index
    %c0_22 = arith.constant 0 : index
    %c0_23 = arith.constant 0 : index
    %45 = vector.load %arg2[%c1, %c0_21, %c0_22, %c0_23] : memref<4x3x128x128xbf16, #tpu.memory_space<vmem>>, vector<1x3x128x128xbf16>
    %46 = vector.shape_cast %45 : vector<1x3x128x128xbf16> to vector<3x128x128xbf16>
    %c1_24 = arith.constant 1 : index
    %c0_25 = arith.constant 0 : index
    %c0_26 = arith.constant 0 : index
    %47 = vector.load %arg3[%c1_24, %c0_25, %c0_26] : memref<4x2x128xf32, #tpu.memory_space<vmem>>, vector<1x2x128xf32>
    %48 = vector.shape_cast %47 : vector<1x2x128xf32> to vector<2x128xf32>
    %49 = vector.extract_strided_slice %44 {offsets = [47, 0], sizes = [384, 128], strides = [1, 1]} : vector<480x128xbf16> to vector<384x128xbf16>
    %50 = vector.extract_strided_slice %46 {offsets = [0, 0, 0], sizes = [1, 128, 128], strides = [1, 1, 1]} : vector<3x128x128xbf16> to vector<1x128x128xbf16>
    %51 = vector.shape_cast %50 : vector<1x128x128xbf16> to vector<128x128xbf16>
    %cst_27 = arith.constant dense<0.000000e+00> : vector<384x128xf32>
    %52 = tpu.matmul %49, %51, %cst_27 {dimension_numbers = #tpu.dot_dimension_numbers<[1], [0], [0], [1], [0, 0, 1, 1], [], []>} : vector<384x128xbf16>, vector<128x128xbf16>, vector<384x128xf32> -> vector<384x128xf32>
    %53 = vector.extract_strided_slice %44 {offsets = [48, 0], sizes = [384, 128], strides = [1, 1]} : vector<480x128xbf16> to vector<384x128xbf16>
    %54 = vector.extract_strided_slice %46 {offsets = [1, 0, 0], sizes = [1, 128, 128], strides = [1, 1, 1]} : vector<3x128x128xbf16> to vector<1x128x128xbf16>
    %55 = vector.shape_cast %54 : vector<1x128x128xbf16> to vector<128x128xbf16>
    %cst_28 = arith.constant dense<0.000000e+00> : vector<384x128xf32>
    %56 = tpu.matmul %53, %55, %cst_28 {dimension_numbers = #tpu.dot_dimension_numbers<[1], [0], [0], [1], [0, 0, 1, 1], [], []>} : vector<384x128xbf16>, vector<128x128xbf16>, vector<384x128xf32> -> vector<384x128xf32>
    %57 = arith.addf %52, %56 : vector<384x128xf32>
    %58 = vector.extract_strided_slice %44 {offsets = [49, 0], sizes = [384, 128], strides = [1, 1]} : vector<480x128xbf16> to vector<384x128xbf16>
    %59 = vector.extract_strided_slice %46 {offsets = [2, 0, 0], sizes = [1, 128, 128], strides = [1, 1, 1]} : vector<3x128x128xbf16> to vector<1x128x128xbf16>
    %60 = vector.shape_cast %59 : vector<1x128x128xbf16> to vector<128x128xbf16>
    %cst_29 = arith.constant dense<0.000000e+00> : vector<384x128xf32>
    %61 = tpu.matmul %58, %60, %cst_29 {dimension_numbers = #tpu.dot_dimension_numbers<[1], [0], [0], [1], [0, 0, 1, 1], [], []>} : vector<384x128xbf16>, vector<128x128xbf16>, vector<384x128xf32> -> vector<384x128xf32>
    %62 = arith.addf %57, %61 : vector<384x128xf32>
    %63 = vector.extract_strided_slice %48 {offsets = [0, 0], sizes = [1, 128], strides = [1, 1]} : vector<2x128xf32> to vector<1x128xf32>
    %64 = vector.broadcast %63 : vector<1x128xf32> to vector<384x128xf32>
    %65 = arith.mulf %62, %64 : vector<384x128xf32>
    %66 = vector.extract_strided_slice %48 {offsets = [1, 0], sizes = [1, 128], strides = [1, 1]} : vector<2x128xf32> to vector<1x128xf32>
    %67 = vector.broadcast %66 : vector<1x128xf32> to vector<384x128xf32>
    %68 = arith.addf %65, %67 : vector<384x128xf32>
    %cst_30 = arith.constant 0.000000e+00 : f32
    %69 = vector.broadcast %cst_30 : f32 to vector<384x128xf32>
    %70 = arith.maximumf %68, %69 : vector<384x128xf32>
    %cst_31 = arith.constant 0.000000e+00 : f32
    %71 = vector.shape_cast %7 : vector<384x1xi1> to vector<384x1xi1>
    %72 = vector.broadcast %71 : vector<384x1xi1> to vector<384x128xi1>
    %73 = vector.broadcast %cst_31 : f32 to vector<384x128xf32>
    %74 = arith.select %72, %70, %73 : vector<384x128xi1>, vector<384x128xf32>
    %75 = arith.truncf %74 : vector<384x128xf32> to vector<384x128xbf16>
    %c48_32 = arith.constant 48 : index
    %c0_33 = arith.constant 0 : index
    %76 = vector.load %arg6[%c48_32, %c0_33] : memref<480x128xbf16, #tpu.memory_space<vmem>>, vector<384x128xbf16>
    tpu.vector_store %arg6[%c48_32, %c0_33], %75 {strides = array<i32>} : memref<480x128xbf16, #tpu.memory_space<vmem>>, vector<384x128xbf16>,
    %c0_34 = arith.constant 0 : index
    %c0_35 = arith.constant 0 : index
    %77 = vector.load %arg6[%c0_34, %c0_35] : memref<480x128xbf16, #tpu.memory_space<vmem>>, vector<480x128xbf16>
    %c2 = arith.constant 2 : index
    %c0_36 = arith.constant 0 : index
    %c0_37 = arith.constant 0 : index
    %c0_38 = arith.constant 0 : index
    %78 = vector.load %arg2[%c2, %c0_36, %c0_37, %c0_38] : memref<4x3x128x128xbf16, #tpu.memory_space<vmem>>, vector<1x3x128x128xbf16>
    %79 = vector.shape_cast %78 : vector<1x3x128x128xbf16> to vector<3x128x128xbf16>
    %c2_39 = arith.constant 2 : index
    %c0_40 = arith.constant 0 : index
    %c0_41 = arith.constant 0 : index
    %80 = vector.load %arg3[%c2_39, %c0_40, %c0_41] : memref<4x2x128xf32, #tpu.memory_space<vmem>>, vector<1x2x128xf32>
    %81 = vector.shape_cast %80 : vector<1x2x128xf32> to vector<2x128xf32>
    %82 = vector.extract_strided_slice %77 {offsets = [0, 0], sizes = [384, 128], strides = [1, 1]} : vector<480x128xbf16> to vector<384x128xbf16>
    %83 = vector.extract_strided_slice %79 {offsets = [0, 0, 0], sizes = [1, 128, 128], strides = [1, 1, 1]} : vector<3x128x128xbf16> to vector<1x128x128xbf16>
    %84 = vector.shape_cast %83 : vector<1x128x128xbf16> to vector<128x128xbf16>
    %cst_42 = arith.constant dense<0.000000e+00> : vector<384x128xf32>
    %85 = tpu.matmul %82, %84, %cst_42 {dimension_numbers = #tpu.dot_dimension_numbers<[1], [0], [0], [1], [0, 0, 1, 1], [], []>} : vector<384x128xbf16>, vector<128x128xbf16>, vector<384x128xf32> -> vector<384x128xf32>
    %86 = vector.extract_strided_slice %77 {offsets = [48, 0], sizes = [384, 128], strides = [1, 1]} : vector<480x128xbf16> to vector<384x128xbf16>
    %87 = vector.extract_strided_slice %79 {offsets = [1, 0, 0], sizes = [1, 128, 128], strides = [1, 1, 1]} : vector<3x128x128xbf16> to vector<1x128x128xbf16>
    %88 = vector.shape_cast %87 : vector<1x128x128xbf16> to vector<128x128xbf16>
    %cst_43 = arith.constant dense<0.000000e+00> : vector<384x128xf32>
    %89 = tpu.matmul %86, %88, %cst_43 {dimension_numbers = #tpu.dot_dimension_numbers<[1], [0], [0], [1], [0, 0, 1, 1], [], []>} : vector<384x128xbf16>, vector<128x128xbf16>, vector<384x128xf32> -> vector<384x128xf32>
    %90 = arith.addf %85, %89 : vector<384x128xf32>
    %91 = vector.extract_strided_slice %77 {offsets = [96, 0], sizes = [384, 128], strides = [1, 1]} : vector<480x128xbf16> to vector<384x128xbf16>
    %92 = vector.extract_strided_slice %79 {offsets = [2, 0, 0], sizes = [1, 128, 128], strides = [1, 1, 1]} : vector<3x128x128xbf16> to vector<1x128x128xbf16>
    %93 = vector.shape_cast %92 : vector<1x128x128xbf16> to vector<128x128xbf16>
    %cst_44 = arith.constant dense<0.000000e+00> : vector<384x128xf32>
    %94 = tpu.matmul %91, %93, %cst_44 {dimension_numbers = #tpu.dot_dimension_numbers<[1], [0], [0], [1], [0, 0, 1, 1], [], []>} : vector<384x128xbf16>, vector<128x128xbf16>, vector<384x128xf32> -> vector<384x128xf32>
    %95 = arith.addf %90, %94 : vector<384x128xf32>
    %96 = vector.extract_strided_slice %81 {offsets = [0, 0], sizes = [1, 128], strides = [1, 1]} : vector<2x128xf32> to vector<1x128xf32>
    %97 = vector.broadcast %96 : vector<1x128xf32> to vector<384x128xf32>
    %98 = arith.mulf %95, %97 : vector<384x128xf32>
    %99 = vector.extract_strided_slice %81 {offsets = [1, 0], sizes = [1, 128], strides = [1, 1]} : vector<2x128xf32> to vector<1x128xf32>
    %100 = vector.broadcast %99 : vector<1x128xf32> to vector<384x128xf32>
    %101 = arith.addf %98, %100 : vector<384x128xf32>
    %cst_45 = arith.constant 0.000000e+00 : f32
    %102 = vector.broadcast %cst_45 : f32 to vector<384x128xf32>
    %103 = arith.maximumf %101, %102 : vector<384x128xf32>
    %cst_46 = arith.constant 0.000000e+00 : f32
    %104 = vector.shape_cast %7 : vector<384x1xi1> to vector<384x1xi1>
    %105 = vector.broadcast %104 : vector<384x1xi1> to vector<384x128xi1>
    %106 = vector.broadcast %cst_46 : f32 to vector<384x128xf32>
    %107 = arith.select %105, %103, %106 : vector<384x128xi1>, vector<384x128xf32>
    %108 = arith.truncf %107 : vector<384x128xf32> to vector<384x128xbf16>
    %c48_47 = arith.constant 48 : index
    %c0_48 = arith.constant 0 : index
    %109 = vector.load %arg5[%c48_47, %c0_48] : memref<480x128xbf16, #tpu.memory_space<vmem>>, vector<384x128xbf16>
    tpu.vector_store %arg5[%c48_47, %c0_48], %108 {strides = array<i32>} : memref<480x128xbf16, #tpu.memory_space<vmem>>, vector<384x128xbf16>,
    %c0_49 = arith.constant 0 : index
    %c0_50 = arith.constant 0 : index
    %110 = vector.load %arg5[%c0_49, %c0_50] : memref<480x128xbf16, #tpu.memory_space<vmem>>, vector<480x128xbf16>
    %c3 = arith.constant 3 : index
    %c0_51 = arith.constant 0 : index
    %c0_52 = arith.constant 0 : index
    %c0_53 = arith.constant 0 : index
    %111 = vector.load %arg2[%c3, %c0_51, %c0_52, %c0_53] : memref<4x3x128x128xbf16, #tpu.memory_space<vmem>>, vector<1x3x128x128xbf16>
    %112 = vector.shape_cast %111 : vector<1x3x128x128xbf16> to vector<3x128x128xbf16>
    %c3_54 = arith.constant 3 : index
    %c0_55 = arith.constant 0 : index
    %c0_56 = arith.constant 0 : index
    %113 = vector.load %arg3[%c3_54, %c0_55, %c0_56] : memref<4x2x128xf32, #tpu.memory_space<vmem>>, vector<1x2x128xf32>
    %114 = vector.shape_cast %113 : vector<1x2x128xf32> to vector<2x128xf32>
    %115 = vector.extract_strided_slice %110 {offsets = [46, 0], sizes = [384, 128], strides = [1, 1]} : vector<480x128xbf16> to vector<384x128xbf16>
    %116 = vector.extract_strided_slice %112 {offsets = [0, 0, 0], sizes = [1, 128, 128], strides = [1, 1, 1]} : vector<3x128x128xbf16> to vector<1x128x128xbf16>
    %117 = vector.shape_cast %116 : vector<1x128x128xbf16> to vector<128x128xbf16>
    %cst_57 = arith.constant dense<0.000000e+00> : vector<384x128xf32>
    %118 = tpu.matmul %115, %117, %cst_57 {dimension_numbers = #tpu.dot_dimension_numbers<[1], [0], [0], [1], [0, 0, 1, 1], [], []>} : vector<384x128xbf16>, vector<128x128xbf16>, vector<384x128xf32> -> vector<384x128xf32>
    %119 = vector.extract_strided_slice %110 {offsets = [48, 0], sizes = [384, 128], strides = [1, 1]} : vector<480x128xbf16> to vector<384x128xbf16>
    %120 = vector.extract_strided_slice %112 {offsets = [1, 0, 0], sizes = [1, 128, 128], strides = [1, 1, 1]} : vector<3x128x128xbf16> to vector<1x128x128xbf16>
    %121 = vector.shape_cast %120 : vector<1x128x128xbf16> to vector<128x128xbf16>
    %cst_58 = arith.constant dense<0.000000e+00> : vector<384x128xf32>
    %122 = tpu.matmul %119, %121, %cst_58 {dimension_numbers = #tpu.dot_dimension_numbers<[1], [0], [0], [1], [0, 0, 1, 1], [], []>} : vector<384x128xbf16>, vector<128x128xbf16>, vector<384x128xf32> -> vector<384x128xf32>
    %123 = arith.addf %118, %122 : vector<384x128xf32>
    %124 = vector.extract_strided_slice %110 {offsets = [50, 0], sizes = [384, 128], strides = [1, 1]} : vector<480x128xbf16> to vector<384x128xbf16>
    %125 = vector.extract_strided_slice %112 {offsets = [2, 0, 0], sizes = [1, 128, 128], strides = [1, 1, 1]} : vector<3x128x128xbf16> to vector<1x128x128xbf16>
    %126 = vector.shape_cast %125 : vector<1x128x128xbf16> to vector<128x128xbf16>
    %cst_59 = arith.constant dense<0.000000e+00> : vector<384x128xf32>
    %127 = tpu.matmul %124, %126, %cst_59 {dimension_numbers = #tpu.dot_dimension_numbers<[1], [0], [0], [1], [0, 0, 1, 1], [], []>} : vector<384x128xbf16>, vector<128x128xbf16>, vector<384x128xf32> -> vector<384x128xf32>
    %128 = arith.addf %123, %127 : vector<384x128xf32>
    %129 = vector.extract_strided_slice %114 {offsets = [0, 0], sizes = [1, 128], strides = [1, 1]} : vector<2x128xf32> to vector<1x128xf32>
    %130 = vector.broadcast %129 : vector<1x128xf32> to vector<384x128xf32>
    %131 = arith.mulf %128, %130 : vector<384x128xf32>
    %132 = vector.extract_strided_slice %114 {offsets = [1, 0], sizes = [1, 128], strides = [1, 1]} : vector<2x128xf32> to vector<1x128xf32>
    %133 = vector.broadcast %132 : vector<1x128xf32> to vector<384x128xf32>
    %134 = arith.addf %131, %133 : vector<384x128xf32>
    %cst_60 = arith.constant 0.000000e+00 : f32
    %135 = vector.shape_cast %7 : vector<384x1xi1> to vector<384x1xi1>
    %136 = vector.broadcast %135 : vector<384x1xi1> to vector<384x128xi1>
    %137 = vector.broadcast %cst_60 : f32 to vector<384x128xf32>
    %138 = arith.select %136, %134, %137 : vector<384x128xi1>, vector<384x128xf32>
    %139 = arith.truncf %138 : vector<384x128xf32> to vector<384x128xbf16>
    %140 = vector.shape_cast %139 : vector<384x128xbf16> to vector<16x24x128xbf16>
    %c0_61 = arith.constant 0 : index
    %c2_62 = arith.constant 2 : index
    %c0_63 = arith.constant 0 : index
    %c0_64 = arith.constant 0 : index
    %141 = vector.load %arg4[%c0_61, %c2_62, %c0_63, %c0_64] : memref<1x20x24x128xbf16, #tpu.memory_space<vmem>>, vector<1x16x24x128xbf16>
    %142 = vector.shape_cast %141 : vector<1x16x24x128xbf16> to vector<16x24x128xbf16>
    %143 = vector.shape_cast %140 : vector<16x24x128xbf16> to vector<1x16x24x128xbf16>
    tpu.vector_store %arg4[%c0_61, %c2_62, %c0_63, %c0_64], %143 {strides = array<i32>} : memref<1x20x24x128xbf16, #tpu.memory_space<vmem>>, vector<1x16x24x128xbf16>,
    return
  }
  func.func @transform_0(%arg0: i32) -> (i32, i32, i32, i32) {
    %c0_i32 = arith.constant 0 : i32
    %c0_i32_0 = arith.constant 0 : i32
    %c0_i32_1 = arith.constant 0 : i32
    %c0_i32_2 = arith.constant 0 : i32
    return %arg0, %c0_i32, %c0_i32_0, %c0_i32_1 : i32, i32, i32, i32
  }
  func.func @transform_1(%arg0: i32) -> (i32, i32, i32, i32) {
    %c0_i32 = arith.constant 0 : i32
    %c0_i32_0 = arith.constant 0 : i32
    %c0_i32_1 = arith.constant 0 : i32
    %c0_i32_2 = arith.constant 0 : i32
    %c0_i32_3 = arith.constant 0 : i32
    return %c0_i32, %c0_i32_0, %c0_i32_1, %c0_i32_2 : i32, i32, i32, i32
  }
  func.func @transform_2(%arg0: i32) -> (i32, i32, i32) {
    %c0_i32 = arith.constant 0 : i32
    %c0_i32_0 = arith.constant 0 : i32
    %c0_i32_1 = arith.constant 0 : i32
    %c0_i32_2 = arith.constant 0 : i32
    return %c0_i32, %c0_i32_0, %c0_i32_1 : i32, i32, i32
  }
  func.func @transform_3(%arg0: i32) -> (i32, i32, i32, i32) {
    %c0_i32 = arith.constant 0 : i32
    %c0_i32_0 = arith.constant 0 : i32
    %c0_i32_1 = arith.constant 0 : i32
    %c0_i32_2 = arith.constant 0 : i32
    return %arg0, %c0_i32, %c0_i32_0, %c0_i32_1 : i32, i32, i32, i32
  }
}

</mosaic_0001>

<bundles_post_ra>
// kernel: _lambda_.1
= control target key start
LH: loop header
LB: loop body
LE: loop exit
PB: predicated region body
PF: predicated region fallthrough
CT: control target
= control target key end

     0   :  { %s9673_s12 = smov 0   ;;  %s12983_s0 = inlined_call_operand.vmem [shape: bf16[2,20,24,128], index: 0, kind: input, shape index: {}]   ;;  %s12984_s1 = inlined_call_operand.vmem [shape: bf16[4,3,128,128], index: 1, kind: input, shape index: {}]   ;;  %s12985_s2 = inlined_call_operand.vmem [shape: f32[4,2,128], index: 2, kind: input, shape index: {}]   ;;  %s12986_s3 = inlined_call_operand.vmem [shape: bf16[2,20,24,128], index: 3, kind: output, shape index: {}]  }
   0x1 LB: > { %s7181_s13 = sadd.s32 4294967295, %s9650_s12   ;;  %p7185_p0 = scmp.ge.s32.totalorder %s9650_s12, 1  ;;  %s9650_s12 = sphi %s9673_s12, %s13_s12  }
   0x2   : > { %p137_p1 = scmp.lt.s32.totalorder %s9650_s12, 3 }
   0x4   : > { %p138_p2 = pnand %p7185_p0, %p137_p1 }
   0x6   : > { %141 = sbr.rel (%p138_p2) target bundleno = 1558 (0x616), region = 32 }
   0xb   : > { %v7914_v0 = vld [vmem:[%s12984_s1 + $0x78] sm:$0xff]  ;;  %v7913_v3 = vld [vmem:[%s12984_s1 + $0x70] sm:$0xff]  ;;  %v7912_v6 = vld [vmem:[%s12984_s1 + $0x68] sm:$0xff]  ;;  %p161_p3 = scmp.lt.s32.totalorder %s7181_s13, 1  ;;  %v13019_v50 = vmov 0   ;;  %v172_v52 = vlaneseq }
   0xc   : > { %v7906_v1 = vld [vmem:[%s12984_s1 + $0x38] sm:$0xff]  ;;  %2172 = vmatpush.bf16.msra.mxu0 %v7914_v0  ;;  %v7905_v4 = vld [vmem:[%s12984_s1 + $0x30] sm:$0xff]  ;;  %v7904_v7 = vld [vmem:[%s12984_s1 + $0x28] sm:$0xff]  ;;  %1762 = vst [vmem:[#allocation2 + $0x14] sm:$0xf] %v13019_v50 }
   0xd   : > { %v7922_v2 = vld [vmem:[%s12984_s1 + $0xb8] sm:$0xff]  ;;  %2403 = vmatpush.bf16.msra.mxu1 %v7906_v1  ;;  %v7921_v5 = vld [vmem:[%s12984_s1 + $0xb0] sm:$0xff]  ;;  %v7920_v8 = vld [vmem:[%s12984_s1 + $0xa8] sm:$0xff]  ;;  %s13753_s13 = smov (!%p161_p3, %s7181_s13), 1  ;;  %1763 = vst [vmem:[#allocation2 + $0x18] sm:$0xf] %v13019_v50 }
   0xe   : > { %2592 = vmatpush.bf16.msra.mxu2 %v7922_v2  ;;  %v7911_v9 = vld [vmem:[%s12984_s1 + $0x60] sm:$0xff]  ;;  %v7910_v12 = vld [vmem:[%s12984_s1 + $0x58] sm:$0xff]  ;;  %v7909_v15 = vld [vmem:[%s12984_s1 + $0x50] sm:$0xff]  ;;  %s9466_s29 = smul.u32 240, %s13753_s13  ;;  %1764 = vst [vmem:[#allocation2 + $0x1c] sm:$0xf] %v13019_v50 }
   0xf   : > { %v7903_v10 = vld [vmem:[%s12984_s1 + $0x20] sm:$0xff]  ;;  %v7902_v13 = vld [vmem:[%s12984_s1 + $0x18] sm:$0xff]  ;;  %v7901_v16 = vld [vmem:[%s12984_s1 + $0x10] sm:$0xff]  ;;  %1765 = vst [vmem:[#allocation2 + $0x20] sm:$0xf] %v13019_v50  ;;  %v9841_v55 = vshrl.u32 %v172_v52, 7 }
  0x10   : > { %2173 = vmatpush.bf16.msra.mxu0 %v7913_v3  ;;  %v7919_v11 = vld [vmem:[%s12984_s1 + $0xa0] sm:$0xff]  ;;  %v7918_v14 = vld [vmem:[%s12984_s1 + $0x98] sm:$0xff]  ;;  %v7917_v17 = vld [vmem:[%s12984_s1 + $0x90] sm:$0xff]  ;;  %s9762_s11 = scalar_lea.vmem %s12983_s0, %s9466_s29  ;;  %1766 = vst [vmem:[#allocation2 + $0x24] sm:$0xf] %v13019_v50  ;;  %s12467_s28 = scalar_lea.vmem %s12986_s3, %s9466_s29 }
  0x11   : > { %2404 = vmatpush.bf16.msra.mxu1 %v7905_v4  ;;  %v7908_v18 = vld [vmem:[%s12984_s1 + $0x48] sm:$0xff]  ;;  %v7907_v21 = vld [vmem:[%s12984_s1 + $0x40] sm:$0xff]  ;;  %v7930_v24 = vld [vmem:[%s12984_s1 + $0xf8] sm:$0xff]  ;;  %1767 = vst [vmem:[#allocation2 + $0x28] sm:$0xf] %v13019_v50  ;;  %v9848_v56 = vadd.s32 8, %v9841_v55 }
  0x12   : > { %2593 = vmatpush.bf16.msra.mxu2 %v7921_v5  ;;  %v7900_v19 = vld [vmem:[%s12984_s1 + $0x8] sm:$0xff]  ;;  %v7899_v22 = vld [vmem:[%s12984_s1] sm:$0xff]  ;;  %v7946_v25 = vld [vmem:[%s12984_s1 + $0x178] sm:$0xff]  ;;  %1768 = vst [vmem:[#allocation2 + $0x2c] sm:$0xf] %v13019_v50  ;;  %v224_v58 = vand.u32 65535, %v9841_v55 }
  0x13   : > { %v7916_v20 = vld [vmem:[%s12984_s1 + $0x88] sm:$0xff]  ;;  %v7915_v23 = vld [vmem:[%s12984_s1 + $0x80] sm:$0xff]  ;;  %v8793_v27 = vld [vmem:[%s9762_s11 + $0x18] sm:$0xff]   ;;  %1769 = vst [vmem:[#allocation2 + $0x30] sm:$0xf] %v13019_v50  ;;  %v253_v57 = vand.u32 65535, %v9848_v56 }
  0x14   : > { %2174 = vmatpush.bf16.msra.mxu0 %v7912_v6  ;;  %v7897_v26 = vld [vmem:[%s9762_s11 + $0xc] sm:$0xff]  ;;  %v9328_v28 = vld [vmem:[%s9762_s11 + $0x24] sm:$0xff]   ;;  %v9324_v29 = vld [vmem:[%s9762_s11 + $0x14] sm:$0xff]   ;;  %1770 = vst [vmem:[#allocation2 + $0x34] sm:$0xf] %v13019_v50  ;;  %v254_v59 = vshrl.u32 %v9848_v56, 16 }
  0x15   : > { %2405 = vmatpush.bf16.msra.mxu1 %v7904_v7  ;;  %v8794_v30 = vld [vmem:[%s9762_s11 + $0x20] sm:$0xff]   ;;  %v9330_v31 = vld [vmem:[%s9762_s11 + $0x2c] sm:$0xff]   ;;  %v9332_v35 = vld [vmem:[%s9762_s11 + $0x34] sm:$0xff]   ;;  %1771 = vst [vmem:[#allocation2 + $0x38] sm:$0xf] %v13019_v50  ;;  %v257_v60 = vmul.u32 43690, %v253_v57 }
  0x16   : > { %2594 = vmatpush.bf16.msra.mxu2 %v7920_v8  ;;  %v7929_v32 = vld [vmem:[%s12984_s1 + $0xf0] sm:$0xff]  ;;  %v9326_v33 = vld [vmem:[%s9762_s11 + $0x1c] sm:$0xff]   ;;  %v8795_v34 = vld [vmem:[%s9762_s11 + $0x28] sm:$0xff]   ;;  %1772 = vst [vmem:[#allocation2 + $0x3c] sm:$0xf] %v13019_v50  ;;  %v225_v61 = vshrl.u32 %v9841_v55, 16 }
  0x17   : > { %v7945_v36 = vld [vmem:[%s12984_s1 + $0x170] sm:$0xff]  ;;  %v9334_v38 = vld [vmem:[%s9762_s11 + $0x3c] sm:$0xff]   ;;  %v9336_v40 = vld [vmem:[%s9762_s11 + $0x44] sm:$0xff]   ;;  %1773 = vst [vmem:[#allocation2 + $0x40] sm:$0xf] %v13019_v50  ;;  %v228_v62 = vmul.u32 43690, %v224_v58 }
  0x18   : > { %2175 = vmatpush.bf16.msra.mxu0 %v7911_v9  ;;  %v8796_v37 = vld [vmem:[%s9762_s11 + $0x30] sm:$0xff]   ;;  %v8797_v39 = vld [vmem:[%s9762_s11 + $0x38] sm:$0xff]   ;;  %v7928_v41 = vld [vmem:[%s12984_s1 + $0xe8] sm:$0xff]  ;;  %1774 = vst [vmem:[#allocation2 + $0x44] sm:$0xf] %v13019_v50  ;;  %v256_v1 = vmul.u32 43691, %v253_v57 }
  0x19   : > { %2406 = vmatpush.bf16.msra.mxu1 %v7903_v10  ;;  %v8798_v42 = vld [vmem:[%s9762_s11 + $0x40] sm:$0xff]   ;;  %v9797_v43 = vld [vmem:[%s9762_s11 + $0x4c] sm:$0xff]   ;;  %v7938_v45 = vld [vmem:[%s12984_s1 + $0x138] sm:$0xff]  ;;  %1775 = vst [vmem:[#allocation2 + $0x48] sm:$0xf] %v13019_v50  ;;  %v258_v2 = vmul.u32 43691, %v254_v59 }
  0x1a   : > { %2595 = vmatpush.bf16.msra.mxu2 %v7919_v11  ;;  %v7944_v44 = vld [vmem:[%s12984_s1 + $0x168] sm:$0xff]  ;;  %3400 = vmatpush.bf16.msra.mxu3 %v7938_v45  ;;  %v7937_v46 = vld [vmem:[%s12984_s1 + $0x130] sm:$0xff]  ;;  %v7935_v51 = vld [vmem:[%s12984_s1 + $0x120] sm:$0xff]  ;;  %1776 = vst [vmem:[#allocation2 + $0x4c] sm:$0xf] %v13019_v50  ;;  %v260_v3 = vshll.u32 %v257_v60, 16 }
  0x1b   : > { %v8799_v47 = vld [vmem:[%s9762_s11 + $0x48] sm:$0xff]   ;;  %v9811_v48 = vld [vmem:[%s9762_s11 + $0x54] sm:$0xff]   ;;  %v9836_v54 = vld [vmem:[%s9762_s11 + $0x5c] sm:$0xff]   ;;  %1777 = vst [vmem:[#allocation2 + $0x50] sm:$0xf] %v13019_v50  ;;  %v227_v4 = vmul.u32 43691, %v224_v58 }
  0x1c   : > { %2176 = vmatpush.bf16.msra.mxu0 %v7910_v12  ;;  %v7936_v49 = vld [vmem:[%s12984_s1 + $0x128] sm:$0xff]  ;;  %v8800_v53 = vld [vmem:[%s9762_s11 + $0x50] sm:$0xff]   ;;  %1778 = vst [vmem:[#allocation2 + $0x54] sm:$0xf] %v13019_v50  ;;  %v8801_v63 = vld [vmem:[%s9762_s11 + $0x58] sm:$0xff]   ;;  %v229_v5 = vmul.u32 43691, %v225_v61  ;;  %vm264_vm0 = vc.u32 %v256_v1, %v260_v3  ;;  %v266_v8 = vadd.s32 %v260_v3, %v256_v1 }
  0x1d   : > { %2407 = vmatpush.bf16.msra.mxu1 %v7902_v13  ;;  %1779 = vst [vmem:[#allocation2 + $0x58] sm:$0xf] %v13019_v50  ;;  %v9866_v0 = vld [vmem:[%s9762_s11 + $0x64] sm:$0xff]   ;;  %v231_v6 = vshll.u32 %v228_v62, 16  ;;  %v262_v7 = vshll.u32 %v258_v2, 16  ;;  %v259_v11 = vmul.u32 43690, %v254_v59 }
  0x1e   : > { %2596 = vmatpush.bf16.msra.mxu2 %v7918_v14  ;;  %3401 = vmatpush.bf16.msra.mxu3 %v7937_v46  ;;  %1780 = vst [vmem:[#allocation2 + $0x5c] sm:$0xf] %v13019_v50  ;;  %v233_v9 = vshll.u32 %v229_v5, 16  ;;  %v265_v12 = vsel %vm264_vm0, 1, %v13019_v50  ;;  %v230_v13 = vmul.u32 43690, %v225_v61 }
  0x1f   : > { %1781 = vst [vmem:[#allocation2 + $0x60] sm:$0xf] %v13019_v50  ;;  %vm235_vm1 = vc.u32 %v227_v4, %v231_v6  ;;  %v237_v10 = vadd.s32 %v231_v6, %v227_v4  ;;  %vm268_vm2 = vc.u32 %v266_v8, %v262_v7 }
  0x20   : > { %2177 = vmatpush.bf16.msra.mxu0 %v7909_v15  ;;  %1782 = vst [vmem:[#allocation2 + $0x64] sm:$0xf] %v13019_v50  ;;  %v236_v14 = vsel %vm235_vm1, 1, %v13019_v50  ;;  %v267_v15 = vadd.s32 %v265_v12, %v259_v11  ;;  %v7932_v11 = vld [vmem:[%s12984_s1 + $0x108] sm:$0xff] }
  0x21   : > { %2408 = vmatpush.bf16.msra.mxu1 %v7901_v16  ;;  %1783 = vst [vmem:[#allocation2 + $0x68] sm:$0xf] %v13019_v50  ;;  %vm239_vm3 = vc.u32 %v237_v10, %v233_v9  ;;  %v269_v16 = vsel %vm268_vm2, 1, %v13019_v50 }
  0x22   : > { %2597 = vmatpush.bf16.msra.mxu2 %v7917_v17  ;;  %3402 = vmatpush.bf16.msra.mxu3 %v7936_v49  ;;  %1784 = vst [vmem:[#allocation2 + $0x6c] sm:$0xf] %v13019_v50  ;;  %v238_v17 = vadd.s32 %v236_v14, %v230_v13 }
  0x23   : > { %1785 = vst [vmem:[#allocation2 + $0x70] sm:$0xf] %v13019_v50 }
  0x24   : > { %2178 = vmatpush.bf16.msra.mxu0 %v7908_v18  ;;  %1786 = vst [vmem:[#allocation2 + $0x74] sm:$0xf] %v13019_v50  ;;  %v240_v18 = vsel %vm239_vm3, 1, %v13019_v50 }
  0x25   : > { %2409 = vmatpush.bf16.msra.mxu1 %v7900_v19  ;;  %1787 = vst [vmem:[#allocation2 + $0x78] sm:$0xf] %v13019_v50  ;;  %v261_v19 = vshrl.u32 %v257_v60, 16  ;;  %v7933_v60 = vld [vmem:[%s12984_s1 + $0x110] sm:$0xff] }
  0x26   : > { %2598 = vmatpush.bf16.msra.mxu2 %v7916_v20  ;;  %3403 = vmatpush.bf16.msra.mxu3 %v7935_v51  ;;  %1788 = vst [vmem:[#allocation2 + $0x7c] sm:$0xf] %v13019_v50  ;;  %v271_v20 = vadd.s32 %v269_v16, %v267_v15 }
  0x27   : > { %1789 = vst [vmem:[#allocation2 + $0x80] sm:$0xf] %v13019_v50 }
  0x28   : > { %2179 = vmatpush.bf16.msra.mxu0 %v7907_v21  ;;  %1790 = vst [vmem:[#allocation2 + $0x84] sm:$0xf] %v13019_v50  ;;  %v232_v21 = vshrl.u32 %v228_v62, 16 }
  0x29   : > { %2410 = vmatpush.bf16.msra.mxu1 %v7899_v22  ;;  %1791 = vst [vmem:[#allocation2 + $0x88] sm:$0xf] %v13019_v50  ;;  %v242_v22 = vadd.s32 %v240_v18, %v238_v17  ;;  %v9970_v18 = vld [vmem:[%s9762_s11 + $0x6c] sm:$0xff]  }
  0x2a   : > { %2599 = vmatpush.bf16.msra.mxu2 %v7915_v23  ;;  %1792 = vst [vmem:[#allocation2 + $0x8c] sm:$0xf] %v13019_v50 }
  0x2b   : > { %2180 = vmatmul.bf16.vlgmr.msra.gmra.mxu0 %v8793_v27  ;;  %1793 = vst [vmem:[#allocation2 + $0x90] sm:$0xf] %v13019_v50  ;;  %v234_v27 = vshrl.u32 %v229_v5, 16  ;;  %v13217_v5 = vmov 0 }
  0x2c   : > { %3853 = vmatpush.bf16.msrb.mxu0 %v7930_v24  ;;  %2411 = vmatmul.bf16.vlgmr.msra.gmra.mxu1 %v7897_v26  ;;  %1794 = vst [vmem:[#allocation2 + $0x94] sm:$0xf] %v13019_v50  ;;  %v272_v26 = vadd.s32 %v271_v20, %v261_v19 }
  0x2d   : > { %4254 = vmatpush.bf16.msrb.mxu1 %v7946_v25  ;;  %2600 = vmatmul.bf16.vlgmr.msra.gmra.mxu2 %v9328_v28  ;;  %1795 = vst [vmem:[#allocation2 + $0x98] sm:$0xf] %v13019_v50  ;;  %v263_v25 = vshrl.u32 %v258_v2, 16  ;;  %v9937_v2 = vadd.s32 24, %v9841_v55 }
  0x2e   : > { %1796 = vst [vmem:[#allocation2 + $0x9c] sm:$0xf] %v13019_v50 }
  0x2f   : > { %1797 = vst [vmem:[#allocation2 + $0xa0] sm:$0xf] %v13019_v50  ;;  %v311_v7 = vand.u32 65535, %v9937_v2  ;;  %v312_v12 = vshrl.u32 %v9937_v2, 16 }
  0x30   : > { %3854 = vmatpush.bf16.msrb.mxu0 %v7929_v32  ;;  %1798 = vst [vmem:[#allocation2 + $0xa4] sm:$0xf] %v13019_v50 }
  0x31   : > { %4255 = vmatpush.bf16.msrb.mxu1 %v7945_v36  ;;  %1799 = vst [vmem:[#allocation2 + $0xa8] sm:$0xf] %v13019_v50  ;;  %v315_v16 = vmul.u32 43690, %v311_v7 }
  0x32   : > { %1800 = vst [vmem:[#allocation2 + $0xac] sm:$0xf] %v13019_v50 }
  0x33   : > { %1801 = vst [vmem:[#allocation2 + $0xb0] sm:$0xf] %v13019_v50 }
  0x34   : > { %3855 = vmatpush.bf16.msrb.mxu0 %v7928_v41  ;;  %1802 = vst [vmem:[#allocation2 + $0xb4] sm:$0xf] %v13019_v50 }
  0x35   : > { %4256 = vmatpush.bf16.msrb.mxu1 %v7944_v44  ;;  %1803 = vst [vmem:[#allocation2 + $0xb8] sm:$0xf] %v13019_v50 }
  0x36   : > { %1804 = vst [vmem:[#allocation2 + $0xbc] sm:$0xf] %v13019_v50 }
  0x37   : > { %1805 = vst [vmem:[#allocation2 + $0xc0] sm:$0xf] %v13019_v50 }
  0x38   : > { %1806 = vst [vmem:[#allocation2 + $0xc4] sm:$0xf] %v13019_v50 }
  0x39   : > { %1807 = vst [vmem:[#allocation2 + $0xc8] sm:$0xf] %v13019_v50 }
  0x3a   : > { %1808 = vst [vmem:[#allocation2 + $0xcc] sm:$0xf] %v13019_v50 }
  0x3b   : > { %2185 = vmatmul.bf16.gmra.mxu0 %v8794_v30  ;;  %1809 = vst [vmem:[#allocation2 + $0xd0] sm:$0xf] %v13019_v50  ;;  %v273_v30 = vadd.s32 %v272_v26, %v263_v25 }
  0x3c   : > { %2416 = vmatmul.bf16.gmra.mxu1 %v9324_v29  ;;  %1810 = vst [vmem:[#allocation2 + $0xd4] sm:$0xf] %v13019_v50 }
  0x3d   : > { %2605 = vmatmul.bf16.gmra.mxu2 %v9330_v31  ;;  %1811 = vst [vmem:[#allocation2 + $0xd8] sm:$0xf] %v13019_v50  ;;  %v274_v32 = vshrl.u32 %v273_v30, 4 }
  0x3e   : > { %1817 = vst [vmem:[#allocation3] sm:$0xf] %v13019_v50 }
  0x3f   : > { %1818 = vst [vmem:[#allocation3 + $0x4] sm:$0xf] %v13019_v50  ;;  %v275_v36 = vmul.u32 24, %v274_v32 }
  0x40   : > { %1819 = vst [vmem:[#allocation3 + $0x8] sm:$0xf] %v13019_v50 }
  0x41   : > { %1820 = vst [vmem:[#allocation3 + $0xc] sm:$0xf] %v13019_v50 }
  0x42   : > { %1821 = vst [vmem:[#allocation3 + $0x10] sm:$0xf] %v13019_v50 }
  0x43   : > { %1822 = vst [vmem:[#allocation3 + $0x14] sm:$0xf] %v13019_v50 }
  0x44   : > { %1823 = vst [vmem:[#allocation3 + $0x18] sm:$0xf] %v13019_v50 }
  0x45   : > { %1824 = vst [vmem:[#allocation3 + $0x1c] sm:$0xf] %v13019_v50 }
  0x46   : > { %1825 = vst [vmem:[#allocation3 + $0x20] sm:$0xf] %v13019_v50 }
  0x47   : > { %1826 = vst [vmem:[#allocation3 + $0x24] sm:$0xf] %v13019_v50 }
  0x48   : > { %1827 = vst [vmem:[#allocation3 + $0x28] sm:$0xf] %v13019_v50 }
  0x49   : > { %1828 = vst [vmem:[#allocation3 + $0x2c] sm:$0xf] %v13019_v50 }
  0x4a   : > { %1829 = vst [vmem:[#allocation3 + $0x30] sm:$0xf] %v13019_v50 }
  0x4b   : > { %2190 = vmatmul.bf16.gmra.mxu0 %v8795_v34  ;;  %1830 = vst [vmem:[#allocation3 + $0x34] sm:$0xf] %v13019_v50 }
  0x4c   : > { %2421 = vmatmul.bf16.gmra.mxu1 %v9326_v33  ;;  %1831 = vst [vmem:[#allocation3 + $0x38] sm:$0xf] %v13019_v50 }
  0x4d   : > { %2610 = vmatmul.bf16.gmra.mxu2 %v9332_v35  ;;  %1832 = vst [vmem:[#allocation3 + $0x3c] sm:$0xf] %v13019_v50 }
  0x4e   : > { %1833 = vst [vmem:[#allocation3 + $0x40] sm:$0xf] %v13019_v50 }
  0x4f   : > { %1834 = vst [vmem:[#allocation3 + $0x44] sm:$0xf] %v13019_v50 }
  0x50   : > { %1835 = vst [vmem:[#allocation3 + $0x48] sm:$0xf] %v13019_v50 }
  0x51   : > { %1836 = vst [vmem:[#allocation3 + $0x4c] sm:$0xf] %v13019_v50 }
  0x52   : > { %1837 = vst [vmem:[#allocation3 + $0x50] sm:$0xf] %v13019_v50 }
  0x53   : > { %1838 = vst [vmem:[#allocation3 + $0x54] sm:$0xf] %v13019_v50 }
  0x54   : > { %1839 = vst [vmem:[#allocation3 + $0x58] sm:$0xf] %v13019_v50 }
  0x55   : > { %1840 = vst [vmem:[#allocation3 + $0x5c] sm:$0xf] %v13019_v50 }
  0x56   : > { %1841 = vst [vmem:[#allocation3 + $0x60] sm:$0xf] %v13019_v50 }
  0x57   : > { %1842 = vst [vmem:[#allocation3 + $0x64] sm:$0xf] %v13019_v50 }
  0x58   : > { %1843 = vst [vmem:[#allocation3 + $0x68] sm:$0xf] %v13019_v50 }
  0x59   : > { %1844 = vst [vmem:[#allocation3 + $0x6c] sm:$0xf] %v13019_v50 }
  0x5a   : > { %1845 = vst [vmem:[#allocation3 + $0x70] sm:$0xf] %v13019_v50 }
  0x5b   : > { %2195 = vmatmul.bf16.gmra.mxu0 %v8796_v37  ;;  %1846 = vst [vmem:[#allocation3 + $0x74] sm:$0xf] %v13019_v50 }
  0x5c   : > { %2426 = vmatmul.bf16.gmra.mxu1 %v9328_v28  ;;  %v243_v28 = vadd.s32 %v242_v22, %v232_v21  ;;  %v314_v21 = vmul.u32 43691, %v311_v7  ;;  %v8802_v22 = vld [vmem:[%s9762_s11 + $0x60] sm:$0xff]   ;;  %1847 = vst [vmem:[#allocation3 + $0x78] sm:$0xf] %v13019_v50  ;;  %v10029_v7 = vadd.s32 40, %v9841_v55 }
  0x5d   : > { %2615 = vmatmul.bf16.gmra.mxu2 %v9334_v38  ;;  %1848 = vst [vmem:[#allocation3 + $0x7c] sm:$0xf] %v13019_v50 }
  0x5e   : > { %1849 = vst [vmem:[#allocation3 + $0x80] sm:$0xf] %v13019_v50 }
  0x5f   : > { %1850 = vst [vmem:[#allocation3 + $0x84] sm:$0xf] %v13019_v50 }
  0x60   : > { %1851 = vst [vmem:[#allocation3 + $0x88] sm:$0xf] %v13019_v50 }
  0x61   : > { %1852 = vst [vmem:[#allocation3 + $0x8c] sm:$0xf] %v13019_v50 }
  0x62   : > { %1853 = vst [vmem:[#allocation3 + $0x90] sm:$0xf] %v13019_v50 }
  0x63   : > { %1854 = vst [vmem:[#allocation3 + $0x94] sm:$0xf] %v13019_v50 }
  0x64   : > { %1855 = vst [vmem:[#allocation3 + $0x98] sm:$0xf] %v13019_v50 }
  0x65   : > { %1856 = vst [vmem:[#allocation3 + $0x9c] sm:$0xf] %v13019_v50 }
  0x66   : > { %1857 = vst [vmem:[#allocation3 + $0xa0] sm:$0xf] %v13019_v50 }
  0x67   : > { %1858 = vst [vmem:[#allocation3 + $0xa4] sm:$0xf] %v13019_v50 }
  0x68   : > { %1859 = vst [vmem:[#allocation3 + $0xa8] sm:$0xf] %v13019_v50 }
  0x69   : > { %1860 = vst [vmem:[#allocation3 + $0xac] sm:$0xf] %v13019_v50 }
  0x6a   : > { %1861 = vst [vmem:[#allocation3 + $0xb0] sm:$0xf] %v13019_v50 }
  0x6b   : > { %2200 = vmatmul.bf16.gmra.mxu0 %v8797_v39  ;;  %1862 = vst [vmem:[#allocation3 + $0xb4] sm:$0xf] %v13019_v50 }
  0x6c   : > { %2431 = vmatmul.bf16.gmra.mxu1 %v9330_v31  ;;  %v244_v31 = vadd.s32 %v243_v28, %v234_v27  ;;  %v7931_v27 = vld [vmem:[%s12984_s1 + $0x100] sm:$0xff]  ;;  %v317_v28 = vmul.u32 43690, %v312_v12  ;;  %1863 = vst [vmem:[#allocation3 + $0xb8] sm:$0xf] %v13019_v50 }
  0x6d   : > { %2620 = vmatmul.bf16.gmra.mxu2 %v9336_v40  ;;  %1864 = vst [vmem:[#allocation3 + $0xbc] sm:$0xf] %v13019_v50 }
  0x6e   : > { %v245_v33 = vshrl.u32 %v244_v31, 4  ;;  %1865 = vst [vmem:[#allocation3 + $0xc0] sm:$0xf] %v13019_v50 }
  0x6f   : > { %1866 = vst [vmem:[#allocation3 + $0xc4] sm:$0xf] %v13019_v50 }
  0x70   : > { %1867 = vst [vmem:[#allocation3 + $0xc8] sm:$0xf] %v13019_v50 }
  0x71   : > { %1868 = vst [vmem:[#allocation3 + $0xcc] sm:$0xf] %v13019_v50 }
  0x72   : > { %1869 = vst [vmem:[#allocation3 + $0xd0] sm:$0xf] %v13019_v50 }
  0x73   : > { %1870 = vst [vmem:[#allocation3 + $0xd4] sm:$0xf] %v13019_v50 }
  0x74   : > { %1871 = vst [vmem:[#allocation3 + $0xd8] sm:$0xf] %v13019_v50 }
  0x75   : > { %1872 = vst [vmem:[#allocation3 + $0xdc] sm:$0xf] %v13019_v50 }
  0x76   : > { %1873 = vst [vmem:[#allocation3 + $0xe0] sm:$0xf] %v13019_v50 }
  0x77   : > { %1874 = vst [vmem:[#allocation3 + $0xe4] sm:$0xf] %v13019_v50 }
  0x78   : > { %1875 = vst [vmem:[#allocation3 + $0xe8] sm:$0xf] %v13019_v50 }
  0x79   : > { %1876 = vst [vmem:[#allocation3 + $0xec] sm:$0xf] %v13019_v50 }
  0x7b   : > { %2205 = vmatmul.bf16.gmra.mxu0 %v8798_v42  ;;  %v246_v42 = vmul.u32 24, %v245_v33 }
  0x7c   : > { %2436 = vmatmul.bf16.gmra.mxu1 %v9332_v35 }
  0x7d   : > { %2625 = vmatmul.bf16.gmra.mxu2 %v9797_v43  ;;  %v247_v52 = vsub.s32 %v9841_v55, %v246_v42  ;;  %v319_v42 = vshrl.u32 %v315_v16, 16 }
  0x7f   : > { %vm1613_vm7 = vcmp.ge.s32.totalorder %v247_v52, 2  ;;  %vm1661_vm8 = vcmp.lt.s32.totalorder %v247_v52, 18 }
  0x80   : > { %vm9960_vm11 = vmand %vm1613_vm7, %vm1661_vm8 }
  0x8b   : > { %2210 = vmatmul.bf16.gmra.mxu0 %v8799_v47  ;;  %v276_v47 = vsub.s32 %v9848_v56, %v275_v36 }
  0x8c   : > { %2441 = vmatmul.bf16.gmra.mxu1 %v9334_v38  ;;  %v1979_v38 = vld [vmem:[%s12985_s2] sm:$0x3] }
  0x8d   : > { %2630 = vmatmul.bf16.gmra.mxu2 %v9811_v48  ;;  %v9912_v46 = vperm.slane %v1979_v38, 0  ;;  %v9927_v59 = vperm.slane %v1979_v38, 1  ;;  %vm1614_vm4 = vcmp.ge.s32.totalorder %v276_v47, 2  ;;  %vm1662_vm5 = vcmp.lt.s32.totalorder %v276_v47, 18 }
  0x8e   : > { %vm9946_vm10 = vmand %vm1614_vm4, %vm1662_vm5 }
  0x8f   : > { %v13218_v5 = vsel %vm9946_vm10, 4294967295, %v13217_v5  ;;  %vm12991_vm14 = vmpackc.low %vm9946_vm10, %vm9960_vm11 }
  0x90   : > { %13219 = vst [vmem:[#allocation4_spill] sm:$0xff] %v13218_v5 }
  0x9b   : > { %2215 = vmatmul.bf16.gmra.mxu0 %v8800_v53 }
  0x9c   : > { %2446 = vmatmul.bf16.gmra.mxu1 %v9336_v40  ;;  %v9907_v40 = vadd.s32 16, %v9841_v55 }
  0x9d   : > { %2635 = vmatmul.bf16.gmra.mxu2 %v9836_v54 }
  0x9e   : > { %v282_v44 = vand.u32 65535, %v9907_v40  ;;  %v283_v49 = vshrl.u32 %v9907_v40, 16 }
  0xa0   : > { %v286_v51 = vmul.u32 43690, %v282_v44  ;;  %v285_v56 = vmul.u32 43691, %v282_v44  ;;  %v288_v61 = vmul.u32 43690, %v283_v49  ;;  %v7927_v44 = vld [vmem:[%s12984_s1 + $0xe0] sm:$0xff] }
  0xa1   : > { %3856 = vmatpush.bf16.msrb.mxu0 %v7927_v44 }
  0xa2   : > { %v289_v57 = vshll.u32 %v286_v51, 16  ;;  %v290_v9 = vshrl.u32 %v286_v51, 16 }
  0xa4   : > { %vm293_vm6 = vc.u32 %v285_v56, %v289_v57 }
  0xa5   : > { %v294_v1 = vsel %vm293_vm6, 1, %v13019_v50 }
  0xa6   : > { %v296_v4 = vadd.s32 %v294_v1, %v288_v61 }
  0xa8   : > { %v2181_v23 = vpop.f32.mrf.mxu0 }
  0xa9   : > { %v2412_v24 = vpop.f32.mrf.mxu1 }
  0xaa   : > { %v2413_v41 = vadd.f32 %v2412_v24, %v2181_v23  ;;  %v316_v23 = vmul.u32 43691, %v312_v12  ;;  %v318_v24 = vshll.u32 %v315_v16, 16  ;;  %v10036_v12 = vadd.s32 48, %v9841_v55 }
  0xab   : > { %2220 = vmatmul.bf16.gmra.mxu0 %v8801_v63  ;;  %v295_v63 = vadd.s32 %v289_v57, %v285_v56  ;;  %v7943_v56 = vld [vmem:[%s12984_s1 + $0x160] sm:$0xff] }
  0xac   : > { %2451 = vmatmul.bf16.gmra.mxu1 %v9797_v43  ;;  %v320_v31 = vshll.u32 %v316_v23, 16  ;;  %vm322_vm12 = vc.u32 %v314_v21, %v318_v24  ;;  %v324_v32 = vadd.s32 %v318_v24, %v314_v21  ;;  %v8803_v24 = vld [vmem:[%s9762_s11 + $0x68] sm:$0xff]  }
  0xad   : > { %2640 = vmatmul.bf16.gmra.mxu2 %v9866_v0  ;;  %4257 = vmatpush.bf16.msrb.mxu1 %v7943_v56 }
  0xae   : > { %vm326_vm13 = vc.u32 %v324_v32, %v320_v31  ;;  %v398_v32 = vand.u32 65535, %v10036_v12 }
  0xb0   : > { %v2601_v29 = vpop.f32.mrf.mxu2  ;;  %v2183_v34 = vpop.f32.mrf.mxu0 }
  0xb1   : > { %v2414_v35 = vpop.f32.mrf.mxu1  ;;  %v2721_v45 = vadd.f32 %v2601_v29, %v2413_v41  ;;  %v9982_v29 = vadd.s32 32, %v9841_v55 }
  0xb2   : > { %v2415_v39 = vadd.f32 %v2414_v35, %v2183_v34  ;;  %v323_v35 = vsel %vm322_vm12, 1, %v13019_v50 }
  0xb3   : > { %v2770_v58 = vmul.f32 %v9912_v46, %v2721_v45  ;;  %v340_v38 = vand.u32 65535, %v9982_v29 }
  0xb5   : > { %v2819_v8 = vadd.f32 %v9927_v59, %v2770_v58  ;;  %v343_v57 = vmul.u32 43691, %v340_v38  ;;  %v344_v58 = vmul.u32 43690, %v340_v38 }
  0xb7   : > { %v2963_v25 = vsel %vm9960_vm11, %v2819_v8, 0.0  ;;  %v347_v1 = vshll.u32 %v344_v58, 16 }
  0xb8   : > { %v2603_v37 = vpop.f32.mrf.mxu2  ;;  %v2186_v14 = vpop.f32.mrf.mxu0 }
  0xb9   : > { %v2722_v43 = vadd.f32 %v2603_v37, %v2415_v39  ;;  %v2417_v15 = vpop.f32.mrf.mxu1  ;;  %v325_v37 = vadd.s32 %v323_v35, %v317_v28  ;;  %vm351_vm1 = vc.u32 %v343_v57, %v347_v1 }
  0xba   : > { %v2418_v33 = vadd.f32 %v2417_v15, %v2186_v14  ;;  %v10040_v15 = vld [vmem:[%s9762_s11 + $0x74] sm:$0xff]   ;;  %v352_v16 = vsel %vm351_vm1, 1, %v13019_v50 }
  0xbb   : > { %v2771_v53 = vmul.f32 %v9912_v46, %v2722_v43  ;;  %2225 = vmatmul.bf16.gmra.mxu0 %v8802_v22  ;;  %v327_v43 = vsel %vm326_vm13, 1, %v13019_v50 }
  0xbc   : > { %2456 = vmatmul.bf16.gmra.mxu1 %v9811_v48  ;;  %v7934_v48 = vld [vmem:[%s12984_s1 + $0x118] sm:$0xff] }
  0xbd   : > { %3404 = vmatpush.bf16.msra.mxu3 %v7934_v48  ;;  %v9941_v3 = vadd.f32 %v9927_v59, %v2771_v53  ;;  %2645 = vmatmul.bf16.gmra.mxu2 %v9970_v18  ;;  %v321_v48 = vshrl.u32 %v316_v23, 16  ;;  %v341_v53 = vshrl.u32 %v9982_v29, 16 }
  0xbf   : > { %v2964_v17 = vsel %vm9946_vm10, %v9941_v3, 0.0  ;;  %v10017_v61 = vmul.u32 43691, %v341_v53 }
  0xc0   : > { %v9985_v30 = vpack.c.bf16 %v2964_v17, %v2963_v25  ;;  %v2606_v36 = vpop.f32.mrf.mxu2  ;;  %v2188_v45 = vpop.f32.mrf.mxu0  ;;  %v369_v17 = vand.u32 65535, %v10029_v7 }
  0xc1   : > { %3405 = vmatpush.bf16.msra.mxu3 %v7933_v60  ;;  %v2723_v41 = vadd.f32 %v2606_v36, %v2418_v33  ;;  %v2419_v47 = vpop.f32.mrf.mxu1  ;;  %v350_v25 = vshrl.u32 %v10017_v61, 16 }
  0xc2   : > { %v2420_v60 = vadd.f32 %v2419_v47, %v2188_v45  ;;  %v372_v31 = vmul.u32 43691, %v369_v17  ;;  %v373_v35 = vmul.u32 43690, %v369_v17  ;;  %v401_v47 = vmul.u32 43691, %v398_v32  ;;  %8941 = vst [vmem:[#allocation2 + $0x18] sm:$0xff] %v9985_v30  }
  0xc3   : > { %v2772_v52 = vmul.f32 %v9912_v46, %v2723_v41  ;;  %v399_v41 = vshrl.u32 %v10036_v12, 16 }
  0xc5   : > { %3406 = vmatpush.bf16.msra.mxu3 %v7932_v11  ;;  %v7984_v11 = vld [vmem:[%s12984_s1 + $0x1b8] sm:$0xff] }
  0xc8   : > { %v2191_v22 = vpop.f32.mrf.mxu0 }
  0xc9   : > { %3407 = vmatpush.bf16.msra.mxu3 %v7931_v27  ;;  %v2422_v23 = vpop.f32.mrf.mxu1 }
  0xca   : > { %v2423_v44 = vadd.f32 %v2422_v23, %v2191_v22 }
  0xcb   : > { %2230 = vmatmul.bf16.gmra.mxu0 %v8803_v24  ;;  %v10119_v24 = vadd.s32 56, %v9841_v55 }
  0xcc   : > { %2461 = vmatmul.bf16.gmra.mxu1 %v9836_v54  ;;  %v287_v54 = vmul.u32 43691, %v283_v49  ;;  %v329_v49 = vadd.s32 %v327_v43, %v325_v37  ;;  %v13225_v43 = vmov 0 }
  0xcd   : > { %5219 = vmatpush.bf16.msrb.mxu3 %v7984_v11  ;;  %2650 = vmatmul.bf16.gmra.mxu2 %v10040_v15 }
  0xce   : > { %v291_v62 = vshll.u32 %v287_v54, 16  ;;  %v292_v19 = vshrl.u32 %v287_v54, 16  ;;  %v330_v54 = vadd.s32 %v329_v49, %v319_v42  ;;  %v376_v42 = vshll.u32 %v373_v35, 16 }
  0xd0   : > { %vm297_vm9 = vc.u32 %v295_v63, %v291_v62  ;;  %v331_v62 = vadd.s32 %v330_v54, %v321_v48  ;;  %v346_v63 = vmul.u32 43690, %v341_v53  ;;  %v10076_v48 = vmul.u32 43690, %v398_v32 }
  0xd1   : > { %v298_v6 = vsel %vm297_vm9, 1, %v13019_v50  ;;  %vm380_vm7 = vc.u32 %v372_v31, %v376_v42  ;;  %v427_v32 = vand.u32 65535, %v10119_v24 }
  0xd2   : > { %v300_v10 = vadd.s32 %v298_v6, %v296_v4  ;;  %v348_v4 = vshrl.u32 %v344_v58, 16  ;;  %v349_v6 = vshll.u32 %v10017_v61, 16  ;;  %v381_v54 = vsel %vm380_vm7, 1, %v13019_v50  ;;  %v2424_v61 = vpop.f32.mrf.mxu1 }
  0xd3   : > { %v406_v22 = vshrl.u32 %v10076_v48, 16 }
  0xd4   : > { %v301_v20 = vadd.s32 %v300_v10, %v290_v9  ;;  %v2608_v9 = vpop.f32.mrf.mxu2  ;;  %v353_v10 = vadd.s32 %v347_v1, %v343_v57  ;;  %v10086_v57 = vmul.u32 43691, %v399_v41 }
  0xd5   : > { %v2724_v14 = vadd.f32 %v2608_v9, %v2420_v60  ;;  %v2193_v60 = vpop.f32.mrf.mxu0  ;;  %v404_v9 = vmul.u32 43690, %v399_v41 }
  0xd6   : > { %v302_v26 = vadd.s32 %v301_v20, %v292_v19  ;;  %v370_v19 = vshrl.u32 %v10029_v7, 16  ;;  %v13222_v20 = vmov 0  ;;  %vm355_vm3 = vc.u32 %v353_v10, %v349_v6 }
  0xd7   : > { %v2773_v27 = vmul.f32 %v9912_v46, %v2724_v14  ;;  %v356_v28 = vsel %vm355_vm3, 1, %v13019_v50  ;;  %v405_v10 = vshll.u32 %v10076_v48, 16  ;;  %v2425_v14 = vadd.f32 %v2424_v61, %v2193_v60 }
  0xd8   : > { %v303_v34 = vshrl.u32 %v302_v26, 4  ;;  %v354_v26 = vadd.s32 %v352_v16, %v346_v63  ;;  %v10060_v36 = vmul.u32 43691, %v370_v19  ;;  %v431_v48 = vmul.u32 43690, %v427_v32 }
  0xd9   : > { %v2822_v38 = vadd.f32 %v9927_v59, %v2773_v27  ;;  %vm409_vm12 = vc.u32 %v401_v47, %v405_v10 }
  0xda   : > { %v304_v39 = vmul.u32 24, %v303_v34  ;;  %v358_v34 = vadd.s32 %v356_v28, %v354_v26  ;;  %v378_v45 = vshll.u32 %v10060_v36, 16  ;;  %v379_v63 = vshrl.u32 %v10060_v36, 16 }
  0xdb   : > { %v410_v23 = vsel %vm409_vm12, 1, %v13019_v50 }
  0xdc   : > { %2466 = vmatmul.bf16.gmra.mxu1 %v9866_v0  ;;  %v9501_v0 = vpack.c.bf16 %v9941_v3, %v2819_v8  ;;  %v305_v51 = vsub.s32 %v9907_v40, %v304_v39  ;;  %v7992_v40 = vld [vmem:[%s12984_s1 + $0x1f8] sm:$0xff]  ;;  %v10025_v3 = vadd.f32 %v9927_v59, %v2772_v52  ;;  %v332_v8 = vshrl.u32 %v331_v62, 4 }
  0xdd   : > { %5024 = vmatpush.bf16.msrb.mxu2 %v7992_v40  ;;  %v375_v39 = vmul.u32 43690, %v370_v19  ;;  %v382_v52 = vadd.s32 %v376_v42, %v372_v31  ;;  %v377_v40 = vshrl.u32 %v373_v35, 16  ;;  %v411_v19 = vadd.s32 %v405_v10, %v401_v47  ;;  %v10127_v31 = vld [vmem:[%s9762_s11 + $0x7c] sm:$0xff]   ;;  %v2196_v36 = vpop.f32.mrf.mxu0 }
  0xde   : > { %9502 = vmatmul.msk.bf16.vlgmr.msra.gmra.mxu3 %vm12991_vm14, %v9501_v0  ;;  %vm1615_vm15 = vcmp.ge.s32.totalorder %v305_v51, 2  ;;  %vm1663_vm0 = vcmp.lt.s32.totalorder %v305_v51, 18  ;;  %v333_v21 = vmul.u32 24, %v332_v8  ;;  %v2611_v51 = vpop.f32.mrf.mxu2  ;;  %v412_v27 = vadd.s32 %v410_v23, %v404_v9  ;;  %2655 = vmatmul.bf16.gmra.mxu2 %v10127_v31 }
  0xdf   : > { %vm10048_vm2 = vmand %vm1615_vm15, %vm1663_vm0  ;;  %v2725_v56 = vadd.f32 %v2611_v51, %v2423_v44  ;;  %v383_v62 = vadd.s32 %v381_v54, %v375_v39  ;;  %vm384_vm8 = vc.u32 %v382_v52, %v378_v45  ;;  %v430_v47 = vmul.u32 43691, %v427_v32 }
  0xe0   : > { %v13223_v20 = vsel %vm10048_vm2, 4294967295, %v13222_v20  ;;  %v334_v33 = vsub.s32 %v9937_v2, %v333_v21  ;;  %v2965_v37 = vsel %vm10048_vm2, %v10025_v3, 0.0  ;;  %v359_v2 = vadd.s32 %v358_v34, %v348_v4  ;;  %v7926_v21 = vld [vmem:[%s12984_s1 + $0xd8] sm:$0xff] }
  0xe1   : > { %13224 = vst [vmem:[#allocation5_spill] sm:$0xff] %v13223_v20  ;;  %v385_v1 = vsel %vm384_vm8, 1, %v13019_v50  ;;  %v9504_v4 = vpack.c.bf16 %v2822_v38, %v10025_v3  ;;  %v407_v3 = vshll.u32 %v10086_v57, 16  ;;  %3857 = vmatpush.bf16.msrb.mxu0 %v7926_v21  ;;  %v13228_v34 = vmov 0 }
  0xe2   : > { %vm1616_vm4 = vcmp.ge.s32.totalorder %v334_v33, 2  ;;  %vm1664_vm5 = vcmp.lt.s32.totalorder %v334_v33, 18  ;;  %v360_v0 = vadd.s32 %v359_v2, %v350_v25  ;;  %v387_v8 = vadd.s32 %v385_v1, %v383_v62 }
  0xe3   : > { %vm10071_vm6 = vmand %vm1616_vm4, %vm1664_vm5  ;;  %v10122_v25 = vadd.s32 64, %v9841_v55  ;;  %vm413_vm0 = vc.u32 %v411_v19, %v407_v3  ;;  %v428_v33 = vshrl.u32 %v10119_v24, 16  ;;  %v408_v2 = vshrl.u32 %v10086_v57, 16 }
  0xe4   : > { %v13226_v43 = vsel %vm10071_vm6, 4294967295, %v13225_v43  ;;  %v2966_v49 = vsel %vm10071_vm6, %v2822_v38, 0.0  ;;  %v361_v58 = vshrl.u32 %v360_v0, 4  ;;  %vm12989_vm9 = vmpackc.low %vm10071_vm6, %vm10048_vm2  ;;  %v388_v17 = vadd.s32 %v387_v8, %v377_v40  ;;  %v8804_v38 = vld [vmem:[%s9762_s11 + $0x70] sm:$0xff]  }
  0xe5   : > { %13227 = vst [vmem:[#allocation6_spill] sm:$0xff] %v13226_v43  ;;  %v10083_v53 = vpack.c.bf16 %v2966_v49, %v2965_v37  ;;  %v2427_v37 = vpop.f32.mrf.mxu1  ;;  %v414_v39 = vsel %vm413_vm0, 1, %v13019_v50  ;;  %v456_v44 = vand.u32 65535, %v10122_v25  ;;  %v10143_v49 = vmul.u32 43691, %v428_v33  ;;  %2235 = vmatmul.bf16.gmra.mxu0 %v8804_v38 }
  0xe6   : > { %v362_v6 = vmul.u32 24, %v361_v58  ;;  %v2613_v26 = vpop.f32.mrf.mxu2  ;;  %v416_v42 = vadd.s32 %v414_v39, %v412_v27  ;;  %v433_v52 = vmul.u32 43690, %v428_v33  ;;  %v434_v58 = vshll.u32 %v431_v48, 16 }
  0xe7   : > { %v2726_v28 = vadd.f32 %v2613_v26, %v2425_v14  ;;  %v436_v60 = vshll.u32 %v10143_v49, 16  ;;  %v2428_v61 = vadd.f32 %v2427_v37, %v2196_v36  ;;  %v10156_v62 = vmul.u32 43690, %v456_v44  ;;  %v2198_v14 = vpop.f32.mrf.mxu0  ;;  %8942 = vst [vmem:[#allocation2 + $0x20] sm:$0xff] %v10083_v53  }
  0xe8   : > { %v363_v16 = vsub.s32 %v9982_v29, %v362_v6  ;;  %v389_v29 = vadd.s32 %v388_v17, %v379_v63  ;;  %v417_v51 = vadd.s32 %v416_v42, %v406_v22  ;;  %vm438_vm5 = vc.u32 %v430_v47, %v434_v58 }
  0xe9   : > { %v2775_v41 = vmul.f32 %v9912_v46, %v2726_v28  ;;  %v13231_v1 = vmov 0  ;;  %v439_v8 = vsel %vm438_vm5, 1, %v13019_v50  ;;  %v459_v9 = vmul.u32 43691, %v456_v44 }
  0xea   : > { %vm1617_vm13 = vcmp.ge.s32.totalorder %v363_v16, 2  ;;  %vm1665_vm15 = vcmp.lt.s32.totalorder %v363_v16, 18  ;;  %v390_v35 = vshrl.u32 %v389_v29, 4  ;;  %v418_v40 = vadd.s32 %v417_v51, %v408_v2 }
  0xeb   : > { %vm10132_vm1 = vmand %vm1617_vm13, %vm1665_vm15  ;;  %v2824_v57 = vadd.f32 %v9927_v59, %v2775_v41  ;;  %v441_v16 = vadd.s32 %v439_v8, %v433_v52  ;;  %v435_v22 = vshrl.u32 %v431_v48, 16  ;;  %v437_v23 = vshrl.u32 %v10143_v49, 16 }
  0xec   : > { %2471 = vmatmul.bf16.gmra.mxu1 %v9970_v18  ;;  %v2774_v18 = vmul.f32 %v9912_v46, %v2725_v56  ;;  %v13229_v34 = vsel %vm10132_vm1, 4294967295, %v13228_v34  ;;  %v391_v45 = vmul.u32 24, %v390_v35  ;;  %v457_v56 = vshrl.u32 %v10122_v25, 16 }
  0xed   : > { %13230 = vst [vmem:[#allocation7_spill] sm:$0xff] %v13229_v34  ;;  %v2429_v3 = vpop.f32.mrf.mxu1  ;;  %v464_v35 = vshrl.u32 %v10156_v62, 16  ;;  %v10191_v37 = vadd.s32 72, %v9841_v55  ;;  %v10198_v41 = vadd.s32 80, %v9841_v55 }
  0xee   : > { %9505 = vmatmul.msk.bf16.gmra.mxu3 %vm12989_vm9, %v9504_v4  ;;  %v10107_v11 = vadd.f32 %v9927_v59, %v2774_v18  ;;  %v392_v54 = vsub.s32 %v10029_v7, %v391_v45  ;;  %v10158_v18 = vmul.u32 43691, %v457_v56  ;;  %v2616_v63 = vpop.f32.mrf.mxu2  ;;  %v440_v7 = vadd.s32 %v434_v58, %v430_v47  ;;  %v7942_v47 = vld [vmem:[%s12984_s1 + $0x158] sm:$0xff] }
  0xef   : > { %v419_v4 = vshrl.u32 %v418_v40, 4  ;;  %v2727_v6 = vadd.f32 %v2616_v63, %v2428_v61  ;;  %v462_v26 = vmul.u32 43690, %v457_v56  ;;  %v2430_v32 = vadd.f32 %v2429_v3, %v2198_v14  ;;  %v2201_v52 = vpop.f32.mrf.mxu0  ;;  %4258 = vmatpush.bf16.msrb.mxu1 %v7942_v47 }
  0xf0   : > { %v2967_v0 = vsel %vm10132_vm1, %v10107_v11, 0.0  ;;  %vm1618_vm3 = vcmp.ge.s32.totalorder %v392_v54, 2  ;;  %vm1666_vm4 = vcmp.lt.s32.totalorder %v392_v54, 18  ;;  %vm442_vm8 = vc.u32 %v440_v7, %v436_v60  ;;  %v8805_v54 = vld [vmem:[%s9762_s11 + $0x78] sm:$0xff]  }
  0xf1   : > { %vm10163_vm7 = vmand %vm1618_vm3, %vm1666_vm4  ;;  %v420_v19 = vmul.u32 24, %v419_v4  ;;  %v2776_v21 = vmul.f32 %v9912_v46, %v2727_v6  ;;  %v443_v29 = vsel %vm442_vm8, 1, %v13019_v50  ;;  %v465_v27 = vshll.u32 %v10158_v18, 16 }
  0xf2   : > { %v13232_v1 = vsel %vm10163_vm7, 4294967295, %v13231_v1  ;;  %v2968_v10 = vsel %vm10163_vm7, %v2824_v57, 0.0  ;;  %v445_v33 = vadd.s32 %v443_v29, %v441_v16  ;;  %vm12987_vm12 = vmpackc.low %vm10163_vm7, %vm10132_vm1  ;;  %v9507_v53 = vpack.c.bf16 %v2824_v57, %v10107_v11 }
  0xf3   : > { %13233 = vst [vmem:[#allocation8_spill] sm:$0xff] %v13232_v1  ;;  %v8134_v17 = vpack.c.bf16 %v2968_v10, %v2967_v0  ;;  %v421_v28 = vsub.s32 %v10036_v12, %v420_v19  ;;  %v466_v36 = vshrl.u32 %v10158_v18, 16  ;;  %v10194_v38 = vadd.f32 %v9927_v59, %v2776_v21  ;;  %v10206_v0 = vld [vmem:[%s9762_s11 + $0x84] sm:$0xff]  }
  0xf4   : > { %v446_v11 = vadd.s32 %v445_v33, %v435_v22  ;;  %v485_v44 = vand.u32 65535, %v10191_v37  ;;  %v486_v45 = vshrl.u32 %v10191_v37, 16  ;;  %2660 = vmatmul.bf16.gmra.mxu2 %v10206_v0  ;;  %v514_v14 = vand.u32 65535, %v10198_v41 }
  0xf5   : > { %8943 = vst [vmem:[#allocation2 + $0x28] sm:$0xff] %v8134_v17   ;;  %vm1619_vm0 = vcmp.ge.s32.totalorder %v421_v28, 2  ;;  %v2432_v56 = vpop.f32.mrf.mxu1  ;;  %vm1667_vm3 = vcmp.lt.s32.totalorder %v421_v28, 18  ;;  %2240 = vmatmul.bf16.gmra.mxu0 %v8805_v54  ;;  %v7983_v54 = vld [vmem:[%s12984_s1 + $0x1b0] sm:$0xff] }
  0xf6   : > { %v2618_v2 = vpop.f32.mrf.mxu2  ;;  %v447_v48 = vadd.s32 %v446_v11, %v437_v23  ;;  %v488_v58 = vmul.u32 43691, %v485_v44  ;;  %v489_v60 = vmul.u32 43690, %v485_v44  ;;  %v490_v61 = vmul.u32 43691, %v486_v45  ;;  %vm10221_vm5 = vmand %vm1619_vm0, %vm1667_vm3  ;;  %5220 = vmatpush.bf16.msrb.mxu3 %v7983_v54 }
  0xf7   : > { %v2728_v49 = vadd.f32 %v2618_v2, %v2430_v32  ;;  %v2433_v18 = vadd.f32 %v2432_v56, %v2201_v52  ;;  %v491_v7 = vmul.u32 43690, %v486_v45  ;;  %v517_v21 = vmul.u32 43691, %v514_v14 }
  0xf8   : > { %v448_v40 = vshrl.u32 %v447_v48, 4  ;;  %v492_v4 = vshll.u32 %v489_v60, 16  ;;  %v494_v6 = vshll.u32 %v490_v61, 16  ;;  %v493_v10 = vshrl.u32 %v489_v60, 16 }
  0xf9   : > { %v10217_v22 = vmul.u32 43690, %v514_v14  ;;  %v13234_v23 = vmov 0  ;;  %v13240_v60 = vmov 0 }
  0xfa   : > { %v449_v8 = vmul.u32 24, %v448_v40  ;;  %vm496_vm4 = vc.u32 %v488_v58, %v492_v4  ;;  %v498_v16 = vadd.s32 %v492_v4, %v488_v58  ;;  %v13235_v23 = vsel %vm10221_vm5, 4294967295, %v13234_v23 }
  0xfb   : > { %v497_v19 = vsel %vm496_vm4, 1, %v13019_v50  ;;  %13236 = vst [vmem:[#allocation9_spill] sm:$0xff] %v13235_v23  ;;  %v10267_v40 = vadd.s32 88, %v9841_v55 }
  0xfc   : > { %2476 = vmatmul.bf16.gmra.mxu1 %v10040_v15  ;;  %v463_v15 = vshll.u32 %v10156_v62, 16  ;;  %v2777_v62 = vmul.f32 %v9912_v46, %v2728_v49  ;;  %v450_v17 = vsub.s32 %v10119_v24, %v449_v8  ;;  %vm500_vm8 = vc.u32 %v498_v16, %v494_v6  ;;  %v10275_v8 = vld [vmem:[%s9762_s11 + $0x8c] sm:$0xff]  }
  0xfd   : > { %v501_v33 = vsel %vm500_vm8, 1, %v13019_v50  ;;  %v544_v14 = vshrl.u32 %v10267_v40, 16 }
  0xfe   : > { %9508 = vmatmul.msk.bf16.gmra.mxu3 %vm12987_vm12, %v9507_v53  ;;  %vm467_vm13 = vc.u32 %v459_v9, %v463_v15  ;;  %v469_v12 = vadd.s32 %v463_v15, %v459_v9  ;;  %v2826_v9 = vadd.f32 %v9927_v59, %v2777_v62  ;;  %v515_v15 = vshrl.u32 %v10198_v41, 16 }
  0xff   : > { %v468_v39 = vsel %vm467_vm13, 1, %v13019_v50  ;;  %vm1620_vm13 = vcmp.ge.s32.totalorder %v450_v17, 2  ;;  %v13237_v53 = vmov 0 }
 0x100   : > { %v470_v42 = vadd.s32 %v468_v39, %v462_v26  ;;  %vm471_vm15 = vc.u32 %v469_v12, %v465_v27  ;;  %v2621_v26 = vpop.f32.mrf.mxu2  ;;  %v499_v27 = vadd.s32 %v497_v19, %v491_v7  ;;  %v10225_v32 = vmul.u32 43691, %v515_v15  ;;  %v8806_v19 = vld [vmem:[%s9762_s11 + $0x80] sm:$0xff]  }
 0x101   : > { %v472_v51 = vsel %vm471_vm15, 1, %v13019_v50  ;;  %vm1668_vm15 = vcmp.lt.s32.totalorder %v450_v17, 18  ;;  %v2729_v24 = vadd.f32 %v2621_v26, %v2433_v18  ;;  %v495_v12 = vshrl.u32 %v490_v61, 16 }
 0x102   : > { %v474_v57 = vadd.s32 %v472_v51, %v470_v42  ;;  %vm10229_vm4 = vmand %vm1620_vm13, %vm1668_vm15  ;;  %v503_v11 = vadd.s32 %v501_v33, %v499_v27  ;;  %v521_v39 = vshll.u32 %v10217_v22, 16  ;;  %v520_v44 = vmul.u32 43690, %v515_v15  ;;  %v7991_v51 = vld [vmem:[%s12984_s1 + $0x1f0] sm:$0xff] }
 0x103   : > { %v13238_v53 = vsel %vm10229_vm4, 4294967295, %v13237_v53  ;;  %v2970_v2 = vsel %vm10229_vm4, %v2826_v9, 0.0  ;;  %v2778_v42 = vmul.f32 %v9912_v46, %v2729_v24  ;;  %v523_v49 = vshll.u32 %v10225_v32, 16  ;;  %vm12988_vm13 = vmpackc.low %vm10229_vm4, %vm10221_vm5  ;;  %5025 = vmatpush.bf16.msrb.mxu2 %v7991_v51 }
 0x104   : > { %v475_v63 = vadd.s32 %v474_v57, %v464_v35  ;;  %13239 = vst [vmem:[#allocation10_spill] sm:$0xff] %v13238_v53  ;;  %v2203_v35 = vpop.f32.mrf.mxu0  ;;  %v504_v48 = vadd.s32 %v503_v11, %v493_v10  ;;  %vm525_vm0 = vc.u32 %v517_v21, %v521_v39  ;;  %v527_v56 = vadd.s32 %v521_v39, %v517_v21 }
 0x105   : > { %v10249_v57 = vadd.f32 %v9927_v59, %v2778_v42  ;;  %v9510_v58 = vpack.c.bf16 %v2826_v9, %v10194_v38  ;;  %v526_v61 = vsel %vm525_vm0, 1, %v13019_v50  ;;  %v524_v9 = vshrl.u32 %v10225_v32, 16  ;;  %2245 = vmatmul.bf16.gmra.mxu0 %v8806_v19  ;;  %2665 = vmatmul.bf16.gmra.mxu2 %v10275_v8 }
 0x106   : > { %v476_v3 = vadd.s32 %v475_v63, %v466_v36  ;;  %v2434_v36 = vpop.f32.mrf.mxu1  ;;  %vm529_vm12 = vc.u32 %v527_v56, %v523_v49  ;;  %v522_v63 = vshrl.u32 %v10217_v22, 16  ;;  %v528_v7 = vadd.s32 %v526_v61, %v520_v44 }
 0x107   : > { %v2435_v52 = vadd.f32 %v2434_v36, %v2203_v35  ;;  %v530_v4 = vsel %vm529_vm12, 1, %v13019_v50  ;;  %v543_v10 = vand.u32 65535, %v10267_v40  ;;  %v548_v35 = vmul.u32 43691, %v544_v14 }
 0x108   : > { %v477_v29 = vshrl.u32 %v476_v3, 4  ;;  %v2623_v18 = vpop.f32.mrf.mxu2  ;;  %v532_v21 = vadd.s32 %v530_v4, %v528_v7  ;;  %v13243_v42 = vmov 0  ;;  %v10305_v7 = vadd.s32 104, %v9841_v55 }
 0x109   : > { %v2730_v6 = vadd.f32 %v2623_v18, %v2435_v52  ;;  %v546_v26 = vmul.u32 43691, %v543_v10  ;;  %v547_v27 = vmul.u32 43690, %v543_v10  ;;  %v7925_v10 = vld [vmem:[%s12984_s1 + $0xd0] sm:$0xff] }
 0x10a   : > { %v478_v28 = vmul.u32 24, %v477_v29  ;;  %3858 = vmatpush.bf16.msrb.mxu0 %v7925_v10 }
 0x10b   : > { %v2779_v29 = vmul.f32 %v9912_v46, %v2730_v6  ;;  %v550_v11 = vshll.u32 %v547_v27, 16  ;;  %v551_v39 = vshrl.u32 %v547_v27, 16  ;;  %v553_v6 = vshrl.u32 %v548_v35, 16 }
 0x10c   : > { %2481 = vmatmul.bf16.gmra.mxu1 %v10127_v31  ;;  %v2969_v31 = vsel %vm10221_vm5, %v10194_v38, 0.0  ;;  %v479_v47 = vsub.s32 %v10122_v25, %v478_v28  ;;  %v505_v25 = vadd.s32 %v504_v48, %v495_v12  ;;  %v10270_v38 = vadd.s32 96, %v9841_v55  ;;  %v2206_v15 = vpop.f32.mrf.mxu0 }
 0x10d   : > { %v8139_v45 = vpack.c.bf16 %v2970_v2, %v2969_v31  ;;  %v533_v28 = vadd.s32 %v532_v21, %v522_v63  ;;  %v2828_v36 = vadd.f32 %v9927_v59, %v2779_v29  ;;  %v549_v12 = vmul.u32 43690, %v544_v14 }
 0x10e   : > { %vm1621_vm3 = vcmp.ge.s32.totalorder %v479_v47, 2  ;;  %vm1669_vm8 = vcmp.lt.s32.totalorder %v479_v47, 18  ;;  %9511 = vmatmul.msk.bf16.gmra.mxu3 %vm12988_vm13, %v9510_v58  ;;  %v506_v62 = vshrl.u32 %v505_v25, 4  ;;  %v2437_v17 = vpop.f32.mrf.mxu1  ;;  %v572_v22 = vand.u32 65535, %v10270_v38 }
 0x10f   : > { %8944 = vst [vmem:[#allocation2 + $0x30] sm:$0xff] %v8139_v45   ;;  %vm10261_vm15 = vmand %vm1621_vm3, %vm1669_vm8  ;;  %v573_v32 = vshrl.u32 %v10270_v38, 16  ;;  %v2438_v33 = vadd.f32 %v2437_v17, %v2206_v15  ;;  %v534_v31 = vadd.s32 %v533_v28, %v524_v9  ;;  %v552_v2 = vshll.u32 %v548_v35, 16 }
 0x110   : > { %v13241_v60 = vsel %vm10261_vm15, 4294967295, %v13240_v60  ;;  %v2971_v3 = vsel %vm10261_vm15, %v10249_v57, 0.0  ;;  %v507_v16 = vmul.u32 24, %v506_v62  ;;  %vm554_vm8 = vc.u32 %v546_v26, %v550_v11  ;;  %v2626_v49 = vpop.f32.mrf.mxu2 }
 0x111   : > { %13242 = vst [vmem:[#allocation11_spill] sm:$0xff] %v13241_v60  ;;  %v575_v44 = vmul.u32 43691, %v572_v22  ;;  %v10294_v45 = vmul.u32 43690, %v572_v22  ;;  %v535_v48 = vshrl.u32 %v534_v31, 4  ;;  %v555_v51 = vsel %vm554_vm8, 1, %v13019_v50 }
 0x112   : > { %v508_v24 = vsub.s32 %v10191_v37, %v507_v16  ;;  %v556_v37 = vadd.s32 %v550_v11, %v546_v26  ;;  %v10299_v52 = vmul.u32 43691, %v573_v32  ;;  %v2731_v54 = vadd.f32 %v2626_v49, %v2438_v33  ;;  %v10333_v11 = vld [vmem:[%s9762_s11 + $0x94] sm:$0xff]  }
 0x113   : > { %v557_v25 = vadd.s32 %v555_v51, %v549_v12  ;;  %v536_v58 = vmul.u32 24, %v535_v48  ;;  %v579_v63 = vshll.u32 %v10294_v45, 16  ;;  %v580_v16 = vshrl.u32 %v10294_v45, 16 }
 0x114   : > { %vm1622_vm12 = vcmp.ge.s32.totalorder %v508_v24, 2  ;;  %vm1670_vm0 = vcmp.lt.s32.totalorder %v508_v24, 18  ;;  %v2208_v61 = vpop.f32.mrf.mxu0  ;;  %v2780_v4 = vmul.f32 %v9912_v46, %v2731_v54  ;;  %v581_v15 = vshll.u32 %v10299_v52, 16 }
 0x115   : > { %vm10290_vm3 = vmand %vm1622_vm12, %vm1670_vm0  ;;  %vm558_vm12 = vc.u32 %v556_v37, %v552_v2  ;;  %v537_v14 = vsub.s32 %v10198_v41, %v536_v58  ;;  %v582_v19 = vshrl.u32 %v10299_v52, 16  ;;  %vm583_vm0 = vc.u32 %v575_v44, %v579_v63  ;;  %2670 = vmatmul.bf16.gmra.mxu2 %v10333_v11 }
 0x116   : > { %v13244_v42 = vsel %vm10290_vm3, 4294967295, %v13243_v42  ;;  %v2972_v47 = vsel %vm10290_vm3, %v2828_v36, 0.0  ;;  %v2439_v62 = vpop.f32.mrf.mxu1  ;;  %v559_v18 = vsel %vm558_vm12, 1, %v13019_v50  ;;  %v585_v21 = vadd.s32 %v579_v63, %v575_v44  ;;  %vm12990_vm12 = vmpackc.low %vm10290_vm3, %vm10261_vm15  ;;  %v8807_v44 = vld [vmem:[%s9762_s11 + $0x88] sm:$0xff]  }
 0x117   : > { %13245 = vst [vmem:[#allocation12_spill] sm:$0xff] %v13244_v42  ;;  %v8144_v56 = vpack.c.bf16 %v2972_v47, %v2971_v3  ;;  %v561_v9 = vadd.s32 %v559_v18, %v557_v25  ;;  %v2440_v3 = vadd.f32 %v2439_v62, %v2208_v61  ;;  %vm1623_vm8 = vcmp.ge.s32.totalorder %v537_v14, 2  ;;  %2250 = vmatmul.bf16.gmra.mxu0 %v8807_v44 }
 0x118   : > { %v10316_v22 = vadd.f32 %v9927_v59, %v2780_v4  ;;  %v9513_v41 = vpack.c.bf16 %v2828_v36, %v10249_v57  ;;  %v584_v29 = vsel %vm583_vm0, 1, %v13019_v50  ;;  %v601_v26 = vand.u32 65535, %v10305_v7  ;;  %v2628_v33 = vpop.f32.mrf.mxu2 }
 0x119   : > { %8945 = vst [vmem:[#allocation2 + $0x38] sm:$0xff] %v8144_v56   ;;  %v562_v17 = vadd.s32 %v561_v9, %v551_v39  ;;  %vm587_vm13 = vc.u32 %v585_v21, %v581_v15  ;;  %v602_v24 = vshrl.u32 %v10305_v7, 16  ;;  %vm1671_vm9 = vcmp.lt.s32.totalorder %v537_v14, 18 }
 0x11a   : > { %v588_v57 = vsel %vm587_vm13, 1, %v13019_v50  ;;  %v604_v28 = vmul.u32 43691, %v601_v26  ;;  %v605_v35 = vmul.u32 43690, %v601_v26  ;;  %v2732_v12 = vadd.f32 %v2628_v33, %v2440_v3  ;;  %vm10346_vm0 = vmand %vm1623_vm8, %vm1671_vm9 }
 0x11b   : > { %v563_v27 = vadd.s32 %v562_v17, %v553_v6  ;;  %v606_v31 = vmul.u32 43691, %v602_v24  ;;  %v607_v45 = vmul.u32 43690, %v602_v24  ;;  %v10337_v49 = vadd.s32 112, %v9841_v55 }
 0x11c   : > { %2486 = vmatmul.bf16.gmra.mxu1 %v10206_v0  ;;  %v578_v0 = vmul.u32 43690, %v573_v32  ;;  %v2211_v2 = vpop.f32.mrf.mxu0  ;;  %v608_v47 = vshll.u32 %v605_v35, 16  ;;  %v609_v48 = vshrl.u32 %v605_v35, 16  ;;  %v2781_v52 = vmul.f32 %v9912_v46, %v2732_v12 }
 0x11d   : > { %v564_v36 = vshrl.u32 %v563_v27, 4  ;;  %v610_v25 = vshll.u32 %v606_v31, 16  ;;  %v611_v58 = vshrl.u32 %v606_v31, 16  ;;  %v13246_v6 = vmov 0 }
 0x11e   : > { %9514 = vmatmul.msk.bf16.gmra.mxu3 %vm12990_vm12, %v9513_v41  ;;  %v586_v32 = vadd.s32 %v584_v29, %v578_v0  ;;  %v2442_v37 = vpop.f32.mrf.mxu1  ;;  %vm612_vm13 = vc.u32 %v604_v28, %v608_v47  ;;  %v614_v61 = vadd.s32 %v608_v47, %v604_v28  ;;  %v2830_v18 = vadd.f32 %v9927_v59, %v2781_v52 }
 0x11f   : > { %v565_v51 = vmul.u32 24, %v564_v36  ;;  %v2443_v56 = vadd.f32 %v2442_v37, %v2211_v2  ;;  %v613_v4 = vsel %vm612_vm13, 1, %v13019_v50  ;;  %v13247_v6 = vsel %vm10346_vm0, 4294967295, %v13246_v6 }
 0x120   : > { %v590_v39 = vadd.s32 %v588_v57, %v586_v32  ;;  %13248 = vst [vmem:[#allocation13_spill] sm:$0xff] %v13247_v6  ;;  %v615_v9 = vadd.s32 %v613_v4, %v607_v45  ;;  %vm616_vm12 = vc.u32 %v614_v61, %v610_v25  ;;  %v630_v0 = vand.u32 65535, %v10337_v49  ;;  %v2631_v14 = vpop.f32.mrf.mxu2  ;;  %v10402_v4 = vld [vmem:[%s9762_s11 + $0x9c] sm:$0xff]   ;;  %v11102_v6 = vld [vmem:[#allocation2 + $0x30] sm:$0xff] }
 0x121   : > { %v566_v62 = vsub.s32 %v10267_v40, %v565_v51  ;;  %v631_v40 = vshrl.u32 %v10337_v49, 16  ;;  %v617_v3 = vsel %vm616_vm12, 1, %v13019_v50  ;;  %v2973_v41 = vsel %vm10346_vm0, %v10316_v22, 0.0 }
 0x122   : > { %v591_v54 = vadd.s32 %v590_v39, %v580_v16  ;;  %v13249_v16 = vmov 0  ;;  %v619_v15 = vadd.s32 %v617_v3, %v615_v9  ;;  %v633_v17 = vmul.u32 43691, %v630_v0 }
 0x123   : > { %vm1624_vm14 = vcmp.ge.s32.totalorder %v566_v62, 2  ;;  %vm1672_vm3 = vcmp.lt.s32.totalorder %v566_v62, 18  ;;  %v10357_v21 = vmul.u32 43691, %v631_v40  ;;  %v2733_v27 = vadd.f32 %v2631_v14, %v2443_v56  ;;  %v8808_v14 = vld [vmem:[%s9762_s11 + $0x90] sm:$0xff]  }
 0x124   : > { %v592_v63 = vadd.s32 %v591_v54, %v582_v19  ;;  %vm10353_vm15 = vmand %vm1624_vm14, %vm1672_vm3  ;;  %v634_v19 = vmul.u32 43690, %v630_v0  ;;  %v2213_v24 = vpop.f32.mrf.mxu0  ;;  %v620_v57 = vadd.s32 %v619_v15, %v609_v48  ;;  %v636_v28 = vmul.u32 43690, %v631_v40 }
 0x125   : > { %v13250_v16 = vsel %vm10353_vm15, 4294967295, %v13249_v16  ;;  %v2974_v29 = vsel %vm10353_vm15, %v2830_v18, 0.0  ;;  %v2782_v12 = vmul.f32 %v9912_v46, %v2733_v27  ;;  %v639_v39 = vshll.u32 %v10357_v21, 16  ;;  %vm12996_vm12 = vmpackc.low %vm10353_vm15, %vm10346_vm0  ;;  %2675 = vmatmul.bf16.gmra.mxu2 %v10402_v4 }
 0x126   : > { %v593_v10 = vshrl.u32 %v592_v63, 4  ;;  %13251 = vst [vmem:[#allocation14_spill] sm:$0xff] %v13250_v16  ;;  %v8149_v32 = vpack.c.bf16 %v2974_v29, %v2973_v41  ;;  %v2444_v33 = vpop.f32.mrf.mxu1  ;;  %v637_v35 = vshll.u32 %v634_v19, 16  ;;  %v13252_v37 = vmov 0 }
 0x127   : > { %v10369_v31 = vadd.f32 %v9927_v59, %v2782_v12  ;;  %v10387_v48 = vadd.s32 120, %v9841_v55  ;;  %v2445_v51 = vadd.f32 %v2444_v33, %v2213_v24  ;;  %v638_v52 = vshrl.u32 %v634_v19, 16  ;;  %2255 = vmatmul.bf16.gmra.mxu0 %v8808_v14  ;;  %v7982_v14 = vld [vmem:[%s12984_s1 + $0x1a8] sm:$0xff] }
 0x128   : > { %v594_v26 = vmul.u32 24, %v593_v10  ;;  %8946 = vst [vmem:[#allocation2 + $0x40] sm:$0xff] %v8149_v32   ;;  %vm641_vm14 = vc.u32 %v633_v17, %v637_v35  ;;  %v643_v45 = vadd.s32 %v637_v35, %v633_v17  ;;  %v640_v56 = vshrl.u32 %v10357_v21, 16  ;;  %5221 = vmatpush.bf16.msrb.mxu3 %v7982_v14 }
 0x129   : > { %v642_v2 = vsel %vm641_vm14, 1, %v13019_v50  ;;  %v10391_v54 = vadd.s32 128, %v9841_v55  ;;  %v659_v61 = vand.u32 65535, %v10387_v48  ;;  %v660_v62 = vshrl.u32 %v10387_v48, 16 }
 0x12a   : > { %v595_v36 = vsub.s32 %v10270_v38, %v594_v26  ;;  %v9516_v38 = vpack.c.bf16 %v2830_v18, %v10316_v22  ;;  %v644_v47 = vadd.s32 %v642_v2, %v636_v28  ;;  %v7941_v22 = vld [vmem:[%s12984_s1 + $0x150] sm:$0xff]  ;;  %vm645_vm13 = vc.u32 %v643_v45, %v639_v39 }
 0x12b   : > { %v646_v9 = vsel %vm645_vm13, 1, %v13019_v50  ;;  %v688_v0 = vand.u32 65535, %v10391_v54  ;;  %4259 = vmatpush.bf16.msrb.mxu1 %v7941_v22  ;;  %v662_v17 = vmul.u32 43691, %v659_v61  ;;  %v663_v19 = vmul.u32 43690, %v659_v61 }
 0x12c   : > { %2491 = vmatmul.bf16.gmra.mxu1 %v10275_v8  ;;  %v621_v8 = vadd.s32 %v620_v57, %v611_v58  ;;  %vm1625_vm9 = vcmp.ge.s32.totalorder %v595_v36, 2  ;;  %vm1673_vm3 = vcmp.lt.s32.totalorder %v595_v36, 18  ;;  %v2633_v58 = vpop.f32.mrf.mxu2  ;;  %v2216_v10 = vpop.f32.mrf.mxu0  ;;  %v648_v15 = vadd.s32 %v646_v9, %v644_v47 }
 0x12d   : > { %vm10372_vm8 = vmand %vm1625_vm9, %vm1673_vm3  ;;  %v2734_v63 = vadd.f32 %v2633_v58, %v2445_v51  ;;  %v664_v41 = vmul.u32 43691, %v660_v62  ;;  %v665_v29 = vmul.u32 43690, %v660_v62  ;;  %v689_v26 = vshrl.u32 %v10391_v54, 16 }
 0x12e   : > { %v13253_v37 = vsel %vm10372_vm8, 4294967295, %v13252_v37  ;;  %v622_v44 = vshrl.u32 %v621_v8, 4  ;;  %9517 = vmatmul.msk.bf16.gmra.mxu3 %vm12996_vm12, %v9516_v38  ;;  %v2975_v18 = vsel %vm10372_vm8, %v10369_v31, 0.0  ;;  %v2447_v3 = vpop.f32.mrf.mxu1  ;;  %v649_v27 = vadd.s32 %v648_v15, %v638_v52 }
 0x12f   : > { %13254 = vst [vmem:[#allocation15_spill] sm:$0xff] %v13253_v37  ;;  %v2783_v21 = vmul.f32 %v9912_v46, %v2734_v63  ;;  %v666_v32 = vshll.u32 %v663_v19, 16  ;;  %v13255_v24 = vmov 0  ;;  %v2448_v33 = vadd.f32 %v2447_v3, %v2216_v10 }
 0x130   : > { %v623_v25 = vmul.u32 24, %v622_v44  ;;  %v667_v57 = vshrl.u32 %v663_v19, 16  ;;  %v668_v28 = vshll.u32 %v664_v41, 16  ;;  %v650_v35 = vadd.s32 %v649_v27, %v640_v56 }
 0x131   : > { %vm670_vm13 = vc.u32 %v662_v17, %v666_v32  ;;  %v672_v36 = vadd.s32 %v666_v32, %v662_v17  ;;  %v691_v12 = vmul.u32 43691, %v688_v0  ;;  %v10419_v2 = vmul.u32 43690, %v688_v0  ;;  %v7990_v0 = vld [vmem:[%s12984_s1 + $0x1e8] sm:$0xff] }
 0x132   : > { %v624_v40 = vsub.s32 %v10305_v7, %v623_v25  ;;  %v2832_v7 = vadd.f32 %v9927_v59, %v2783_v21  ;;  %v671_v39 = vsel %vm670_vm13, 1, %v13019_v50  ;;  %v10421_v44 = vmul.u32 43691, %v689_v26  ;;  %5026 = vmatpush.bf16.msrb.mxu2 %v7990_v0 }
 0x133   : > { %v651_v45 = vshrl.u32 %v650_v35, 4  ;;  %v673_v51 = vadd.s32 %v671_v39, %v665_v29  ;;  %v695_v22 = vshll.u32 %v10419_v2, 16  ;;  %v10427_v25 = vadd.s32 136, %v9841_v55 }
 0x134   : > { %vm1626_vm14 = vcmp.ge.s32.totalorder %v624_v40, 2  ;;  %vm1674_vm9 = vcmp.lt.s32.totalorder %v624_v40, 18  ;;  %v2636_v47 = vpop.f32.mrf.mxu2  ;;  %v2218_v61 = vpop.f32.mrf.mxu0  ;;  %v669_v63 = vshrl.u32 %v664_v41, 16  ;;  %v694_v9 = vmul.u32 43690, %v689_v26 }
 0x135   : > { %vm10410_vm3 = vmand %vm1626_vm14, %vm1674_vm9  ;;  %vm674_vm14 = vc.u32 %v672_v36, %v668_v28  ;;  %v2735_v52 = vadd.f32 %v2636_v47, %v2448_v33  ;;  %v652_v58 = vmul.u32 24, %v651_v45  ;;  %v696_v10 = vshrl.u32 %v10419_v2, 16  ;;  %v10467_v2 = vld [vmem:[%s9762_s11 + $0xa4] sm:$0xff]  }
 0x136   : > { %v13256_v24 = vsel %vm10410_vm3, 4294967295, %v13255_v24  ;;  %v2976_v8 = vsel %vm10410_vm3, %v2832_v7, 0.0  ;;  %v675_v56 = vsel %vm674_vm14, 1, %v13019_v50  ;;  %v2449_v62 = vpop.f32.mrf.mxu1  ;;  %v697_v3 = vshll.u32 %v10421_v44, 16  ;;  %vm12999_vm12 = vmpackc.low %vm10410_vm3, %vm10372_vm8  ;;  %2680 = vmatmul.bf16.gmra.mxu2 %v10467_v2 }
 0x137   : > { %13257 = vst [vmem:[#allocation16_spill] sm:$0xff] %v13256_v24  ;;  %v8154_v38 = vpack.c.bf16 %v2976_v8, %v2975_v18  ;;  %v677_v18 = vadd.s32 %v675_v56, %v673_v51  ;;  %v2450_v40 = vadd.f32 %v2449_v62, %v2218_v61  ;;  %v653_v15 = vsub.s32 %v10337_v49, %v652_v58 }
 0x138   : > { %vm699_vm9 = vc.u32 %v691_v12, %v695_v22  ;;  %v701_v19 = vadd.s32 %v695_v22, %v691_v12  ;;  %v717_v29 = vand.u32 65535, %v10427_v25  ;;  %v718_v26 = vshrl.u32 %v10427_v25, 16  ;;  %v8809_v22 = vld [vmem:[%s9762_s11 + $0x98] sm:$0xff]  }
 0x139   : > { %8947 = vst [vmem:[#allocation2 + $0x48] sm:$0xff] %v8154_v38   ;;  %v678_v17 = vadd.s32 %v677_v18, %v667_v57  ;;  %v700_v41 = vsel %vm699_vm9, 1, %v13019_v50  ;;  %vm1627_vm13 = vcmp.ge.s32.totalorder %v653_v15, 2  ;;  %vm1675_vm14 = vcmp.lt.s32.totalorder %v653_v15, 18  ;;  %2260 = vmatmul.bf16.gmra.mxu0 %v8809_v22 }
 0x13a   : > { %v9519_v49 = vpack.c.bf16 %v2832_v7, %v10369_v31  ;;  %v702_v32 = vadd.s32 %v700_v41, %v694_v9  ;;  %vm10455_vm9 = vmand %vm1627_vm13, %vm1675_vm14  ;;  %v13258_v33 = vmov 0  ;;  %vm703_vm15 = vc.u32 %v701_v19, %v697_v3 }
 0x13b   : > { %v679_v27 = vadd.s32 %v678_v17, %v669_v63  ;;  %v13259_v33 = vsel %vm10455_vm9, 4294967295, %v13258_v33  ;;  %v720_v57 = vmul.u32 43691, %v717_v29  ;;  %v721_v28 = vmul.u32 43690, %v717_v29 }
 0x13c   : > { %2496 = vmatmul.bf16.gmra.mxu1 %v10333_v11  ;;  %v2784_v11 = vmul.f32 %v9912_v46, %v2735_v52  ;;  %13260 = vst [vmem:[#allocation17_spill] sm:$0xff] %v13259_v33  ;;  %v10459_v35 = vmul.u32 43691, %v718_v26  ;;  %v2638_v36 = vpop.f32.mrf.mxu2  ;;  %v698_v12 = vshrl.u32 %v10421_v44, 16  ;;  %v704_v8 = vsel %vm703_vm15, 1, %v13019_v50  ;;  %v2221_v52 = vpop.f32.mrf.mxu0 }
 0x13d   : > { %v680_v7 = vshrl.u32 %v679_v27, 4  ;;  %v2736_v39 = vadd.f32 %v2638_v36, %v2450_v40  ;;  %v706_v38 = vadd.s32 %v704_v8, %v702_v32  ;;  %v723_v45 = vmul.u32 43690, %v718_v26 }
 0x13e   : > { %v10440_v21 = vadd.f32 %v9927_v59, %v2784_v11  ;;  %9520 = vmatmul.msk.bf16.gmra.mxu3 %vm12999_vm12, %v9519_v49  ;;  %v724_v47 = vshll.u32 %v721_v28, 16  ;;  %v2452_v56 = vpop.f32.mrf.mxu1  ;;  %v725_v58 = vshrl.u32 %v721_v28, 16  ;;  %v726_v61 = vshll.u32 %v10459_v35, 16 }
 0x13f   : > { %v681_v51 = vmul.u32 24, %v680_v7  ;;  %v10472_v62 = vadd.s32 144, %v9841_v55  ;;  %v2785_v44 = vmul.f32 %v9912_v46, %v2736_v39  ;;  %v707_v63 = vadd.s32 %v706_v38, %v696_v10 }
 0x140   : > { %v2977_v31 = vsel %vm10455_vm9, %v10440_v21, 0.0  ;;  %v727_v18 = vshrl.u32 %v10459_v35, 16  ;;  %vm728_vm15 = vc.u32 %v720_v57, %v724_v47  ;;  %v730_v11 = vadd.s32 %v724_v47, %v720_v57 }
 0x141   : > { %v682_v9 = vsub.s32 %v10387_v48, %v681_v51  ;;  %v729_v0 = vsel %vm728_vm15, 1, %v13019_v50  ;;  %v746_v40 = vand.u32 65535, %v10472_v62  ;;  %v2834_v3 = vadd.f32 %v9927_v59, %v2785_v44  ;;  %v7924_v51 = vld [vmem:[%s12984_s1 + $0xc8] sm:$0xff] }
 0x142   : > { %v708_v14 = vadd.s32 %v707_v63, %v698_v12  ;;  %v731_v15 = vadd.s32 %v729_v0, %v723_v45  ;;  %v747_v17 = vshrl.u32 %v10472_v62, 16  ;;  %v2453_v10 = vadd.f32 %v2452_v56, %v2221_v52  ;;  %3859 = vmatpush.bf16.msrb.mxu0 %v7924_v51 }
 0x143   : > { %vm1628_vm13 = vcmp.ge.s32.totalorder %v682_v9, 2  ;;  %vm1676_vm14 = vcmp.lt.s32.totalorder %v682_v9, 18  ;;  %vm732_vm12 = vc.u32 %v730_v11, %v726_v61  ;;  %v13261_v48 = vmov 0 }
 0x144   : > { %vm10482_vm3 = vmand %vm1628_vm13, %vm1676_vm14  ;;  %v709_v19 = vshrl.u32 %v708_v14, 4  ;;  %v733_v41 = vsel %vm732_vm12, 1, %v13019_v50  ;;  %v750_v29 = vmul.u32 43690, %v746_v40  ;;  %v10487_v26 = vmul.u32 43691, %v747_v17  ;;  %v2641_v49 = vpop.f32.mrf.mxu2  ;;  %v2223_v8 = vpop.f32.mrf.mxu0 }
 0x145   : > { %v13262_v48 = vsel %vm10482_vm3, 4294967295, %v13261_v48  ;;  %v2978_v27 = vsel %vm10482_vm3, %v2834_v3, 0.0  ;;  %v735_v32 = vadd.s32 %v733_v41, %v731_v15  ;;  %v749_v57 = vmul.u32 43691, %v746_v40  ;;  %vm13004_vm8 = vmpackc.low %vm10482_vm3, %vm10455_vm9 }
 0x146   : > { %13263 = vst [vmem:[#allocation18_spill] sm:$0xff] %v13262_v48  ;;  %v10492_v28 = vadd.s32 152, %v9841_v55  ;;  %v8159_v35 = vpack.c.bf16 %v2978_v27, %v2977_v31  ;;  %v710_v7 = vmul.u32 24, %v709_v19  ;;  %v2737_v36 = vadd.f32 %v2641_v49, %v2453_v10  ;;  %v2454_v39 = vpop.f32.mrf.mxu1 }
 0x147   : > { %v753_v12 = vshll.u32 %v750_v29, 16  ;;  %v736_v38 = vadd.s32 %v735_v32, %v725_v58  ;;  %v752_v45 = vmul.u32 43690, %v747_v17  ;;  %v755_v47 = vshll.u32 %v10487_v26, 16 }
 0x148   : > { %8948 = vst [vmem:[#allocation2 + $0x50] sm:$0xff] %v8159_v35   ;;  %v711_v52 = vsub.s32 %v10391_v54, %v710_v7  ;;  %v2786_v56 = vmul.f32 %v9912_v46, %v2737_v36  ;;  %v756_v31 = vshrl.u32 %v10487_v26, 16  ;;  %v775_v58 = vand.u32 65535, %v10492_v28  ;;  %v10527_v26 = vld [vmem:[%s9762_s11 + $0xac] sm:$0xff]   ;;  %v8810_v36 = vld [vmem:[%s9762_s11 + $0xa0] sm:$0xff]  }
 0x149   : > { %v737_v22 = vadd.s32 %v736_v38, %v727_v18  ;;  %vm757_vm12 = vc.u32 %v749_v57, %v753_v12  ;;  %v759_v61 = vadd.s32 %v753_v12, %v749_v57  ;;  %v13264_v54 = vmov 0  ;;  %2265 = vmatmul.bf16.gmra.mxu0 %v8810_v36  ;;  %2685 = vmatmul.bf16.gmra.mxu2 %v10527_v26 }
 0x14a   : > { %vm1629_vm15 = vcmp.ge.s32.totalorder %v711_v52, 2  ;;  %vm1677_vm13 = vcmp.lt.s32.totalorder %v711_v52, 18  ;;  %v10504_v44 = vadd.f32 %v9927_v59, %v2786_v56  ;;  %v758_v63 = vsel %vm757_vm12, 1, %v13019_v50 }
 0x14b   : > { %vm10507_vm14 = vmand %vm1629_vm15, %vm1677_vm13  ;;  %v738_v9 = vshrl.u32 %v737_v22, 4  ;;  %v9522_v18 = vpack.c.bf16 %v2834_v3, %v10440_v21  ;;  %v760_v0 = vadd.s32 %v758_v63, %v752_v45  ;;  %vm761_vm12 = vc.u32 %v759_v61, %v755_v47 }
 0x14c   : > { %2501 = vmatmul.bf16.gmra.mxu1 %v10402_v4  ;;  %v754_v4 = vshrl.u32 %v750_v29, 16  ;;  %v13265_v54 = vsel %vm10507_vm14, 4294967295, %v13264_v54  ;;  %v776_v11 = vshrl.u32 %v10492_v28, 16  ;;  %v2455_v40 = vadd.f32 %v2454_v39, %v2223_v8  ;;  %v2643_v10 = vpop.f32.mrf.mxu2  ;;  %v2226_v35 = vpop.f32.mrf.mxu0 }
 0x14d   : > { %13266 = vst [vmem:[#allocation19_spill] sm:$0xff] %v13265_v54  ;;  %v762_v14 = vsel %vm761_vm12, 1, %v13019_v50  ;;  %v778_v15 = vmul.u32 43691, %v775_v58  ;;  %v779_v17 = vmul.u32 43690, %v775_v58  ;;  %v2979_v21 = vsel %vm10507_vm14, %v10504_v44, 0.0 }
 0x14e   : > { %9523 = vmatmul.msk.bf16.gmra.mxu3 %vm13004_vm8, %v9522_v18  ;;  %v739_v3 = vmul.u32 24, %v738_v9  ;;  %v764_v19 = vadd.s32 %v762_v14, %v760_v0  ;;  %v780_v41 = vmul.u32 43691, %v776_v11  ;;  %v2738_v29 = vadd.f32 %v2643_v10, %v2455_v40  ;;  %v2457_v7 = vpop.f32.mrf.mxu1 }
 0x14f   : > { %v781_v27 = vmul.u32 43690, %v776_v11  ;;  %v782_v49 = vshll.u32 %v779_v17, 16  ;;  %v10530_v32 = vadd.s32 160, %v9841_v55  ;;  %v783_v8 = vshrl.u32 %v779_v17, 16 }
 0x150   : > { %v740_v57 = vsub.s32 %v10427_v25, %v739_v3  ;;  %v765_v12 = vadd.s32 %v764_v19, %v754_v4  ;;  %v784_v39 = vshll.u32 %v780_v41, 16  ;;  %v2787_v38 = vmul.f32 %v9912_v46, %v2738_v29 }
 0x151   : > { %v785_v45 = vshrl.u32 %v780_v41, 16  ;;  %vm786_vm15 = vc.u32 %v778_v15, %v782_v49  ;;  %v788_v47 = vadd.s32 %v782_v49, %v778_v15  ;;  %v13267_v56 = vmov 0 }
 0x152   : > { %vm1630_vm13 = vcmp.ge.s32.totalorder %v740_v57, 2  ;;  %vm1678_vm12 = vcmp.lt.s32.totalorder %v740_v57, 18  ;;  %v766_v51 = vadd.s32 %v765_v12, %v756_v31  ;;  %v787_v52 = vsel %vm786_vm15, 1, %v13019_v50 }
 0x153   : > { %vm10536_vm8 = vmand %vm1630_vm13, %vm1678_vm12  ;;  %v2836_v25 = vadd.f32 %v9927_v59, %v2787_v38  ;;  %v789_v4 = vadd.s32 %v787_v52, %v781_v27  ;;  %vm790_vm3 = vc.u32 %v788_v47, %v784_v39  ;;  %v804_v22 = vand.u32 65535, %v10530_v32 }
 0x154   : > { %v13268_v56 = vsel %vm10536_vm8, 4294967295, %v13267_v56  ;;  %v2458_v61 = vadd.f32 %v2457_v7, %v2226_v35  ;;  %v767_v58 = vshrl.u32 %v766_v51, 4  ;;  %v791_v63 = vsel %vm790_vm3, 1, %v13019_v50  ;;  %v2646_v15 = vpop.f32.mrf.mxu2  ;;  %v2228_v57 = vpop.f32.mrf.mxu0  ;;  %vm13009_vm9 = vmpackc.low %vm10536_vm8, %vm10507_vm14 }
 0x155   : > { %13269 = vst [vmem:[#allocation20_spill] sm:$0xff] %v13268_v56  ;;  %v805_v31 = vshrl.u32 %v10530_v32, 16  ;;  %v2980_v9 = vsel %vm10536_vm8, %v2836_v25, 0.0  ;;  %v793_v18 = vadd.s32 %v791_v63, %v789_v4  ;;  %v807_v0 = vmul.u32 43691, %v804_v22 }
 0x156   : > { %v808_v11 = vmul.u32 43690, %v804_v22  ;;  %v8164_v40 = vpack.c.bf16 %v2980_v9, %v2979_v21  ;;  %v768_v14 = vmul.u32 24, %v767_v58  ;;  %v10550_v3 = vadd.s32 168, %v9841_v55  ;;  %v2459_v21 = vpop.f32.mrf.mxu1 }
 0x157   : > { %v10547_v17 = vmul.u32 43691, %v805_v31  ;;  %v2739_v10 = vadd.f32 %v2646_v15, %v2458_v61  ;;  %v794_v19 = vadd.s32 %v793_v18, %v783_v8  ;;  %v810_v41 = vmul.u32 43690, %v805_v31  ;;  %v7940_v31 = vld [vmem:[%s12984_s1 + $0x148] sm:$0xff] }
 0x158   : > { %v811_v29 = vshll.u32 %v808_v11, 16  ;;  %v3989_v27 = vshll.u32 %v9985_v30, 16  ;;  %8949 = vst [vmem:[#allocation2 + $0x58] sm:$0xff] %v8164_v40   ;;  %v769_v49 = vsub.s32 %v10472_v62, %v768_v14  ;;  %v812_v12 = vshrl.u32 %v808_v11, 16  ;;  %4260 = vmatpush.bf16.msrb.mxu1 %v7940_v31 }
 0x159   : > { %v813_v35 = vshll.u32 %v10547_v17, 16  ;;  %v2788_v7 = vmul.f32 %v9912_v46, %v2739_v10  ;;  %v795_v36 = vadd.s32 %v794_v19, %v785_v45  ;;  %v13270_v39 = vmov 0 }
 0x15a   : > { %vm815_vm3 = vc.u32 %v807_v0, %v811_v29  ;;  %vm1631_vm15 = vcmp.ge.s32.totalorder %v769_v49, 2  ;;  %vm1679_vm13 = vcmp.lt.s32.totalorder %v769_v49, 18  ;;  %v817_v8 = vadd.s32 %v811_v29, %v807_v0  ;;  %v8811_v49 = vld [vmem:[%s9762_s11 + $0xa8] sm:$0xff]  }
 0x15b   : > { %vm10558_vm12 = vmand %vm1631_vm15, %vm1679_vm13  ;;  %v10563_v62 = vadd.f32 %v9927_v59, %v2788_v7  ;;  %v796_v38 = vshrl.u32 %v795_v36, 4  ;;  %v833_v45 = vand.u32 65535, %v10550_v3  ;;  %v9525_v52 = vpack.c.bf16 %v2836_v25, %v10504_v44  ;;  %2270 = vmatmul.bf16.gmra.mxu0 %v8811_v49 }
 0x15c   : > { %2506 = vmatmul.bf16.gmra.mxu1 %v10467_v2  ;;  %v816_v2 = vsel %vm815_vm3, 1, %v13019_v50  ;;  %v13271_v39 = vsel %vm10558_vm12, 4294967295, %v13270_v39  ;;  %v814_v4 = vshrl.u32 %v10547_v17, 16  ;;  %vm819_vm3 = vc.u32 %v817_v8, %v813_v35  ;;  %v2648_v9 = vpop.f32.mrf.mxu2  ;;  %v10594_v17 = vld [vmem:[%s9762_s11 + $0xb4] sm:$0xff]  }
 0x15d   : > { %13272 = vst [vmem:[#allocation21_spill] sm:$0xff] %v13271_v39  ;;  %v818_v51 = vadd.s32 %v816_v2, %v810_v41  ;;  %v834_v22 = vshrl.u32 %v10550_v3, 16  ;;  %v10581_v61 = vadd.s32 176, %v9841_v55  ;;  %v2981_v58 = vsel %vm10558_vm12, %v10563_v62, 0.0  ;;  %v2231_v41 = vpop.f32.mrf.mxu0  ;;  %2690 = vmatmul.bf16.gmra.mxu2 %v10594_v17 }
 0x15e   : > { %9526 = vmatmul.msk.bf16.gmra.mxu3 %vm13009_vm9, %v9525_v52  ;;  %v2460_v44 = vadd.f32 %v2459_v21, %v2228_v57  ;;  %v797_v25 = vmul.u32 24, %v796_v38  ;;  %v820_v63 = vsel %vm819_vm3, 1, %v13019_v50  ;;  %v836_v0 = vmul.u32 43691, %v833_v45  ;;  %v2462_v29 = vpop.f32.mrf.mxu1 }
 0x15f   : > { %v822_v18 = vadd.s32 %v820_v63, %v818_v51  ;;  %v837_v11 = vmul.u32 43690, %v833_v45  ;;  %v10590_v40 = vmul.u32 43691, %v834_v22  ;;  %v839_v10 = vmul.u32 43690, %v834_v22 }
 0x160   : > { %v798_v14 = vsub.s32 %v10492_v28, %v797_v25  ;;  %v2740_v15 = vadd.f32 %v2648_v9, %v2460_v44  ;;  %v862_v19 = vand.u32 65535, %v10581_v61  ;;  %v863_v7 = vshrl.u32 %v10581_v61, 16 }
 0x161   : > { %v10565_v47 = vpop.f32.mrf.mxu3  ;;  %v823_v57 = vadd.s32 %v822_v18, %v812_v12  ;;  %v840_v21 = vshll.u32 %v837_v11, 16  ;;  %v842_v35 = vshll.u32 %v10590_v40, 16  ;;  %v841_v36 = vshrl.u32 %v837_v11, 16 }
 0x162   : > { %vm1632_vm15 = vcmp.ge.s32.totalorder %v798_v14, 2  ;;  %vm1680_vm13 = vcmp.lt.s32.totalorder %v798_v14, 18  ;;  %v2789_v28 = vmul.f32 %v9912_v46, %v2740_v15  ;;  %v13273_v2 = vmov 0 }
 0x163   : > { %vm10601_vm3 = vmand %vm1632_vm15, %vm1680_vm13  ;;  %v2463_v8 = vadd.f32 %v2462_v29, %v2231_v41  ;;  %v824_v38 = vadd.s32 %v823_v57, %v814_v4  ;;  %vm844_vm9 = vc.u32 %v836_v0, %v840_v21  ;;  %v846_v51 = vadd.s32 %v840_v21, %v836_v0 }
 0x164   : > { %v13274_v2 = vsel %vm10601_vm3, 4294967295, %v13273_v2  ;;  %v2838_v12 = vadd.f32 %v9927_v59, %v2789_v28  ;;  %v845_v52 = vsel %vm844_vm9, 1, %v13019_v50  ;;  %v865_v22 = vmul.u32 43691, %v862_v19  ;;  %v2651_v15 = vpop.f32.mrf.mxu2  ;;  %v7989_v28 = vld [vmem:[%s12984_s1 + $0x1e0] sm:$0xff]  ;;  %vm13014_vm14 = vmpackc.low %vm10601_vm3, %vm10558_vm12 }
 0x165   : > { %13275 = vst [vmem:[#allocation22_spill] sm:$0xff] %v13274_v2  ;;  %v10610_v44 = vmul.u32 43690, %v862_v19  ;;  %v825_v25 = vshrl.u32 %v824_v38, 4  ;;  %v847_v63 = vadd.s32 %v845_v52, %v839_v10  ;;  %vm848_vm15 = vc.u32 %v846_v51, %v842_v35  ;;  %v10620_v10 = vld [vmem:[#allocation2 + $0x18] sm:$0xff]  ;;  %v2233_v35 = vpop.f32.mrf.mxu0  ;;  %5027 = vmatpush.bf16.msrb.mxu2 %v7989_v28 }
 0x166   : > { %v10612_v31 = vmul.u32 43691, %v863_v7  ;;  %v2982_v4 = vsel %vm10601_vm3, %v2838_v12, 0.0  ;;  %v849_v9 = vsel %vm848_vm15, 1, %v13019_v50  ;;  %v868_v18 = vmul.u32 43690, %v863_v7 }
 0x167   : > { %v869_v0 = vshll.u32 %v10610_v44, 16  ;;  %v8169_v11 = vpack.c.bf16 %v2982_v4, %v2981_v58  ;;  %v826_v14 = vmul.u32 24, %v825_v25  ;;  %v843_v41 = vshrl.u32 %v10590_v40, 16  ;;  %v2464_v40 = vpop.f32.mrf.mxu1 }
 0x168   : > { %v851_v19 = vadd.s32 %v849_v9, %v847_v63  ;;  %v2741_v49 = vadd.f32 %v2651_v15, %v2463_v8  ;;  %v871_v57 = vshll.u32 %v10612_v31, 16  ;;  %v10626_v21 = vrot.slane %v3989_v27, 1  ;;  %v7981_v27 = vld [vmem:[%s12984_s1 + $0x1a0] sm:$0xff] }
 0x169   : > { %v10607_v45 = vpop.f32.mrf.mxu3  ;;  %vm873_vm9 = vc.u32 %v865_v22, %v869_v0  ;;  %8950 = vst [vmem:[#allocation2 + $0x60] sm:$0xff] %v8169_v11   ;;  %v827_v58 = vsub.s32 %v10530_v32, %v826_v14  ;;  %v870_v38 = vshrl.u32 %v10610_v44, 16  ;;  %v875_v51 = vadd.s32 %v869_v0, %v865_v22  ;;  %5222 = vmatpush.bf16.msrb.mxu3 %v7981_v27 }
 0x16a   : > { %v852_v7 = vadd.s32 %v851_v19, %v841_v36  ;;  %v2790_v8 = vmul.f32 %v9912_v46, %v2741_v49  ;;  %v10639_v36 = vadd.s32 184, %v9841_v55  ;;  %v13276_v52 = vmov 0 }
 0x16b   : > { %vm1633_vm13 = vcmp.ge.s32.totalorder %v827_v58, 2  ;;  %vm1681_vm15 = vcmp.lt.s32.totalorder %v827_v58, 18  ;;  %v872_v22 = vshrl.u32 %v10612_v31, 16  ;;  %vm877_vm8 = vc.u32 %v875_v51, %v871_v57 }
 0x16c   : > { %2511 = vmatmul.bf16.gmra.mxu1 %v10527_v26  ;;  %v874_v26 = vsel %vm873_vm9, 1, %v13019_v50  ;;  %v853_v32 = vadd.s32 %v852_v7, %v843_v41  ;;  %vm10641_vm9 = vmand %vm1633_vm13, %vm1681_vm15  ;;  %v10646_v25 = vadd.f32 %v9927_v59, %v2790_v8  ;;  %v10650_v44 = vadd.s32 192, %v9841_v55  ;;  %v2653_v41 = vpop.f32.mrf.mxu2  ;;  %v10674_v7 = vld [vmem:[%s9762_s11 + $0xbc] sm:$0xff]  }
 0x16d   : > { %v876_v30 = vadd.s32 %v874_v26, %v868_v18  ;;  %v13277_v52 = vsel %vm10641_vm9, 4294967295, %v13276_v52  ;;  %v9528_v4 = vpack.c.bf16 %v2838_v12, %v10563_v62  ;;  %v878_v9 = vsel %vm877_vm8, 1, %v13019_v50  ;;  %2695 = vmatmul.bf16.gmra.mxu2 %v10674_v7 }
 0x16e   : > { %13278 = vst [vmem:[#allocation23_spill] sm:$0xff] %v13277_v52  ;;  %v854_v63 = vshrl.u32 %v853_v32, 4  ;;  %v891_v18 = vand.u32 65535, %v10639_v36  ;;  %v892_v0 = vshrl.u32 %v10639_v36, 16  ;;  %v2983_v11 = vsel %vm10641_vm9, %v10646_v25, 0.0 }
 0x16f   : > { %9529 = vmatmul.msk.bf16.gmra.mxu3 %vm13014_vm14, %v9528_v4  ;;  %v2465_v62 = vadd.f32 %v2464_v40, %v2233_v35  ;;  %v880_v12 = vadd.s32 %v878_v9, %v876_v30  ;;  %v920_v14 = vand.u32 65535, %v10650_v44  ;;  %v921_v8 = vshrl.u32 %v10650_v44, 16  ;;  %v2236_v35 = vpop.f32.mrf.mxu0  ;;  %v2467_v40 = vpop.f32.mrf.mxu1  ;;  %v8812_v30 = vld [vmem:[%s9762_s11 + $0xb0] sm:$0xff]  }
 0x170   : > { %v855_v15 = vmul.u32 24, %v854_v63  ;;  %v894_v19 = vmul.u32 43691, %v891_v18  ;;  %v895_v49 = vmul.u32 43690, %v891_v18  ;;  %v10671_v57 = vmul.u32 43691, %v892_v0  ;;  %2275 = vmatmul.bf16.gmra.mxu0 %v8812_v30 }
 0x171   : > { %v10662_v31 = vpop.f32.mrf.mxu3  ;;  %v2742_v58 = vadd.f32 %v2653_v41, %v2465_v62  ;;  %v881_v26 = vadd.s32 %v880_v12, %v870_v38  ;;  %v897_v28 = vmul.u32 43690, %v892_v0  ;;  %v923_v63 = vmul.u32 43691, %v920_v14 }
 0x172   : > { %v856_v51 = vsub.s32 %v10550_v3, %v855_v15  ;;  %v898_v27 = vshll.u32 %v895_v49, 16  ;;  %v900_v32 = vshll.u32 %v10671_v57, 16  ;;  %v2468_v9 = vadd.f32 %v2467_v40, %v2236_v35 }
 0x173   : > { %v2791_v4 = vmul.f32 %v9912_v46, %v2742_v58  ;;  %v882_v18 = vadd.s32 %v881_v26, %v872_v22  ;;  %v899_v62 = vshrl.u32 %v895_v49, 16  ;;  %v13279_v0 = vmov 0 }
 0x174   : > { %vm1634_vm8 = vcmp.ge.s32.totalorder %v856_v51, 2  ;;  %vm1682_vm13 = vcmp.lt.s32.totalorder %v856_v51, 18  ;;  %vm902_vm15 = vc.u32 %v894_v19, %v898_v27  ;;  %v904_v38 = vadd.s32 %v898_v27, %v894_v19  ;;  %v2656_v27 = vpop.f32.mrf.mxu2 }
 0x175   : > { %vm10681_vm14 = vmand %vm1634_vm8, %vm1682_vm13  ;;  %v2840_v3 = vadd.f32 %v9927_v59, %v2791_v4  ;;  %v883_v12 = vshrl.u32 %v882_v18, 4  ;;  %v903_v15 = vsel %vm902_vm15, 1, %v13019_v50  ;;  %v924_v41 = vmul.u32 43690, %v920_v14 }
 0x176   : > { %v13280_v0 = vsel %vm10681_vm14, 4294967295, %v13279_v0  ;;  %v901_v22 = vshrl.u32 %v10671_v57, 16  ;;  %v905_v49 = vadd.s32 %v903_v15, %v897_v28  ;;  %vm906_vm3 = vc.u32 %v904_v38, %v900_v32  ;;  %v10698_v57 = vld [vmem:[#allocation2 + $0x20] sm:$0xff] }
 0x177   : > { %13281 = vst [vmem:[#allocation24_spill] sm:$0xff] %v13280_v0  ;;  %v10691_v19 = vmul.u32 43691, %v921_v8  ;;  %v2984_v26 = vsel %vm10681_vm14, %v2840_v3, 0.0  ;;  %v884_v51 = vmul.u32 24, %v883_v12  ;;  %v907_v35 = vsel %vm906_vm3, 1, %v13019_v50  ;;  %v2238_v15 = vpop.f32.mrf.mxu0 }
 0x178   : > { %v927_v40 = vshll.u32 %v924_v41, 16  ;;  %v8174_v30 = vpack.c.bf16 %v2984_v26, %v2983_v11  ;;  %v909_v4 = vadd.s32 %v907_v35, %v905_v49  ;;  %v926_v18 = vmul.u32 43690, %v921_v8  ;;  %v2469_v11 = vpop.f32.mrf.mxu1 }
 0x179   : > { %v10688_v58 = vpop.f32.mrf.mxu3  ;;  %v929_v14 = vshll.u32 %v10691_v19, 16  ;;  %v885_v32 = vsub.s32 %v10581_v61, %v884_v51  ;;  %v2743_v38 = vadd.f32 %v2656_v27, %v2468_v9  ;;  %v928_v61 = vshrl.u32 %v924_v41, 16  ;;  %v10708_v9 = vld [vmem:[#allocation2 + $0x14] sm:$0xff]  }
 0x17a   : > { %vm931_vm8 = vc.u32 %v923_v63, %v927_v40  ;;  %8951 = vst [vmem:[#allocation2 + $0x68] sm:$0xff] %v8174_v30   ;;  %v910_v26 = vadd.s32 %v909_v4, %v899_v62  ;;  %v933_v49 = vadd.s32 %v927_v40, %v923_v63  ;;  %v13282_v51 = vmov 0 }
 0x17b   : > { %v932_v8 = vsel %vm931_vm8, 1, %v13019_v50  ;;  %vm1635_vm3 = vcmp.ge.s32.totalorder %v885_v32, 2  ;;  %vm1683_vm13 = vcmp.lt.s32.totalorder %v885_v32, 18  ;;  %v2792_v35 = vmul.f32 %v9912_v46, %v2743_v38  ;;  %vm13027_vm8 = vmpackc.low %vm10681_vm14, %vm10641_vm9 }
 0x17c   : > { %2516 = vmatmul.bf16.gmra.mxu1 %v10594_v17  ;;  %v7923_v17 = vld [vmem:[%s12984_s1 + $0xc0] sm:$0xff]  ;;  %vm10710_vm15 = vmand %vm1635_vm3, %vm1683_vm13  ;;  %v911_v30 = vadd.s32 %v910_v26, %v901_v22  ;;  %v934_v62 = vadd.s32 %v932_v8, %v926_v18  ;;  %vm935_vm12 = vc.u32 %v933_v49, %v929_v14  ;;  %v10715_v63 = vadd.s32 200, %v9841_v55  ;;  %v2658_v49 = vpop.f32.mrf.mxu2 }
 0x17d   : > { %v13283_v51 = vsel %vm10710_vm15, 4294967295, %v13282_v51  ;;  %3860 = vmatpush.bf16.msrb.mxu0 %v7923_v17  ;;  %v10718_v40 = vadd.f32 %v9927_v59, %v2792_v35  ;;  %v930_v27 = vshrl.u32 %v10691_v19, 16  ;;  %v936_v41 = vsel %vm935_vm12, 1, %v13019_v50 }
 0x17e   : > { %13284 = vst [vmem:[#allocation25_spill] sm:$0xff] %v13283_v51  ;;  %v10723_v4 = vadd.s32 208, %v9841_v55  ;;  %v912_v32 = vshrl.u32 %v911_v30, 4  ;;  %v9531_v22 = vpack.c.bf16 %v2840_v3, %v10646_v25  ;;  %v938_v19 = vadd.s32 %v936_v41, %v934_v62 }
 0x17f   : > { %v949_v18 = vand.u32 65535, %v10715_v63  ;;  %v950_v14 = vshrl.u32 %v10715_v63, 16  ;;  %v2985_v38 = vsel %vm10710_vm15, %v10718_v40, 0.0  ;;  %v2470_v26 = vadd.f32 %v2469_v11, %v2238_v15  ;;  %v2241_v29 = vpop.f32.mrf.mxu0 }
 0x180   : > { %9532 = vmatmul.msk.bf16.gmra.mxu3 %vm13027_vm8, %v9531_v22  ;;  %v978_v8 = vand.u32 65535, %v10723_v4  ;;  %v3558_v25 = vshrl.u32 %v10708_v9, 16  ;;  %v913_v3 = vmul.u32 24, %v912_v32  ;;  %v939_v35 = vadd.s32 %v938_v19, %v928_v61  ;;  %v10745_v22 = vld [vmem:[%s9762_s11 + $0xc4] sm:$0xff]   ;;  %v2472_v50 = vpop.f32.mrf.mxu1  ;;  %v8813_v32 = vld [vmem:[%s9762_s11 + $0xb8] sm:$0xff]  }
 0x181   : > { %v10742_v17 = vpop.f32.mrf.mxu3  ;;  %v952_v30 = vmul.u32 43691, %v949_v18  ;;  %v953_v62 = vmul.u32 43690, %v949_v18  ;;  %v2744_v41 = vadd.f32 %v2658_v49, %v2470_v26  ;;  %v954_v12 = vmul.u32 43691, %v950_v14  ;;  %2280 = vmatmul.bf16.gmra.mxu0 %v8813_v32  ;;  %2700 = vmatmul.bf16.gmra.mxu2 %v10745_v22 }
 0x182   : > { %v979_v28 = vshrl.u32 %v10723_v4, 16  ;;  %v10749_v15 = vadd.s32 216, %v9841_v55  ;;  %v914_v11 = vsub.s32 %v10639_v36, %v913_v3  ;;  %v940_v0 = vadd.s32 %v939_v35, %v930_v27 }
 0x183   : > { %v955_v52 = vmul.u32 43690, %v950_v14  ;;  %v956_v2 = vshll.u32 %v953_v62, 16  ;;  %v2793_v61 = vmul.f32 %v9912_v46, %v2744_v41  ;;  %v957_v19 = vshrl.u32 %v953_v62, 16 }
 0x184   : > { %v958_v18 = vshll.u32 %v954_v12, 16  ;;  %v981_v26 = vmul.u32 43691, %v978_v8  ;;  %vm1636_vm12 = vcmp.ge.s32.totalorder %v914_v11, 2  ;;  %vm1684_vm3 = vcmp.lt.s32.totalorder %v914_v11, 18 }
 0x185   : > { %v941_v49 = vshrl.u32 %v940_v0, 4  ;;  %vm960_vm13 = vc.u32 %v952_v30, %v956_v2  ;;  %vm10754_vm8 = vmand %vm1636_vm12, %vm1684_vm3  ;;  %v13285_v39 = vmov 0  ;;  %v2842_v36 = vadd.f32 %v9927_v59, %v2793_v61  ;;  %v2661_v61 = vpop.f32.mrf.mxu2 }
 0x186   : > { %v13286_v39 = vsel %vm10754_vm8, 4294967295, %v13285_v39  ;;  %v13288_v27 = vmov 0   ;;  %v962_v3 = vadd.s32 %v956_v2, %v952_v30  ;;  %v982_v35 = vmul.u32 43690, %v978_v8  ;;  %vm13044_vm9 = vmpackc.low %vm10754_vm8, %vm10710_vm15 }
 0x187   : > { %13287 = vst [vmem:[#allocation26_spill] sm:$0xff] %v13286_v39  ;;  %v961_v14 = vsel %vm960_vm13, 1, %v13288_v27  ;;  %v2473_v62 = vadd.f32 %v2472_v50, %v2241_v29  ;;  %v942_v41 = vmul.u32 24, %v941_v49  ;;  %v10761_v54 = vmul.u32 43691, %v979_v28 }
 0x188   : > { %v963_v56 = vadd.s32 %v961_v14, %v955_v52  ;;  %v2986_v0 = vsel %vm10754_vm8, %v2842_v36, 0.0  ;;  %v959_v11 = vshrl.u32 %v954_v12, 16  ;;  %vm964_vm12 = vc.u32 %v962_v3, %v958_v18  ;;  %v2243_v12 = vpop.f32.mrf.mxu0 }
 0x189   : > { %v985_v48 = vshll.u32 %v982_v35, 16  ;;  %v8179_v33 = vpack.c.bf16 %v2986_v0, %v2985_v38  ;;  %v943_v32 = vsub.s32 %v10650_v44, %v942_v41  ;;  %v10766_v24 = vpop.f32.mrf.mxu3  ;;  %v965_v2 = vsel %vm964_vm12, 1, %v13288_v27  ;;  %v2474_v38 = vpop.f32.mrf.mxu1 }
 0x18a   : > { %v984_v8 = vmul.u32 43690, %v979_v28  ;;  %v2745_v50 = vadd.f32 %v2661_v61, %v2473_v62  ;;  %v967_v29 = vadd.s32 %v965_v2, %v963_v56  ;;  %v987_v52 = vshll.u32 %v10761_v54, 16 }
 0x18b   : > { %vm989_vm3 = vc.u32 %v981_v26, %v985_v48  ;;  %8952 = vst [vmem:[#allocation2 + $0x70] sm:$0xff] %v8179_v33   ;;  %vm1637_vm13 = vcmp.ge.s32.totalorder %v943_v32, 2  ;;  %vm1685_vm14 = vcmp.lt.s32.totalorder %v943_v32, 18  ;;  %v10772_v30 = vrot.slane %v3558_v25, 3 }
 0x18c   : > { %2521 = vmatmul.bf16.gmra.mxu1 %v10674_v7  ;;  %v990_v44 = vsel %vm989_vm3, 1, %v13288_v27  ;;  %v2794_v18 = vmul.f32 %v9912_v46, %v2745_v50  ;;  %v968_v49 = vadd.s32 %v967_v29, %v957_v19  ;;  %v991_v28 = vadd.s32 %v985_v48, %v981_v26  ;;  %vm10778_vm12 = vmand %vm1637_vm13, %vm1685_vm14 }
 0x18d   : > { %v986_v14 = vshrl.u32 %v982_v35, 16  ;;  %v992_v56 = vadd.s32 %v990_v44, %v984_v8  ;;  %v1007_v3 = vand.u32 65535, %v10749_v15  ;;  %v1008_v33 = vshrl.u32 %v10749_v15, 16  ;;  %v2663_v50 = vpop.f32.mrf.mxu2 }
 0x18e   : > { %v13289_v62 = vmov 0  ;;  %v10783_v41 = vadd.f32 %v9927_v59, %v2794_v18  ;;  %v969_v25 = vadd.s32 %v968_v49, %v959_v11  ;;  %vm993_vm3 = vc.u32 %v991_v28, %v987_v52  ;;  %v9370_v18 = vld [vmem:[%s9762_s11 + $0xcc] sm:$0xff]  }
 0x18f   : > { %v13290_v62 = vsel %vm10778_vm12, 4294967295, %v13289_v62  ;;  %v10786_v19 = vadd.s32 224, %v9841_v55  ;;  %v9534_v48 = vpack.c.bf16 %v2842_v36, %v10718_v40  ;;  %v994_v26 = vsel %vm993_vm3, 1, %v13288_v27  ;;  %v7939_v40 = vld [vmem:[%s12984_s1 + $0x140] sm:$0xff] }
 0x190   : > { %13291 = vst [vmem:[#allocation27_spill] sm:$0xff] %v13290_v62  ;;  %v1010_v35 = vmul.u32 43691, %v1007_v3  ;;  %v10799_v0 = vmul.u32 43690, %v1007_v3  ;;  %v10801_v11 = vmul.u32 43691, %v1008_v33  ;;  %v2475_v32 = vadd.f32 %v2474_v38, %v2243_v12  ;;  %4261 = vmatpush.bf16.msrb.mxu1 %v7939_v40 }
 0x191   : > { %9535 = vmatmul.msk.bf16.gmra.mxu3 %vm13044_vm9, %v9534_v48  ;;  %v970_v61 = vshrl.u32 %v969_v25, 4  ;;  %v988_v2 = vshrl.u32 %v10761_v54, 16  ;;  %v996_v8 = vadd.s32 %v994_v26, %v992_v56  ;;  %v2987_v36 = vsel %vm10778_vm12, %v10783_v41, 0.0  ;;  %v10813_v54 = vpop.f32.mrf.mxu3  ;;  %v2246_v56 = vpop.f32.mrf.mxu0  ;;  %v8814_v25 = vld [vmem:[%s9762_s11 + $0xc0] sm:$0xff]   ;;  %2705 = vmatmul.bf16.gmra.mxu2 %v9370_v18 }
 0x192   : > { %v1013_v29 = vmul.u32 43690, %v1008_v33  ;;  %v1014_v52 = vshll.u32 %v10799_v0, 16  ;;  %v1016_v44 = vshll.u32 %v10801_v11, 16  ;;  %v2746_v38 = vadd.f32 %v2663_v50, %v2475_v32  ;;  %v2477_v3 = vpop.f32.mrf.mxu1  ;;  %2285 = vmatmul.bf16.gmra.mxu0 %v8814_v25 }
 0x193   : > { %v971_v12 = vmul.u32 24, %v970_v61  ;;  %v997_v49 = vadd.s32 %v996_v8, %v986_v14  ;;  %v1036_v28 = vand.u32 65535, %v10786_v19  ;;  %v1015_v48 = vshrl.u32 %v10799_v0, 16 }
 0x194   : > { %vm1018_vm14 = vc.u32 %v1010_v35, %v1014_v52  ;;  %v1020_v33 = vadd.s32 %v1014_v52, %v1010_v35  ;;  %v1037_v26 = vshrl.u32 %v10786_v19, 16  ;;  %v2795_v32 = vmul.f32 %v9912_v46, %v2746_v38 }
 0x195   : > { %v972_v7 = vsub.s32 %v10715_v63, %v971_v12  ;;  %v998_v61 = vadd.s32 %v997_v49, %v988_v2  ;;  %v1017_v50 = vshrl.u32 %v10801_v11, 16  ;;  %v1019_v14 = vsel %vm1018_vm14, 1, %v13288_v27 }
 0x196   : > { %vm1022_vm13 = vc.u32 %v1020_v33, %v1016_v44  ;;  %v1039_v8 = vmul.u32 43691, %v1036_v28  ;;  %v10823_v40 = vmul.u32 43690, %v1036_v28  ;;  %v2844_v0 = vadd.f32 %v9927_v59, %v2795_v32  ;;  %v2666_v28 = vpop.f32.mrf.mxu2 }
 0x197   : > { %vm1638_vm3 = vcmp.ge.s32.totalorder %v972_v7, 2  ;;  %vm1686_vm9 = vcmp.lt.s32.totalorder %v972_v7, 18  ;;  %v999_v35 = vshrl.u32 %v998_v61, 4  ;;  %v13292_v63 = vmov 0 }
 0x198   : > { %vm10826_vm8 = vmand %vm1638_vm3, %vm1686_vm9  ;;  %v1021_v2 = vadd.s32 %v1019_v14, %v1013_v29  ;;  %v1023_v11 = vsel %vm1022_vm13, 1, %v13288_v27  ;;  %v10831_v52 = vmul.u32 43691, %v1037_v26  ;;  %v10834_v44 = vadd.s32 232, %v9841_v55 }
 0x199   : > { %v13293_v63 = vsel %vm10826_vm8, 4294967295, %v13292_v63  ;;  %v2988_v7 = vsel %vm10826_vm8, %v2844_v0, 0.0  ;;  %v2478_v12 = vadd.f32 %v2477_v3, %v2246_v56  ;;  %v1000_v38 = vmul.u32 24, %v999_v35  ;;  %v10842_v14 = vpop.f32.mrf.mxu3  ;;  %v2248_v56 = vpop.f32.mrf.mxu0 }
 0x19a   : > { %13294 = vst [vmem:[#allocation28_spill] sm:$0xff] %v13293_v63  ;;  %v1043_v18 = vshll.u32 %v10823_v40, 16  ;;  %v8184_v49 = vpack.c.bf16 %v2988_v7, %v2987_v36  ;;  %v1025_v25 = vadd.s32 %v1023_v11, %v1021_v2  ;;  %v1042_v33 = vmul.u32 43690, %v1037_v26  ;;  %v2479_v3 = vpop.f32.mrf.mxu1  ;;  %v7988_v26 = vld [vmem:[%s12984_s1 + $0x1d8] sm:$0xff] }
 0x19b   : > { %v1045_v29 = vshll.u32 %v10831_v52, 16  ;;  %v1001_v32 = vsub.s32 %v10723_v4, %v1000_v38  ;;  %v2747_v61 = vadd.f32 %v2666_v28, %v2478_v12  ;;  %v1065_v2 = vand.u32 65535, %v10834_v44  ;;  %5028 = vmatpush.bf16.msrb.mxu2 %v7988_v26  ;;  %v9371_v26 = vld [vmem:[%s9762_s11 + $0xd4] sm:$0xff]  ;;  %v9375_v63 = vld [vmem:[#allocation2 + $0x1c] sm:$0xff]  }
 0x19c   : > { %2526 = vmatmul.bf16.gmra.mxu1 %v10745_v22  ;;  %vm1047_vm9 = vc.u32 %v1039_v8, %v1043_v18  ;;  %v1049_v39 = vadd.s32 %v1043_v18, %v1039_v8  ;;  %8953 = vst [vmem:[#allocation2 + $0x78] sm:$0xff] %v8184_v49   ;;  %v1026_v35 = vadd.s32 %v1025_v25, %v1015_v48  ;;  %v13295_v22 = vshll.u32 %v10708_v9, 16  ;;  %v7980_v48 = vld [vmem:[%s12984_s1 + $0x198] sm:$0xff] }
 0x19d   : > { %v1048_v36 = vsel %vm1047_vm9, 1, %v13288_v27  ;;  %vm1639_vm14 = vcmp.ge.s32.totalorder %v1001_v32, 2  ;;  %v2796_v11 = vmul.f32 %v9912_v46, %v2747_v61  ;;  %v1044_v8 = vshrl.u32 %v10823_v40, 16  ;;  %5223 = vmatpush.bf16.msrb.mxu3 %v7980_v48  ;;  %vm13049_vm9 = vmpackc.low %vm10826_vm8, %vm10778_vm12 }
 0x19e   : > { %v10851_v4 = vrot.slane %v13295_v22, 4  ;;  %v1046_v7 = vshrl.u32 %v10831_v52, 16  ;;  %v1027_v12 = vadd.s32 %v1026_v35, %v1017_v50  ;;  %v1050_v38 = vadd.s32 %v1048_v36, %v1042_v33  ;;  %v2668_v35 = vpop.f32.mrf.mxu2 }
 0x19f   : > { %vm1051_vm13 = vc.u32 %v1049_v39, %v1045_v29  ;;  %v1066_v18 = vshrl.u32 %v10834_v44, 16  ;;  %vm1687_vm3 = vcmp.lt.s32.totalorder %v1001_v32, 18  ;;  %v1068_v49 = vmul.u32 43691, %v1065_v2 }
 0x1a0   : > { %v1052_v9 = vsel %vm1051_vm13, 1, %v13288_v27  ;;  %v1069_v28 = vmul.u32 43690, %v1065_v2  ;;  %v2480_v25 = vadd.f32 %v2479_v3, %v2248_v56  ;;  %v1028_v40 = vshrl.u32 %v1027_v12, 4 }
 0x1a1   : > { %v9537_v50 = vpack.c.bf16 %v2844_v0, %v10783_v41  ;;  %v1054_v39 = vadd.s32 %v1052_v9, %v1050_v38  ;;  %v1070_v52 = vmul.u32 43691, %v1066_v18  ;;  %v10872_v33 = vadd.f32 %v9927_v59, %v2796_v11  ;;  %v10878_v22 = vpop.f32.mrf.mxu3  ;;  %v2251_v38 = vpop.f32.mrf.mxu0  ;;  %v8815_v9 = vld [vmem:[%s9762_s11 + $0xc8] sm:$0xff]   ;;  %2710 = vmatmul.bf16.gmra.mxu2 %v9371_v26 }
 0x1a2   : > { %v1071_v29 = vmul.u32 43690, %v1066_v18  ;;  %v1072_v61 = vshll.u32 %v1069_v28, 16  ;;  %v10875_v56 = vadd.s32 240, %v9841_v55  ;;  %v1029_v3 = vmul.u32 24, %v1028_v40  ;;  %v2482_v18 = vpop.f32.mrf.mxu1  ;;  %2290 = vmatmul.bf16.gmra.mxu0 %v8815_v9 }
 0x1a3   : > { %9538 = vmatmul.msk.bf16.gmra.mxu3 %vm13049_vm9, %v9537_v50  ;;  %v1055_v41 = vadd.s32 %v1054_v39, %v1044_v8  ;;  %v1073_v0 = vshrl.u32 %v1069_v28, 16  ;;  %v1074_v36 = vshll.u32 %v1070_v52, 16  ;;  %v2748_v2 = vadd.f32 %v2668_v35, %v2480_v25  ;;  %vm10887_vm9 = vmand %vm1639_vm14, %vm1687_vm3 }
 0x1a4   : > { %vm1076_vm13 = vc.u32 %v1068_v49, %v1072_v61  ;;  %v1078_v48 = vadd.s32 %v1072_v61, %v1068_v49  ;;  %v1094_v11 = vand.u32 65535, %v10875_v56  ;;  %v1030_v12 = vsub.s32 %v10749_v15, %v1029_v3 }
 0x1a5   : > { %v1056_v50 = vadd.s32 %v1055_v41, %v1046_v7  ;;  %v1077_v40 = vsel %vm1076_vm13, 1, %v13288_v27  ;;  %v1095_v8 = vshrl.u32 %v10875_v56, 16  ;;  %v13296_v28 = vmov 0 }
 0x1a6   : > { %v13297_v28 = vsel %vm10887_vm9, 4294967295, %v13296_v28  ;;  %v2797_v49 = vmul.f32 %v9912_v46, %v2748_v2  ;;  %v1075_v25 = vshrl.u32 %v1070_v52, 16  ;;  %v1079_v39 = vadd.s32 %v1077_v40, %v1071_v29  ;;  %v2671_v9 = vpop.f32.mrf.mxu2 }
 0x1a7   : > { %13298 = vst [vmem:[#allocation29_spill] sm:$0xff] %v13297_v28  ;;  %vm1080_vm8 = vc.u32 %v1078_v48, %v1074_v36  ;;  %vm1640_vm12 = vcmp.ge.s32.totalorder %v1030_v12, 2  ;;  %vm1688_vm15 = vcmp.lt.s32.totalorder %v1030_v12, 18  ;;  %v1057_v15 = vshrl.u32 %v1056_v50, 4 }
 0x1a8   : > { %v1081_v7 = vsel %vm1080_vm8, 1, %v13288_v27  ;;  %vm10893_vm0 = vmand %vm1640_vm12, %vm1688_vm15  ;;  %v13299_v61 = vmov 0  ;;  %v2846_v32 = vadd.f32 %v9927_v59, %v2797_v49  ;;  %v1097_v35 = vmul.u32 43691, %v1094_v11 }
 0x1a9   : > { %v13300_v61 = vsel %vm10893_vm0, 4294967295, %v13299_v61  ;;  %v1083_v3 = vadd.s32 %v1081_v7, %v1079_v39  ;;  %v1098_v41 = vmul.u32 43690, %v1094_v11  ;;  %v2989_v52 = vsel %vm10887_vm9, %v10872_v33, 0.0  ;;  %vm13066_vm13 = vmpackc.low %vm10893_vm0, %vm10887_vm9 }
 0x1aa   : > { %13301 = vst [vmem:[#allocation30_spill] sm:$0xff] %v13300_v61  ;;  %v2483_v29 = vadd.f32 %v2482_v18, %v2251_v38  ;;  %v1058_v36 = vmul.u32 24, %v1057_v15  ;;  %v10901_v2 = vmul.u32 43691, %v1095_v8  ;;  %v2990_v48 = vsel %vm10893_vm0, %v2846_v32, 0.0  ;;  %v10910_v38 = vpop.f32.mrf.mxu3 }
 0x1ab   : > { %v1084_v12 = vadd.s32 %v1083_v3, %v1073_v0  ;;  %v1100_v50 = vmul.u32 43690, %v1095_v8  ;;  %v1101_v40 = vshll.u32 %v1098_v41, 16  ;;  %v8189_v49 = vpack.c.bf16 %v2990_v48, %v2989_v52  ;;  %v2253_v0 = vpop.f32.mrf.mxu0  ;;  %v2484_v8 = vpop.f32.mrf.mxu1  ;;  %v8000_v52 = vld [vmem:[%s12984_s1 + $0x238] sm:$0xff] }
 0x1ac   : > { %v1059_v26 = vsub.s32 %v10786_v19, %v1058_v36  ;;  %v1103_v11 = vshll.u32 %v10901_v2, 16  ;;  %v10908_v39 = vadd.s32 248, %v9841_v55  ;;  %v2749_v7 = vadd.f32 %v2671_v9, %v2483_v29  ;;  %5414 = vmatpush.bf16.msra.mxu0 %v8000_v52 }
 0x1ad   : > { %v1085_v18 = vadd.s32 %v1084_v12, %v1075_v25  ;;  %vm1105_vm15 = vc.u32 %v1097_v35, %v1101_v40  ;;  %v1107_v15 = vadd.s32 %v1101_v40, %v1097_v35  ;;  %8954 = vst [vmem:[#allocation2 + $0x80] sm:$0xff] %v8189_v49   ;;  %v1102_v3 = vshrl.u32 %v1098_v41, 16 }
 0x1ae   : > { %vm1641_vm8 = vcmp.ge.s32.totalorder %v1059_v26, 2  ;;  %vm1689_vm12 = vcmp.lt.s32.totalorder %v1059_v26, 18  ;;  %v1106_v19 = vsel %vm1105_vm15, 1, %v13288_v27  ;;  %v2798_v29 = vmul.f32 %v9912_v46, %v2749_v7 }
 0x1af   : > { %v1086_v36 = vshrl.u32 %v1085_v18, 4  ;;  %v1104_v25 = vshrl.u32 %v10901_v2, 16  ;;  %v1108_v48 = vadd.s32 %v1106_v19, %v1100_v50  ;;  %vm10918_vm14 = vmand %vm1641_vm8, %vm1689_vm12  ;;  %v13302_v35 = vmov 0  ;;  %v2673_v19 = vpop.f32.mrf.mxu2 }
 0x1b0   : > { %v13303_v35 = vsel %vm10918_vm14, 4294967295, %v13302_v35  ;;  %v2485_v12 = vadd.f32 %v2484_v8, %v2253_v0  ;;  %vm1109_vm3 = vc.u32 %v1107_v15, %v1103_v11  ;;  %v1123_v41 = vand.u32 65535, %v10908_v39 }
 0x1b1   : > { %13304 = vst [vmem:[#allocation31_spill] sm:$0xff] %v13303_v35  ;;  %v1124_v40 = vshrl.u32 %v10908_v39, 16  ;;  %v10925_v49 = vadd.f32 %v9927_v59, %v2798_v29  ;;  %v1087_v26 = vmul.u32 24, %v1086_v36  ;;  %v1110_v9 = vsel %vm1109_vm3, 1, %v13288_v27 }
 0x1b2   : > { %v3566_v7 = vshrl.u32 %v9375_v63, 16  ;;  %v9540_v2 = vpack.c.bf16 %v2846_v32, %v10872_v33  ;;  %v1112_v50 = vadd.s32 %v1110_v9, %v1108_v48  ;;  %v1126_v11 = vmul.u32 43691, %v1123_v41  ;;  %v7898_v9 = vld [vmem:[%s9762_s11 + $0xdc] sm:$0xff] }
 0x1b3   : > { %v1127_v18 = vmul.u32 43690, %v1123_v41  ;;  %v10938_v15 = vmul.u32 43691, %v1124_v40  ;;  %v2991_v0 = vsel %vm10918_vm14, %v10925_v49, 0.0  ;;  %v1088_v8 = vsub.s32 %v10834_v44, %v1087_v26  ;;  %v2256_v28 = vpop.f32.mrf.mxu0  ;;  %v2487_v44 = vpop.f32.mrf.mxu1  ;;  %v8816_v26 = vld [vmem:[%s9762_s11 + $0xd0] sm:$0xff]   ;;  %2715 = vmatmul.bf16.gmra.mxu2 %v7898_v9 }
 0x1b4   : > { %9541 = vmatmul.msk.bf16.gmra.mxu3 %vm13066_vm13, %v9540_v2  ;;  %v1129_v33 = vmul.u32 43690, %v1124_v40  ;;  %v3564_v32 = vor.u32 %v10851_v4, %v10772_v30  ;;  %v1113_v52 = vadd.s32 %v1112_v50, %v1102_v3  ;;  %v3568_v48 = vrot.slane %v3566_v7, 3  ;;  %v10948_v2 = vpop.f32.mrf.mxu3  ;;  %2295 = vmatmul.bf16.gmra.mxu0 %v8816_v26 }
 0x1b5   : > { %v1130_v29 = vshll.u32 %v1127_v18, 16  ;;  %v1132_v36 = vshll.u32 %v10938_v15, 16  ;;  %vm1642_vm8 = vcmp.ge.s32.totalorder %v1088_v8, 2  ;;  %vm1690_vm12 = vcmp.lt.s32.totalorder %v1088_v8, 18 }
 0x1b6   : > { %v2750_v41 = vadd.f32 %v2673_v19, %v2485_v12  ;;  %v1131_v61 = vshrl.u32 %v1127_v18, 16  ;;  %v1114_v40 = vadd.s32 %v1113_v52, %v1104_v25  ;;  %v3569_v30 = vshll.u32 %v9375_v63, 16  ;;  %vm10956_vm15 = vmand %vm1642_vm8, %vm1690_vm12 }
 0x1b7   : > { %vm1134_vm3 = vc.u32 %v1126_v11, %v1130_v29  ;;  %v1136_v62 = vadd.s32 %v1130_v29, %v1126_v11  ;;  %v1133_v3 = vshrl.u32 %v10938_v15, 16  ;;  %vm13072_vm13 = vsmask.f32 7424 }
 0x1b8   : > { %v2799_v4 = vmul.f32 %v9912_v46, %v2750_v41  ;;  %v1135_v7 = vsel %vm1134_vm3, 1, %v13288_v27  ;;  %v13305_v12 = vmov 0  ;;  %v1115_v50 = vshrl.u32 %v1114_v40, 4  ;;  %v2676_v40 = vpop.f32.mrf.mxu2 }
 0x1b9   : > { %v13306_v12 = vsel %vm10956_vm15, 4294967295, %v13305_v12  ;;  %v1137_v18 = vadd.s32 %v1135_v7, %v1129_v33  ;;  %vm1138_vm0 = vc.u32 %v1136_v62, %v1132_v36  ;;  %v3571_v25 = vrot.slane %v3569_v30, 4 }
 0x1ba   : > { %13307 = vst [vmem:[#allocation32_spill] sm:$0xff] %v13306_v12  ;;  %v2848_v11 = vadd.f32 %v9927_v59, %v2799_v4  ;;  %v1139_v63 = vsel %vm1138_vm0, 1, %v13288_v27  ;;  %v13308_v15 = vshrl.u32 %v10620_v10, 16  ;;  %v13309_v8 = vshll.u32 %v10698_v57, 16 }
 0x1bb   : > { %v1116_v29 = vmul.u32 24, %v1115_v50  ;;  %v1141_v41 = vadd.s32 %v1139_v63, %v1137_v18  ;;  %v10967_v51 = vor.u32 %v3571_v25, %v3568_v48  ;;  %v10970_v62 = vadd.s32 256, %v9841_v55 }
 0x1bc   : > { %v3992_v19 = vor.u32 %v10626_v21, %v13308_v15  ;;  %v3996_v52 = vrot.slane %v13309_v8, 1  ;;  %v2992_v33 = vsel %vm10956_vm15, %v2848_v11, 0.0  ;;  %v2488_v36 = vadd.f32 %v2487_v44, %v2256_v28  ;;  %v10983_v50 = vpop.f32.mrf.mxu3 }
 0x1bd   : > { %v10976_v10 = vadd.s32 264, %v9841_v55  ;;  %v8194_v21 = vpack.c.bf16 %v2992_v33, %v2991_v0  ;;  %v1117_v26 = vsub.s32 %v10875_v56, %v1116_v29  ;;  %v1142_v30 = vadd.s32 %v1141_v41, %v1131_v61  ;;  %13311 = vst [vmem:[#allocation33_spill] sm:$0xff] %v10983_v50  ;;  %v2258_v56 = vpop.f32.mrf.mxu0  ;;  %v2489_v61 = vpop.f32.mrf.mxu1 }
 0x1be   : > { %v3997_v9 = vsel %vm13072_vm13, %v3992_v19, %v3996_v52  ;;  %v13310_v48 = vshrl.u32 %v10698_v57, 16  ;;  %v2751_v7 = vadd.f32 %v2676_v40, %v2488_v36  ;;  %vm13312_vm0 = vsmask.f32 4352 }
 0x1bf   : > { %4262 = vmatmul.bf16.vlgmr.msrb.gmra.mxu1 %v3997_v9  ;;  %v3573_v28 = vsel %vm13312_vm0, %v3564_v32, %v10967_v51  ;;  %v1152_v44 = vand.u32 65535, %v10970_v62  ;;  %v1153_v18 = vshrl.u32 %v10970_v62, 16  ;;  %8955 = vst [vmem:[#allocation2 + $0x88] sm:$0xff] %v8194_v21   ;;  %vm1643_vm8 = vcmp.ge.s32.totalorder %v1117_v26, 2  ;;  %vm13071_vm0 = vmpackc.low %vm10956_vm15, %vm10918_vm14 }
 0x1c0   : > { %v10981_v4 = vor.u32 %v13310_v48, %v3996_v52  ;;  %vm1691_vm12 = vcmp.lt.s32.totalorder %v1117_v26, 18  ;;  %v1143_v0 = vadd.s32 %v1142_v30, %v1133_v3  ;;  %v1181_v57 = vand.u32 65535, %v10976_v10 }
 0x1c1   : > { %v2800_v25 = vmul.f32 %v9912_v46, %v2751_v7  ;;  %v2490_v63 = vadd.f32 %v2489_v61, %v2258_v56  ;;  %v1155_v15 = vmul.u32 43691, %v1152_v44  ;;  %v1156_v19 = vmul.u32 43690, %v1152_v44  ;;  %vm10991_vm3 = vmand %vm1643_vm8, %vm1691_vm12 }
 0x1c2   : > { %v13313_v8 = vmov 0  ;;  %v1144_v32 = vshrl.u32 %v1143_v0, 4  ;;  %v1157_v52 = vmul.u32 43691, %v1153_v18  ;;  %v1158_v29 = vmul.u32 43690, %v1153_v18 }
 0x1c3   : > { %v13314_v8 = vsel %vm10991_vm3, 4294967295, %v13313_v8  ;;  %v1182_v41 = vshrl.u32 %v10976_v10, 16  ;;  %v10997_v33 = vadd.f32 %v9927_v59, %v2800_v25  ;;  %v1159_v3 = vshll.u32 %v1156_v19, 16  ;;  %v9377_v25 = vld [vmem:[#allocation2 + $0x24] sm:$0xff]  }
 0x1c4   : > { %13315 = vst [vmem:[#allocation34_spill] sm:$0xff] %v13314_v8  ;;  %v1160_v36 = vshrl.u32 %v1156_v19, 16  ;;  %v1184_v9 = vmul.u32 43691, %v1181_v57  ;;  %v1145_v21 = vmul.u32 24, %v1144_v32  ;;  %v9543_v26 = vpack.c.bf16 %v2848_v11, %v10925_v49  ;;  %v2678_v49 = vpop.f32.mrf.mxu2  ;;  %v11016_v32 = vpop.f32.mrf.mxu3  ;;  %3861 = vmatmul.bf16.vlgmr.msrb.gmra.mxu0 %v3573_v28 }
 0x1c5   : > { %v1161_v40 = vshll.u32 %v1157_v52, 16  ;;  %v1162_v30 = vshrl.u32 %v1157_v52, 16  ;;  %v1185_v48 = vmul.u32 43690, %v1181_v57  ;;  %v2993_v7 = vsel %vm10991_vm3, %v10997_v33, 0.0  ;;  %13316 = vst [vmem:[#allocation35_spill] sm:$0xff] %v11016_v32 }
 0x1c6   : > { %9544 = vmatmul.msk.bf16.gmra.mxu3 %vm13071_vm0, %v9543_v26  ;;  %vm1163_vm8 = vc.u32 %v1155_v15, %v1159_v3  ;;  %v1165_v44 = vadd.s32 %v1159_v3, %v1155_v15  ;;  %v11012_v18 = vmul.u32 43691, %v1182_v41  ;;  %v1146_v56 = vsub.s32 %v10908_v39, %v1145_v21  ;;  %v2261_v26 = vpop.f32.mrf.mxu0  ;;  %v2492_v15 = vpop.f32.mrf.mxu1 }
 0x1c7   : > { %v1164_v11 = vsel %vm1163_vm8, 1, %v13288_v27  ;;  %v1187_v61 = vmul.u32 43690, %v1182_v41  ;;  %v1188_v0 = vshll.u32 %v1185_v48, 16  ;;  %v2752_v19 = vadd.f32 %v2678_v49, %v2490_v63 }
 0x1c8   : > { %v1166_v57 = vadd.s32 %v1164_v11, %v1158_v29  ;;  %vm1167_vm12 = vc.u32 %v1165_v44, %v1161_v40  ;;  %v1189_v52 = vshrl.u32 %v1185_v48, 16  ;;  %vm1644_vm0 = vcmp.ge.s32.totalorder %v1146_v56, 2  ;;  %v11028_v11 = vld [vmem:[#allocation2 + $0x28] sm:$0xff] }
 0x1c9   : > { %vm1692_vm13 = vcmp.lt.s32.totalorder %v1146_v56, 18  ;;  %v1168_v3 = vsel %vm1167_vm12, 1, %v13288_v27  ;;  %v1190_v39 = vshll.u32 %v11012_v18, 16  ;;  %v2801_v21 = vmul.f32 %v9912_v46, %v2752_v19 }
 0x1ca   : > { %v2493_v12 = vadd.f32 %v2492_v15, %v2261_v26  ;;  %v1170_v41 = vadd.s32 %v1168_v3, %v1166_v57  ;;  %v1191_v35 = vshrl.u32 %v11012_v18, 16  ;;  %vm11022_vm8 = vmand %vm1644_vm0, %vm1692_vm13  ;;  %v13317_v63 = vmov 0 }
 0x1cb   : > { %v13318_v63 = vsel %vm11022_vm8, 4294967295, %v13317_v63  ;;  %vm1192_vm15 = vc.u32 %v1184_v9, %v1188_v0  ;;  %v1194_v29 = vadd.s32 %v1188_v0, %v1184_v9  ;;  %v3575_v40 = vshrl.u32 %v9377_v25, 16  ;;  %vm13079_vm0 = vmpackc.low %vm11022_vm8, %vm10991_vm3 }
 0x1cc   : > { %13319 = vst [vmem:[#allocation36_spill] sm:$0xff] %v13318_v63  ;;  %v3578_v48 = vshll.u32 %v9377_v25, 16  ;;  %v2850_v44 = vadd.f32 %v9927_v59, %v2801_v21  ;;  %v1171_v56 = vadd.s32 %v1170_v41, %v1160_v36  ;;  %v1193_v49 = vsel %vm1192_vm15, 1, %v13288_v27  ;;  %v2681_v36 = vpop.f32.mrf.mxu2  ;;  %v9379_v63 = vld [vmem:[#allocation2 + $0x2c] sm:$0xff]  }
 0x1cd   : > { %v4002_v19 = vshll.u32 %v11028_v11, 16  ;;  %v1195_v57 = vadd.s32 %v1193_v49, %v1187_v61  ;;  %vm1196_vm12 = vc.u32 %v1194_v29, %v1190_v39  ;;  %v3577_v18 = vrot.slane %v3575_v40, 3  ;;  %v11041_v29 = vpop.f32.mrf.mxu3 }
 0x1ce   : > { %v3580_v26 = vrot.slane %v3578_v48, 4  ;;  %v2994_v15 = vsel %vm11022_vm8, %v2850_v44, 0.0  ;;  %v1172_v9 = vadd.s32 %v1171_v56, %v1162_v30  ;;  %v1197_v0 = vsel %vm1196_vm12, 1, %v13288_v27  ;;  %13320 = vst [vmem:[#allocation37_spill] sm:$0xff] %v11041_v29  ;;  %v2494_v48 = vpop.f32.mrf.mxu1 }
 0x1cf   : > { %v11034_v25 = vrot.slane %v4002_v19, 1  ;;  %v8199_v28 = vpack.c.bf16 %v2994_v15, %v2993_v7  ;;  %v1199_v3 = vadd.s32 %v1197_v0, %v1195_v57  ;;  %v11039_v41 = vadd.s32 272, %v9841_v55  ;;  %v2263_v7 = vpop.f32.mrf.mxu0 }
 0x1d0   : > { %v11036_v21 = vor.u32 %v3580_v26, %v3577_v18  ;;  %v1173_v61 = vshrl.u32 %v1172_v9, 4  ;;  %v2753_v39 = vadd.f32 %v2681_v36, %v2493_v12  ;;  %vm13321_vm13 = vsmask.f32 7424  ;;  %v7979_v26 = vld [vmem:[%s12984_s1 + $0x190] sm:$0xff] }
 0x1d1   : > { %v4005_v30 = vsel %vm13321_vm13, %v10981_v4, %v11034_v25  ;;  %v11047_v40 = vadd.s32 280, %v9841_v55  ;;  %8956 = vst [vmem:[#allocation2 + $0x90] sm:$0xff] %v8199_v28   ;;  %v1200_v56 = vadd.s32 %v1199_v3, %v1189_v52  ;;  %v1210_v49 = vand.u32 65535, %v11039_v41  ;;  %v7987_v4 = vld [vmem:[%s12984_s1 + $0x1d0] sm:$0xff]  ;;  %5224 = vmatpush.bf16.msrb.mxu3 %v7979_v26 }
 0x1d2   : > { %4267 = vmatmul.bf16.gmra.mxu1 %v4005_v30  ;;  %v1174_v57 = vmul.u32 24, %v1173_v61  ;;  %v2802_v12 = vmul.f32 %v9912_v46, %v2753_v39  ;;  %v1211_v18 = vshrl.u32 %v11039_v41, 16  ;;  %vm13322_vm15 = vsmask.f32 4352  ;;  %5029 = vmatpush.bf16.msrb.mxu2 %v7987_v4 }
 0x1d3   : > { %v1201_v15 = vadd.s32 %v1200_v56, %v1191_v35  ;;  %v3582_v52 = vsel %vm13322_vm15, %v10967_v51, %v11036_v21  ;;  %v1213_v9 = vmul.u32 43691, %v1210_v49  ;;  %v1214_v0 = vmul.u32 43690, %v1210_v49 }
 0x1d4   : > { %v1175_v28 = vsub.s32 %v10970_v62, %v1174_v57  ;;  %v2495_v36 = vadd.f32 %v2494_v48, %v2263_v7  ;;  %v1215_v3 = vmul.u32 43691, %v1211_v18  ;;  %v1239_v61 = vand.u32 65535, %v11047_v40  ;;  %v2683_v49 = vpop.f32.mrf.mxu2  ;;  %3866 = vmatmul.bf16.gmra.mxu0 %v3582_v52 }
 0x1d5   : > { %v1202_v39 = vshrl.u32 %v1201_v15, 4  ;;  %v9546_v35 = vpack.c.bf16 %v2850_v44, %v10997_v33  ;;  %v1216_v51 = vmul.u32 43690, %v1211_v18  ;;  %v1217_v62 = vshll.u32 %v1214_v0, 16  ;;  %v11078_v4 = vpop.f32.mrf.mxu3 }
 0x1d6   : > { %v1240_v30 = vshrl.u32 %v11047_v40, 16  ;;  %vm1645_vm12 = vcmp.ge.s32.totalorder %v1175_v28, 2  ;;  %vm1693_vm13 = vcmp.lt.s32.totalorder %v1175_v28, 18  ;;  %v11076_v7 = vadd.f32 %v9927_v59, %v2802_v12  ;;  %13323 = vst [vmem:[#allocation38_spill] sm:$0xff] %v11078_v4  ;;  %v2497_v19 = vpop.f32.mrf.mxu1 }
 0x1d7   : > { %9547 = vmatmul.msk.bf16.gmra.mxu3 %vm13079_vm0, %v9546_v35  ;;  %v1219_v48 = vshll.u32 %v1215_v3, 16  ;;  %v1203_v56 = vmul.u32 24, %v1202_v39  ;;  %v1218_v57 = vshrl.u32 %v1214_v0, 16  ;;  %vm1221_vm15 = vc.u32 %v1213_v9, %v1217_v62  ;;  %vm11081_vm0 = vmand %vm1645_vm12, %vm1693_vm13  ;;  %v2266_v28 = vpop.f32.mrf.mxu0 }
 0x1d8   : > { %v1223_v33 = vadd.s32 %v1217_v62, %v1213_v9  ;;  %v2754_v44 = vadd.f32 %v2683_v49, %v2495_v36  ;;  %v1222_v26 = vsel %vm1221_vm15, 1, %v13288_v27  ;;  %v1242_v18 = vmul.u32 43691, %v1239_v61 }
 0x1d9   : > { %v1243_v15 = vmul.u32 43690, %v1239_v61  ;;  %v13324_v35 = vmov 0  ;;  %v1204_v12 = vsub.s32 %v10976_v10, %v1203_v56  ;;  %v1224_v39 = vadd.s32 %v1222_v26, %v1216_v51 }
 0x1da   : > { %v13325_v35 = vsel %vm11081_vm0, 4294967295, %v13324_v35  ;;  %vm1225_vm8 = vc.u32 %v1223_v33, %v1219_v48  ;;  %v1244_v0 = vmul.u32 43691, %v1240_v30  ;;  %v2803_v9 = vmul.f32 %v9912_v46, %v2754_v44 }
 0x1db   : > { %13326 = vst [vmem:[#allocation39_spill] sm:$0xff] %v13325_v35  ;;  %v1220_v36 = vshrl.u32 %v1215_v3, 16  ;;  %v1226_v62 = vsel %vm1225_vm8, 1, %v13288_v27  ;;  %v1245_v49 = vmul.u32 43690, %v1240_v30  ;;  %vm1646_vm15 = vcmp.ge.s32.totalorder %v1204_v12, 2 }
 0x1dc   : > { %vm1694_vm3 = vcmp.lt.s32.totalorder %v1204_v12, 18  ;;  %v1228_v61 = vadd.s32 %v1226_v62, %v1224_v39  ;;  %v1246_v8 = vshll.u32 %v1243_v15, 16  ;;  %v2995_v10 = vsel %vm11081_vm0, %v11076_v7, 0.0  ;;  %v2686_v29 = vpop.f32.mrf.mxu2 }
 0x1dd   : > { %vm11091_vm12 = vmand %vm1646_vm15, %vm1694_vm3  ;;  %v13327_v56 = vmov 0  ;;  %v2852_v51 = vadd.f32 %v9927_v59, %v2803_v9  ;;  %v2498_v48 = vadd.f32 %v2497_v19, %v2266_v28  ;;  %v1248_v3 = vshll.u32 %v1244_v0, 16  ;;  %v11099_v19 = vpop.f32.mrf.mxu3 }
 0x1de   : > { %v13328_v56 = vsel %vm11091_vm12, 4294967295, %v13327_v56  ;;  %v1229_v33 = vadd.s32 %v1228_v61, %v1218_v57  ;;  %vm1250_vm8 = vc.u32 %v1242_v18, %v1246_v8  ;;  %v1252_v30 = vadd.s32 %v1246_v8, %v1242_v18  ;;  %13330 = vst [vmem:[#allocation41_spill] sm:$0xff] %v11099_v19  ;;  %v2499_v61 = vpop.f32.mrf.mxu1  ;;  %vm13096_vm13 = vmpackc.low %vm11091_vm12, %vm11081_vm0 }
 0x1df   : > { %13329 = vst [vmem:[#allocation40_spill] sm:$0xff] %v13328_v56  ;;  %v3584_v44 = vshrl.u32 %v9379_v63, 16  ;;  %v2996_v26 = vsel %vm11091_vm12, %v2852_v51, 0.0  ;;  %v1247_v12 = vshrl.u32 %v1243_v15, 16  ;;  %v1251_v39 = vsel %vm1250_vm8, 1, %v13288_v27  ;;  %v2268_v28 = vpop.f32.mrf.mxu0 }
 0x1e0   : > { %v3587_v62 = vshll.u32 %v9379_v63, 16  ;;  %v8204_v4 = vpack.c.bf16 %v2996_v26, %v2995_v10  ;;  %v1230_v37 = vadd.s32 %v1229_v33, %v1220_v36  ;;  %v1253_v32 = vadd.s32 %v1251_v39, %v1245_v49 }
 0x1e1   : > { %vm1254_vm3 = vc.u32 %v1252_v30, %v1248_v3  ;;  %v2755_v9 = vadd.f32 %v2686_v29, %v2498_v48  ;;  %v3586_v57 = vrot.slane %v3584_v44, 3  ;;  %v1249_v15 = vshrl.u32 %v1244_v0, 16 }
 0x1e2   : > { %v1255_v52 = vsel %vm1254_vm3, 1, %v13288_v27  ;;  %v3589_v8 = vrot.slane %v3587_v62, 4  ;;  %8957 = vst [vmem:[#allocation2 + $0x98] sm:$0xff] %v8204_v4   ;;  %v1231_v18 = vshrl.u32 %v1230_v37, 4  ;;  %v4010_v63 = vshll.u32 %v11102_v6, 16 }
 0x1e3   : > { %v1257_v16 = vadd.s32 %v1255_v52, %v1253_v32  ;;  %v2804_v36 = vmul.f32 %v9912_v46, %v2755_v9  ;;  %v13331_v29 = vshrl.u32 %v11028_v11, 16  ;;  %v11112_v48 = vadd.s32 288, %v9841_v55  ;;  %v7999_v11 = vld [vmem:[%s12984_s1 + $0x230] sm:$0xff] }
 0x1e4   : > { %v11106_v49 = vor.u32 %v3589_v8, %v3586_v57  ;;  %v1232_v37 = vmul.u32 24, %v1231_v18  ;;  %v11114_v3 = vrot.slane %v4010_v63, 1  ;;  %v11117_v32 = vadd.s32 296, %v9841_v55  ;;  %5415 = vmatpush.bf16.msra.mxu0 %v7999_v11 }
 0x1e5   : > { %v4008_v10 = vor.u32 %v13331_v29, %v11034_v25  ;;  %v1258_v4 = vadd.s32 %v1257_v16, %v1247_v12  ;;  %v11120_v0 = vadd.f32 %v9927_v59, %v2804_v36  ;;  %v2500_v33 = vadd.f32 %v2499_v61, %v2268_v28  ;;  %v11149_v18 = vpop.f32.mrf.mxu3 }
 0x1e6   : > { %v1268_v30 = vand.u32 65535, %v11112_v48  ;;  %v1269_v44 = vshrl.u32 %v11112_v48, 16  ;;  %v1233_v25 = vsub.s32 %v11039_v41, %v1232_v37  ;;  %v9549_v26 = vpack.c.bf16 %v2852_v51, %v11076_v7  ;;  %v2688_v51 = vpop.f32.mrf.mxu2  ;;  %13337 = vst [vmem:[#allocation43_spill] sm:$0xff] %v11149_v18 }
 0x1e7   : > { %v1259_v16 = vadd.s32 %v1258_v4, %v1249_v15  ;;  %vm13332_vm15 = vsmask.f32 4352  ;;  %vm13333_vm8 = vsmask.f32 7424  ;;  %v1297_v52 = vand.u32 65535, %v11117_v32  ;;  %v2271_v29 = vpop.f32.mrf.mxu0 }
 0x1e8   : > { %9550 = vmatmul.msk.bf16.gmra.mxu3 %vm13096_vm13, %v9549_v26  ;;  %v3591_v12 = vsel %vm13332_vm15, %v11036_v21, %v11106_v49  ;;  %v4013_v41 = vsel %vm13333_vm8, %v4008_v10, %v11114_v3  ;;  %v1271_v39 = vmul.u32 43691, %v1268_v30  ;;  %v1272_v62 = vmul.u32 43690, %v1268_v30  ;;  %v2502_v10 = vpop.f32.mrf.mxu1 }
 0x1e9   : > { %4272 = vmatmul.bf16.gmra.mxu1 %v4013_v41  ;;  %v1273_v9 = vmul.u32 43691, %v1269_v44  ;;  %vm1647_vm3 = vcmp.ge.s32.totalorder %v1233_v25, 2  ;;  %vm1695_vm14 = vcmp.lt.s32.totalorder %v1233_v25, 18  ;;  %v1260_v7 = vshrl.u32 %v1259_v16, 4  ;;  %v9381_v41 = vld [vmem:[#allocation2 + $0x34] sm:$0xff]   ;;  %3871 = vmatmul.bf16.gmra.mxu0 %v3591_v12 }
 0x1ea   : > { %v1298_v57 = vshrl.u32 %v11117_v32, 16  ;;  %vm11145_vm13 = vmand %vm1647_vm3, %vm1695_vm14  ;;  %v13334_v8 = vmov 0  ;;  %v2756_v21 = vadd.f32 %v2688_v51, %v2500_v33  ;;  %v1274_v28 = vmul.u32 43690, %v1269_v44 }
 0x1eb   : > { %v13335_v8 = vsel %vm11145_vm13, 4294967295, %v13334_v8  ;;  %v1275_v61 = vshll.u32 %v1272_v62, 16  ;;  %v1277_v15 = vshll.u32 %v1273_v9, 16  ;;  %v2997_v63 = vsel %vm11145_vm13, %v11120_v0, 0.0 }
 0x1ec   : > { %13336 = vst [vmem:[#allocation42_spill] sm:$0xff] %v13335_v8  ;;  %v1261_v36 = vmul.u32 24, %v1260_v7  ;;  %v1276_v37 = vshrl.u32 %v1272_v62, 16  ;;  %v1278_v4 = vshrl.u32 %v1273_v9, 16  ;;  %v2805_v30 = vmul.f32 %v9912_v46, %v2756_v21 }
 0x1ed   : > { %vm1279_vm14 = vc.u32 %v1271_v39, %v1275_v61  ;;  %v1281_v11 = vadd.s32 %v1275_v61, %v1271_v39  ;;  %v1300_v25 = vmul.u32 43691, %v1297_v52  ;;  %v1301_v16 = vmul.u32 43690, %v1297_v52 }
 0x1ee   : > { %v1262_v33 = vsub.s32 %v11047_v40, %v1261_v36  ;;  %v1280_v44 = vsel %vm1279_vm14, 1, %v13288_v27  ;;  %v1302_v26 = vmul.u32 43691, %v1298_v57  ;;  %v2854_v51 = vadd.f32 %v9927_v59, %v2805_v30  ;;  %v2691_v12 = vpop.f32.mrf.mxu2 }
 0x1ef   : > { %v1282_v7 = vadd.s32 %v1280_v44, %v1274_v28  ;;  %vm1283_vm15 = vc.u32 %v1281_v11, %v1277_v15  ;;  %v1303_v56 = vmul.u32 43690, %v1298_v57  ;;  %v1304_v9 = vshll.u32 %v1301_v16, 16  ;;  %v2273_v35 = vpop.f32.mrf.mxu0 }
 0x1f0   : > { %vm1648_vm8 = vcmp.ge.s32.totalorder %v1262_v33, 2  ;;  %vm1696_vm3 = vcmp.lt.s32.totalorder %v1262_v33, 18  ;;  %v1284_v62 = vsel %vm1283_vm15, 1, %v13288_v27  ;;  %v13338_v39 = vmov 0  ;;  %v11165_v33 = vpop.f32.mrf.mxu3  ;;  %v2504_v18 = vpop.f32.mrf.mxu1 }
 0x1f1   : > { %vm11159_vm12 = vmand %vm1648_vm8, %vm1696_vm3  ;;  %v2503_v40 = vadd.f32 %v2502_v10, %v2271_v29  ;;  %v1286_v21 = vadd.s32 %v1284_v62, %v1282_v7  ;;  %v1305_v52 = vshrl.u32 %v1301_v16, 16  ;;  %v1306_v61 = vshll.u32 %v1302_v26, 16  ;;  %13341 = vst [vmem:[#allocation45_spill] sm:$0xff] %v11165_v33 }
 0x1f2   : > { %v13339_v39 = vsel %vm11159_vm12, 4294967295, %v13338_v39  ;;  %v2998_v36 = vsel %vm11159_vm12, %v2854_v51, 0.0  ;;  %vm1308_vm14 = vc.u32 %v1300_v25, %v1304_v9  ;;  %v1310_v28 = vadd.s32 %v1304_v9, %v1300_v25  ;;  %vm13103_vm8 = vmpackc.low %vm11159_vm12, %vm11145_vm13 }
 0x1f3   : > { %13340 = vst [vmem:[#allocation44_spill] sm:$0xff] %v13339_v39  ;;  %v3593_v57 = vshrl.u32 %v9381_v41, 16  ;;  %v8209_v15 = vpack.c.bf16 %v2998_v36, %v2997_v63  ;;  %v1287_v30 = vadd.s32 %v1286_v21, %v1276_v37  ;;  %v2757_v11 = vadd.f32 %v2691_v12, %v2503_v40  ;;  %v11171_v12 = vld [vmem:[#allocation2 + $0x38] sm:$0xff] }
 0x1f4   : > { %v1309_v44 = vsel %vm1308_vm14, 1, %v13288_v27  ;;  %vm1312_vm15 = vc.u32 %v1310_v28, %v1306_v61  ;;  %v3596_v16 = vshll.u32 %v9381_v41, 16  ;;  %v4014_v7 = vshrl.u32 %v11102_v6, 16 }
 0x1f5   : > { %v1311_v29 = vadd.s32 %v1309_v44, %v1303_v56  ;;  %v3595_v10 = vrot.slane %v3593_v57, 3  ;;  %8958 = vst [vmem:[#allocation2 + $0xa0] sm:$0xff] %v8209_v15   ;;  %v1288_v62 = vadd.s32 %v1287_v30, %v1278_v4  ;;  %v1313_v25 = vsel %vm1312_vm15, 1, %v13288_v27 }
 0x1f6   : > { %v2806_v63 = vmul.f32 %v9912_v46, %v2757_v11  ;;  %v1307_v37 = vshrl.u32 %v1302_v26, 16  ;;  %v3598_v40 = vrot.slane %v3596_v16, 4  ;;  %v2505_v36 = vadd.f32 %v2504_v18, %v2273_v35  ;;  %v2693_v30 = vpop.f32.mrf.mxu2 }
 0x1f7   : > { %v1315_v9 = vadd.s32 %v1313_v25, %v1311_v29  ;;  %v1289_v21 = vshrl.u32 %v1288_v62, 4  ;;  %v4018_v56 = vshll.u32 %v11171_v12, 16  ;;  %v11175_v61 = vadd.s32 304, %v9841_v55  ;;  %v2276_v62 = vpop.f32.mrf.mxu0 }
 0x1f8   : > { %v9552_v6 = vpack.c.bf16 %v2854_v51, %v11120_v0  ;;  %v11187_v35 = vor.u32 %v3598_v40, %v3595_v10  ;;  %v4016_v18 = vor.u32 %v4014_v7, %v11114_v3  ;;  %v11191_v4 = vadd.s32 312, %v9841_v55  ;;  %v11205_v29 = vpop.f32.mrf.mxu3  ;;  %v2507_v25 = vpop.f32.mrf.mxu1 }
 0x1f9   : > { %v1316_v41 = vadd.s32 %v1315_v9, %v1305_v52  ;;  %v1290_v26 = vmul.u32 24, %v1289_v21  ;;  %v11193_v52 = vrot.slane %v4018_v56, 1  ;;  %v1326_v28 = vand.u32 65535, %v11175_v61  ;;  %13343 = vst [vmem:[#allocation46_spill] sm:$0xff] %v11205_v29 }
 0x1fa   : > { %9553 = vmatmul.msk.bf16.gmra.mxu3 %vm13103_vm8, %v9552_v6  ;;  %v1327_v0 = vshrl.u32 %v11175_v61, 16  ;;  %v11199_v57 = vadd.f32 %v9927_v59, %v2806_v63  ;;  %vm13342_vm3 = vsmask.f32 4352  ;;  %v2758_v44 = vadd.f32 %v2693_v30, %v2505_v36 }
 0x1fb   : > { %v1317_v15 = vadd.s32 %v1316_v41, %v1307_v37  ;;  %v3600_v3 = vsel %vm13342_vm3, %v11106_v49, %v11187_v35  ;;  %v1291_v11 = vsub.s32 %v11112_v48, %v1290_v26  ;;  %vm13344_vm14 = vsmask.f32 7424 }
 0x1fc   : > { %v4021_v10 = vsel %vm13344_vm14, %v4016_v18, %v11193_v52  ;;  %v1355_v16 = vand.u32 65535, %v11191_v4  ;;  %v1329_v63 = vmul.u32 43691, %v1326_v28  ;;  %v1330_v37 = vmul.u32 43690, %v1326_v28  ;;  %3876 = vmatmul.bf16.gmra.mxu0 %v3600_v3  ;;  %v9383_v28 = vld [vmem:[#allocation2 + $0x3c] sm:$0xff]  }
 0x1fd   : > { %v1318_v7 = vshrl.u32 %v1317_v15, 4  ;;  %4277 = vmatmul.bf16.gmra.mxu1 %v4021_v10  ;;  %v1331_v9 = vmul.u32 43691, %v1327_v0  ;;  %vm1649_vm15 = vcmp.ge.s32.totalorder %v1291_v11, 2  ;;  %vm1697_vm8 = vcmp.lt.s32.totalorder %v1291_v11, 18  ;;  %v11217_v15 = vld [vmem:[#allocation2 + $0x40] sm:$0xff] }
 0x1fe   : > { %v2807_v49 = vmul.f32 %v9912_v46, %v2758_v44  ;;  %v1356_v48 = vshrl.u32 %v11191_v4, 16  ;;  %vm11212_vm3 = vmand %vm1649_vm15, %vm1697_vm8  ;;  %v13345_v40 = vmov 0  ;;  %v1332_v36 = vmul.u32 43690, %v1327_v0 }
 0x1ff   : > { %v13346_v40 = vsel %vm11212_vm3, 4294967295, %v13345_v40  ;;  %v1319_v21 = vmul.u32 24, %v1318_v7  ;;  %v1333_v56 = vshll.u32 %v1330_v37, 16  ;;  %v1335_v41 = vshll.u32 %v1331_v9, 16 }
 0x200   : > { %13347 = vst [vmem:[#allocation47_spill] sm:$0xff] %v13346_v40  ;;  %v2856_v6 = vadd.f32 %v9927_v59, %v2807_v49  ;;  %v2508_v18 = vadd.f32 %v2507_v25, %v2276_v62  ;;  %v1334_v26 = vshrl.u32 %v1330_v37, 16  ;;  %v4026_v30 = vshll.u32 %v11217_v15, 16  ;;  %v2696_v25 = vpop.f32.mrf.mxu2 }
 0x201   : > { %v1320_v11 = vsub.s32 %v11117_v32, %v1319_v21  ;;  %vm1337_vm8 = vc.u32 %v1329_v63, %v1333_v56  ;;  %v1339_v44 = vadd.s32 %v1333_v56, %v1329_v63  ;;  %v1359_v10 = vmul.u32 43690, %v1355_v16  ;;  %v11232_v63 = vpop.f32.mrf.mxu3 }
 0x202   : > { %v2999_v0 = vsel %vm11212_vm3, %v11199_v57, 0.0  ;;  %v1338_v7 = vsel %vm1337_vm8, 1, %v13288_v27  ;;  %v1358_v49 = vmul.u32 43691, %v1355_v16  ;;  %v11225_v62 = vmul.u32 43691, %v1356_v48  ;;  %13351 = vst [vmem:[#allocation49_spill] sm:$0xff] %v11232_v63 }
 0x203   : > { %vm1650_vm14 = vcmp.ge.s32.totalorder %v1320_v11, 2  ;;  %vm1698_vm15 = vcmp.lt.s32.totalorder %v1320_v11, 18  ;;  %v1340_v3 = vadd.s32 %v1338_v7, %v1332_v36  ;;  %vm1341_vm12 = vc.u32 %v1339_v44, %v1335_v41  ;;  %v2278_v11 = vpop.f32.mrf.mxu0  ;;  %v2509_v36 = vpop.f32.mrf.mxu1 }
 0x204   : > { %vm11227_vm13 = vmand %vm1650_vm14, %vm1698_vm15  ;;  %v13348_v37 = vmov 0  ;;  %v1342_v32 = vsel %vm1341_vm12, 1, %v13288_v27  ;;  %v1361_v21 = vmul.u32 43690, %v1356_v48  ;;  %v1362_v56 = vshll.u32 %v1359_v10, 16 }
 0x205   : > { %v13349_v37 = vsel %vm11227_vm13, 4294967295, %v13348_v37  ;;  %v3602_v51 = vshrl.u32 %v9383_v28, 16  ;;  %v3000_v16 = vsel %vm11227_vm13, %v2856_v6, 0.0  ;;  %v1336_v39 = vshrl.u32 %v1331_v9, 16  ;;  %vm13116_vm14 = vmpackc.low %vm11227_vm13, %vm11212_vm3 }
 0x206   : > { %13350 = vst [vmem:[#allocation48_spill] sm:$0xff] %v13349_v37  ;;  %v1344_v8 = vadd.s32 %v1342_v32, %v1340_v3  ;;  %v1364_v41 = vshll.u32 %v11225_v62, 16  ;;  %v8214_v44 = vpack.c.bf16 %v3000_v16, %v2999_v0  ;;  %v2759_v7 = vadd.f32 %v2696_v25, %v2508_v18 }
 0x207   : > { %v1363_v29 = vshrl.u32 %v1359_v10, 16  ;;  %vm1366_vm8 = vc.u32 %v1358_v49, %v1362_v56  ;;  %v1365_v19 = vshrl.u32 %v11225_v62, 16  ;;  %v1368_v63 = vadd.s32 %v1362_v56, %v1358_v49 }
 0x208   : > { %v1345_v33 = vadd.s32 %v1344_v8, %v1334_v26  ;;  %v1367_v48 = vsel %vm1366_vm8, 1, %v13288_v27  ;;  %8959 = vst [vmem:[#allocation2 + $0xa8] sm:$0xff] %v8214_v44   ;;  %v2510_v50 = vadd.f32 %v2509_v36, %v2278_v11  ;;  %v3604_v60 = vrot.slane %v3602_v51, 3  ;;  %v2698_v49 = vpop.f32.mrf.mxu2 }
 0x209   : > { %v1369_v42 = vadd.s32 %v1367_v48, %v1361_v21  ;;  %v3605_v9 = vshll.u32 %v9383_v28, 16  ;;  %vm1370_vm12 = vc.u32 %v1368_v63, %v1364_v41  ;;  %v9555_v18 = vpack.c.bf16 %v2856_v6, %v11199_v57 }
 0x20a   : > { %v1346_v3 = vadd.s32 %v1345_v33, %v1336_v39  ;;  %v13352_v8 = vshrl.u32 %v11171_v12, 16  ;;  %v4028_v26 = vrot.slane %v4026_v30, 1  ;;  %v1371_v39 = vsel %vm1370_vm12, 1, %v13288_v27  ;;  %v11261_v12 = vpop.f32.mrf.mxu3 }
 0x20b   : > { %9556 = vmatmul.msk.bf16.gmra.mxu3 %vm13116_vm14, %v9555_v18  ;;  %v3607_v33 = vrot.slane %v3605_v9, 4  ;;  %v11254_v28 = vadd.s32 320, %v9841_v55  ;;  %v11257_v10 = vadd.s32 328, %v9841_v55  ;;  %v2808_v6 = vmul.f32 %v9912_v46, %v2759_v7  ;;  %13354 = vst [vmem:[#allocation50_spill] sm:$0xff] %v11261_v12  ;;  %v2281_v16 = vpop.f32.mrf.mxu0  ;;  %v2512_v11 = vpop.f32.mrf.mxu1 }
 0x20c   : > { %v4024_v51 = vor.u32 %v13352_v8, %v11193_v52  ;;  %v1347_v57 = vshrl.u32 %v1346_v3, 4  ;;  %v1373_v0 = vadd.s32 %v1371_v39, %v1369_v42  ;;  %vm13353_vm15 = vsmask.f32 7424 }
 0x20d   : > { %v2760_v25 = vadd.f32 %v2698_v49, %v2510_v50  ;;  %v11263_v52 = vor.u32 %v3607_v33, %v3604_v60  ;;  %v1384_v30 = vand.u32 65535, %v11254_v28  ;;  %v1385_v32 = vshrl.u32 %v11254_v28, 16  ;;  %v7986_v50 = vld [vmem:[%s12984_s1 + $0x1c8] sm:$0xff] }
 0x20e   : > { %v4029_v62 = vsel %vm13353_vm15, %v4024_v51, %v4028_v26  ;;  %v4030_v63 = vshrl.u32 %v11217_v15, 16  ;;  %v1348_v21 = vmul.u32 24, %v1347_v57  ;;  %v1374_v56 = vadd.s32 %v1373_v0, %v1363_v29  ;;  %v7978_v60 = vld [vmem:[%s12984_s1 + $0x188] sm:$0xff]  ;;  %5030 = vmatpush.bf16.msrb.mxu2 %v7986_v50 }
 0x20f   : > { %4282 = vmatmul.bf16.gmra.mxu1 %v4029_v62  ;;  %v1413_v42 = vand.u32 65535, %v11257_v10  ;;  %v2809_v36 = vmul.f32 %v9912_v46, %v2760_v25  ;;  %vm13355_vm8 = vsmask.f32 4352  ;;  %v1387_v29 = vmul.u32 43691, %v1384_v30  ;;  %5225 = vmatpush.bf16.msrb.mxu3 %v7978_v60 }
 0x210   : > { %v3609_v15 = vsel %vm13355_vm8, %v11187_v35, %v11263_v52  ;;  %v1414_v41 = vshrl.u32 %v11257_v10, 16  ;;  %v1349_v44 = vsub.s32 %v11175_v61, %v1348_v21  ;;  %v1375_v7 = vadd.s32 %v1374_v56, %v1365_v19  ;;  %v2701_v62 = vpop.f32.mrf.mxu2  ;;  %v9385_v56 = vld [vmem:[#allocation2 + $0x44] sm:$0xff]  }
 0x211   : > { %v1388_v48 = vmul.u32 43690, %v1384_v30  ;;  %v1389_v9 = vmul.u32 43691, %v1385_v32  ;;  %v11282_v3 = vadd.f32 %v9927_v59, %v2808_v6  ;;  %3881 = vmatmul.bf16.gmra.mxu0 %v3609_v15  ;;  %v1390_v18 = vmul.u32 43690, %v1385_v32 }
 0x212   : > { %v11284_v8 = vmul.u32 43690, %v1413_v42  ;;  %v11286_v51 = vor.u32 %v4030_v63, %v4028_v26  ;;  %vm1651_vm12 = vcmp.ge.s32.totalorder %v1349_v44, 2  ;;  %vm1699_vm15 = vcmp.lt.s32.totalorder %v1349_v44, 18  ;;  %v11296_v63 = vpop.f32.mrf.mxu3 }
 0x213   : > { %v1376_v35 = vshrl.u32 %v1375_v7, 4  ;;  %v1391_v39 = vshll.u32 %v1388_v48, 16  ;;  %vm11288_vm8 = vmand %vm1651_vm12, %vm1699_vm15  ;;  %v13356_v61 = vmov 0  ;;  %v2858_v19 = vadd.f32 %v9927_v59, %v2809_v36  ;;  %13359 = vst [vmem:[#allocation52_spill] sm:$0xff] %v11296_v63  ;;  %v2283_v60 = vpop.f32.mrf.mxu0  ;;  %v2514_v36 = vpop.f32.mrf.mxu1 }
 0x214   : > { %v13357_v61 = vsel %vm11288_vm8, 4294967295, %v13356_v61  ;;  %v2513_v33 = vadd.f32 %v2512_v11, %v2281_v16  ;;  %v1393_v57 = vshll.u32 %v1389_v9, 16  ;;  %v11293_v6 = vmul.u32 43691, %v1414_v41 }
 0x215   : > { %13358 = vst [vmem:[#allocation51_spill] sm:$0xff] %v13357_v61  ;;  %v1377_v0 = vmul.u32 24, %v1376_v35  ;;  %vm1395_vm14 = vc.u32 %v1387_v29, %v1391_v39  ;;  %v1397_v49 = vadd.s32 %v1391_v39, %v1387_v29  ;;  %v1416_v26 = vmul.u32 43691, %v1413_v42 }
 0x216   : > { %v1392_v25 = vshrl.u32 %v1388_v48, 16  ;;  %v1394_v30 = vshrl.u32 %v1389_v9, 16  ;;  %v1396_v32 = vsel %vm1395_vm14, 1, %v13288_v27  ;;  %v1420_v21 = vshll.u32 %v11284_v8, 16 }
 0x217   : > { %v3001_v16 = vsel %vm11288_vm8, %v11282_v3, 0.0  ;;  %v1378_v11 = vsub.s32 %v11191_v4, %v1377_v0  ;;  %v1398_v50 = vadd.s32 %v1396_v32, %v1390_v18  ;;  %vm1399_vm12 = vc.u32 %v1397_v49, %v1393_v57 }
 0x218   : > { %v1400_v42 = vsel %vm1399_vm12, 1, %v13288_v27  ;;  %v2761_v15 = vadd.f32 %v2701_v62, %v2513_v33  ;;  %v1419_v29 = vmul.u32 43690, %v1414_v41  ;;  %v1422_v44 = vshll.u32 %v11293_v6, 16 }
 0x219   : > { %vm1652_vm14 = vcmp.ge.s32.totalorder %v1378_v11, 2  ;;  %vm1700_vm15 = vcmp.lt.s32.totalorder %v1378_v11, 18  ;;  %v1402_v7 = vadd.s32 %v1400_v42, %v1398_v50  ;;  %v1421_v48 = vshrl.u32 %v11284_v8, 16  ;;  %v2703_v11 = vpop.f32.mrf.mxu2 }
 0x21a   : > { %vm11306_vm13 = vmand %vm1652_vm14, %vm1700_vm15  ;;  %v13360_v9 = vmov 0  ;;  %v2515_v4 = vadd.f32 %v2514_v36, %v2283_v60  ;;  %vm1424_vm3 = vc.u32 %v1416_v26, %v1420_v21  ;;  %v1426_v18 = vadd.s32 %v1420_v21, %v1416_v26  ;;  %v11314_v60 = vld [vmem:[#allocation2 + $0x48] sm:$0xff] }
 0x21b   : > { %v13361_v9 = vsel %vm11306_vm13, 4294967295, %v13360_v9  ;;  %v3611_v35 = vshrl.u32 %v9385_v56, 16  ;;  %v3002_v39 = vsel %vm11306_vm13, %v2858_v19, 0.0  ;;  %v1403_v33 = vadd.s32 %v1402_v7, %v1392_v25  ;;  %v2286_v42 = vpop.f32.mrf.mxu0 }
 0x21c   : > { %13362 = vst [vmem:[#allocation53_spill] sm:$0xff] %v13361_v9  ;;  %v1425_v41 = vsel %vm1424_vm3, 1, %v13288_v27  ;;  %v3614_v57 = vshll.u32 %v9385_v56, 16  ;;  %v8219_v0 = vpack.c.bf16 %v3002_v39, %v3001_v16  ;;  %vm1428_vm12 = vc.u32 %v1426_v18, %v1422_v44  ;;  %vm13121_vm3 = vmpackc.low %vm11306_vm13, %vm11288_vm8  ;;  %v11328_v56 = vpop.f32.mrf.mxu3 }
 0x21d   : > { %v1427_v49 = vadd.s32 %v1425_v41, %v1419_v29  ;;  %v3613_v62 = vrot.slane %v3611_v35, 3  ;;  %v1404_v8 = vadd.s32 %v1403_v33, %v1394_v30  ;;  %v1429_v32 = vsel %vm1428_vm12, 1, %v13288_v27  ;;  %13363 = vst [vmem:[#allocation54_spill] sm:$0xff] %v11328_v56  ;;  %v2517_v29 = vpop.f32.mrf.mxu1 }
 0x21e   : > { %v3616_v50 = vrot.slane %v3614_v57, 4  ;;  %v4034_v26 = vshll.u32 %v11314_v60, 16  ;;  %8960 = vst [vmem:[#allocation2 + $0xb0] sm:$0xff] %v8219_v0   ;;  %v1423_v21 = vshrl.u32 %v11293_v6, 16  ;;  %v2762_v36 = vadd.f32 %v2703_v11, %v2515_v4 }
 0x21f   : > { %v1431_v25 = vadd.s32 %v1429_v32, %v1427_v49  ;;  %v9558_v30 = vpack.c.bf16 %v2858_v19, %v11282_v3  ;;  %v11331_v16 = vadd.s32 336, %v9841_v55  ;;  %v1405_v6 = vshrl.u32 %v1404_v8, 4  ;;  %v7998_v49 = vld [vmem:[%s12984_s1 + $0x228] sm:$0xff] }
 0x220   : > { %v11333_v44 = vor.u32 %v3616_v50, %v3613_v62  ;;  %v11335_v7 = vrot.slane %v4034_v26, 1  ;;  %v11338_v3 = vadd.s32 344, %v9841_v55  ;;  %vm13364_vm14 = vsmask.f32 4352  ;;  %5416 = vmatpush.bf16.msra.mxu0 %v7998_v49 }
 0x221   : > { %9559 = vmatmul.msk.bf16.gmra.mxu3 %vm13121_vm3, %v9558_v30  ;;  %v1432_v19 = vadd.s32 %v1431_v25, %v1421_v48  ;;  %v1442_v4 = vand.u32 65535, %v11331_v16  ;;  %v1406_v18 = vmul.u32 24, %v1405_v6  ;;  %vm13365_vm15 = vsmask.f32 7424  ;;  %v2706_v26 = vpop.f32.mrf.mxu2 }
 0x222   : > { %v3618_v35 = vsel %vm13364_vm14, %v11263_v52, %v11333_v44  ;;  %v4037_v39 = vsel %vm13365_vm15, %v11286_v51, %v11335_v7  ;;  %v1443_v33 = vshrl.u32 %v11331_v16, 16  ;;  %v2810_v41 = vmul.f32 %v9912_v46, %v2761_v15 }
 0x223   : > { %v1433_v57 = vadd.s32 %v1432_v19, %v1423_v21  ;;  %3886 = vmatmul.bf16.gmra.mxu0 %v3618_v35  ;;  %4287 = vmatmul.bf16.gmra.mxu1 %v4037_v39  ;;  %v1445_v0 = vmul.u32 43691, %v1442_v4  ;;  %v1446_v48 = vmul.u32 43690, %v1442_v4  ;;  %v1407_v62 = vsub.s32 %v11254_v28, %v1406_v18  ;;  %v2288_v18 = vpop.f32.mrf.mxu0 }
 0x224   : > { %v2811_v52 = vmul.f32 %v9912_v46, %v2762_v36  ;;  %v1447_v8 = vmul.u32 43691, %v1443_v33  ;;  %v1471_v51 = vand.u32 65535, %v11338_v3  ;;  %v1448_v11 = vmul.u32 43690, %v1443_v33  ;;  %v11357_v6 = vpop.f32.mrf.mxu3 }
 0x225   : > { %v1434_v32 = vshrl.u32 %v1433_v57, 4  ;;  %v1449_v50 = vshll.u32 %v1446_v48, 16  ;;  %vm1653_vm12 = vcmp.ge.s32.totalorder %v1407_v62, 2  ;;  %vm1701_vm14 = vcmp.lt.s32.totalorder %v1407_v62, 18  ;;  %13366 = vst [vmem:[#allocation55_spill] sm:$0xff] %v11357_v6  ;;  %v2519_v35 = vpop.f32.mrf.mxu1 }
 0x226   : > { %v1451_v15 = vshll.u32 %v1447_v8, 16  ;;  %v1472_v21 = vshrl.u32 %v11338_v3, 16  ;;  %v2859_v36 = vadd.f32 %v9927_v59, %v2810_v41  ;;  %v2860_v19 = vadd.f32 %v9927_v59, %v2811_v52  ;;  %vm11364_vm3 = vmand %vm1653_vm12, %vm1701_vm14 }
 0x227   : > { %v1435_v30 = vmul.u32 24, %v1434_v32  ;;  %vm1453_vm15 = vc.u32 %v1445_v0, %v1449_v50  ;;  %v1455_v28 = vadd.s32 %v1449_v50, %v1445_v0  ;;  %v1475_v39 = vmul.u32 43690, %v1471_v51  ;;  %v9387_v32 = vld [vmem:[#allocation2 + $0x4c] sm:$0xff]  }
 0x228   : > { %v1454_v4 = vsel %vm1453_vm15, 1, %v13288_v27  ;;  %v13367_v33 = vmov 0  ;;  %v1450_v0 = vshrl.u32 %v1446_v48, 16  ;;  %v2518_v41 = vadd.f32 %v2517_v29, %v2286_v42 }
 0x229   : > { %v13368_v33 = vsel %vm11364_vm3, 4294967295, %v13367_v33  ;;  %v1436_v57 = vsub.s32 %v11257_v10, %v1435_v30  ;;  %v1456_v49 = vadd.s32 %v1454_v4, %v1448_v11  ;;  %vm1457_vm13 = vc.u32 %v1455_v28, %v1451_v15  ;;  %v2708_v4 = vpop.f32.mrf.mxu2 }
 0x22a   : > { %13369 = vst [vmem:[#allocation56_spill] sm:$0xff] %v13368_v33  ;;  %v1458_v52 = vsel %vm1457_vm13, 1, %v13288_v27  ;;  %v1474_v50 = vmul.u32 43691, %v1471_v51  ;;  %v1476_v25 = vmul.u32 43691, %v1472_v21  ;;  %v1452_v9 = vshrl.u32 %v1447_v8, 16 }
 0x22b   : > { %vm1654_vm15 = vcmp.ge.s32.totalorder %v1436_v57, 2  ;;  %vm1702_vm8 = vcmp.lt.s32.totalorder %v1436_v57, 18  ;;  %v1460_v61 = vadd.s32 %v1458_v52, %v1456_v49  ;;  %v3003_v62 = vsel %vm11364_vm3, %v2859_v36, 0.0  ;;  %v2291_v63 = vpop.f32.mrf.mxu0 }
 0x22c   : > { %vm11372_vm12 = vmand %vm1654_vm15, %vm1702_vm8  ;;  %v13370_v37 = vmov 0  ;;  %v1477_v10 = vmul.u32 43690, %v1472_v21  ;;  %v1478_v48 = vshll.u32 %v1475_v39, 16  ;;  %v1480_v11 = vshll.u32 %v1476_v25, 16  ;;  %v11379_v40 = vpop.f32.mrf.mxu3  ;;  %v13463_v43 = vld [vmem:[#allocation55_spill] sm:$0xff] }
 0x22d   : > { %v13371_v37 = vsel %vm11372_vm12, 4294967295, %v13370_v37  ;;  %v3004_v42 = vsel %vm11372_vm12, %v2860_v19, 0.0  ;;  %v1461_v29 = vadd.s32 %v1460_v61, %v1450_v0  ;;  %v3620_v51 = vshrl.u32 %v9387_v32, 16  ;;  %13373 = vst [vmem:[#allocation58_spill] sm:$0xff] %v11379_v40  ;;  %v2522_v61 = vpop.f32.mrf.mxu1  ;;  %vm13134_vm14 = vmpackc.low %vm11372_vm12, %vm11364_vm3 }
 0x22e   : > { %13372 = vst [vmem:[#allocation57_spill] sm:$0xff] %v13371_v37  ;;  %v3623_v15 = vshll.u32 %v9387_v32, 16  ;;  %v8224_v30 = vpack.c.bf16 %v3004_v42, %v3003_v62  ;;  %v2763_v28 = vadd.f32 %v2706_v26, %v2518_v41  ;;  %vm1482_vm13 = vc.u32 %v1474_v50, %v1478_v48 }
 0x22f   : > { %v1484_v8 = vadd.s32 %v1478_v48, %v1474_v50  ;;  %v1462_v57 = vadd.s32 %v1461_v29, %v1452_v9  ;;  %v2520_v49 = vadd.f32 %v2519_v35, %v2288_v18  ;;  %v1483_v52 = vsel %vm1482_vm13, 1, %v13288_v27  ;;  %v11393_v50 = vld [vmem:[#allocation2 + $0x50] sm:$0xff] }
 0x230   : > { %v3622_v21 = vrot.slane %v3620_v51, 3  ;;  %8961 = vst [vmem:[#allocation2 + $0xb8] sm:$0xff] %v8224_v30   ;;  %v1479_v6 = vshrl.u32 %v1475_v39, 16  ;;  %v1485_v56 = vadd.s32 %v1483_v52, %v1477_v10  ;;  %v9561_v26 = vpack.c.bf16 %v2860_v19, %v2859_v36 }
 0x231   : > { %vm1486_vm8 = vc.u32 %v1484_v8, %v1480_v11  ;;  %v3625_v9 = vrot.slane %v3623_v15, 4  ;;  %v1463_v18 = vshrl.u32 %v1462_v57, 4  ;;  %v1481_v35 = vshrl.u32 %v1476_v25, 16  ;;  %v11417_v57 = vld [vmem:[#allocation2 + $0x54] sm:$0xff]  }
 0x232   : > { %9562 = vmatmul.msk.bf16.gmra.mxu3 %vm13134_vm14, %v9561_v26  ;;  %v1487_v39 = vsel %vm1486_vm8, 1, %v13288_v27  ;;  %v2764_v0 = vadd.f32 %v2708_v4, %v2520_v49  ;;  %v4042_v62 = vshll.u32 %v11393_v50, 16  ;;  %v11397_v36 = vadd.s32 352, %v9841_v55  ;;  %v2711_v4 = vpop.f32.mrf.mxu2 }
 0x233   : > { %v1489_v32 = vadd.s32 %v1487_v39, %v1485_v56  ;;  %v11391_v41 = vor.u32 %v3625_v9, %v3622_v21  ;;  %v1464_v19 = vmul.u32 24, %v1463_v18  ;;  %v2812_v10 = vmul.f32 %v9912_v46, %v2763_v28  ;;  %v2293_v39 = vpop.f32.mrf.mxu0 }
 0x234   : > { %v13374_v48 = vshrl.u32 %v11314_v60, 16  ;;  %v11404_v11 = vadd.s32 360, %v9841_v55  ;;  %vm13375_vm15 = vsmask.f32 4352  ;;  %v11409_v29 = vrot.slane %v4042_v62, 1 }
 0x235   : > { %v1490_v56 = vadd.s32 %v1489_v32, %v1479_v6  ;;  %v3627_v42 = vsel %vm13375_vm15, %v11333_v44, %v11391_v41  ;;  %v1500_v51 = vand.u32 65535, %v11397_v36  ;;  %v1465_v15 = vsub.s32 %v11331_v16, %v1464_v19  ;;  %v11422_v16 = vpop.f32.mrf.mxu3 }
 0x236   : > { %v4040_v25 = vor.u32 %v13374_v48, %v11335_v7  ;;  %v2813_v30 = vmul.f32 %v9912_v46, %v2764_v0  ;;  %3891 = vmatmul.bf16.gmra.mxu0 %v3627_v42  ;;  %v1501_v60 = vshrl.u32 %v11397_v36, 16  ;;  %vm13376_vm13 = vsmask.f32 7424  ;;  %13377 = vst [vmem:[#allocation59_spill] sm:$0xff] %v11422_v16  ;;  %v2524_v0 = vpop.f32.mrf.mxu1 }
 0x237   : > { %v1491_v7 = vadd.s32 %v1490_v56, %v1481_v35  ;;  %v1503_v6 = vmul.u32 43691, %v1500_v51  ;;  %v1504_v8 = vmul.u32 43690, %v1500_v51  ;;  %v11420_v44 = vadd.f32 %v9927_v59, %v2812_v10 }
 0x238   : > { %v4045_v28 = vsel %vm13376_vm13, %v4040_v25, %v11409_v29  ;;  %v1505_v49 = vmul.u32 43691, %v1501_v60  ;;  %v1529_v52 = vand.u32 65535, %v11404_v11  ;;  %v1530_v21 = vshrl.u32 %v11404_v11, 16 }
 0x239   : > { %4292 = vmatmul.bf16.gmra.mxu1 %v4045_v28  ;;  %v1492_v26 = vshrl.u32 %v1491_v7, 4  ;;  %v2523_v9 = vadd.f32 %v2522_v61, %v2291_v63  ;;  %v1506_v18 = vmul.u32 43690, %v1501_v60  ;;  %v1507_v35 = vshll.u32 %v1504_v8, 16 }
 0x23a   : > { %vm1655_vm8 = vcmp.ge.s32.totalorder %v1465_v15, 2  ;;  %vm1703_vm15 = vcmp.lt.s32.totalorder %v1465_v15, 18  ;;  %v2862_v32 = vadd.f32 %v9927_v59, %v2813_v30  ;;  %v1509_v62 = vshll.u32 %v1505_v49, 16 }
 0x23b   : > { %v1493_v19 = vmul.u32 24, %v1492_v26  ;;  %vm1511_vm13 = vc.u32 %v1503_v6, %v1507_v35  ;;  %v1513_v10 = vadd.s32 %v1507_v35, %v1503_v6  ;;  %v3629_v48 = vshrl.u32 %v11417_v57, 16  ;;  %vm11429_vm14 = vmand %vm1655_vm8, %vm1703_vm15 }
 0x23c   : > { %v1512_v25 = vsel %vm1511_vm13, 1, %v13288_v27  ;;  %v1532_v56 = vmul.u32 43691, %v1529_v52  ;;  %v1533_v42 = vmul.u32 43690, %v1529_v52  ;;  %v1534_v51 = vmul.u32 43691, %v1530_v21 }
 0x23d   : > { %v13378_v63 = vmov 0  ;;  %v1494_v61 = vsub.s32 %v11338_v3, %v1493_v19  ;;  %v1508_v15 = vshrl.u32 %v1504_v8, 16  ;;  %v1514_v60 = vadd.s32 %v1512_v25, %v1506_v18  ;;  %v11442_v18 = vpop.f32.mrf.mxu3  ;;  %v2296_v25 = vpop.f32.mrf.mxu0 }
 0x23e   : > { %v13379_v63 = vsel %vm11429_vm14, 4294967295, %v13378_v63  ;;  %vm1515_vm12 = vc.u32 %v1513_v10, %v1509_v62  ;;  %v1510_v30 = vshrl.u32 %v1505_v49, 16  ;;  %v1535_v28 = vmul.u32 43690, %v1530_v21  ;;  %v2713_v49 = vpop.f32.mrf.mxu2  ;;  %13384 = vst [vmem:[#allocation62_spill] sm:$0xff] %v11442_v18 }
 0x23f   : > { %13380 = vst [vmem:[#allocation60_spill] sm:$0xff] %v13379_v63  ;;  %v1516_v7 = vsel %vm1515_vm12, 1, %v13288_v27  ;;  %v1536_v6 = vshll.u32 %v1533_v42, 16  ;;  %vm1656_vm3 = vcmp.ge.s32.totalorder %v1494_v61, 2  ;;  %vm1704_vm0 = vcmp.lt.s32.totalorder %v1494_v61, 18  ;;  %v2527_v61 = vpop.f32.mrf.mxu1 }
 0x240   : > { %v1518_v26 = vadd.s32 %v1516_v7, %v1514_v60  ;;  %v1538_v35 = vshll.u32 %v1534_v51, 16  ;;  %v3005_v52 = vsel %vm11429_vm14, %v11420_v44, 0.0  ;;  %vm11438_vm8 = vmand %vm1656_vm3, %vm1704_vm0  ;;  %v13381_v37 = vmov 0 }
 0x241   : > { %v13382_v37 = vsel %vm11438_vm8, 4294967295, %v13381_v37  ;;  %v2765_v3 = vadd.f32 %v2711_v4, %v2523_v9  ;;  %vm1540_vm15 = vc.u32 %v1532_v56, %v1536_v6  ;;  %v1542_v8 = vadd.s32 %v1536_v6, %v1532_v56  ;;  %vm13145_vm3 = vmpackc.low %vm11438_vm8, %vm11429_vm14 }
 0x242   : > { %13383 = vst [vmem:[#allocation61_spill] sm:$0xff] %v13382_v37  ;;  %v3006_v21 = vsel %vm11438_vm8, %v2862_v32, 0.0  ;;  %v1519_v62 = vadd.s32 %v1518_v26, %v1508_v15  ;;  %v2525_v19 = vadd.f32 %v2524_v0, %v2293_v39  ;;  %v1541_v10 = vsel %vm1540_vm15, 1, %v13288_v27 }
 0x243   : > { %v8229_v60 = vpack.c.bf16 %v3006_v21, %v3005_v52  ;;  %v1537_v7 = vshrl.u32 %v1533_v42, 16  ;;  %v1543_v33 = vadd.s32 %v1541_v10, %v1535_v28  ;;  %vm1544_vm0 = vc.u32 %v1542_v8, %v1538_v35  ;;  %v9391_v52 = vld [vmem:[#allocation2 + $0x5c] sm:$0xff]  }
 0x244   : > { %v1520_v16 = vadd.s32 %v1519_v62, %v1510_v30  ;;  %v1545_v4 = vsel %vm1544_vm0, 1, %v13288_v27  ;;  %v3631_v9 = vrot.slane %v3629_v48, 3  ;;  %v3632_v56 = vshll.u32 %v11417_v57, 16 }
 0x245   : > { %v4046_v6 = vshrl.u32 %v11393_v50, 16  ;;  %8962 = vst [vmem:[#allocation2 + $0xc0] sm:$0xff] %v8229_v60   ;;  %v1539_v18 = vshrl.u32 %v1534_v51, 16  ;;  %v1547_v15 = vadd.s32 %v1545_v4, %v1543_v33  ;;  %v2766_v39 = vadd.f32 %v2713_v49, %v2525_v19  ;;  %v11460_v50 = vld [vmem:[#allocation2 + $0x58] sm:$0xff]  ;;  %v11478_v21 = vpop.f32.mrf.mxu3  ;;  %v11493_v10 = vpop.f32.mrf.mxu0 }
 0x246   : > { %v9564_v0 = vpack.c.bf16 %v2862_v32, %v11420_v44  ;;  %v1521_v57 = vshrl.u32 %v1520_v16, 4  ;;  %v3634_v48 = vrot.slane %v3632_v56, 4  ;;  %v4050_v33 = vshll.u32 %v11460_v50, 16  ;;  %13385 = vst [vmem:[#allocation63_spill] sm:$0xff] %v11478_v21 }
 0x247   : > { %v11464_v42 = vadd.s32 368, %v9841_v55  ;;  %v2814_v51 = vmul.f32 %v9912_v46, %v2765_v3  ;;  %v1548_v30 = vadd.s32 %v1547_v15, %v1537_v7  ;;  %v4048_v44 = vor.u32 %v4046_v6, %v11409_v29  ;;  %v7985_v29 = vld [vmem:[%s12984_s1 + $0x1c0] sm:$0xff]  ;;  %v11495_v60 = vpop.f32.mrf.mxu1 }
 0x248   : > { %9565 = vmatmul.msk.bf16.gmra.mxu3 %vm13145_vm3, %v9564_v0  ;;  %v11469_v32 = vadd.s32 376, %v9841_v55  ;;  %v1522_v28 = vmul.u32 24, %v1521_v57  ;;  %v11471_v26 = vor.u32 %v3634_v48, %v3631_v9  ;;  %v11473_v16 = vrot.slane %v4050_v33, 1  ;;  %v7977_v55 = vld [vmem:[%s12984_s1 + $0x180] sm:$0xff]  ;;  %5031 = vmatpush.bf16.msrb.mxu2 %v7985_v29  ;;  %v2716_v57 = vpop.f32.mrf.mxu2 }
 0x249   : > { %v1558_v35 = vand.u32 65535, %v11464_v42  ;;  %v1549_v8 = vadd.s32 %v1548_v30, %v1539_v18  ;;  %v1559_v49 = vshrl.u32 %v11464_v42, 16  ;;  %v2815_v62 = vmul.f32 %v9912_v46, %v2766_v39  ;;  %5226 = vmatpush.bf16.msrb.mxu3 %v7977_v55 }
 0x24a   : > { %v1523_v3 = vsub.s32 %v11397_v36, %v1522_v28  ;;  %vm13386_vm12 = vsmask.f32 4352  ;;  %vm13387_vm13 = vsmask.f32 7424  ;;  %v2863_v36 = vadd.f32 %v9927_v59, %v2814_v51 }
 0x24b   : > { %v3636_v18 = vsel %vm13386_vm12, %v11391_v41, %v11471_v26  ;;  %v4053_v19 = vsel %vm13387_vm13, %v4048_v44, %v11473_v16  ;;  %v1550_v7 = vshrl.u32 %v1549_v8, 4  ;;  %v1561_v4 = vmul.u32 43691, %v1558_v35  ;;  %v11504_v44 = vld [vmem:[#allocation2 + $0x60] sm:$0xff] }
 0x24c   : > { %3896 = vmatmul.bf16.gmra.mxu0 %v3636_v18  ;;  %4297 = vmatmul.bf16.gmra.mxu1 %v4053_v19  ;;  %v1562_v9 = vmul.u32 43690, %v1558_v35  ;;  %v11497_v56 = vmul.u32 43691, %v1559_v49  ;;  %vm1657_vm15 = vcmp.ge.s32.totalorder %v1523_v3, 2  ;;  %v1564_v6 = vmul.u32 43690, %v1559_v49  ;;  %v7997_v49 = vld [vmem:[%s12984_s1 + $0x220] sm:$0xff] }
 0x24d   : > { %v1587_v41 = vand.u32 65535, %v11469_v32  ;;  %vm1705_vm0 = vcmp.lt.s32.totalorder %v1523_v3, 18  ;;  %v1551_v15 = vmul.u32 24, %v1550_v7  ;;  %v2864_v48 = vadd.f32 %v9927_v59, %v2815_v62  ;;  %v11518_v18 = vpop.f32.mrf.mxu3  ;;  %5417 = vmatpush.bf16.msra.mxu0 %v7997_v49 }
 0x24e   : > { %v1565_v39 = vshll.u32 %v1562_v9, 16  ;;  %v1567_v0 = vshll.u32 %v11497_v56, 16  ;;  %v2528_v33 = vadd.f32 %v2527_v61, %v2296_v25  ;;  %v1588_v30 = vshrl.u32 %v11469_v32, 16  ;;  %vm11513_vm13 = vmand %vm1657_vm15, %vm1705_vm0  ;;  %13391 = vst [vmem:[#allocation65_spill] sm:$0xff] %v11518_v18 }
 0x24f   : > { %v4058_v51 = vshll.u32 %v11504_v44, 16  ;;  %v1552_v28 = vsub.s32 %v11404_v11, %v1551_v15  ;;  %v1566_v35 = vshrl.u32 %v1562_v9, 16  ;;  %v13388_v29 = vmov 0  ;;  %v3862_v15 = vpop.f32.mrf.mxu0 }
 0x250   : > { %vm1569_vm12 = vc.u32 %v1561_v4, %v1565_v39  ;;  %v1571_v8 = vadd.s32 %v1565_v39, %v1561_v4  ;;  %v13389_v29 = vsel %vm11513_vm13, 4294967295, %v13388_v29  ;;  %v1590_v61 = vmul.u32 43691, %v1587_v41  ;;  %v4263_v39 = vpop.f32.mrf.mxu1 }
 0x251   : > { %13390 = vst [vmem:[#allocation64_spill] sm:$0xff] %v13389_v29  ;;  %v1570_v25 = vsel %vm1569_vm12, 1, %v13288_v27  ;;  %v1591_v55 = vmul.u32 43690, %v1587_v41  ;;  %v1592_v62 = vmul.u32 43691, %v1588_v30  ;;  %vm1658_vm3 = vcmp.ge.s32.totalorder %v1552_v28, 2 }
 0x252   : > { %vm1706_vm8 = vcmp.lt.s32.totalorder %v1552_v28, 18  ;;  %v1572_v11 = vadd.s32 %v1570_v25, %v1564_v6  ;;  %vm1573_vm14 = vc.u32 %v1571_v8, %v1567_v0  ;;  %v13392_v19 = vmov 0  ;;  %v7340_v41 = vld [vmem:[%s12985_s2 + $0x2] sm:$0x3] }
 0x253   : > { %vm11520_vm9 = vmand %vm1658_vm3, %vm1706_vm8  ;;  %v1574_v3 = vsel %vm1573_vm14, 1, %v13288_v27  ;;  %v1593_v7 = vmul.u32 43690, %v1588_v30  ;;  %v1594_v4 = vshll.u32 %v1591_v55, 16  ;;  %v1596_v9 = vshll.u32 %v1592_v62, 16 }
 0x254   : > { %v13393_v19 = vsel %vm11520_vm9, 4294967295, %v13392_v19  ;;  %v3007_v6 = vsel %vm11513_vm13, %v2863_v36, 0.0  ;;  %v3008_v0 = vsel %vm11520_vm9, %v2864_v48, 0.0  ;;  %v1568_v28 = vshrl.u32 %v11497_v56, 16  ;;  %vm13156_vm3 = vmpackc.low %vm11520_vm9, %vm11513_vm13 }
 0x255   : > { %13394 = vst [vmem:[#allocation66_spill] sm:$0xff] %v13393_v19  ;;  %v1576_v8 = vadd.s32 %v1574_v3, %v1572_v11  ;;  %v8234_v49 = vpack.c.bf16 %v3008_v0, %v3007_v6  ;;  %vm1598_vm14 = vc.u32 %v1590_v61, %v1594_v4  ;;  %v1600_v30 = vadd.s32 %v1594_v4, %v1590_v61 }
 0x256   : > { %v3863_v25 = vadd.f32 %v3862_v15, %v10565_v47  ;;  %v2767_v63 = vadd.f32 %v2716_v57, %v2528_v33  ;;  %v1599_v18 = vsel %vm1598_vm14, 1, %v13288_v27  ;;  %v11535_v21 = vperm.slane %v7340_v41, 0  ;;  %v11555_v15 = vpop.f32.mrf.mxu3 }
 0x257   : > { %v1577_v37 = vadd.s32 %v1576_v8, %v1566_v35  ;;  %8963 = vst [vmem:[#allocation2 + $0xc8] sm:$0xff] %v8234_v49   ;;  %v1595_v40 = vshrl.u32 %v1591_v55, 16  ;;  %v1601_v12 = vadd.s32 %v1599_v18, %v1593_v7  ;;  %vm1602_vm8 = vc.u32 %v1600_v30, %v1596_v9  ;;  %v2718_v55 = vpop.f32.mrf.mxu2  ;;  %v9393_v8 = vld [vmem:[#allocation2 + $0x64] sm:$0xff]  }
 0x258   : > { %v9567_v56 = vpack.c.bf16 %v2864_v48, %v2863_v36  ;;  %v4383_v47 = vadd.f32 %v4263_v39, %v3863_v25  ;;  %v2530_v33 = vadd.f32 %v11495_v60, %v11493_v10  ;;  %v1597_v35 = vshrl.u32 %v1592_v62, 16  ;;  %v3864_v39 = vpop.f32.mrf.mxu0 }
 0x259   : > { %v1578_v57 = vadd.s32 %v1577_v37, %v1568_v28  ;;  %v1603_v61 = vsel %vm1602_vm8, 1, %v13288_v27  ;;  %v11549_v18 = vperm.slane %v7340_v41, 1  ;;  %v3638_v3 = vshrl.u32 %v9391_v52, 16 }
 0x25a   : > { %9568 = vmatmul.msk.bf16.gmra.mxu3 %vm13156_vm3, %v9567_v56  ;;  %v1605_v11 = vadd.s32 %v1603_v61, %v1601_v12  ;;  %v3641_v36 = vshll.u32 %v9391_v52, 16  ;;  %v4432_v7 = vmul.f32 %v11535_v21, %v4383_v47  ;;  %v13395_v4 = vshrl.u32 %v11460_v50, 16  ;;  %v4265_v12 = vpop.f32.mrf.mxu1 }
 0x25b   : > { %v1579_v48 = vshrl.u32 %v1578_v57, 4  ;;  %v4060_v37 = vrot.slane %v4058_v51, 1  ;;  %v2768_v60 = vadd.f32 %v2718_v55, %v2530_v33  ;;  %v3640_v62 = vrot.slane %v3638_v3, 3 }
 0x25c   : > { %v4056_v9 = vor.u32 %v13395_v4, %v11473_v16  ;;  %v1606_v10 = vadd.s32 %v1605_v11, %v1595_v40  ;;  %v3643_v27 = vrot.slane %v3641_v36, 4  ;;  %vm13396_vm15 = vsmask.f32 7424 }
 0x25d   : > { %v1580_v41 = vmul.u32 24, %v1579_v48  ;;  %v3865_v52 = vadd.f32 %v3864_v39, %v10607_v45  ;;  %v4481_v16 = vadd.f32 %v11549_v18, %v4432_v7  ;;  %v2816_v40 = vmul.f32 %v9912_v46, %v2767_v63  ;;  %v11577_v48 = vld [vmem:[#allocation2 + $0x68] sm:$0xff] }
 0x25e   : > { %v4061_v6 = vsel %vm13396_vm15, %v4056_v9, %v4060_v37  ;;  %v1607_v0 = vadd.s32 %v1606_v10, %v1597_v35  ;;  %v3644_v28 = vor.u32 %v3643_v27, %v3640_v62  ;;  %v2817_v30 = vmul.f32 %v9912_v46, %v2768_v60  ;;  %v11567_v57 = vpop.f32.mrf.mxu3 }
 0x25f   : > { %4302 = vmatmul.bf16.gmra.mxu1 %v4061_v6  ;;  %v1581_v50 = vsub.s32 %v11464_v42, %v1580_v41  ;;  %v4384_v51 = vadd.f32 %v4265_v12, %v3865_v52  ;;  %vm13397_vm0 = vsmask.f32 4352  ;;  %v4529_v47 = vmax.f32 %v4481_v16, 0.0 }
 0x260   : > { %v1608_v49 = vshrl.u32 %v1607_v0, 4  ;;  %v3645_v25 = vsel %vm13397_vm0, %v11471_v26, %v3644_v28  ;;  %v3647_v33 = vshrl.u32 %v9393_v8, 16  ;;  %v2865_v63 = vadd.f32 %v9927_v59, %v2816_v40  ;;  %v3867_v61 = vpop.f32.mrf.mxu0 }
 0x261   : > { %3901 = vmatmul.bf16.gmra.mxu0 %v3645_v25  ;;  %v4433_v45 = vmul.f32 %v11535_v21, %v4384_v51  ;;  %vm1659_vm12 = vcmp.ge.s32.totalorder %v1581_v50, 2  ;;  %vm1707_vm14 = vcmp.lt.s32.totalorder %v1581_v50, 18  ;;  %v2866_v46 = vadd.f32 %v9927_v59, %v2817_v30  ;;  %v8008_v25 = vld [vmem:[%s12984_s1 + $0x278] sm:$0xff] }
 0x262   : > { %v1609_v56 = vmul.u32 24, %v1608_v49  ;;  %v4268_v26 = vpop.f32.mrf.mxu1  ;;  %v3650_v55 = vshll.u32 %v9393_v8, 16  ;;  %vm11572_vm8 = vmand %vm1659_vm12, %vm1707_vm14  ;;  %v13398_v11 = vmov 0  ;;  %v3868_v36 = vadd.f32 %v3867_v61, %v10662_v31  ;;  %6452 = vmatpush.bf16.msra.mxu2 %v8008_v25  ;;  %v9397_v25 = vld [vmem:[#allocation2 + $0x74] sm:$0xff]  }
 0x263   : > { %v4482_v42 = vadd.f32 %v11549_v18, %v4433_v45  ;;  %v13399_v11 = vsel %vm11572_vm8, 4294967295, %v13398_v11  ;;  %v4066_v7 = vshll.u32 %v11577_v48, 16  ;;  %v4577_v59 = vsel %vm9960_vm11, %v4529_v47, 0.0 }
 0x264   : > { %v1610_v35 = vsub.s32 %v11469_v32, %v1609_v56  ;;  %13400 = vst [vmem:[#allocation67_spill] sm:$0xff] %v13399_v11  ;;  %v13401_v32 = vmov 0  ;;  %v4385_v9 = vadd.f32 %v4268_v26, %v3868_v36  ;;  %v3649_v10 = vrot.slane %v3647_v33, 3  ;;  %v9487_v36 = vld [vmem:[#allocation2 + $0x70] sm:$0xff] }
 0x265   : > { %v4530_v3 = vmax.f32 %v4482_v42, 0.0  ;;  %v3009_v31 = vsel %vm11572_vm8, %v2865_v63, 0.0  ;;  %v3652_v27 = vrot.slane %v3650_v55, 4  ;;  %v4062_v39 = vshrl.u32 %v11504_v44, 16  ;;  %v8016_v42 = vld [vmem:[%s12984_s1 + $0x2b8] sm:$0xff] }
 0x266   : > { %vm1660_vm15 = vcmp.ge.s32.totalorder %v1610_v35, 2  ;;  %vm1708_vm0 = vcmp.lt.s32.totalorder %v1610_v35, 18  ;;  %v4068_v41 = vrot.slane %v4066_v7, 1  ;;  %v9570_v6 = vpack.c.bf16 %v2866_v46, %v2865_v63  ;;  %v11606_v0 = vpop.f32.mrf.mxu3  ;;  %6174 = vmatpush.bf16.msra.mxu1 %v8016_v42 }
 0x267   : > { %vm11580_vm3 = vmand %vm1660_vm15, %vm1708_vm0  ;;  %v4578_v4 = vsel %vm9946_vm10, %v4530_v3, 0.0  ;;  %v4434_v44 = vmul.f32 %v11535_v21, %v4385_v9  ;;  %v4064_v52 = vor.u32 %v4062_v39, %v4060_v37  ;;  %v3653_v50 = vor.u32 %v3652_v27, %v3649_v10  ;;  %v9395_v37 = vld [vmem:[#allocation2 + $0x6c] sm:$0xff]  }
 0x268   : > { %v13402_v32 = vsel %vm11580_vm3, 4294967295, %v13401_v32  ;;  %v3010_v60 = vsel %vm11580_vm3, %v2866_v46, 0.0  ;;  %v8340_v62 = vpack.c.bf16 %v4578_v4, %v4577_v59  ;;  %vm13157_vm12 = vmpackc.low %vm11580_vm3, %vm11572_vm8  ;;  %v3869_v16 = vpop.f32.mrf.mxu0  ;;  %vm13404_vm14 = vsmask.f32 7424  ;;  %v7947_v10 = vld [vmem:[#allocation3] sm:$0xff] }
 0x269   : > { %13403 = vst [vmem:[#allocation68_spill] sm:$0xff] %v13402_v32  ;;  %v11593_v12 = vpack.c.bf16 %v3010_v60, %v3009_v31  ;;  %v4069_v8 = vsel %vm13404_vm14, %v4064_v52, %v4068_v41  ;;  %v3870_v40 = vadd.f32 %v3869_v16, %v10688_v58  ;;  %v4483_v49 = vadd.f32 %v11549_v18, %v4434_v44  ;;  %v8024_v58 = vld [vmem:[%s12984_s1 + $0x2f8] sm:$0xff]  ;;  %vm13406_vm0 = vmmov %vm13404_vm14 }
 0x26a   : > { %9108 = vst [vmem:[#allocation3 + $0x18] sm:$0xff] %v8340_v62   ;;  %9571 = vmatmul.msk.bf16.gmra.mxu3 %vm13157_vm12, %v9570_v6  ;;  %v4270_v51 = vpop.f32.mrf.mxu1  ;;  %vm13405_vm15 = vsmask.f32 4352  ;;  %v3656_v61 = vshrl.u32 %v9395_v37, 16  ;;  %v3659_v26 = vshll.u32 %v9395_v37, 16  ;;  %v4074_v7 = vshll.u32 %v9487_v36, 16 }
 0x26b   : > { %8964 = vst [vmem:[#allocation2 + $0xd0] sm:$0xff] %v11593_v12   ;;  %v4386_v30 = vadd.f32 %v4270_v51, %v3870_v40  ;;  %v3654_v45 = vsel %vm13405_vm15, %v3644_v28, %v3653_v50  ;;  %v4531_v33 = vmax.f32 %v4483_v49, 0.0  ;;  %6706 = vmatpush.bf16.msra.mxu3 %v8024_v58  ;;  %v4070_v27 = vshrl.u32 %v11577_v48, 16  ;;  %vm13407_vm14 = vmmov %vm13405_vm15  ;;  %v7996_v37 = vld [vmem:[%s12984_s1 + $0x218] sm:$0xff] }
 0x26c   : > { %v3658_v60 = vrot.slane %v3656_v61, 3  ;;  %v3661_v62 = vrot.slane %v3659_v26, 4  ;;  %v4076_v39 = vrot.slane %v4074_v7, 1  ;;  %5418 = vmatpush.bf16.msra.mxu0 %v7996_v37  ;;  %v9488_v61 = vld [vmem:[#allocation2 + $0x78] sm:$0xff]  ;;  %vm13408_vm15 = vmmov %vm13406_vm0  ;;  %vm13418_vm12 = vsmask.f32 4352 }
 0x26d   : > { %v4435_v56 = vmul.f32 %v11535_v21, %v4386_v30  ;;  %v4579_v59 = vsel %vm10048_vm2, %v4531_v33, 0.0  ;;  %v3665_v33 = vshrl.u32 %v9397_v25, 16  ;;  %v4082_v26 = vshll.u32 %v9488_v61, 16 }
 0x26e   : > { %v11626_v28 = vpop.f32.mrf.mxu3  ;;  %v3662_v52 = vor.u32 %v3661_v62, %v3658_v60 }
 0x26f   : > { %4307 = vmatmul.bf16.gmra.mxu1 %v4069_v8  ;;  %v4484_v63 = vadd.f32 %v11549_v18, %v4435_v56  ;;  %v4084_v60 = vrot.slane %v4082_v26, 1 }
 0x270   : > { %v3872_v35 = vpop.f32.mrf.mxu0  ;;  %v3663_v48 = vsel %vm13407_vm14, %v3653_v50, %v3662_v52 }
 0x271   : > { %3906 = vmatmul.bf16.gmra.mxu0 %v3654_v45  ;;  %v11616_v47 = vld [vmem:[#allocation3 + $0x18] sm:$0xff]  ;;  %v4532_v55 = vmax.f32 %v4484_v63, 0.0  ;;  %v3873_v3 = vadd.f32 %v3872_v35, %v10742_v17  ;;  %v4072_v17 = vor.u32 %v4070_v27, %v4068_v41  ;;  %v3668_v63 = vshll.u32 %v9397_v25, 16 }
 0x272   : > { %5032 = vmatmul.bf16.vlgmr.msrb.gmra.mxu2 %v11616_v47  ;;  %v4273_v46 = vpop.f32.mrf.mxu1 }
 0x273   : > { %v4580_v4 = vsel %vm10071_vm6, %v4532_v55, 0.0  ;;  %v4387_v9 = vadd.f32 %v4273_v46, %v3873_v3  ;;  %v4077_v8 = vsel %vm13406_vm0, %v4072_v17, %v4076_v39  ;;  %vm13409_vm0 = vmmov %vm13407_vm14 }
 0x274   : > { %v8345_v31 = vpack.c.bf16 %v4580_v4, %v4579_v59  ;;  %v7948_v59 = vld [vmem:[#allocation3 + $0x8] sm:$0xff]  ;;  %vm13410_vm14 = vmmov %vm13408_vm15 }
 0x275   : > { %v4436_v6 = vmul.f32 %v11535_v21, %v4387_v9  ;;  %v3667_v9 = vrot.slane %v3665_v33, 3  ;;  %v9489_v33 = vld [vmem:[#allocation2 + $0x80] sm:$0xff] }
 0x276   : > { %9109 = vst [vmem:[#allocation3 + $0x20] sm:$0xff] %v8345_v31   ;;  %v11635_v44 = vpop.f32.mrf.mxu3  ;;  %v4078_v31 = vshrl.u32 %v9487_v36, 16 }
 0x277   : > { %v4485_v49 = vadd.f32 %v11549_v18, %v4436_v6 }
 0x278   : > { %v3874_v16 = vpop.f32.mrf.mxu0 }
 0x279   : > { %v3875_v40 = vadd.f32 %v3874_v16, %v10766_v24  ;;  %v4533_v56 = vmax.f32 %v4485_v49, 0.0 }
 0x27a   : > { %5227 = vmatmul.bf16.vlgmr.msrb.gmra.mxu3 %v7947_v10  ;;  %v4275_v51 = vpop.f32.mrf.mxu1  ;;  %v3670_v10 = vrot.slane %v3668_v63, 4  ;;  %v4090_v63 = vshll.u32 %v9489_v33, 16 }
 0x27b   : > { %v4388_v30 = vadd.f32 %v4275_v51, %v3875_v40  ;;  %v4581_v55 = vsel %vm10132_vm1, %v4533_v56, 0.0 }
 0x27c   : > { %v3671_v6 = vor.u32 %v3670_v10, %v3667_v9  ;;  %v4092_v9 = vrot.slane %v4090_v63, 1 }
 0x27d   : > { %v4437_v45 = vmul.f32 %v11535_v21, %v4388_v30  ;;  %v11642_v41 = vld [vmem:[#allocation3 + $0x20] sm:$0xff]  ;;  %v9399_v30 = vld [vmem:[#allocation2 + $0x7c] sm:$0xff]  }
 0x27e   : > { %v11649_v24 = vpop.f32.mrf.mxu3  ;;  %v3672_v36 = vsel %vm13409_vm0, %v3662_v52, %v3671_v6 }
 0x27f   : > { %4312 = vmatmul.bf16.gmra.mxu1 %v4077_v8  ;;  %v4486_v58 = vadd.f32 %v11549_v18, %v4437_v45 }
 0x280   : > { %v3877_v42 = vpop.f32.mrf.mxu0 }
 0x281   : > { %3911 = vmatmul.bf16.gmra.mxu0 %v3663_v48  ;;  %v4534_v35 = vmax.f32 %v4486_v58, 0.0  ;;  %v3878_v46 = vadd.f32 %v3877_v42, %v10813_v54  ;;  %v4080_v54 = vor.u32 %v4078_v31, %v4076_v39  ;;  %v3674_v58 = vshrl.u32 %v9399_v30, 16 }
 0x282   : > { %5037 = vmatmul.bf16.gmra.mxu2 %v11642_v41  ;;  %v4278_v50 = vpop.f32.mrf.mxu1  ;;  %v3677_v42 = vshll.u32 %v9399_v30, 16  ;;  %v8007_v30 = vld [vmem:[%s12984_s1 + $0x270] sm:$0xff] }
 0x283   : > { %v4582_v3 = vsel %vm10163_vm7, %v4534_v35, 0.0  ;;  %v4389_v7 = vadd.f32 %v4278_v50, %v3878_v46  ;;  %v4085_v51 = vsel %vm13408_vm15, %v4080_v54, %v4084_v60  ;;  %vm13411_vm15 = vmmov %vm13409_vm0  ;;  %6453 = vmatpush.bf16.msra.mxu2 %v8007_v30 }
 0x284   : > { %v8350_v4 = vpack.c.bf16 %v4582_v3, %v4581_v55  ;;  %v7949_v55 = vld [vmem:[#allocation3 + $0x10] sm:$0xff] }
 0x285   : > { %v4438_v62 = vmul.f32 %v11535_v21, %v4389_v7  ;;  %v3676_v7 = vrot.slane %v3674_v58, 3 }
 0x286   : > { %9110 = vst [vmem:[#allocation3 + $0x28] sm:$0xff] %v8350_v4   ;;  %v11657_v27 = vpop.f32.mrf.mxu3  ;;  %v4086_v4 = vshrl.u32 %v9488_v61, 16 }
 0x287   : > { %v4487_v40 = vadd.f32 %v11549_v18, %v4438_v62 }
 0x288   : > { %v3879_v17 = vpop.f32.mrf.mxu0 }
 0x289   : > { %v3880_v8 = vadd.f32 %v3879_v17, %v10842_v14  ;;  %v4535_v25 = vmax.f32 %v4487_v40, 0.0 }
 0x28a   : > { %5232 = vmatmul.bf16.gmra.mxu3 %v7948_v59  ;;  %v4280_v16 = vpop.f32.mrf.mxu1  ;;  %v3679_v59 = vrot.slane %v3677_v42, 4 }
 0x28b   : > { %v4390_v49 = vadd.f32 %v4280_v16, %v3880_v8  ;;  %v4583_v35 = vsel %vm10221_vm5, %v4535_v25, 0.0 }
 0x28c   : > { %v3680_v62 = vor.u32 %v3679_v59, %v3676_v7 }
 0x28d   : > { %v4439_v48 = vmul.f32 %v11535_v21, %v4390_v49  ;;  %v11664_v39 = vld [vmem:[#allocation3 + $0x28] sm:$0xff]  ;;  %v9401_v49 = vld [vmem:[#allocation2 + $0x84] sm:$0xff]  }
 0x28e   : > { %v11668_v37 = vpop.f32.mrf.mxu3  ;;  %v3681_v61 = vsel %vm13411_vm15, %v3671_v6, %v3680_v62  ;;  %v3686_v58 = vshll.u32 %v9401_v49, 16  ;;  %vm13416_vm15 = vsmask.f32 7424 }
 0x28f   : > { %4317 = vmatmul.bf16.gmra.mxu1 %v4085_v51  ;;  %v4488_v45 = vadd.f32 %v11549_v18, %v4439_v48  ;;  %v8015_v48 = vld [vmem:[%s12984_s1 + $0x2b0] sm:$0xff] }
 0x290   : > { %v3882_v14 = vpop.f32.mrf.mxu0  ;;  %6175 = vmatpush.bf16.msra.mxu1 %v8015_v48  ;;  %v9403_v48 = vld [vmem:[#allocation2 + $0x8c] sm:$0xff]  }
 0x291   : > { %3916 = vmatmul.bf16.gmra.mxu0 %v3672_v36  ;;  %v4536_v50 = vmax.f32 %v4488_v45, 0.0  ;;  %v3883_v52 = vadd.f32 %v3882_v14, %v10878_v22  ;;  %v4088_v22 = vor.u32 %v4086_v4, %v4084_v60 }
 0x292   : > { %5042 = vmatmul.bf16.gmra.mxu2 %v11664_v39  ;;  %v4283_v56 = vpop.f32.mrf.mxu1 }
 0x293   : > { %v4584_v46 = vsel %vm10229_vm4, %v4536_v50, 0.0  ;;  %v4391_v26 = vadd.f32 %v4283_v56, %v3883_v52  ;;  %v4093_v16 = vsel %vm13410_vm14, %v4088_v22, %v4092_v9  ;;  %v3683_v56 = vshrl.u32 %v9401_v49, 16  ;;  %v9490_v52 = vld [vmem:[#allocation2 + $0x88] sm:$0xff] }
 0x294   : > { %v8355_v3 = vpack.c.bf16 %v4584_v46, %v4583_v35  ;;  %v4098_v63 = vshll.u32 %v9490_v52, 16  ;;  %v13412_v46 = vld [vmem:[#allocation11_spill] sm:$0xff]  ;;  %v4094_v22 = vshrl.u32 %v9489_v33, 16 }
 0x295   : > { %v4440_v10 = vmul.f32 %v11535_v21, %v4391_v26  ;;  %vm13413_vm0 = vnez %v13412_v46  ;;  %v3685_v4 = vrot.slane %v3683_v56, 3 }
 0x296   : > { %9111 = vst [vmem:[#allocation3 + $0x30] sm:$0xff] %v8355_v3   ;;  %v11676_v31 = vpop.f32.mrf.mxu3 }
 0x297   : > { %v4489_v8 = vadd.f32 %v11549_v18, %v4440_v10  ;;  %v3688_v10 = vrot.slane %v3686_v58, 4  ;;  %v9491_v58 = vld [vmem:[#allocation2 + $0x90] sm:$0xff] }
 0x298   : > { %v3884_v54 = vpop.f32.mrf.mxu0 }
 0x299   : > { %v3885_v51 = vadd.f32 %v3884_v54, %v10910_v38  ;;  %v8023_v38 = vld [vmem:[%s12984_s1 + $0x2f0] sm:$0xff]  ;;  %v4537_v25 = vmax.f32 %v4489_v8, 0.0  ;;  %v4100_v54 = vrot.slane %v4098_v63, 1  ;;  %v13419_v63 = vld [vmem:[#allocation13_spill] sm:$0xff] }
 0x29a   : > { %5237 = vmatmul.bf16.gmra.mxu3 %v7949_v55  ;;  %v4285_v17 = vpop.f32.mrf.mxu1  ;;  %v13414_v55 = vld [vmem:[#allocation12_spill] sm:$0xff] }
 0x29b   : > { %v4392_v40 = vadd.f32 %v4285_v17, %v3885_v51  ;;  %6707 = vmatpush.bf16.msra.mxu3 %v8023_v38  ;;  %v4585_v26 = vsel %vm13413_vm0, %v4537_v25, 0.0  ;;  %vm13415_vm14 = vnez %v13414_v55  ;;  %v4096_v17 = vor.u32 %v4094_v22, %v4092_v9 }
 0x29c   : > { %vm13441_vm0 = vsmask.f32 4352 }
 0x29d   : > { %v4441_v36 = vmul.f32 %v11535_v21, %v4392_v40  ;;  %v11683_v60 = vld [vmem:[#allocation3 + $0x30] sm:$0xff]  ;;  %v4101_v8 = vsel %vm13416_vm15, %v4096_v17, %v4100_v54  ;;  %v13417_v40 = vld [vmem:[#allocation33_spill] sm:$0xff] }
 0x29f   : > { %4322 = vmatmul.bf16.gmra.mxu1 %v4093_v16  ;;  %v4490_v6 = vadd.f32 %v11549_v18, %v4441_v36  ;;  %v3689_v16 = vor.u32 %v3688_v10, %v3685_v4 }
 0x2a0   : > { %v3887_v45 = vpop.f32.mrf.mxu0 }
 0x2a1   : > { %3921 = vmatmul.bf16.gmra.mxu0 %v3681_v61  ;;  %v4538_v42 = vmax.f32 %v4490_v6, 0.0  ;;  %v3888_v50 = vadd.f32 %v3887_v45, %v10948_v2  ;;  %v3690_v38 = vsel %vm13418_vm12, %v3680_v62, %v3689_v16  ;;  %v3692_v45 = vshrl.u32 %v9403_v48, 16  ;;  %v7995_v62 = vld [vmem:[%s12984_s1 + $0x210] sm:$0xff] }
 0x2a2   : > { %5047 = vmatmul.bf16.gmra.mxu2 %v11683_v60  ;;  %v4288_v14 = vpop.f32.mrf.mxu1  ;;  %vm13420_vm12 = vnez %v13419_v63  ;;  %5419 = vmatpush.bf16.msra.mxu0 %v7995_v62  ;;  %v13450_v63 = vld [vmem:[#allocation49_spill] sm:$0xff] }
 0x2a3   : > { %v4586_v3 = vsel %vm13415_vm14, %v4538_v42, 0.0  ;;  %v4393_v7 = vadd.f32 %v4288_v14, %v3888_v50  ;;  %v3695_v14 = vshll.u32 %v9403_v48, 16  ;;  %v4106_v42 = vshll.u32 %v9491_v58, 16 }
 0x2a4   : > { %v11697_v35 = vpop.f32.mrf.mxu3  ;;  %v8360_v59 = vpack.c.bf16 %v4586_v3, %v4585_v26  ;;  %v13421_v3 = vld [vmem:[#allocation14_spill] sm:$0xff]  ;;  %v3694_v17 = vrot.slane %v3692_v45, 3  ;;  %vm13432_vm14 = vsmask.f32 7424 }
 0x2a5   : > { %v4442_v2 = vmul.f32 %v11535_v21, %v4393_v7  ;;  %vm13422_vm15 = vnez %v13421_v3  ;;  %v13446_v3 = vld [vmem:[#allocation19_spill] sm:$0xff] }
 0x2a6   : > { %9112 = vst [vmem:[#allocation3 + $0x38] sm:$0xff] %v8360_v59   ;;  %v13423_v59 = vld [vmem:[#allocation35_spill] sm:$0xff] }
 0x2a7   : > { %v4491_v30 = vadd.f32 %v11549_v18, %v4442_v2 }
 0x2a8   : > { %v3889_v51 = vpop.f32.mrf.mxu0 }
 0x2a9   : > { %v3890_v61 = vadd.f32 %v3889_v51, %v13417_v40  ;;  %v4539_v25 = vmax.f32 %v4491_v30, 0.0  ;;  %v3697_v51 = vrot.slane %v3695_v14, 4  ;;  %v9405_v14 = vld [vmem:[#allocation2 + $0x94] sm:$0xff]  }
 0x2aa   : > { %5242 = vmatmul.bf16.gmra.mxu3 %v11616_v47  ;;  %v4290_v49 = vpop.f32.mrf.mxu1  ;;  %v3701_v62 = vshrl.u32 %v9405_v14, 16 }
 0x2ab   : > { %v4394_v33 = vadd.f32 %v4290_v49, %v3890_v61  ;;  %v4587_v26 = vsel %vm13420_vm12, %v4539_v25, 0.0  ;;  %v4108_v61 = vrot.slane %v4106_v42, 1  ;;  %v3698_v30 = vor.u32 %v3697_v51, %v3694_v17  ;;  %v13427_v51 = vld [vmem:[#allocation15_spill] sm:$0xff] }
 0x2ac   : > { %v11707_v36 = vpop.f32.mrf.mxu3  ;;  %vm13426_vm12 = vsmask.f32 4352  ;;  %v4110_v17 = vshrl.u32 %v9491_v58, 16 }
 0x2ad   : > { %v4443_v47 = vmul.f32 %v11535_v21, %v4394_v33  ;;  %v11712_v9 = vld [vmem:[#allocation3 + $0x38] sm:$0xff] }
 0x2af   : > { %4327 = vmatmul.bf16.gmra.mxu1 %v4101_v8  ;;  %v4492_v6 = vadd.f32 %v11549_v18, %v4443_v47  ;;  %v4102_v8 = vshrl.u32 %v9490_v52, 16  ;;  %v13425_v47 = vld [vmem:[#allocation37_spill] sm:$0xff] }
 0x2b1   : > { %3926 = vmatmul.bf16.gmra.mxu0 %v3690_v38  ;;  %v4540_v56 = vmax.f32 %v4492_v6, 0.0  ;;  %v4104_v49 = vor.u32 %v4102_v8, %v4100_v54  ;;  %v3699_v6 = vsel %vm13426_vm12, %v3689_v16, %v3698_v30  ;;  %v9492_v16 = vld [vmem:[#allocation2 + $0x98] sm:$0xff]  ;;  %vm13428_vm12 = vnez %v13427_v51  ;;  %v9411_v51 = vld [vmem:[#allocation2 + $0xac] sm:$0xff]  }
 0x2b2   : > { %5052 = vmatmul.bf16.gmra.mxu2 %v11712_v9 }
 0x2b3   : > { %v3892_v50 = vpop.f32.mrf.mxu0  ;;  %v4588_v7 = vsel %vm13422_vm15, %v4540_v56, 0.0  ;;  %vm13424_vm15 = vsmask.f32 7424 }
 0x2b4   : > { %v3893_v4 = vadd.f32 %v3892_v50, %v13423_v59  ;;  %v8365_v22 = vpack.c.bf16 %v4588_v7, %v4587_v26  ;;  %v4109_v38 = vsel %vm13424_vm15, %v4104_v49, %v4108_v61  ;;  %v3704_v50 = vshll.u32 %v9405_v14, 16 }
 0x2b5   : > { %v11724_v10 = vpop.f32.mrf.mxu3  ;;  %v4114_v59 = vshll.u32 %v9492_v16, 16  ;;  %v4112_v14 = vor.u32 %v4110_v17, %v4108_v61 }
 0x2b6   : > { %v4293_v2 = vpop.f32.mrf.mxu1  ;;  %9113 = vst [vmem:[#allocation3 + $0x40] sm:$0xff] %v8365_v22   ;;  %v3703_v22 = vrot.slane %v3701_v62, 3  ;;  %v9407_v62 = vld [vmem:[#allocation2 + $0x9c] sm:$0xff]  }
 0x2b7   : > { %v4395_v40 = vadd.f32 %v4293_v2, %v3893_v4  ;;  %v3706_v2 = vrot.slane %v3704_v50, 4  ;;  %v3710_v61 = vshrl.u32 %v9407_v62, 16 }
 0x2b9   : > { %v4444_v33 = vmul.f32 %v11535_v21, %v4395_v40  ;;  %v13429_v40 = vld [vmem:[#allocation16_spill] sm:$0xff] }
 0x2ba   : > { %5247 = vmatmul.bf16.gmra.mxu3 %v11642_v41  ;;  %vm13430_vm15 = vnez %v13429_v40 }
 0x2bb   : > { %v3894_v48 = vpop.f32.mrf.mxu0  ;;  %v4493_v52 = vadd.f32 %v11549_v18, %v4444_v33  ;;  %v4116_v33 = vrot.slane %v4114_v59, 1  ;;  %v13434_v59 = vld [vmem:[#allocation41_spill] sm:$0xff] }
 0x2bc   : > { %v3895_v25 = vadd.f32 %v3894_v48, %v13425_v47 }
 0x2bd   : > { %v11732_v42 = vpop.f32.mrf.mxu3  ;;  %v11734_v41 = vld [vmem:[#allocation3 + $0x40] sm:$0xff]  ;;  %v4541_v26 = vmax.f32 %v4493_v52, 0.0  ;;  %v3707_v52 = vor.u32 %v3706_v2, %v3703_v22  ;;  %v3713_v22 = vshll.u32 %v9407_v62, 16  ;;  %v8014_v62 = vld [vmem:[%s12984_s1 + $0x2a8] sm:$0xff] }
 0x2be   : > { %v4295_v45 = vpop.f32.mrf.mxu1  ;;  %6176 = vmatpush.bf16.msra.mxu1 %v8014_v62 }
 0x2bf   : > { %4332 = vmatmul.bf16.gmra.mxu1 %v4109_v38  ;;  %v4396_v56 = vadd.f32 %v4295_v45, %v3895_v25  ;;  %v4589_v8 = vsel %vm13428_vm12, %v4541_v26, 0.0  ;;  %v13431_v25 = vld [vmem:[#allocation38_spill] sm:$0xff]  ;;  %vm13433_vm12 = vsmask.f32 4352 }
 0x2c1   : > { %3931 = vmatmul.bf16.gmra.mxu0 %v3699_v6  ;;  %v4445_v54 = vmul.f32 %v11535_v21, %v4396_v56  ;;  %v4117_v56 = vsel %vm13432_vm14, %v4112_v14, %v4116_v33 }
 0x2c2   : > { %5057 = vmatmul.bf16.gmra.mxu2 %v11734_v41 }
 0x2c3   : > { %v4494_v7 = vadd.f32 %v11549_v18, %v4445_v54  ;;  %v3708_v54 = vsel %vm13433_vm12, %v3698_v30, %v3707_v52  ;;  %v9493_v30 = vld [vmem:[#allocation2 + $0xa0] sm:$0xff] }
 0x2c5   : > { %v4542_v4 = vmax.f32 %v4494_v7, 0.0 }
 0x2c7   : > { %v4590_v49 = vsel %vm13430_vm15, %v4542_v4, 0.0  ;;  %vm13439_vm15 = vsmask.f32 7424 }
 0x2c8   : > { %v8370_v38 = vpack.c.bf16 %v4590_v49, %v4589_v8  ;;  %v4122_v49 = vshll.u32 %v9493_v30, 16 }
 0x2c9   : > { %v3897_v48 = vpop.f32.mrf.mxu0  ;;  %v4298_v47 = vpop.f32.mrf.mxu1 }
 0x2ca   : > { %v3898_v6 = vadd.f32 %v3897_v48, %v13431_v25  ;;  %5252 = vmatmul.bf16.gmra.mxu3 %v11664_v39  ;;  %9114 = vst [vmem:[#allocation3 + $0x48] sm:$0xff] %v8370_v38   ;;  %v3712_v48 = vrot.slane %v3710_v61, 3  ;;  %v4118_v25 = vshrl.u32 %v9492_v16, 16 }
 0x2cb   : > { %v11745_v45 = vpop.f32.mrf.mxu3 }
 0x2cc   : > { %v4397_v58 = vadd.f32 %v4298_v47, %v3898_v6  ;;  %v3715_v47 = vrot.slane %v3713_v22, 4  ;;  %v13437_v22 = vld [vmem:[#allocation18_spill] sm:$0xff] }
 0x2cd   : > { %vm13438_vm12 = vnez %v13437_v22 }
 0x2ce   : > { %v4446_v50 = vmul.f32 %v11535_v21, %v4397_v58  ;;  %v4124_v58 = vrot.slane %v4122_v49, 1 }
 0x2cf   : > { %4337 = vmatmul.bf16.gmra.mxu1 %v4117_v56  ;;  %v8006_v56 = vld [vmem:[%s12984_s1 + $0x268] sm:$0xff] }
 0x2d0   : > { %v4495_v2 = vadd.f32 %v11549_v18, %v4446_v50  ;;  %6454 = vmatpush.bf16.msra.mxu2 %v8006_v56 }
 0x2d1   : > { %3936 = vmatmul.bf16.gmra.mxu0 %v3708_v54  ;;  %v3899_v26 = vpop.f32.mrf.mxu0  ;;  %v4300_v7 = vpop.f32.mrf.mxu1  ;;  %v11753_v8 = vld [vmem:[#allocation3 + $0x48] sm:$0xff]  ;;  %v8022_v54 = vld [vmem:[%s12984_s1 + $0x2e8] sm:$0xff] }
 0x2d2   : > { %v3900_v4 = vadd.f32 %v3899_v26, %v13434_v59  ;;  %5062 = vmatmul.bf16.gmra.mxu2 %v11753_v8  ;;  %v4543_v6 = vmax.f32 %v4495_v2, 0.0  ;;  %v3716_v59 = vor.u32 %v3715_v47, %v3712_v48  ;;  %6708 = vmatpush.bf16.msra.mxu3 %v8022_v54 }
 0x2d3   : > { %v11751_v39 = vpop.f32.mrf.mxu3 }
 0x2d4   : > { %v4398_v17 = vadd.f32 %v4300_v7, %v3900_v4  ;;  %v4120_v7 = vor.u32 %v4118_v25, %v4116_v33  ;;  %v13435_v4 = vld [vmem:[#allocation17_spill] sm:$0xff]  ;;  %v3717_v33 = vsel %vm13441_vm0, %v3707_v52, %v3716_v59  ;;  %v4126_v52 = vshrl.u32 %v9493_v30, 16  ;;  %vm13443_vm0 = vmmov %vm13439_vm15 }
 0x2d5   : > { %vm13436_vm14 = vnez %v13435_v4  ;;  %v9409_v25 = vld [vmem:[#allocation2 + $0xa4] sm:$0xff]  }
 0x2d6   : > { %v4447_v38 = vmul.f32 %v11535_v21, %v4398_v17  ;;  %v4591_v61 = vsel %vm13436_vm14, %v4543_v6, 0.0  ;;  %v4125_v17 = vsel %vm13439_vm15, %v4120_v7, %v4124_v58  ;;  %v3719_v6 = vshrl.u32 %v9409_v25, 16 }
 0x2d7   : > { %v3722_v54 = vshll.u32 %v9409_v25, 16  ;;  %vm13445_vm15 = vsmask.f32 4352 }
 0x2d8   : > { %v4496_v14 = vadd.f32 %v11549_v18, %v4447_v38 }
 0x2da   : > { %v4544_v50 = vmax.f32 %v4496_v14, 0.0  ;;  %5257 = vmatmul.bf16.gmra.mxu3 %v11683_v60  ;;  %v13440_v14 = vld [vmem:[#allocation43_spill] sm:$0xff] }
 0x2dc   : > { %v4303_v26 = vpop.f32.mrf.mxu1  ;;  %v4592_v2 = vsel %vm13438_vm12, %v4544_v50, 0.0  ;;  %v9494_v50 = vld [vmem:[#allocation2 + $0xa8] sm:$0xff]  ;;  %vm13447_vm12 = vnez %v13446_v3 }
 0x2dd   : > { %v11769_v16 = vpop.f32.mrf.mxu3  ;;  %v8375_v49 = vpack.c.bf16 %v4592_v2, %v4591_v61  ;;  %v4130_v7 = vshll.u32 %v9494_v50, 16  ;;  %v13442_v2 = vld [vmem:[#allocation45_spill] sm:$0xff] }
 0x2de   : > { %v3902_v38 = vpop.f32.mrf.mxu0 }
 0x2df   : > { %4342 = vmatmul.bf16.gmra.mxu1 %v4125_v17  ;;  %v3903_v40 = vadd.f32 %v3902_v38, %v13440_v14  ;;  %9115 = vst [vmem:[#allocation3 + $0x50] sm:$0xff] %v8375_v49   ;;  %v3721_v49 = vrot.slane %v3719_v6, 3  ;;  %v3724_v38 = vrot.slane %v3722_v54, 4  ;;  %v4132_v14 = vrot.slane %v4130_v7, 1 }
 0x2e1   : > { %v4399_v48 = vadd.f32 %v4303_v26, %v3903_v40  ;;  %3941 = vmatmul.bf16.gmra.mxu0 %v3717_v33  ;;  %v7994_v33 = vld [vmem:[%s12984_s1 + $0x208] sm:$0xff]  ;;  %v3725_v6 = vor.u32 %v3724_v38, %v3721_v49 }
 0x2e2   : > { %5420 = vmatpush.bf16.msra.mxu0 %v7994_v33 }
 0x2e3   : > { %v4448_v62 = vmul.f32 %v11535_v21, %v4399_v48 }
 0x2e4   : > { %v4305_v47 = vpop.f32.mrf.mxu1 }
 0x2e5   : > { %v11778_v56 = vpop.f32.mrf.mxu3  ;;  %v4497_v40 = vadd.f32 %v11549_v18, %v4448_v62 }
 0x2e6   : > { %v3904_v61 = vpop.f32.mrf.mxu0  ;;  %v11782_v22 = vld [vmem:[#allocation3 + $0x50] sm:$0xff] }
 0x2e7   : > { %v3905_v17 = vadd.f32 %v3904_v61, %v13442_v2  ;;  %5067 = vmatmul.bf16.gmra.mxu2 %v11782_v22  ;;  %v4128_v61 = vor.u32 %v4126_v52, %v4124_v58  ;;  %v4545_v54 = vmax.f32 %v4497_v40, 0.0  ;;  %v13448_v52 = vld [vmem:[#allocation20_spill] sm:$0xff] }
 0x2e8   : > { %vm13449_vm14 = vnez %v13448_v52 }
 0x2e9   : > { %v4400_v26 = vadd.f32 %v4305_v47, %v3905_v17  ;;  %v4133_v47 = vsel %vm13443_vm0, %v4128_v61, %v4132_v14  ;;  %v13444_v17 = vld [vmem:[#allocation46_spill] sm:$0xff]  ;;  %v4593_v58 = vsel %vm13447_vm12, %v4545_v54, 0.0  ;;  %v3731_v61 = vshll.u32 %v9411_v51, 16 }
 0x2ea   : > { %5262 = vmatmul.bf16.gmra.mxu3 %v11712_v9 }
 0x2eb   : > { %v4449_v25 = vmul.f32 %v11535_v21, %v4400_v26  ;;  %v3726_v26 = vsel %vm13445_vm15, %v3716_v59, %v3725_v6  ;;  %v3733_v52 = vrot.slane %v3731_v61, 4  ;;  %v13451_v61 = vld [vmem:[#allocation50_spill] sm:$0xff] }
 0x2ec   : > { %v4308_v48 = vpop.f32.mrf.mxu1 }
 0x2ed   : > { %v4498_v30 = vadd.f32 %v11549_v18, %v4449_v25  ;;  %v11793_v2 = vpop.f32.mrf.mxu3  ;;  %v3728_v25 = vshrl.u32 %v9411_v51, 16 }
 0x2ee   : > { %v3907_v62 = vpop.f32.mrf.mxu0 }
 0x2ef   : > { %4347 = vmatmul.bf16.gmra.mxu1 %v4133_v47  ;;  %v4546_v7 = vmax.f32 %v4498_v30, 0.0  ;;  %v3908_v4 = vadd.f32 %v3907_v62, %v13444_v17  ;;  %v9495_v47 = vld [vmem:[#allocation2 + $0xb0] sm:$0xff]  ;;  %v3730_v55 = vrot.slane %v3728_v25, 3 }
 0x2f0   : > { %v4138_v62 = vshll.u32 %v9495_v47, 16 }
 0x2f1   : > { %v4594_v49 = vsel %vm13449_vm14, %v4546_v7, 0.0  ;;  %v4401_v38 = vadd.f32 %v4308_v48, %v3908_v4  ;;  %3946 = vmatmul.bf16.gmra.mxu0 %v3726_v26  ;;  %v4134_v7 = vshrl.u32 %v9494_v50, 16 }
 0x2f2   : > { %v8380_v40 = vpack.c.bf16 %v4594_v49, %v4593_v58  ;;  %v4140_v26 = vrot.slane %v4138_v62, 1 }
 0x2f3   : > { %v4450_v30 = vmul.f32 %v11535_v21, %v4401_v38  ;;  %v4136_v38 = vor.u32 %v4134_v7, %v4132_v14  ;;  %v9413_v14 = vld [vmem:[#allocation2 + $0xb4] sm:$0xff]  }
 0x2f4   : > { %v4310_v33 = vpop.f32.mrf.mxu1  ;;  %9116 = vst [vmem:[#allocation3 + $0x58] sm:$0xff] %v8380_v40   ;;  %v3734_v40 = vor.u32 %v3733_v52, %v3730_v55  ;;  %v13452_v55 = vld [vmem:[#allocation21_spill] sm:$0xff]  ;;  %v13454_v7 = vld [vmem:[#allocation22_spill] sm:$0xff]  ;;  %v3740_v53 = vshll.u32 %v9413_v14, 16 }
 0x2f5   : > { %v11802_v59 = vpop.f32.mrf.mxu3  ;;  %v5033_v54 = vpop.f32.mrf.mxu2  ;;  %v4499_v4 = vadd.f32 %v11549_v18, %v4450_v30  ;;  %v4141_v50 = vsel %vm13443_vm0, %v4136_v38, %v4140_v26  ;;  %vm13453_vm14 = vnez %v13452_v55  ;;  %vm13455_vm12 = vnez %v13454_v7  ;;  %v13456_v55 = vld [vmem:[#allocation52_spill] sm:$0xff]  ;;  %v13457_v7 = vld [vmem:[#allocation54_spill] sm:$0xff] }
 0x2f6   : > { %v3909_v17 = vpop.f32.mrf.mxu0 }
 0x2f7   : > { %v3910_v3 = vadd.f32 %v3909_v17, %v13450_v63  ;;  %v4547_v46 = vmax.f32 %v4499_v4, 0.0 }
 0x2f9   : > { %v4402_v48 = vadd.f32 %v4310_v33, %v3910_v3  ;;  %v4595_v52 = vsel %vm13453_vm14, %v4547_v46, 0.0 }
 0x2fa   : > { %5267 = vmatmul.bf16.gmra.mxu3 %v11734_v41 }
 0x2fb   : > { %v4451_v58 = vmul.f32 %v11535_v21, %v4402_v48  ;;  %v11807_v49 = vld [vmem:[#allocation3 + $0x58] sm:$0xff]  ;;  %v3735_v48 = vsel %vm13445_vm15, %v3725_v6, %v3734_v40 }
 0x2fc   : > { %v4313_v51 = vpop.f32.mrf.mxu1  ;;  %5072 = vmatmul.bf16.gmra.mxu2 %v11807_v49 }
 0x2fd   : > { %v4500_v63 = vadd.f32 %v11549_v18, %v4451_v58  ;;  %v5228_v3 = vpop.f32.mrf.mxu3  ;;  %v5035_v17 = vpop.f32.mrf.mxu2 }
 0x2fe   : > { %v3912_v25 = vpop.f32.mrf.mxu0  ;;  %v11814_v62 = vadd.f32 %v5228_v3, %v5033_v54 }
 0x2ff   : > { %4352 = vmatmul.bf16.gmra.mxu1 %v4141_v50  ;;  %v4548_v33 = vmax.f32 %v4500_v63, 0.0  ;;  %v3913_v30 = vadd.f32 %v3912_v25, %v13451_v61  ;;  %v3737_v63 = vshrl.u32 %v9413_v14, 16  ;;  %v11822_v25 = vld [vmem:[#allocation2 + $0xb8] sm:$0xff] }
 0x300   : > { %v4146_v6 = vshll.u32 %v11822_v25, 16 }
 0x301   : > { %v4596_v4 = vsel %vm13455_vm12, %v4548_v33, 0.0  ;;  %v4403_v58 = vadd.f32 %v4313_v51, %v3913_v30  ;;  %3951 = vmatmul.bf16.gmra.mxu0 %v3735_v48  ;;  %v3739_v51 = vrot.slane %v3737_v63, 3  ;;  %v3742_v30 = vrot.slane %v3740_v53, 4 }
 0x302   : > { %v8385_v38 = vpack.c.bf16 %v4596_v4, %v4595_v52  ;;  %v4142_v48 = vshrl.u32 %v9495_v47, 16  ;;  %v4148_v14 = vrot.slane %v4146_v6, 1 }
 0x303   : > { %v4452_v54 = vmul.f32 %v11535_v21, %v4403_v58  ;;  %v8005_v58 = vld [vmem:[%s12984_s1 + $0x260] sm:$0xff]  ;;  %v3743_v63 = vor.u32 %v3742_v30, %v3739_v51 }
 0x304   : > { %v4315_v50 = vpop.f32.mrf.mxu1  ;;  %9117 = vst [vmem:[#allocation3 + $0x60] sm:$0xff] %v8385_v38   ;;  %v8021_v38 = vld [vmem:[%s12984_s1 + $0x2e0] sm:$0xff]  ;;  %6455 = vmatpush.bf16.msra.mxu2 %v8005_v58 }
 0x305   : > { %v5230_v61 = vpop.f32.mrf.mxu3  ;;  %v5038_v33 = vpop.f32.mrf.mxu2  ;;  %v4501_v52 = vadd.f32 %v11549_v18, %v4452_v54  ;;  %6709 = vmatpush.bf16.msra.mxu3 %v8021_v38  ;;  %v3744_v51 = vsel %vm13445_vm15, %v3734_v40, %v3743_v63  ;;  %v9415_v30 = vld [vmem:[#allocation2 + $0xbc] sm:$0xff]  }
 0x306   : > { %v3914_v3 = vpop.f32.mrf.mxu0  ;;  %v11826_v23 = vadd.f32 %v5230_v61, %v5035_v17  ;;  %v8013_v17 = vld [vmem:[%s12984_s1 + $0x2a0] sm:$0xff] }
 0x307   : > { %v3915_v46 = vadd.f32 %v3914_v3, %v13456_v55  ;;  %6177 = vmatpush.bf16.msra.mxu1 %v8013_v17  ;;  %v4549_v54 = vmax.f32 %v4501_v52, 0.0  ;;  %v13461_v58 = vld [vmem:[#allocation24_spill] sm:$0xff] }
 0x308   : > { %vm13462_vm14 = vnez %v13461_v58 }
 0x309   : > { %v4404_v4 = vadd.f32 %v4315_v50, %v3915_v46  ;;  %v4144_v50 = vor.u32 %v4142_v48, %v4140_v26  ;;  %v13459_v48 = vld [vmem:[#allocation23_spill] sm:$0xff] }
 0x30a   : > { %5272 = vmatmul.bf16.gmra.mxu3 %v11753_v8  ;;  %vm13460_vm12 = vnez %v13459_v48 }
 0x30b   : > { %v4453_v55 = vmul.f32 %v11535_v21, %v4404_v4  ;;  %v11839_v47 = vld [vmem:[#allocation3 + $0x60] sm:$0xff]  ;;  %v4149_v3 = vsel %vm13443_vm0, %v4144_v50, %v4148_v14  ;;  %v4597_v52 = vsel %vm13460_vm12, %v4549_v54, 0.0 }
 0x30c   : > { %v4318_v53 = vpop.f32.mrf.mxu1  ;;  %5077 = vmatmul.bf16.gmra.mxu2 %v11839_v47 }
 0x30d   : > { %v4502_v6 = vadd.f32 %v11549_v18, %v4453_v55  ;;  %v5233_v46 = vpop.f32.mrf.mxu3  ;;  %v5040_v26 = vpop.f32.mrf.mxu2 }
 0x30e   : > { %v3917_v61 = vpop.f32.mrf.mxu0  ;;  %v11846_v34 = vadd.f32 %v5233_v46, %v5038_v33  ;;  %v9497_v33 = vld [vmem:[#allocation2 + $0xc0] sm:$0xff] }
 0x30f   : > { %4357 = vmatmul.bf16.gmra.mxu1 %v4149_v3  ;;  %v4550_v4 = vmax.f32 %v4502_v6, 0.0  ;;  %v3918_v1 = vadd.f32 %v3917_v61, %v13457_v7  ;;  %v3746_v6 = vshrl.u32 %v9415_v30, 16  ;;  %v3749_v3 = vshll.u32 %v9415_v30, 16  ;;  %v7993_v30 = vld [vmem:[%s12984_s1 + $0x200] sm:$0xff] }
 0x310   : > { %13458 = vst [vmem:[#allocation33_spill] sm:$0xff] %v11846_v34  ;;  %v4154_v61 = vshll.u32 %v9497_v33, 16  ;;  %5421 = vmatpush.bf16.msra.mxu0 %v7993_v30 }
 0x311   : > { %v4598_v38 = vsel %vm13462_vm14, %v4550_v4, 0.0  ;;  %v4405_v17 = vadd.f32 %v4318_v53, %v3918_v1  ;;  %3956 = vmatmul.bf16.gmra.mxu0 %v3744_v51  ;;  %v3748_v58 = vrot.slane %v3746_v6, 3  ;;  %v3751_v4 = vrot.slane %v3749_v3, 4 }
 0x312   : > { %v8390_v55 = vpack.c.bf16 %v4598_v38, %v4597_v52  ;;  %v4150_v1 = vshrl.u32 %v11822_v25, 16  ;;  %v4156_v52 = vrot.slane %v4154_v61, 1  ;;  %v13465_v61 = vld [vmem:[#allocation58_spill] sm:$0xff] }
 0x313   : > { %v4454_v7 = vmul.f32 %v11535_v21, %v4405_v17 }
 0x314   : > { %v4320_v50 = vpop.f32.mrf.mxu1  ;;  %9118 = vst [vmem:[#allocation3 + $0x68] sm:$0xff] %v8390_v55  }
 0x315   : > { %v5235_v40 = vpop.f32.mrf.mxu3  ;;  %v5043_v54 = vpop.f32.mrf.mxu2  ;;  %v4503_v53 = vadd.f32 %v11549_v18, %v4454_v7 }
 0x316   : > { %v3919_v46 = vpop.f32.mrf.mxu0  ;;  %v11855_v48 = vadd.f32 %v5235_v40, %v5040_v26  ;;  %v3752_v26 = vor.u32 %v3751_v4, %v3748_v58  ;;  %v13467_v58 = vld [vmem:[#allocation25_spill] sm:$0xff] }
 0x317   : > { %v3920_v20 = vadd.f32 %v3919_v46, %v13463_v43  ;;  %v4152_v43 = vor.u32 %v4150_v1, %v4148_v14  ;;  %v4551_v6 = vmax.f32 %v4503_v53, 0.0  ;;  %v9417_v1 = vld [vmem:[#allocation2 + $0xc4] sm:$0xff]   ;;  %vm13468_vm14 = vnez %v13467_v58  ;;  %v13469_v53 = vld [vmem:[#allocation26_spill] sm:$0xff]  ;;  %v13471_v58 = vld [vmem:[#allocation59_spill] sm:$0xff] }
 0x318   : > { %13464 = vst [vmem:[#allocation35_spill] sm:$0xff] %v11855_v48  ;;  %v3753_v14 = vsel %vm13445_vm15, %v3743_v63, %v3752_v26  ;;  %vm13470_vm12 = vnez %v13469_v53  ;;  %v3758_v48 = vshll.u32 %v9417_v1, 16 }
 0x319   : > { %v4406_v51 = vadd.f32 %v4320_v50, %v3920_v20  ;;  %v4157_v20 = vsel %vm13443_vm0, %v4152_v43, %v4156_v52  ;;  %v4599_v4 = vsel %vm13468_vm14, %v4551_v6, 0.0 }
 0x31a   : > { %5277 = vmatmul.bf16.gmra.mxu3 %v11782_v22 }
 0x31b   : > { %v4455_v38 = vmul.f32 %v11535_v21, %v4406_v51  ;;  %v11863_v55 = vld [vmem:[#allocation3 + $0x68] sm:$0xff] }
 0x31c   : > { %v4323_v17 = vpop.f32.mrf.mxu1  ;;  %5082 = vmatmul.bf16.gmra.mxu2 %v11863_v55 }
 0x31d   : > { %v4504_v25 = vadd.f32 %v11549_v18, %v4455_v38  ;;  %v5238_v3 = vpop.f32.mrf.mxu3  ;;  %v5045_v51 = vpop.f32.mrf.mxu2 }
 0x31e   : > { %v3922_v50 = vpop.f32.mrf.mxu0  ;;  %v11870_v40 = vadd.f32 %v5238_v3, %v5043_v54 }
 0x31f   : > { %4362 = vmatmul.bf16.gmra.mxu1 %v4157_v20  ;;  %v4552_v7 = vmax.f32 %v4504_v25, 0.0  ;;  %v3923_v46 = vadd.f32 %v3922_v50, %v13465_v61  ;;  %v3755_v25 = vshrl.u32 %v9417_v1, 16  ;;  %v11878_v50 = vld [vmem:[#allocation2 + $0xc8] sm:$0xff] }
 0x320   : > { %13466 = vst [vmem:[#allocation37_spill] sm:$0xff] %v11870_v40  ;;  %v4162_v63 = vshll.u32 %v11878_v50, 16 }
 0x321   : > { %v4600_v30 = vsel %vm13470_vm12, %v4552_v7, 0.0  ;;  %v4407_v38 = vadd.f32 %v4323_v17, %v3923_v46  ;;  %3961 = vmatmul.bf16.gmra.mxu0 %v3753_v14  ;;  %v3757_v17 = vrot.slane %v3755_v25, 3  ;;  %v3760_v46 = vrot.slane %v3758_v48, 4 }
 0x322   : > { %v8395_v43 = vpack.c.bf16 %v4600_v30, %v4599_v4  ;;  %v4158_v14 = vshrl.u32 %v9497_v33, 16  ;;  %v4164_v1 = vrot.slane %v4162_v63, 1 }
 0x323   : > { %v4456_v54 = vmul.f32 %v11535_v21, %v4407_v38  ;;  %v11889_v5 = vor.u32 %v3760_v46, %v3757_v17  ;;  %v13475_v17 = vld [vmem:[#allocation27_spill] sm:$0xff] }
 0x324   : > { %v4325_v20 = vpop.f32.mrf.mxu1  ;;  %9119 = vst [vmem:[#allocation3 + $0x70] sm:$0xff] %v8395_v43   ;;  %v4160_v34 = vor.u32 %v4158_v14, %v4156_v52  ;;  %vm13476_vm12 = vnez %v13475_v17  ;;  %v13477_v14 = vld [vmem:[#allocation28_spill] sm:$0xff] }
 0x325   : > { %v5240_v61 = vpop.f32.mrf.mxu3  ;;  %v5048_v7 = vpop.f32.mrf.mxu2  ;;  %v4505_v4 = vadd.f32 %v11549_v18, %v4456_v54  ;;  %v13473_v54 = vld [vmem:[#allocation62_spill] sm:$0xff]  ;;  %v3762_v52 = vsel %vm13445_vm15, %v3752_v26, %v11889_v5  ;;  %vm13478_vm14 = vnez %v13477_v14 }
 0x326   : > { %v3924_v3 = vpop.f32.mrf.mxu0  ;;  %v11882_v40 = vadd.f32 %v5240_v61, %v5045_v51  ;;  %v4165_v48 = vsel %vm13443_vm0, %v4160_v34, %v4164_v1 }
 0x327   : > { %v3925_v6 = vadd.f32 %v3924_v3, %v13471_v58  ;;  %v4553_v51 = vmax.f32 %v4505_v4, 0.0 }
 0x328   : > { %13472 = vst [vmem:[#allocation38_spill] sm:$0xff] %v11882_v40  ;;  %v13481_v40 = vld [vmem:[#allocation65_spill] sm:$0xff] }
 0x329   : > { %v4408_v30 = vadd.f32 %v4325_v20, %v3925_v6  ;;  %v9418_v6 = vld [vmem:[#allocation2 + $0xcc] sm:$0xff]   ;;  %v4601_v46 = vsel %vm13476_vm12, %v4553_v51, 0.0 }
 0x32a   : > { %5282 = vmatmul.bf16.gmra.mxu3 %v11807_v49 }
 0x32b   : > { %v4457_v38 = vmul.f32 %v11535_v21, %v4408_v30  ;;  %v11886_v53 = vld [vmem:[#allocation3 + $0x70] sm:$0xff] }
 0x32c   : > { %v4328_v43 = vpop.f32.mrf.mxu1  ;;  %5087 = vmatmul.bf16.gmra.mxu2 %v11886_v53 }
 0x32d   : > { %v4506_v58 = vadd.f32 %v11549_v18, %v4457_v38  ;;  %v5243_v20 = vpop.f32.mrf.mxu3  ;;  %v5050_v61 = vpop.f32.mrf.mxu2 }
 0x32e   : > { %v3927_v33 = vpop.f32.mrf.mxu0  ;;  %v11895_v3 = vadd.f32 %v5243_v20, %v5048_v7 }
 0x32f   : > { %4367 = vmatmul.bf16.gmra.mxu1 %v4165_v48  ;;  %v4554_v25 = vmax.f32 %v4506_v58, 0.0  ;;  %v3928_v63 = vadd.f32 %v3927_v33, %v13473_v54  ;;  %v3764_v58 = vshrl.u32 %v9418_v6, 16  ;;  %v3767_v48 = vshll.u32 %v9418_v6, 16  ;;  %v13479_v54 = vld [vmem:[#allocation63_spill] sm:$0xff] }
 0x330   : > { %13474 = vst [vmem:[#allocation41_spill] sm:$0xff] %v11895_v3  ;;  %v4170_v33 = vshll.u32 %v11593_v12, 16  ;;  %v8004_v6 = vld [vmem:[%s12984_s1 + $0x258] sm:$0xff] }
 0x331   : > { %v4602_v4 = vsel %vm13478_vm14, %v4554_v25, 0.0  ;;  %v4409_v34 = vadd.f32 %v4328_v43, %v3928_v63  ;;  %3966 = vmatmul.bf16.gmra.mxu0 %v3762_v52  ;;  %v3766_v14 = vrot.slane %v3764_v58, 3  ;;  %v3769_v25 = vrot.slane %v3767_v48, 4  ;;  %v8020_v12 = vld [vmem:[%s12984_s1 + $0x2d8] sm:$0xff]  ;;  %6456 = vmatpush.bf16.msra.mxu2 %v8004_v6 }
 0x332   : > { %v8400_v30 = vpack.c.bf16 %v4602_v4, %v4601_v46  ;;  %v4166_v43 = vshrl.u32 %v11878_v50, 16  ;;  %v4172_v46 = vrot.slane %v4170_v33, 1  ;;  %v3156_v4 = vld [vmem:[#allocation2 + $0xd8] sm:$0xf]  ;;  %6710 = vmatpush.bf16.msra.mxu3 %v8020_v12  ;;  %v13485_v12 = vld [vmem:[#allocation30_spill] sm:$0xff] }
 0x333   : > { %v4458_v7 = vmul.f32 %v11535_v21, %v4409_v34  ;;  %v3983_v33 = vunpack.c.l.b16 %v3156_v4 }
 0x334   : > { %v4330_v38 = vpop.f32.mrf.mxu1  ;;  %9120 = vst [vmem:[#allocation3 + $0x78] sm:$0xff] %v8400_v30  }
 0x335   : > { %v5245_v26 = vpop.f32.mrf.mxu3  ;;  %v5053_v51 = vpop.f32.mrf.mxu2  ;;  %v4507_v63 = vadd.f32 %v11549_v18, %v4458_v7 }
 0x336   : > { %v3929_v20 = vpop.f32.mrf.mxu0  ;;  %v11906_v17 = vadd.f32 %v5245_v26, %v5050_v61  ;;  %v8012_v61 = vld [vmem:[%s12984_s1 + $0x298] sm:$0xff] }
 0x337   : > { %v3930_v3 = vadd.f32 %v3929_v20, %v13479_v54  ;;  %6178 = vmatpush.bf16.msra.mxu1 %v8012_v61  ;;  %v4555_v58 = vmax.f32 %v4507_v63, 0.0  ;;  %v9499_v54 = vld [vmem:[#allocation2 + $0xd0] sm:$0xff]  ;;  %v13483_v63 = vld [vmem:[#allocation29_spill] sm:$0xff] }
 0x338   : > { %13480 = vst [vmem:[#allocation43_spill] sm:$0xff] %v11906_v17  ;;  %vm13484_vm14 = vnez %v13483_v63 }
 0x339   : > { %v4410_v52 = vadd.f32 %v4330_v38, %v3930_v3  ;;  %v4168_v3 = vor.u32 %v4166_v43, %v4164_v1  ;;  %v3770_v38 = vor.u32 %v3769_v25, %v3766_v14  ;;  %v4603_v6 = vsel %vm13484_vm14, %v4555_v58, 0.0 }
 0x33a   : > { %5287 = vmatmul.bf16.gmra.mxu3 %v11839_v47 }
 0x33b   : > { %v4459_v34 = vmul.f32 %v11535_v21, %v4410_v52  ;;  %v11920_v30 = vld [vmem:[#allocation3 + $0x78] sm:$0xff]  ;;  %v4173_v7 = vsel %vm13443_vm0, %v4168_v3, %v4172_v46  ;;  %v8336_v52 = vunpack.c.h.b16 %v9499_v54  ;;  %v3771_v25 = vsel %vm13445_vm15, %v11889_v5, %v3770_v38 }
 0x33c   : > { %v4333_v50 = vpop.f32.mrf.mxu1  ;;  %5092 = vmatmul.bf16.gmra.mxu2 %v11920_v30  ;;  %vm13486_vm0 = vnez %v13485_v12  ;;  %v4174_v12 = vshrl.u32 %v9499_v54, 16  ;;  %vm13487_vm15 = vsmask.f32 7424 }
 0x33d   : > { %v4508_v48 = vadd.f32 %v11549_v18, %v4459_v34  ;;  %v5248_v26 = vpop.f32.mrf.mxu3  ;;  %v5055_v14 = vpop.f32.mrf.mxu2  ;;  %v3984_v34 = vpack.c.b16 %v3983_v33, %v3983_v33 }
 0x33e   : > { %v3932_v20 = vpop.f32.mrf.mxu0  ;;  %v11927_v43 = vadd.f32 %v5248_v26, %v5053_v51 }
 0x33f   : > { %4372 = vmatmul.bf16.gmra.mxu1 %v4173_v7  ;;  %v4556_v17 = vmax.f32 %v4508_v48, 0.0  ;;  %v3933_v1 = vadd.f32 %v3932_v20, %v13481_v40  ;;  %v3555_v7 = vpack.c.b16 %v8336_v52, %v8336_v52  ;;  %v4178_v51 = vshll.u32 %v3984_v34, 16 }
 0x340   : > { %13482 = vst [vmem:[#allocation45_spill] sm:$0xff] %v11927_v43 }
 0x341   : > { %v4604_v61 = vsel %vm13486_vm0, %v4556_v17, 0.0  ;;  %v4411_v4 = vadd.f32 %v4333_v50, %v3933_v1  ;;  %3971 = vmatmul.bf16.gmra.mxu0 %v3771_v25  ;;  %v3773_v43 = vshrl.u32 %v3555_v7, 16  ;;  %v3776_v5 = vshll.u32 %v3555_v7, 16 }
 0x342   : > { %v8405_v3 = vpack.c.bf16 %v4604_v61, %v4603_v6  ;;  %v4176_v1 = vor.u32 %v4174_v12, %v4172_v46  ;;  %v4180_v52 = vrot.slane %v4178_v51, 1  ;;  %vm13488_vm0 = vsmask.f32 4352  ;;  %v13489_v51 = vld [vmem:[#allocation31_spill] sm:$0xff] }
 0x343   : > { %v4460_v40 = vmul.f32 %v11535_v21, %v4411_v4  ;;  %v3775_v25 = vrot.slane %v3773_v43, 3  ;;  %v3778_v6 = vrot.slane %v3776_v5, 4  ;;  %vm13490_vm14 = vnez %v13489_v51 }
 0x344   : > { %v4335_v48 = vpop.f32.mrf.mxu1  ;;  %9121 = vst [vmem:[#allocation3 + $0x80] sm:$0xff] %v8405_v3   ;;  %v4181_v54 = vsel %vm13487_vm15, %v4176_v1, %v4180_v52 }
 0x345   : > { %v5250_v26 = vpop.f32.mrf.mxu3  ;;  %v5058_v17 = vpop.f32.mrf.mxu2  ;;  %v4509_v50 = vadd.f32 %v11549_v18, %v4460_v40 }
 0x346   : > { %v3934_v20 = vpop.f32.mrf.mxu0  ;;  %v11937_v58 = vadd.f32 %v5250_v26, %v5055_v14  ;;  %v13491_v26 = vld [vmem:[#allocation32_spill] sm:$0xff] }
 0x347   : > { %v3935_v63 = vadd.f32 %v3934_v20, %v11555_v15  ;;  %v4557_v3 = vmax.f32 %v4509_v50, 0.0  ;;  %vm13492_vm12 = vnez %v13491_v26 }
 0x349   : > { %v4412_v33 = vadd.f32 %v4335_v48, %v3935_v63  ;;  %v3779_v63 = vor.u32 %v3778_v6, %v3775_v25  ;;  %v4605_v20 = vsel %vm13490_vm14, %v4557_v3, 0.0 }
 0x34a   : > { %5292 = vmatmul.bf16.gmra.mxu3 %v11863_v55 }
 0x34b   : > { %v4461_v61 = vmul.f32 %v11535_v21, %v4412_v33  ;;  %v11941_v34 = vld [vmem:[#allocation3 + $0x80] sm:$0xff]  ;;  %v3780_v40 = vsel %vm13488_vm0, %v3770_v38, %v3779_v63 }
 0x34c   : > { %v4338_v4 = vpop.f32.mrf.mxu1  ;;  %5097 = vmatmul.bf16.gmra.mxu2 %v11941_v34 }
 0x34d   : > { %v4510_v15 = vadd.f32 %v11549_v18, %v4461_v61  ;;  %v5253_v46 = vpop.f32.mrf.mxu3  ;;  %v5060_v48 = vpop.f32.mrf.mxu2 }
 0x34e   : > { %v3937_v14 = vpop.f32.mrf.mxu0  ;;  %v11948_v7 = vadd.f32 %v5253_v46, %v5058_v17 }
 0x34f   : > { %4377 = vmatmul.bf16.gmra.mxu1 %v4181_v54  ;;  %v4558_v43 = vmax.f32 %v4510_v15, 0.0  ;;  %v3938_v12 = vadd.f32 %v3937_v14, %v11567_v57 }
 0x351   : > { %v4606_v5 = vsel %vm13492_vm12, %v4558_v43, 0.0  ;;  %v4413_v50 = vadd.f32 %v4338_v4, %v3938_v12  ;;  %3976 = vmatmul.bf16.gmra.mxu0 %v3780_v40  ;;  %v13493_v40 = vld [vmem:[#allocation34_spill] sm:$0xff] }
 0x352   : > { %v8410_v33 = vpack.c.bf16 %v4606_v5, %v4605_v20  ;;  %vm13494_vm0 = vnez %v13493_v40  ;;  %v13495_v5 = vld [vmem:[#allocation36_spill] sm:$0xff] }
 0x353   : > { %v4462_v52 = vmul.f32 %v11535_v21, %v4413_v50  ;;  %vm13496_vm15 = vnez %v13495_v5 }
 0x354   : > { %v4340_v1 = vpop.f32.mrf.mxu1  ;;  %9122 = vst [vmem:[#allocation3 + $0x88] sm:$0xff] %v8410_v33  }
 0x355   : > { %v5255_v57 = vpop.f32.mrf.mxu3  ;;  %v5063_v38 = vpop.f32.mrf.mxu2  ;;  %v4511_v61 = vadd.f32 %v11549_v18, %v4462_v52 }
 0x356   : > { %v3939_v25 = vpop.f32.mrf.mxu0  ;;  %v11957_v6 = vadd.f32 %v5255_v57, %v5060_v48 }
 0x357   : > { %v3940_v17 = vadd.f32 %v3939_v25, %v11606_v0  ;;  %v4559_v14 = vmax.f32 %v4511_v61, 0.0 }
 0x359   : > { %v4414_v3 = vadd.f32 %v4340_v1, %v3940_v17  ;;  %v4607_v20 = vsel %vm13494_vm0, %v4559_v14, 0.0  ;;  %v8011_v14 = vld [vmem:[%s12984_s1 + $0x290] sm:$0xff] }
 0x35a   : > { %5297 = vmatmul.bf16.gmra.mxu3 %v11886_v53  ;;  %6179 = vmatpush.bf16.msra.mxu1 %v8011_v14 }
 0x35b   : > { %v4463_v15 = vmul.f32 %v11535_v21, %v4414_v3  ;;  %v11961_v4 = vld [vmem:[#allocation3 + $0x88] sm:$0xff] }
 0x35c   : > { %v4343_v54 = vpop.f32.mrf.mxu1  ;;  %5102 = vmatmul.bf16.gmra.mxu2 %v11961_v4 }
 0x35d   : > { %v4512_v63 = vadd.f32 %v11549_v18, %v4463_v15  ;;  %v5258_v0 = vpop.f32.mrf.mxu3  ;;  %v5065_v52 = vpop.f32.mrf.mxu2 }
 0x35e   : > { %v3942_v46 = vpop.f32.mrf.mxu0  ;;  %v11967_v48 = vadd.f32 %v5258_v0, %v5063_v38 }
 0x35f   : > { %v4560_v43 = vmax.f32 %v4512_v63, 0.0  ;;  %v3943_v12 = vadd.f32 %v3942_v46, %v11626_v28 }
 0x361   : > { %v4608_v50 = vsel %vm13496_vm15, %v4560_v43, 0.0  ;;  %v4415_v33 = vadd.f32 %v4343_v54, %v3943_v12  ;;  %5422 = vmatmul.bf16.vlgmr.msra.gmra.mxu0 %v11683_v60  ;;  %v8003_v54 = vld [vmem:[%s12984_s1 + $0x250] sm:$0xff] }
 0x362   : > { %v8415_v1 = vpack.c.bf16 %v4608_v50, %v4607_v20  ;;  %v8019_v60 = vld [vmem:[%s12984_s1 + $0x2d0] sm:$0xff]  ;;  %6457 = vmatpush.bf16.msra.mxu2 %v8003_v54 }
 0x363   : > { %v4464_v57 = vmul.f32 %v11535_v21, %v4415_v33  ;;  %6711 = vmatpush.bf16.msra.mxu3 %v8019_v60 }
 0x364   : > { %v4345_v25 = vpop.f32.mrf.mxu1  ;;  %9123 = vst [vmem:[#allocation3 + $0x90] sm:$0xff] %v8415_v1  }
 0x365   : > { %v5260_v61 = vpop.f32.mrf.mxu3  ;;  %v4513_v3 = vadd.f32 %v11549_v18, %v4464_v57 }
 0x366   : > { %v3944_v17 = vpop.f32.mrf.mxu0  ;;  %v11976_v38 = vadd.f32 %v5260_v61, %v5065_v52 }
 0x367   : > { %v3945_v28 = vadd.f32 %v3944_v17, %v11635_v44  ;;  %v4561_v43 = vmax.f32 %v4513_v3, 0.0  ;;  %v13499_v17 = vld [vmem:[#allocation40_spill] sm:$0xff] }
 0x368   : > { %vm13500_vm0 = vnez %v13499_v17  ;;  %v13529_v17 = vld [vmem:[#allocation37_spill] sm:$0xff] }
 0x369   : > { %v4416_v15 = vadd.f32 %v4345_v25, %v3945_v28  ;;  %v13497_v25 = vld [vmem:[#allocation39_spill] sm:$0xff] }
 0x36a   : > { %5302 = vmatmul.bf16.gmra.mxu3 %v11920_v30  ;;  %v5068_v0 = vpop.f32.mrf.mxu2  ;;  %vm13498_vm15 = vnez %v13497_v25 }
 0x36b   : > { %v4465_v63 = vmul.f32 %v11535_v21, %v4416_v15  ;;  %v11989_v46 = vld [vmem:[#allocation3 + $0x90] sm:$0xff]  ;;  %v4609_v57 = vsel %vm13498_vm15, %v4561_v43, 0.0 }
 0x36c   : > { %v4348_v44 = vpop.f32.mrf.mxu1  ;;  %5107 = vmatmul.bf16.gmra.mxu2 %v11989_v46 }
 0x36d   : > { %v4514_v12 = vadd.f32 %v11549_v18, %v4465_v63  ;;  %v5263_v50 = vpop.f32.mrf.mxu3 }
 0x36e   : > { %v3947_v20 = vpop.f32.mrf.mxu0  ;;  %v11995_v52 = vadd.f32 %v5263_v50, %v5068_v0 }
 0x36f   : > { %v4562_v33 = vmax.f32 %v4514_v12, 0.0  ;;  %v3948_v1 = vadd.f32 %v3947_v20, %v11649_v24 }
 0x371   : > { %v4610_v61 = vsel %vm13500_vm0, %v4562_v33, 0.0  ;;  %v4417_v28 = vadd.f32 %v4348_v44, %v3948_v1  ;;  %5427 = vmatmul.bf16.gmra.mxu0 %v11712_v9 }
 0x372   : > { %v8420_v3 = vpack.c.bf16 %v4610_v61, %v4609_v57  ;;  %v5070_v54 = vpop.f32.mrf.mxu2 }
 0x373   : > { %v4466_v60 = vmul.f32 %v11535_v21, %v4417_v28 }
 0x374   : > { %v4350_v15 = vpop.f32.mrf.mxu1  ;;  %9124 = vst [vmem:[#allocation3 + $0x98] sm:$0xff] %v8420_v3   ;;  %v13501_v3 = vld [vmem:[#allocation42_spill] sm:$0xff] }
 0x375   : > { %v5265_v63 = vpop.f32.mrf.mxu3  ;;  %v4515_v43 = vadd.f32 %v11549_v18, %v4466_v60  ;;  %vm13502_vm0 = vnez %v13501_v3 }
 0x376   : > { %v3949_v14 = vpop.f32.mrf.mxu0  ;;  %v12004_v0 = vadd.f32 %v5265_v63, %v5070_v54  ;;  %v13503_v54 = vld [vmem:[#allocation44_spill] sm:$0xff] }
 0x377   : > { %v3950_v24 = vadd.f32 %v3949_v14, %v11657_v27  ;;  %v4563_v9 = vmax.f32 %v4515_v43, 0.0  ;;  %vm13504_vm15 = vnez %v13503_v54 }
 0x379   : > { %v4418_v12 = vadd.f32 %v4350_v15, %v3950_v24  ;;  %v4611_v15 = vsel %vm13502_vm0, %v4563_v9, 0.0 }
 0x37a   : > { %5307 = vmatmul.bf16.gmra.mxu3 %v11941_v34 }
 0x37b   : > { %v4467_v20 = vmul.f32 %v11535_v21, %v4418_v12  ;;  %v12008_v50 = vld [vmem:[#allocation3 + $0x98] sm:$0xff] }
 0x37c   : > { %v4353_v44 = vpop.f32.mrf.mxu1  ;;  %5112 = vmatmul.bf16.gmra.mxu2 %v12008_v50 }
 0x37d   : > { %v4516_v33 = vadd.f32 %v11549_v18, %v4467_v20  ;;  %v5268_v57 = vpop.f32.mrf.mxu3 }
 0x37e   : > { %v3952_v1 = vpop.f32.mrf.mxu0 }
 0x37f   : > { %v4564_v27 = vmax.f32 %v4516_v33, 0.0  ;;  %v3953_v61 = vadd.f32 %v3952_v1, %v11668_v37  ;;  %v5073_v28 = vpop.f32.mrf.mxu2 }
 0x380   : > { %v12018_v63 = vadd.f32 %v5268_v57, %v5073_v28 }
 0x381   : > { %v4612_v60 = vsel %vm13504_vm15, %v4564_v27, 0.0  ;;  %v4419_v14 = vadd.f32 %v4353_v44, %v3953_v61  ;;  %5432 = vmatmul.bf16.gmra.mxu0 %v11734_v41 }
 0x382   : > { %v8425_v24 = vpack.c.bf16 %v4612_v60, %v4611_v15 }
 0x383   : > { %v4468_v12 = vmul.f32 %v11535_v21, %v4419_v14 }
 0x384   : > { %v4355_v43 = vpop.f32.mrf.mxu1  ;;  %9125 = vst [vmem:[#allocation3 + $0xa0] sm:$0xff] %v8425_v24   ;;  %v13505_v24 = vld [vmem:[#allocation47_spill] sm:$0xff] }
 0x385   : > { %v5270_v33 = vpop.f32.mrf.mxu3  ;;  %v4517_v9 = vadd.f32 %v11549_v18, %v4468_v12  ;;  %vm13506_vm15 = vnez %v13505_v24 }
 0x386   : > { %v3954_v20 = vpop.f32.mrf.mxu0 }
 0x387   : > { %v3955_v37 = vadd.f32 %v3954_v20, %v11676_v31  ;;  %v5075_v1 = vpop.f32.mrf.mxu2  ;;  %v4565_v41 = vmax.f32 %v4517_v9, 0.0 }
 0x388   : > { %v12024_v54 = vadd.f32 %v5270_v33, %v5075_v1 }
 0x389   : > { %v4420_v3 = vadd.f32 %v4355_v43, %v3955_v37  ;;  %v4613_v43 = vsel %vm13506_vm15, %v4565_v41, 0.0 }
 0x38a   : > { %5312 = vmatmul.bf16.gmra.mxu3 %v11961_v4 }
 0x38b   : > { %v4469_v44 = vmul.f32 %v11535_v21, %v4420_v3  ;;  %v12027_v27 = vld [vmem:[#allocation3 + $0xa0] sm:$0xff]  ;;  %v13507_v3 = vld [vmem:[#allocation48_spill] sm:$0xff] }
 0x38c   : > { %v4358_v57 = vpop.f32.mrf.mxu1  ;;  %5117 = vmatmul.bf16.gmra.mxu2 %v12027_v27  ;;  %vm13508_vm0 = vnez %v13507_v3 }
 0x38d   : > { %v4518_v61 = vadd.f32 %v11549_v18, %v4469_v44  ;;  %v5273_v31 = vpop.f32.mrf.mxu3 }
 0x38e   : > { %v3957_v28 = vpop.f32.mrf.mxu0 }
 0x38f   : > { %v4566_v15 = vmax.f32 %v4518_v61, 0.0  ;;  %v3958_v60 = vadd.f32 %v3957_v28, %v11697_v35  ;;  %v5078_v14 = vpop.f32.mrf.mxu2 }
 0x390   : > { %v12037_v33 = vadd.f32 %v5273_v31, %v5078_v14  ;;  %v8010_v31 = vld [vmem:[%s12984_s1 + $0x288] sm:$0xff] }
 0x391   : > { %v4614_v12 = vsel %vm13508_vm0, %v4566_v15, 0.0  ;;  %v4421_v20 = vadd.f32 %v4358_v57, %v3958_v60  ;;  %5437 = vmatmul.bf16.gmra.mxu0 %v11753_v8  ;;  %v8002_v57 = vld [vmem:[%s12984_s1 + $0x248] sm:$0xff]  ;;  %6180 = vmatpush.bf16.msra.mxu1 %v8010_v31 }
 0x392   : > { %v8430_v37 = vpack.c.bf16 %v4614_v12, %v4613_v43  ;;  %v8018_v8 = vld [vmem:[%s12984_s1 + $0x2c8] sm:$0xff]  ;;  %6458 = vmatpush.bf16.msra.mxu2 %v8002_v57 }
 0x393   : > { %v4470_v9 = vmul.f32 %v11535_v21, %v4421_v20  ;;  %6712 = vmatpush.bf16.msra.mxu3 %v8018_v8 }
 0x394   : > { %v4360_v1 = vpop.f32.mrf.mxu1  ;;  %9126 = vst [vmem:[#allocation3 + $0xa8] sm:$0xff] %v8430_v37  }
 0x395   : > { %v5275_v61 = vpop.f32.mrf.mxu3  ;;  %v4519_v41 = vadd.f32 %v11549_v18, %v4470_v9 }
 0x396   : > { %v3959_v44 = vpop.f32.mrf.mxu0 }
 0x397   : > { %v3960_v35 = vadd.f32 %v3959_v44, %v11707_v36  ;;  %v5080_v28 = vpop.f32.mrf.mxu2  ;;  %v4567_v14 = vmax.f32 %v4519_v41, 0.0 }
 0x398   : > { %v12043_v3 = vadd.f32 %v5275_v61, %v5080_v28  ;;  %v13511_v61 = vld [vmem:[#allocation53_spill] sm:$0xff] }
 0x399   : > { %v4422_v24 = vadd.f32 %v4360_v1, %v3960_v35  ;;  %vm13512_vm15 = vnez %v13511_v61 }
 0x39a   : > { %5317 = vmatmul.bf16.gmra.mxu3 %v11989_v46 }
 0x39b   : > { %v4471_v36 = vmul.f32 %v11535_v21, %v4422_v24  ;;  %v12055_v60 = vld [vmem:[#allocation3 + $0xa8] sm:$0xff] }
 0x39c   : > { %v4363_v15 = vpop.f32.mrf.mxu1  ;;  %5122 = vmatmul.bf16.gmra.mxu2 %v12055_v60  ;;  %v13509_v24 = vld [vmem:[#allocation51_spill] sm:$0xff] }
 0x39d   : > { %v4520_v43 = vadd.f32 %v11549_v18, %v4471_v36  ;;  %v5278_v20 = vpop.f32.mrf.mxu3  ;;  %vm13510_vm0 = vnez %v13509_v24 }
 0x39e   : > { %v3962_v12 = vpop.f32.mrf.mxu0  ;;  %v4615_v44 = vsel %vm13510_vm0, %v4567_v14, 0.0 }
 0x39f   : > { %v4568_v37 = vmax.f32 %v4520_v43, 0.0  ;;  %v3963_v1 = vadd.f32 %v3962_v12, %v11724_v10  ;;  %v5083_v9 = vpop.f32.mrf.mxu2 }
 0x3a0   : > { %v12065_v57 = vadd.f32 %v5278_v20, %v5083_v9 }
 0x3a1   : > { %v4616_v35 = vsel %vm13512_vm15, %v4568_v37, 0.0  ;;  %v4423_v28 = vadd.f32 %v4363_v15, %v3963_v1  ;;  %5442 = vmatmul.bf16.gmra.mxu0 %v11782_v22 }
 0x3a2   : > { %v8435_v41 = vpack.c.bf16 %v4616_v35, %v4615_v44 }
 0x3a3   : > { %v4472_v31 = vmul.f32 %v11535_v21, %v4423_v28 }
 0x3a4   : > { %v4365_v8 = vpop.f32.mrf.mxu1  ;;  %9127 = vst [vmem:[#allocation3 + $0xb0] sm:$0xff] %v8435_v41   ;;  %v13513_v41 = vld [vmem:[#allocation56_spill] sm:$0xff] }
 0x3a5   : > { %v5280_v43 = vpop.f32.mrf.mxu3  ;;  %v4521_v14 = vadd.f32 %v11549_v18, %v4472_v31  ;;  %vm13514_vm15 = vnez %v13513_v41 }
 0x3a6   : > { %v3964_v36 = vpop.f32.mrf.mxu0 }
 0x3a7   : > { %v3965_v10 = vadd.f32 %v3964_v36, %v11732_v42  ;;  %v5085_v12 = vpop.f32.mrf.mxu2  ;;  %v4569_v22 = vmax.f32 %v4521_v14, 0.0 }
 0x3a8   : > { %v12071_v61 = vadd.f32 %v5280_v43, %v5085_v12 }
 0x3a9   : > { %v4424_v24 = vadd.f32 %v4365_v8, %v3965_v10  ;;  %v4617_v8 = vsel %vm13514_vm15, %v4569_v22, 0.0 }
 0x3aa   : > { %5322 = vmatmul.bf16.gmra.mxu3 %v12008_v50 }
 0x3ab   : > { %v4473_v15 = vmul.f32 %v11535_v21, %v4424_v24  ;;  %v12074_v37 = vld [vmem:[#allocation3 + $0xb0] sm:$0xff]  ;;  %v13515_v24 = vld [vmem:[#allocation57_spill] sm:$0xff] }
 0x3ac   : > { %v4368_v20 = vpop.f32.mrf.mxu1  ;;  %5127 = vmatmul.bf16.gmra.mxu2 %v12074_v37  ;;  %vm13516_vm0 = vnez %v13515_v24 }
 0x3ad   : > { %v4522_v1 = vadd.f32 %v11549_v18, %v4473_v15  ;;  %v5283_v42 = vpop.f32.mrf.mxu3 }
 0x3ae   : > { %v3967_v9 = vpop.f32.mrf.mxu0 }
 0x3af   : > { %v4570_v44 = vmax.f32 %v4522_v1, 0.0  ;;  %v3968_v35 = vadd.f32 %v3967_v9, %v11745_v45  ;;  %v5088_v28 = vpop.f32.mrf.mxu2 }
 0x3b0   : > { %v12084_v43 = vadd.f32 %v5283_v42, %v5088_v28 }
 0x3b1   : > { %v4618_v31 = vsel %vm13516_vm0, %v4570_v44, 0.0  ;;  %v4425_v36 = vadd.f32 %v4368_v20, %v3968_v35  ;;  %5447 = vmatmul.bf16.gmra.mxu0 %v11807_v49 }
 0x3b2   : > { %v8440_v10 = vpack.c.bf16 %v4618_v31, %v4617_v8 }
 0x3b3   : > { %v4474_v14 = vmul.f32 %v11535_v21, %v4425_v36 }
 0x3b4   : > { %v4370_v12 = vpop.f32.mrf.mxu1  ;;  %9128 = vst [vmem:[#allocation3 + $0xb8] sm:$0xff] %v8440_v10   ;;  %v13517_v10 = vld [vmem:[#allocation60_spill] sm:$0xff] }
 0x3b5   : > { %v5285_v1 = vpop.f32.mrf.mxu3  ;;  %v4523_v22 = vadd.f32 %v11549_v18, %v4474_v14  ;;  %vm13518_vm0 = vnez %v13517_v10 }
 0x3b6   : > { %v3969_v15 = vpop.f32.mrf.mxu0 }
 0x3b7   : > { %v3970_v45 = vadd.f32 %v3969_v15, %v11751_v39  ;;  %v5090_v9 = vpop.f32.mrf.mxu2  ;;  %v4571_v49 = vmax.f32 %v4523_v22, 0.0 }
 0x3b8   : > { %v12090_v24 = vadd.f32 %v5285_v1, %v5090_v9 }
 0x3b9   : > { %v4426_v41 = vadd.f32 %v4370_v12, %v3970_v45  ;;  %v4619_v12 = vsel %vm13518_vm0, %v4571_v49, 0.0  ;;  %v8001_v49 = vld [vmem:[%s12984_s1 + $0x240] sm:$0xff]  ;;  %vm13565_vm0 = vcmask 1046528  }
 0x3ba   : > { %5327 = vmatmul.bf16.gmra.mxu3 %v12027_v27  ;;  %6459 = vmatpush.bf16.msra.mxu2 %v8001_v49 }
 0x3bb   : > { %v4475_v20 = vmul.f32 %v11535_v21, %v4426_v41  ;;  %v12093_v44 = vld [vmem:[#allocation3 + $0xb8] sm:$0xff] }
 0x3bc   : > { %v4373_v42 = vpop.f32.mrf.mxu1  ;;  %5132 = vmatmul.bf16.gmra.mxu2 %v12093_v44  ;;  %v13519_v41 = vld [vmem:[#allocation61_spill] sm:$0xff] }
 0x3bd   : > { %v4524_v35 = vadd.f32 %v11549_v18, %v4475_v20  ;;  %v5288_v39 = vpop.f32.mrf.mxu3  ;;  %vm13520_vm15 = vnez %v13519_v41 }
 0x3be   : > { %v3972_v28 = vpop.f32.mrf.mxu0 }
 0x3bf   : > { %v4572_v8 = vmax.f32 %v4524_v35, 0.0  ;;  %v3973_v31 = vadd.f32 %v3972_v28, %v11769_v16  ;;  %v5093_v36 = vpop.f32.mrf.mxu2 }
 0x3c0   : > { %v12103_v1 = vadd.f32 %v5288_v39, %v5093_v36 }
 0x3c1   : > { %v4620_v14 = vsel %vm13520_vm15, %v4572_v8, 0.0  ;;  %v4427_v15 = vadd.f32 %v4373_v42, %v3973_v31  ;;  %5452 = vmatmul.bf16.gmra.mxu0 %v11839_v47  ;;  %v8017_v42 = vld [vmem:[%s12984_s1 + $0x2c0] sm:$0xff] }
 0x3c2   : > { %v8445_v45 = vpack.c.bf16 %v4620_v14, %v4619_v12  ;;  %v8009_v47 = vld [vmem:[%s12984_s1 + $0x280] sm:$0xff]  ;;  %6713 = vmatpush.bf16.msra.mxu3 %v8017_v42 }
 0x3c3   : > { %v4476_v22 = vmul.f32 %v11535_v21, %v4427_v15  ;;  %6181 = vmatpush.bf16.msra.mxu1 %v8009_v47 }
 0x3c4   : > { %v4375_v9 = vpop.f32.mrf.mxu1  ;;  %9129 = vst [vmem:[#allocation3 + $0xc0] sm:$0xff] %v8445_v45  }
 0x3c5   : > { %v12107_v35 = vpop.f32.mrf.mxu3  ;;  %v4525_v39 = vadd.f32 %v11549_v18, %v4476_v22 }
 0x3c6   : > { %v3974_v20 = vpop.f32.mrf.mxu0 }
 0x3c7   : > { %v3975_v16 = vadd.f32 %v3974_v20, %v11778_v56  ;;  %v12119_v28 = vpop.f32.mrf.mxu2  ;;  %v4573_v36 = vmax.f32 %v4525_v39, 0.0 }
 0x3c9   : > { %v4428_v8 = vadd.f32 %v4375_v9, %v3975_v16  ;;  %v4621_v16 = vsel %vm11513_vm13, %v4573_v36, 0.0  ;;  %vm13556_vm13 = vcmask 1046528  }
 0x3ca   : > { %5332 = vmatmul.bf16.gmra.mxu3 %v12055_v60 }
 0x3cb   : > { %v4477_v56 = vmul.f32 %v11535_v21, %v4428_v8  ;;  %v12123_v31 = vld [vmem:[#allocation3 + $0xc0] sm:$0xff] }
 0x3cc   : > { %v4378_v14 = vpop.f32.mrf.mxu1  ;;  %5137 = vmatmul.bf16.gmra.mxu2 %v12123_v31 }
 0x3cd   : > { %v4526_v12 = vadd.f32 %v11549_v18, %v4477_v56  ;;  %v5293_v45 = vpop.f32.mrf.mxu3 }
 0x3ce   : > { %v3977_v15 = vpop.f32.mrf.mxu0 }
 0x3cf   : > { %v4574_v20 = vmax.f32 %v4526_v12, 0.0  ;;  %v3978_v9 = vadd.f32 %v3977_v15, %v11793_v2  ;;  %v5098_v22 = vpop.f32.mrf.mxu2 }
 0x3d0   : > { %v12133_v47 = vadd.f32 %v5293_v45, %v5098_v22 }
 0x3d1   : > { %v4622_v49 = vsel %vm11520_vm9, %v4574_v20, 0.0  ;;  %v4429_v42 = vadd.f32 %v4378_v14, %v3978_v9  ;;  %5457 = vmatmul.bf16.gmra.mxu0 %v11863_v55  ;;  %v7485_v55 = vld [vmem:[%s12985_s2 + $0x4] sm:$0x3] }
 0x3d2   : > { %v8450_v39 = vpack.c.bf16 %v4622_v49, %v4621_v16 }
 0x3d3   : > { %v4478_v8 = vmul.f32 %v11535_v21, %v4429_v42 }
 0x3d4   : > { %9130 = vst [vmem:[#allocation3 + $0xc8] sm:$0xff] %v8450_v39   ;;  %v4380_v15 = vpop.f32.mrf.mxu1  ;;  %v12153_v39 = vperm.slane %v7485_v55, 0 }
 0x3d5   : > { %v12137_v12 = vpop.f32.mrf.mxu3  ;;  %v4527_v36 = vadd.f32 %v11549_v18, %v4478_v8 }
 0x3d6   : > { %v3979_v56 = vpop.f32.mrf.mxu0 }
 0x3d7   : > { %v3980_v2 = vadd.f32 %v3979_v56, %v11802_v59  ;;  %v12140_v29 = vpop.f32.mrf.mxu2  ;;  %v4575_v9 = vmax.f32 %v4527_v36, 0.0  ;;  %v12163_v36 = vperm.slane %v7485_v55, 1 }
 0x3d9   : > { %v4430_v20 = vadd.f32 %v4380_v15, %v3980_v2  ;;  %v4623_v8 = vsel %vm11572_vm8, %v4575_v9, 0.0  ;;  %vm13531_vm8 = vmpackc.low %vm10071_vm6, %vm10048_vm2 }
 0x3da   : > { %5337 = vmatmul.bf16.gmra.mxu3 %v12074_v37 }
 0x3db   : > { %v4479_v14 = vmul.f32 %v11535_v21, %v4430_v20  ;;  %v12144_v45 = vld [vmem:[#allocation3 + $0xc8] sm:$0xff] }
 0x3dc   : > { %5142 = vmatmul.bf16.gmra.mxu2 %v12144_v45 }
 0x3dd   : > { %v4528_v22 = vadd.f32 %v11549_v18, %v4479_v14  ;;  %v5298_v16 = vpop.f32.mrf.mxu3 }
 0x3de   : > { %v5423_v59 = vpop.f32.mrf.mxu0 }
 0x3df   : > { %v4576_v49 = vmax.f32 %v4528_v22, 0.0  ;;  %v5543_v42 = vadd.f32 %v5423_v59, %v11814_v62  ;;  %v5103_v21 = vpop.f32.mrf.mxu2 }
 0x3e0   : > { %v12159_v2 = vadd.f32 %v5298_v16, %v5103_v21 }
 0x3e1   : > { %v4624_v56 = vsel %vm11580_vm3, %v4576_v49, 0.0  ;;  %5462 = vmatmul.bf16.gmra.mxu0 %v11886_v53  ;;  %v5592_v15 = vmul.f32 %v12153_v39, %v5543_v42  ;;  %vm13523_vm3 = vmpackc.low %vm9946_vm10, %vm9960_vm11 }
 0x3e2   : > { %v8455_v18 = vpack.c.bf16 %v4624_v56, %v4623_v8 }
 0x3e3   : > { %v5641_v14 = vadd.f32 %v12163_v36, %v5592_v15 }
 0x3e4   : > { %9131 = vst [vmem:[#allocation3 + $0xd0] sm:$0xff] %v8455_v18   ;;  %v13522_v18 = vld [vmem:[#allocation33_spill] sm:$0xff] }
 0x3e5   : > { %v12165_v20 = vpop.f32.mrf.mxu3  ;;  %v5689_v16 = vmax.f32 %v5641_v14, 0.0 }
 0x3e6   : > { %v5425_v62 = vpop.f32.mrf.mxu0 }
 0x3e7   : > { %v5544_v9 = vadd.f32 %v5425_v62, %v11826_v23  ;;  %v12169_v22 = vpop.f32.mrf.mxu2  ;;  %v5737_v8 = vsel %vm9960_vm11, %v5689_v16, 0.0  ;;  %v5291_v23 = vadd.f32 %v12107_v35, %v12119_v28 }
 0x3e9   : > { %v5593_v59 = vmul.f32 %v12153_v39, %v5544_v9 }
 0x3ea   : > { %5342 = vmatmul.bf16.gmra.mxu3 %v12093_v44 }
 0x3eb   : > { %v5642_v53 = vadd.f32 %v12163_v36, %v5593_v59  ;;  %v12173_v49 = vld [vmem:[#allocation3 + $0xd0] sm:$0xff] }
 0x3ec   : > { %5147 = vmatmul.bf16.gmra.mxu2 %v12173_v49 }
 0x3ed   : > { %v5690_v55 = vmax.f32 %v5642_v53, 0.0  ;;  %v5303_v21 = vpop.f32.mrf.mxu3 }
 0x3ee   : > { %v5428_v42 = vpop.f32.mrf.mxu0 }
 0x3ef   : > { %v5738_v56 = vsel %vm9946_vm10, %v5690_v55, 0.0  ;;  %v5545_v15 = vadd.f32 %v5428_v42, %v13522_v18  ;;  %v5108_v14 = vpop.f32.mrf.mxu2  ;;  %v9573_v59 = vpack.c.bf16 %v5690_v55, %v5689_v16 }
 0x3f0   : > { %v8460_v62 = vpack.c.bf16 %v5738_v56, %v5737_v8  ;;  %v12182_v9 = vadd.f32 %v5303_v21, %v5108_v14  ;;  %v13525_v8 = vld [vmem:[#allocation35_spill] sm:$0xff] }
 0x3f1   : > { %5467 = vmatmul.bf16.gmra.mxu0 %v11920_v30  ;;  %9574 = vmatmul.msk.bf16.vlgmr.msra.gmra.mxu1 %vm13523_vm3, %v9573_v59  ;;  %v5594_v53 = vmul.f32 %v12153_v39, %v5545_v15  ;;  %vm13185_vm3 = vcmask 1046528  }
 0x3f2   : > { %9132 = vst [vmem:[#allocation2 + $0x18] sm:$0xff] %v8460_v62  }
 0x3f3   : > { %v5643_v42 = vadd.f32 %v12163_v36, %v5594_v53 }
 0x3f5   : > { %v12191_v11 = vpop.f32.mrf.mxu3  ;;  %v5691_v16 = vmax.f32 %v5643_v42, 0.0  ;;  %v6585_v42 = vrot.slane %v8460_v62, 1 }
 0x3f6   : > { %v5430_v32 = vpop.f32.mrf.mxu0  ;;  %13524 = vst [vmem:[#allocation46_spill] sm:$0xff] %v12191_v11 }
 0x3f7   : > { %v5546_v21 = vadd.f32 %v5430_v32, %v13525_v8  ;;  %v12195_v56 = vpop.f32.mrf.mxu2  ;;  %v5739_v15 = vsel %vm10048_vm2, %v5691_v16, 0.0 }
 0x3f8   : > { %13526 = vst [vmem:[#allocation49_spill] sm:$0xff] %v12195_v56 }
 0x3f9   : > { %v5595_v30 = vmul.f32 %v12153_v39, %v5546_v21 }
 0x3fb   : > { %v5644_v55 = vadd.f32 %v12163_v36, %v5595_v30 }
 0x3fd   : > { %v5692_v18 = vmax.f32 %v5644_v55, 0.0  ;;  %v5308_v19 = vpop.f32.mrf.mxu3 }
 0x3fe   : > { %v5433_v14 = vpop.f32.mrf.mxu0 }
 0x3ff   : > { %v5740_v10 = vsel %vm10071_vm6, %v5692_v18, 0.0  ;;  %v5547_v53 = vadd.f32 %v5433_v14, %v13529_v17  ;;  %v5113_v32 = vpop.f32.mrf.mxu2  ;;  %v9576_v21 = vpack.c.bf16 %v5692_v18, %v5691_v16  ;;  %v13533_v14 = vld [vmem:[#allocation38_spill] sm:$0xff] }
 0x400   : > { %v8465_v25 = vpack.c.bf16 %v5740_v10, %v5739_v15  ;;  %v12204_v8 = vadd.f32 %v5308_v19, %v5113_v32  ;;  %v9420_v16 = vld [vmem:[#allocation2 + $0x14] sm:$0xff]  }
 0x401   : > { %5472 = vmatmul.bf16.gmra.mxu0 %v11941_v34  ;;  %9577 = vmatmul.msk.bf16.gmra.mxu1 %vm13531_vm8, %v9576_v21  ;;  %v5596_v55 = vmul.f32 %v12153_v39, %v5547_v53  ;;  %vm13184_vm8 = vcmask 1044480   ;;  %v6331_v21 = vrot.slane %v9420_v16, 3 }
 0x402   : > { %13530 = vst [vmem:[#allocation50_spill] sm:$0xff] %v12204_v8  ;;  %v6586_v30 = vrot.slane %v8465_v25, 1 }
 0x403   : > { %9133 = vst [vmem:[#allocation2 + $0x20] sm:$0xff] %v8465_v25   ;;  %v5645_v34 = vadd.f32 %v12163_v36, %v5596_v55 }
 0x404   : > { %v6587_v17 = vsel %vm13185_vm3, %v6585_v42, %v6586_v30 }
 0x405   : > { %6714 = vmatmul.bf16.vlgmr.msra.gmra.mxu3 %v6587_v17  ;;  %v12214_v10 = vpop.f32.mrf.mxu3  ;;  %v5693_v25 = vmax.f32 %v5645_v34, 0.0 }
 0x406   : > { %v5435_v19 = vpop.f32.mrf.mxu0  ;;  %13532 = vst [vmem:[#allocation52_spill] sm:$0xff] %v12214_v10 }
 0x407   : > { %v5548_v62 = vadd.f32 %v5435_v19, %v13533_v14  ;;  %v12218_v18 = vpop.f32.mrf.mxu2  ;;  %v5741_v19 = vsel %vm10132_vm1, %v5693_v25, 0.0 }
 0x408   : > { %13534 = vst [vmem:[#allocation54_spill] sm:$0xff] %v12218_v18 }
 0x409   : > { %v5597_v15 = vmul.f32 %v12153_v39, %v5548_v62  ;;  %v13537_v62 = vld [vmem:[#allocation41_spill] sm:$0xff] }
 0x40a   : > { %v9422_v32 = vld [vmem:[#allocation2 + $0x1c] sm:$0xff]  }
 0x40b   : > { %v5646_v53 = vadd.f32 %v12163_v36, %v5597_v15  ;;  %v6332_v42 = vrot.slane %v9422_v32, 3 }
 0x40d   : > { %v5694_v17 = vmax.f32 %v5646_v53, 0.0  ;;  %v6333_v8 = vsel %vm13184_vm8, %v6331_v21, %v6332_v42  ;;  %v5313_v55 = vpop.f32.mrf.mxu3  ;;  %vm13539_vm8 = vmpackc.low %vm10163_vm7, %vm10132_vm1 }
 0x40e   : > { %v5438_v10 = vpop.f32.mrf.mxu0  ;;  %6460 = vmatmul.bf16.vlgmr.msra.gmra.mxu2 %v6333_v8 }
 0x40f   : > { %v5742_v18 = vsel %vm10163_vm7, %v5694_v17, 0.0  ;;  %v5549_v40 = vadd.f32 %v5438_v10, %v13537_v62  ;;  %v5118_v34 = vpop.f32.mrf.mxu2  ;;  %v9579_v16 = vpack.c.bf16 %v5694_v17, %v5693_v25 }
 0x410   : > { %v8470_v11 = vpack.c.bf16 %v5742_v18, %v5741_v19  ;;  %v12228_v56 = vadd.f32 %v5313_v55, %v5118_v34 }
 0x411   : > { %5477 = vmatmul.bf16.gmra.mxu0 %v11961_v4  ;;  %9580 = vmatmul.msk.bf16.gmra.mxu1 %vm13539_vm8, %v9579_v16  ;;  %v5598_v15 = vmul.f32 %v12153_v39, %v5549_v40  ;;  %v13541_v4 = vld [vmem:[#allocation43_spill] sm:$0xff]  ;;  %vm13543_vm8 = vcmask 1044480  }
 0x412   : > { %13538 = vst [vmem:[#allocation55_spill] sm:$0xff] %v12228_v56  ;;  %v6588_v8 = vrot.slane %v8470_v11, 1 }
 0x413   : > { %9134 = vst [vmem:[#allocation2 + $0x28] sm:$0xff] %v8470_v11   ;;  %v5647_v53 = vadd.f32 %v12163_v36, %v5598_v15 }
 0x414   : > { %v6589_v32 = vsel %vm13185_vm3, %v6586_v30, %v6588_v8 }
 0x415   : > { %6719 = vmatmul.bf16.gmra.mxu3 %v6589_v32  ;;  %v12238_v18 = vpop.f32.mrf.mxu3  ;;  %v5695_v19 = vmax.f32 %v5647_v53, 0.0 }
 0x416   : > { %v5440_v10 = vpop.f32.mrf.mxu0  ;;  %13540 = vst [vmem:[#allocation58_spill] sm:$0xff] %v12238_v18 }
 0x417   : > { %v5550_v21 = vadd.f32 %v5440_v10, %v13541_v4  ;;  %v12242_v25 = vpop.f32.mrf.mxu2  ;;  %v5743_v15 = vsel %vm10221_vm5, %v5695_v19, 0.0  ;;  %v13546_v4 = vld [vmem:[#allocation45_spill] sm:$0xff] }
 0x418   : > { %13542 = vst [vmem:[#allocation59_spill] sm:$0xff] %v12242_v25 }
 0x419   : > { %v5599_v17 = vmul.f32 %v12153_v39, %v5550_v21 }
 0x41a   : > { %v9424_v55 = vld [vmem:[#allocation2 + $0x24] sm:$0xff]  }
 0x41b   : > { %v5648_v11 = vadd.f32 %v12163_v36, %v5599_v17  ;;  %v6334_v62 = vrot.slane %v9424_v55, 3 }
 0x41d   : > { %v5696_v40 = vmax.f32 %v5648_v11, 0.0  ;;  %v6335_v30 = vsel %vm13543_vm8, %v6332_v42, %v6334_v62  ;;  %v5318_v16 = vpop.f32.mrf.mxu3  ;;  %vm13547_vm8 = vmpackc.low %vm10229_vm4, %vm10221_vm5 }
 0x41e   : > { %v5443_v34 = vpop.f32.mrf.mxu0  ;;  %6465 = vmatmul.bf16.gmra.mxu2 %v6335_v30 }
 0x41f   : > { %v5744_v10 = vsel %vm10229_vm4, %v5696_v40, 0.0  ;;  %v5551_v25 = vadd.f32 %v5443_v34, %v13546_v4  ;;  %v5123_v56 = vpop.f32.mrf.mxu2  ;;  %v9582_v17 = vpack.c.bf16 %v5696_v40, %v5695_v19 }
 0x420   : > { %v8475_v21 = vpack.c.bf16 %v5744_v10, %v5743_v15  ;;  %v12252_v53 = vadd.f32 %v5318_v16, %v5123_v56 }
 0x421   : > { %5482 = vmatmul.bf16.gmra.mxu0 %v11989_v46  ;;  %9583 = vmatmul.msk.bf16.gmra.mxu1 %vm13547_vm8, %v9582_v17  ;;  %v5600_v55 = vmul.f32 %v12153_v39, %v5551_v25  ;;  %vm13550_vm8 = vcmask 1044480  }
 0x422   : > { %9135 = vst [vmem:[#allocation2 + $0x30] sm:$0xff] %v8475_v21   ;;  %v6590_v42 = vrot.slane %v8475_v21, 1 }
 0x423   : > { %v5649_v56 = vadd.f32 %v12163_v36, %v5600_v55 }
 0x424   : > { %v6591_v11 = vsel %vm13185_vm3, %v6588_v8, %v6590_v42 }
 0x425   : > { %6724 = vmatmul.bf16.gmra.mxu3 %v6591_v11  ;;  %v12262_v34 = vpop.f32.mrf.mxu3  ;;  %v5697_v15 = vmax.f32 %v5649_v56, 0.0  ;;  %v13551_v11 = vld [vmem:[#allocation11_spill] sm:$0xff] }
 0x426   : > { %v5445_v30 = vpop.f32.mrf.mxu0  ;;  %13548 = vst [vmem:[#allocation62_spill] sm:$0xff] %v12262_v34  ;;  %vm13552_vm3 = vnez %v13551_v11  ;;  %v13553_v34 = vld [vmem:[#allocation12_spill] sm:$0xff] }
 0x427   : > { %v5552_v46 = vadd.f32 %v5445_v30, %v11937_v58  ;;  %v12266_v19 = vpop.f32.mrf.mxu2  ;;  %v5745_v55 = vsel %vm13552_vm3, %v5697_v15, 0.0  ;;  %vm13554_vm9 = vnez %v13553_v34 }
 0x428   : > { %13549 = vst [vmem:[#allocation63_spill] sm:$0xff] %v12266_v19 }
 0x429   : > { %v5601_v40 = vmul.f32 %v12153_v39, %v5552_v46  ;;  %v9426_v16 = vld [vmem:[#allocation2 + $0x2c] sm:$0xff]  }
 0x42a   : > { %v6336_v4 = vrot.slane %v9426_v16, 3 }
 0x42b   : > { %v5650_v10 = vadd.f32 %v12163_v36, %v5601_v40 }
 0x42c   : > { %v6337_v8 = vsel %vm13550_vm8, %v6334_v62, %v6336_v4  ;;  %vm13555_vm8 = vmpackc.low %vm13554_vm9, %vm13552_vm3 }
 0x42d   : > { %v5698_v25 = vmax.f32 %v5650_v10, 0.0  ;;  %v5323_v17 = vpop.f32.mrf.mxu3 }
 0x42e   : > { %v5448_v21 = vpop.f32.mrf.mxu0  ;;  %6470 = vmatmul.bf16.gmra.mxu2 %v6337_v8 }
 0x42f   : > { %v5746_v58 = vsel %vm13554_vm9, %v5698_v25, 0.0  ;;  %v5553_v30 = vadd.f32 %v5448_v21, %v11948_v7  ;;  %v5128_v19 = vpop.f32.mrf.mxu2  ;;  %v9585_v40 = vpack.c.bf16 %v5698_v25, %v5697_v15 }
 0x430   : > { %v8480_v46 = vpack.c.bf16 %v5746_v58, %v5745_v55  ;;  %v12276_v56 = vadd.f32 %v5323_v17, %v5128_v19 }
 0x431   : > { %5487 = vmatmul.bf16.gmra.mxu0 %v12008_v50  ;;  %9586 = vmatmul.msk.bf16.gmra.mxu1 %vm13555_vm8, %v9585_v40  ;;  %v5602_v16 = vmul.f32 %v12153_v39, %v5553_v30  ;;  %vm13559_vm8 = vcmask 1044480  }
 0x432   : > { %9136 = vst [vmem:[#allocation2 + $0x38] sm:$0xff] %v8480_v46   ;;  %v6592_v62 = vrot.slane %v8480_v46, 1 }
 0x433   : > { %v5651_v19 = vadd.f32 %v12163_v36, %v5602_v16 }
 0x434   : > { %v6593_v10 = vsel %vm13556_vm13, %v6590_v42, %v6592_v62 }
 0x435   : > { %6729 = vmatmul.bf16.gmra.mxu3 %v6593_v10  ;;  %v12286_v8 = vpop.f32.mrf.mxu3  ;;  %v5699_v17 = vmax.f32 %v5651_v19, 0.0  ;;  %v13560_v10 = vld [vmem:[#allocation13_spill] sm:$0xff] }
 0x436   : > { %v5450_v7 = vpop.f32.mrf.mxu0  ;;  %13557 = vst [vmem:[#allocation65_spill] sm:$0xff] %v12286_v8  ;;  %vm13561_vm13 = vnez %v13560_v10  ;;  %v13562_v8 = vld [vmem:[#allocation14_spill] sm:$0xff] }
 0x437   : > { %v5554_v50 = vadd.f32 %v5450_v7, %v11957_v6  ;;  %v12290_v15 = vpop.f32.mrf.mxu2  ;;  %v5747_v16 = vsel %vm13561_vm13, %v5699_v17, 0.0  ;;  %vm13563_vm15 = vnez %v13562_v8 }
 0x438   : > { %13558 = vst [vmem:[#allocation31_spill] sm:$0xff] %v12290_v15 }
 0x439   : > { %v5603_v25 = vmul.f32 %v12153_v39, %v5554_v50  ;;  %v9428_v21 = vld [vmem:[#allocation2 + $0x34] sm:$0xff]  }
 0x43a   : > { %v6338_v58 = vrot.slane %v9428_v21, 3 }
 0x43b   : > { %v5652_v55 = vadd.f32 %v12163_v36, %v5603_v25 }
 0x43c   : > { %v6339_v42 = vsel %vm13559_vm8, %v6336_v4, %v6338_v58  ;;  %vm13564_vm8 = vmpackc.low %vm13563_vm15, %vm13561_vm13  ;;  %vm13575_vm13 = vcmask 1046528  }
 0x43d   : > { %v5700_v30 = vmax.f32 %v5652_v55, 0.0  ;;  %v5328_v40 = vpop.f32.mrf.mxu3 }
 0x43e   : > { %v5453_v46 = vpop.f32.mrf.mxu0  ;;  %6475 = vmatmul.bf16.gmra.mxu2 %v6339_v42 }
 0x43f   : > { %v5748_v6 = vsel %vm13563_vm15, %v5700_v30, 0.0  ;;  %v5555_v7 = vadd.f32 %v5453_v46, %v11967_v48  ;;  %v5133_v15 = vpop.f32.mrf.mxu2  ;;  %v9588_v25 = vpack.c.bf16 %v5700_v30, %v5699_v17 }
 0x440   : > { %v8485_v50 = vpack.c.bf16 %v5748_v6, %v5747_v16  ;;  %v12300_v19 = vadd.f32 %v5328_v40, %v5133_v15 }
 0x441   : > { %5492 = vmatmul.bf16.gmra.mxu0 %v12027_v27  ;;  %9589 = vmatmul.msk.bf16.gmra.mxu1 %vm13564_vm8, %v9588_v25  ;;  %v5604_v21 = vmul.f32 %v12153_v39, %v5555_v7  ;;  %vm13568_vm8 = vcmask 1044480  }
 0x442   : > { %9137 = vst [vmem:[#allocation2 + $0x40] sm:$0xff] %v8485_v50   ;;  %v6594_v4 = vrot.slane %v8485_v50, 1 }
 0x443   : > { %v5653_v15 = vadd.f32 %v12163_v36, %v5604_v21 }
 0x444   : > { %v6595_v55 = vsel %vm13565_vm0, %v6592_v62, %v6594_v4 }
 0x445   : > { %6734 = vmatmul.bf16.gmra.mxu3 %v6595_v55  ;;  %v12310_v42 = vpop.f32.mrf.mxu3  ;;  %v5701_v40 = vmax.f32 %v5653_v15, 0.0  ;;  %v13569_v55 = vld [vmem:[#allocation15_spill] sm:$0xff] }
 0x446   : > { %v5455_v48 = vpop.f32.mrf.mxu0  ;;  %13566 = vst [vmem:[#allocation32_spill] sm:$0xff] %v12310_v42  ;;  %vm13570_vm0 = vnez %v13569_v55  ;;  %v13571_v42 = vld [vmem:[#allocation16_spill] sm:$0xff] }
 0x447   : > { %v5556_v27 = vadd.f32 %v5455_v48, %v11976_v38  ;;  %v12314_v17 = vpop.f32.mrf.mxu2  ;;  %v5749_v21 = vsel %vm13570_vm0, %v5701_v40, 0.0  ;;  %vm13572_vm15 = vnez %v13571_v42 }
 0x448   : > { %13567 = vst [vmem:[#allocation4_spill] sm:$0xff] %v12314_v17 }
 0x449   : > { %v5605_v30 = vmul.f32 %v12153_v39, %v5556_v27  ;;  %v9430_v46 = vld [vmem:[#allocation2 + $0x3c] sm:$0xff]  }
 0x44a   : > { %v6340_v6 = vrot.slane %v9430_v46, 3 }
 0x44b   : > { %v5654_v16 = vadd.f32 %v12163_v36, %v5605_v30 }
 0x44c   : > { %v6341_v62 = vsel %vm13568_vm8, %v6338_v58, %v6340_v6  ;;  %vm13574_vm8 = vmpackc.low %vm13572_vm15, %vm13570_vm0  ;;  %vm13585_vm0 = vcmask 1046528  }
 0x44d   : > { %v5702_v7 = vmax.f32 %v5654_v16, 0.0  ;;  %v5333_v25 = vpop.f32.mrf.mxu3 }
 0x44e   : > { %v5458_v50 = vpop.f32.mrf.mxu0  ;;  %6480 = vmatmul.bf16.gmra.mxu2 %v6341_v62 }
 0x44f   : > { %v5750_v38 = vsel %vm13572_vm15, %v5702_v7, 0.0  ;;  %v5557_v48 = vadd.f32 %v5458_v50, %v11995_v52  ;;  %v5138_v17 = vpop.f32.mrf.mxu2  ;;  %v9591_v30 = vpack.c.bf16 %v5702_v7, %v5701_v40 }
 0x450   : > { %v8490_v27 = vpack.c.bf16 %v5750_v38, %v5749_v21  ;;  %v12324_v15 = vadd.f32 %v5333_v25, %v5138_v17 }
 0x451   : > { %5497 = vmatmul.bf16.gmra.mxu0 %v12055_v60  ;;  %9592 = vmatmul.msk.bf16.gmra.mxu1 %vm13574_vm8, %v9591_v30  ;;  %v5606_v46 = vmul.f32 %v12153_v39, %v5557_v48  ;;  %vm13578_vm8 = vcmask 1044480  }
 0x452   : > { %13573 = vst [vmem:[#allocation33_spill] sm:$0xff] %v12324_v15  ;;  %v6596_v58 = vrot.slane %v8490_v27, 1 }
 0x453   : > { %9138 = vst [vmem:[#allocation2 + $0x48] sm:$0xff] %v8490_v27   ;;  %v5655_v17 = vadd.f32 %v12163_v36, %v5606_v46 }
 0x454   : > { %v6597_v16 = vsel %vm13575_vm13, %v6594_v4, %v6596_v58 }
 0x455   : > { %6739 = vmatmul.bf16.gmra.mxu3 %v6597_v16  ;;  %v12334_v62 = vpop.f32.mrf.mxu3  ;;  %v5703_v25 = vmax.f32 %v5655_v17, 0.0  ;;  %v13579_v16 = vld [vmem:[#allocation17_spill] sm:$0xff] }
 0x456   : > { %v5460_v52 = vpop.f32.mrf.mxu0  ;;  %13576 = vst [vmem:[#allocation35_spill] sm:$0xff] %v12334_v62  ;;  %vm13580_vm13 = vnez %v13579_v16  ;;  %v13581_v62 = vld [vmem:[#allocation18_spill] sm:$0xff] }
 0x457   : > { %v5558_v60 = vadd.f32 %v5460_v52, %v12004_v0  ;;  %v12338_v40 = vpop.f32.mrf.mxu2  ;;  %v5751_v46 = vsel %vm13580_vm13, %v5703_v25, 0.0  ;;  %vm13582_vm15 = vnez %v13581_v62 }
 0x458   : > { %13577 = vst [vmem:[#allocation5_spill] sm:$0xff] %v12338_v40 }
 0x459   : > { %v5607_v7 = vmul.f32 %v12153_v39, %v5558_v60 }
 0x45a   : > { %v9432_v50 = vld [vmem:[#allocation2 + $0x44] sm:$0xff]  }
 0x45b   : > { %v5656_v21 = vadd.f32 %v12163_v36, %v5607_v7  ;;  %v6342_v38 = vrot.slane %v9432_v50, 3 }
 0x45d   : > { %v5704_v48 = vmax.f32 %v5656_v21, 0.0  ;;  %v6343_v4 = vsel %vm13578_vm8, %v6340_v6, %v6342_v38  ;;  %v5338_v30 = vpop.f32.mrf.mxu3  ;;  %vm13584_vm8 = vmpackc.low %vm13582_vm15, %vm13580_vm13  ;;  %vm13595_vm13 = vcmask 1046528  }
 0x45e   : > { %v5463_v27 = vpop.f32.mrf.mxu0  ;;  %6485 = vmatmul.bf16.gmra.mxu2 %v6343_v4 }
 0x45f   : > { %v5752_v0 = vsel %vm13582_vm15, %v5704_v48, 0.0  ;;  %v5559_v52 = vadd.f32 %v5463_v27, %v12018_v63  ;;  %v5143_v40 = vpop.f32.mrf.mxu2  ;;  %v9594_v7 = vpack.c.bf16 %v5704_v48, %v5703_v25 }
 0x460   : > { %v8495_v60 = vpack.c.bf16 %v5752_v0, %v5751_v46  ;;  %v12348_v17 = vadd.f32 %v5338_v30, %v5143_v40 }
 0x461   : > { %5502 = vmatmul.bf16.gmra.mxu0 %v12074_v37  ;;  %9595 = vmatmul.msk.bf16.gmra.mxu1 %vm13584_vm8, %v9594_v7  ;;  %v5608_v50 = vmul.f32 %v12153_v39, %v5559_v52  ;;  %vm13588_vm8 = vcmask 1044480   ;;  %v13589_v7 = vld [vmem:[#allocation19_spill] sm:$0xff] }
 0x462   : > { %13583 = vst [vmem:[#allocation6_spill] sm:$0xff] %v12348_v17  ;;  %v6598_v6 = vrot.slane %v8495_v60, 1 }
 0x463   : > { %9139 = vst [vmem:[#allocation2 + $0x50] sm:$0xff] %v8495_v60   ;;  %v5657_v40 = vadd.f32 %v12163_v36, %v5608_v50  ;;  %v13591_v50 = vld [vmem:[#allocation20_spill] sm:$0xff] }
 0x464   : > { %v6599_v21 = vsel %vm13585_vm0, %v6596_v58, %v6598_v6  ;;  %vm13590_vm0 = vnez %v13589_v7  ;;  %vm13592_vm15 = vnez %v13591_v50  ;;  %v13615_v50 = vld [vmem:[#allocation26_spill] sm:$0xff] }
 0x465   : > { %6744 = vmatmul.bf16.gmra.mxu3 %v6599_v21  ;;  %v12358_v4 = vpop.f32.mrf.mxu3  ;;  %v5705_v30 = vmax.f32 %v5657_v40, 0.0 }
 0x466   : > { %v5465_v63 = vpop.f32.mrf.mxu0  ;;  %13586 = vst [vmem:[#allocation37_spill] sm:$0xff] %v12358_v4 }
 0x467   : > { %v5560_v37 = vadd.f32 %v5465_v63, %v12024_v54  ;;  %v12362_v25 = vpop.f32.mrf.mxu2  ;;  %v5753_v21 = vsel %vm13590_vm0, %v5705_v30, 0.0 }
 0x468   : > { %13587 = vst [vmem:[#allocation38_spill] sm:$0xff] %v12362_v25 }
 0x469   : > { %v5609_v48 = vmul.f32 %v12153_v39, %v5560_v37 }
 0x46a   : > { %v9434_v27 = vld [vmem:[#allocation2 + $0x4c] sm:$0xff]  }
 0x46b   : > { %v5658_v46 = vadd.f32 %v12163_v36, %v5609_v48  ;;  %v6344_v0 = vrot.slane %v9434_v27, 3 }
 0x46d   : > { %v5706_v52 = vmax.f32 %v5658_v46, 0.0  ;;  %v6345_v58 = vsel %vm13588_vm8, %v6342_v38, %v6344_v0  ;;  %v5343_v25 = vpop.f32.mrf.mxu3  ;;  %vm13594_vm8 = vmpackc.low %vm13592_vm15, %vm13590_vm0  ;;  %vm13603_vm0 = vcmask 1046528  }
 0x46e   : > { %v5468_v60 = vpop.f32.mrf.mxu0  ;;  %6490 = vmatmul.bf16.gmra.mxu2 %v6345_v58  ;;  %v12372_v4 = vpop.f32.mrf.mxu1 }
 0x46f   : > { %v5754_v54 = vsel %vm13592_vm15, %v5706_v52, 0.0  ;;  %v5561_v63 = vadd.f32 %v5468_v60, %v12037_v33  ;;  %v5148_v40 = vpop.f32.mrf.mxu2  ;;  %v9597_v38 = vpack.c.bf16 %v5706_v52, %v5705_v30 }
 0x470   : > { %v8500_v37 = vpack.c.bf16 %v5754_v54, %v5753_v21  ;;  %v12374_v48 = vadd.f32 %v5343_v25, %v5148_v40 }
 0x471   : > { %5507 = vmatmul.bf16.gmra.mxu0 %v12093_v44  ;;  %9598 = vmatmul.msk.bf16.gmra.mxu1 %vm13594_vm8, %v9597_v38  ;;  %v5610_v33 = vmul.f32 %v12153_v39, %v5561_v63  ;;  %vm13596_vm8 = vcmask 1044480  }
 0x472   : > { %13593 = vst [vmem:[#allocation7_spill] sm:$0xff] %v12374_v48  ;;  %v6600_v27 = vrot.slane %v8500_v37, 1 }
 0x473   : > { %9140 = vst [vmem:[#allocation2 + $0x58] sm:$0xff] %v8500_v37   ;;  %v5659_v25 = vadd.f32 %v12163_v36, %v5610_v33  ;;  %v13599_v33 = vld [vmem:[#allocation22_spill] sm:$0xff] }
 0x474   : > { %v6601_v46 = vsel %vm13595_vm13, %v6598_v6, %v6600_v27  ;;  %v13597_v6 = vld [vmem:[#allocation21_spill] sm:$0xff]  ;;  %vm13600_vm15 = vnez %v13599_v33 }
 0x475   : > { %6749 = vmatmul.bf16.gmra.mxu3 %v6601_v46  ;;  %v5707_v21 = vmax.f32 %v5659_v25, 0.0  ;;  %vm13598_vm13 = vnez %v13597_v6  ;;  %v12398_v25 = vpop.f32.mrf.mxu3 }
 0x476   : > { %v5470_v58 = vpop.f32.mrf.mxu0  ;;  %v12386_v44 = vpop.f32.mrf.mxu1  ;;  %13601 = vst [vmem:[#allocation8_spill] sm:$0xff] %v12398_v25 }
 0x477   : > { %v5562_v60 = vadd.f32 %v5470_v58, %v12043_v3  ;;  %v5755_v46 = vsel %vm13598_vm13, %v5707_v21, 0.0 }
 0x479   : > { %v5611_v30 = vmul.f32 %v12153_v39, %v5562_v60 }
 0x47a   : > { %v9436_v52 = vld [vmem:[#allocation2 + $0x54] sm:$0xff]  }
 0x47b   : > { %v5660_v54 = vadd.f32 %v12163_v36, %v5611_v30  ;;  %v6346_v40 = vrot.slane %v9436_v52, 3 }
 0x47d   : > { %v5708_v37 = vmax.f32 %v5660_v54, 0.0  ;;  %v6347_v63 = vsel %vm13596_vm8, %v6344_v0, %v6346_v40  ;;  %vm13602_vm8 = vmpackc.low %vm13600_vm15, %vm13598_vm13  ;;  %vm13611_vm13 = vcmask 1046528  }
 0x47e   : > { %v5473_v38 = vpop.f32.mrf.mxu0  ;;  %6495 = vmatmul.bf16.gmra.mxu2 %v6347_v63  ;;  %v12396_v48 = vpop.f32.mrf.mxu1 }
 0x47f   : > { %v5756_v3 = vsel %vm13600_vm15, %v5708_v37, 0.0  ;;  %v5563_v58 = vadd.f32 %v5473_v38, %v12065_v57  ;;  %v9600_v30 = vpack.c.bf16 %v5708_v37, %v5707_v21  ;;  %v12412_v37 = vpop.f32.mrf.mxu2 }
 0x480   : > { %v8505_v60 = vpack.c.bf16 %v5756_v3, %v5755_v46  ;;  %13604 = vst [vmem:[#allocation41_spill] sm:$0xff] %v12412_v37 }
 0x481   : > { %5512 = vmatmul.bf16.gmra.mxu0 %v12123_v31  ;;  %9601 = vmatmul.msk.bf16.gmra.mxu1 %vm13602_vm8, %v9600_v30  ;;  %v5612_v52 = vmul.f32 %v12153_v39, %v5563_v58 }
 0x482   : > { %9141 = vst [vmem:[#allocation2 + $0x60] sm:$0xff] %v8505_v60   ;;  %v6602_v0 = vrot.slane %v8505_v60, 1 }
 0x483   : > { %v5661_v63 = vadd.f32 %v12163_v36, %v5612_v52  ;;  %v13606_v52 = vld [vmem:[#allocation23_spill] sm:$0xff] }
 0x484   : > { %v6603_v57 = vsel %vm13603_vm0, %v6600_v27, %v6602_v0  ;;  %vm13605_vm0 = vcmask 1044480   ;;  %vm13607_vm8 = vnez %v13606_v52 }
 0x485   : > { %6754 = vmatmul.bf16.gmra.mxu3 %v6603_v57  ;;  %v5709_v30 = vmax.f32 %v5661_v63, 0.0 }
 0x486   : > { %v5475_v54 = vpop.f32.mrf.mxu0  ;;  %v12410_v31 = vpop.f32.mrf.mxu1 }
 0x487   : > { %v5564_v38 = vadd.f32 %v5475_v54, %v12071_v61  ;;  %v5757_v61 = vsel %vm13607_vm8, %v5709_v30, 0.0  ;;  %v13608_v54 = vld [vmem:[#allocation24_spill] sm:$0xff] }
 0x488   : > { %v6715_v21 = vpop.f32.mrf.mxu3  ;;  %vm13609_vm15 = vnez %v13608_v54 }
 0x489   : > { %v5613_v46 = vmul.f32 %v12153_v39, %v5564_v38  ;;  %v9438_v3 = vld [vmem:[#allocation2 + $0x5c] sm:$0xff]  }
 0x48a   : > { %v6348_v58 = vrot.slane %v9438_v3, 3 }
 0x48b   : > { %v5662_v60 = vadd.f32 %v12163_v36, %v5613_v46 }
 0x48c   : > { %v6349_v27 = vsel %vm13605_vm0, %v6346_v40, %v6348_v58  ;;  %vm13610_vm0 = vmpackc.low %vm13609_vm15, %vm13607_vm8 }
 0x48d   : > { %v5710_v25 = vmax.f32 %v5662_v60, 0.0 }
 0x48e   : > { %v5478_v57 = vpop.f32.mrf.mxu0  ;;  %6500 = vmatmul.bf16.gmra.mxu2 %v6349_v27  ;;  %v12422_v33 = vpop.f32.mrf.mxu1 }
 0x48f   : > { %v5758_v17 = vsel %vm13609_vm15, %v5710_v25, 0.0  ;;  %v5565_v37 = vadd.f32 %v5478_v57, %v12084_v43  ;;  %v9603_v3 = vpack.c.bf16 %v5710_v25, %v5709_v30  ;;  %vm13616_vm15 = vnez %v13615_v50 }
 0x490   : > { %v8510_v38 = vpack.c.bf16 %v5758_v17, %v5757_v61  ;;  %v6717_v63 = vpop.f32.mrf.mxu3  ;;  %v7750_v17 = vld [vmem:[%s12985_s2 + $0x6] sm:$0x3] }
 0x491   : > { %5517 = vmatmul.bf16.gmra.mxu0 %v12144_v45  ;;  %v6461_v46 = vpop.f32.mrf.mxu2  ;;  %9604 = vmatmul.msk.bf16.gmra.mxu1 %vm13610_vm0, %v9603_v3  ;;  %v5614_v43 = vmul.f32 %v12153_v39, %v5565_v37  ;;  %v12436_v57 = vperm.slane %v7750_v17, 0  ;;  %v12444_v52 = vperm.slane %v7750_v17, 1 }
 0x492   : > { %9142 = vst [vmem:[#allocation2 + $0x68] sm:$0xff] %v8510_v38   ;;  %v6462_v40 = vadd.f32 %v6461_v46, %v12372_v4  ;;  %v6604_v60 = vrot.slane %v8510_v38, 1 }
 0x493   : > { %v5663_v25 = vadd.f32 %v12163_v36, %v5614_v43 }
 0x494   : > { %v6605_v45 = vsel %vm13611_vm13, %v6602_v0, %v6604_v60  ;;  %v6835_v27 = vadd.f32 %v6715_v21, %v6462_v40  ;;  %vm13612_vm13 = vcmask 1044480  }
 0x495   : > { %6759 = vmatmul.bf16.gmra.mxu3 %v6605_v45  ;;  %v5711_v21 = vmax.f32 %v5663_v25, 0.0 }
 0x496   : > { %v5480_v4 = vpop.f32.mrf.mxu0  ;;  %v12440_v61 = vpop.f32.mrf.mxu1  ;;  %v6884_v54 = vmul.f32 %v12436_v57, %v6835_v27  ;;  %v13613_v27 = vld [vmem:[#allocation25_spill] sm:$0xff] }
 0x497   : > { %v5566_v30 = vadd.f32 %v5480_v4, %v12090_v24  ;;  %vm13614_vm0 = vnez %v13613_v27 }
 0x498   : > { %v6720_v38 = vpop.f32.mrf.mxu3  ;;  %v6933_v4 = vadd.f32 %v12444_v52, %v6884_v54  ;;  %v5759_v17 = vsel %vm13614_vm0, %v5711_v21, 0.0 }
 0x499   : > { %v5615_v37 = vmul.f32 %v12153_v39, %v5566_v30  ;;  %v6463_v46 = vpop.f32.mrf.mxu2  ;;  %v9440_v3 = vld [vmem:[#allocation2 + $0x64] sm:$0xff]  }
 0x49a   : > { %v6464_v0 = vadd.f32 %v6463_v46, %v12386_v44  ;;  %v6350_v45 = vrot.slane %v9440_v3, 3  ;;  %v6981_v3 = vsel %vm9960_vm11, %v6933_v4, 0.0  ;;  %vm13618_vm11 = vcmask 1046528  }
 0x49b   : > { %v5664_v40 = vadd.f32 %v12163_v36, %v5615_v37 }
 0x49c   : > { %v6836_v43 = vadd.f32 %v6717_v63, %v6464_v0  ;;  %v6351_v24 = vsel %vm13612_vm13, %v6348_v58, %v6350_v45  ;;  %vm13617_vm13 = vmpackc.low %vm13616_vm15, %vm13614_vm0 }
 0x49d   : > { %v5712_v6 = vmax.f32 %v5664_v40, 0.0 }
 0x49e   : > { %v6885_v30 = vmul.f32 %v12436_v57, %v6836_v43  ;;  %v5483_v15 = vpop.f32.mrf.mxu0  ;;  %6505 = vmatmul.bf16.gmra.mxu2 %v6351_v24  ;;  %v12456_v37 = vpop.f32.mrf.mxu1 }
 0x49f   : > { %v5760_v44 = vsel %vm13616_vm15, %v5712_v6, 0.0  ;;  %v5567_v25 = vadd.f32 %v5483_v15, %v12103_v1  ;;  %v9606_v0 = vpack.c.bf16 %v5712_v6, %v5711_v21  ;;  %vm13625_vm15 = vcmask 1046528  }
 0x4a0   : > { %v8515_v63 = vpack.c.bf16 %v5760_v44, %v5759_v17  ;;  %v6934_v58 = vadd.f32 %v12444_v52, %v6885_v30  ;;  %v6722_v46 = vpop.f32.mrf.mxu3 }
 0x4a1   : > { %5522 = vmatmul.bf16.gmra.mxu0 %v12173_v49  ;;  %v6466_v54 = vpop.f32.mrf.mxu2  ;;  %9607 = vmatmul.msk.bf16.gmra.mxu1 %vm13617_vm13, %v9606_v0  ;;  %v5616_v40 = vmul.f32 %v12153_v39, %v5567_v25 }
 0x4a2   : > { %9143 = vst [vmem:[#allocation2 + $0x70] sm:$0xff] %v8515_v63   ;;  %v6982_v1 = vsel %vm9946_vm10, %v6934_v58, 0.0  ;;  %v6467_v15 = vadd.f32 %v6466_v54, %v12396_v48  ;;  %v6606_v13 = vrot.slane %v8515_v63, 1  ;;  %vm13619_vm10 = vcmask 1044480  }
 0x4a3   : > { %v8676_v49 = vpack.c.bf16 %v6982_v1, %v6981_v3  ;;  %v5665_v6 = vadd.f32 %v12163_v36, %v5616_v40  ;;  %v7974_v1 = vld [vmem:[#allocation3 + $0xd8] sm:$0xff]  ;;  %v13620_v40 = vld [vmem:[#allocation27_spill] sm:$0xff] }
 0x4a4   : > { %v6607_v43 = vsel %vm13618_vm11, %v6604_v60, %v6606_v13  ;;  %v6837_v24 = vadd.f32 %v6720_v38, %v6467_v15  ;;  %vm13621_vm13 = vnez %v13620_v40  ;;  %v5930_v40 = vld [vmem:[#allocation2 + $0xd8] sm:$0xf] }
 0x4a5   : > { %9299 = vst [vmem:[%s12467_s28 + $0x18] sm:$0xff] %v8676_v49   ;;  %6764 = vmatmul.bf16.gmra.mxu3 %v6607_v43  ;;  %v5713_v58 = vmax.f32 %v5665_v6, 0.0 }
 0x4a6   : > { %v5485_v48 = vpop.f32.mrf.mxu0  ;;  %v12483_v4 = vpop.f32.mrf.mxu1  ;;  %v6886_v25 = vmul.f32 %v12436_v57, %v6837_v24 }
 0x4a7   : > { %v5568_v21 = vadd.f32 %v5485_v48, %v5291_v23  ;;  %v5761_v43 = vsel %vm13621_vm13, %v5713_v58, 0.0  ;;  %v13622_v23 = vld [vmem:[#allocation28_spill] sm:$0xff] }
 0x4a8   : > { %v6725_v30 = vpop.f32.mrf.mxu3  ;;  %v6935_v15 = vadd.f32 %v12444_v52, %v6886_v25  ;;  %vm13623_vm11 = vnez %v13622_v23  ;;  %v6582_v23 = vunpack.c.l.b16 %v5930_v40 }
 0x4a9   : > { %v5617_v17 = vmul.f32 %v12153_v39, %v5568_v21  ;;  %v6468_v44 = vpop.f32.mrf.mxu2  ;;  %v9442_v63 = vld [vmem:[#allocation2 + $0x6c] sm:$0xff]  }
 0x4aa   : > { %v6469_v60 = vadd.f32 %v6468_v44, %v12410_v31  ;;  %v6352_v28 = vrot.slane %v9442_v63, 3 }
 0x4ab   : > { %v5666_v35 = vadd.f32 %v12163_v36, %v5617_v17  ;;  %v6983_v17 = vsel %vm10048_vm2, %v6935_v15, 0.0  ;;  %vm13626_vm2 = vcmask 1044480  }
 0x4ac   : > { %v6838_v38 = vadd.f32 %v6722_v46, %v6469_v60  ;;  %v6353_v3 = vsel %vm13619_vm10, %v6350_v45, %v6352_v28  ;;  %vm13624_vm10 = vmpackc.low %vm13623_vm11, %vm13621_vm13 }
 0x4ad   : > { %v5714_v54 = vmax.f32 %v5666_v35, 0.0 }
 0x4ae   : > { %v6887_v0 = vmul.f32 %v12436_v57, %v6838_v38  ;;  %v5488_v49 = vpop.f32.mrf.mxu0  ;;  %6510 = vmatmul.bf16.gmra.mxu2 %v6353_v3  ;;  %v12497_v48 = vpop.f32.mrf.mxu1  ;;  %v5296_v38 = vadd.f32 %v12137_v12, %v12140_v29 }
 0x4af   : > { %v5762_v31 = vsel %vm13623_vm11, %v5714_v54, 0.0  ;;  %v5569_v24 = vadd.f32 %v5488_v49, %v12133_v47  ;;  %v9609_v25 = vpack.c.bf16 %v5714_v54, %v5713_v58 }
 0x4b0   : > { %v8520_v46 = vpack.c.bf16 %v5762_v31, %v5761_v43  ;;  %v6936_v45 = vadd.f32 %v12444_v52, %v6887_v0  ;;  %v6727_v6 = vpop.f32.mrf.mxu3 }
 0x4b1   : > { %5527 = vmatmul.bf16.gmra.mxu0 %v7974_v1  ;;  %v6471_v21 = vpop.f32.mrf.mxu2  ;;  %9610 = vmatmul.msk.bf16.gmra.mxu1 %vm13624_vm10, %v9609_v25  ;;  %v5618_v35 = vmul.f32 %v12153_v39, %v5569_v24 }
 0x4b2   : > { %9144 = vst [vmem:[#allocation2 + $0x78] sm:$0xff] %v8520_v46   ;;  %v6984_v44 = vsel %vm10071_vm6, %v6936_v45, 0.0  ;;  %v6472_v63 = vadd.f32 %v6471_v21, %v12422_v33  ;;  %v6608_v47 = vrot.slane %v8520_v46, 1  ;;  %v7975_v45 = vld [vmem:[#allocation3 + $0xe0] sm:$0xff] }
 0x4b3   : > { %v8681_v60 = vpack.c.bf16 %v6984_v44, %v6983_v17  ;;  %v5667_v58 = vadd.f32 %v12163_v36, %v5618_v35 }
 0x4b4   : > { %v6609_v59 = vsel %vm13625_vm15, %v6606_v13, %v6608_v47  ;;  %v6839_v41 = vadd.f32 %v6725_v30, %v6472_v63  ;;  %v13627_v63 = vld [vmem:[#allocation29_spill] sm:$0xff] }
 0x4b5   : > { %9300 = vst [vmem:[%s12467_s28 + $0x20] sm:$0xff] %v8681_v60   ;;  %6769 = vmatmul.bf16.gmra.mxu3 %v6609_v59  ;;  %v5715_v31 = vmax.f32 %v5667_v58, 0.0  ;;  %vm13628_vm6 = vnez %v13627_v63  ;;  %v13629_v60 = vld [vmem:[#allocation30_spill] sm:$0xff] }
 0x4b6   : > { %v5490_v33 = vpop.f32.mrf.mxu0  ;;  %v12516_v3 = vpop.f32.mrf.mxu1  ;;  %v6888_v43 = vmul.f32 %v12436_v57, %v6839_v41  ;;  %vm13630_vm15 = vnez %v13629_v60 }
 0x4b7   : > { %v5570_v54 = vadd.f32 %v5490_v33, %v5296_v38  ;;  %v5763_v25 = vsel %vm13628_vm6, %v5715_v31, 0.0  ;;  %vm13631_vm10 = vmpackc.low %vm13630_vm15, %vm13628_vm6 }
 0x4b8   : > { %v6730_v1 = vpop.f32.mrf.mxu3  ;;  %v6937_v21 = vadd.f32 %v12444_v52, %v6888_v43  ;;  %v5301_v43 = vadd.f32 %v12165_v20, %v12169_v22 }
 0x4b9   : > { %v5619_v15 = vmul.f32 %v12153_v39, %v5570_v54  ;;  %v6473_v0 = vpop.f32.mrf.mxu2  ;;  %v9444_v49 = vld [vmem:[#allocation2 + $0x74] sm:$0xff]  }
 0x4ba   : > { %v6474_v13 = vadd.f32 %v6473_v0, %v12440_v61  ;;  %v6354_v12 = vrot.slane %v9444_v49, 3  ;;  %v6985_v33 = vsel %vm10132_vm1, %v6937_v21, 0.0  ;;  %vm13633_vm1 = vcmask 1044480  }
 0x4bb   : > { %v5668_v29 = vadd.f32 %v12163_v36, %v5619_v15 }
 0x4bc   : > { %v6840_v30 = vadd.f32 %v6727_v6, %v6474_v13  ;;  %v6355_v46 = vsel %vm13626_vm2, %v6352_v28, %v6354_v12  ;;  %vm13632_vm2 = vcmask 1046528  }
 0x4bd   : > { %v5716_v24 = vmax.f32 %v5668_v29, 0.0 }
 0x4be   : > { %v6889_v17 = vmul.f32 %v12436_v57, %v6840_v30  ;;  %v5493_v44 = vpop.f32.mrf.mxu0  ;;  %6515 = vmatmul.bf16.gmra.mxu2 %v6355_v46  ;;  %v12530_v59 = vpop.f32.mrf.mxu1 }
 0x4bf   : > { %v5764_v61 = vsel %vm13630_vm15, %v5716_v24, 0.0  ;;  %v5571_v35 = vadd.f32 %v5493_v44, %v12159_v2  ;;  %v9612_v15 = vpack.c.bf16 %v5716_v24, %v5715_v31 }
 0x4c0   : > { %v8525_v6 = vpack.c.bf16 %v5764_v61, %v5763_v25  ;;  %v6938_v28 = vadd.f32 %v12444_v52, %v6889_v17  ;;  %v6732_v38 = vpop.f32.mrf.mxu3  ;;  %v7976_v61 = vld [vmem:[#allocation3 + $0xe8] sm:$0xff] }
 0x4c1   : > { %5532 = vmatmul.bf16.gmra.mxu0 %v7975_v45  ;;  %v6476_v41 = vpop.f32.mrf.mxu2  ;;  %9613 = vmatmul.msk.bf16.gmra.mxu1 %vm13631_vm10, %v9612_v15  ;;  %v5620_v49 = vmul.f32 %v12153_v39, %v5571_v35  ;;  %vm13635_vm10 = vmmov %vm13632_vm2 }
 0x4c2   : > { %9145 = vst [vmem:[#allocation2 + $0x80] sm:$0xff] %v8525_v6   ;;  %v6986_v58 = vsel %vm10163_vm7, %v6938_v28, 0.0  ;;  %v6477_v54 = vadd.f32 %v6476_v41, %v12456_v37  ;;  %v6610_v2 = vrot.slane %v8525_v6, 1  ;;  %vm13634_vm7 = vmpackc.low %vm13492_vm12, %vm13490_vm14 }
 0x4c3   : > { %v8686_v0 = vpack.c.bf16 %v6986_v58, %v6985_v33  ;;  %v5669_v13 = vadd.f32 %v12163_v36, %v5620_v49 }
 0x4c4   : > { %v6611_v5 = vsel %vm13632_vm2, %v6608_v47, %v6610_v2  ;;  %v6841_v14 = vadd.f32 %v6730_v1, %v6477_v54 }
 0x4c5   : > { %9301 = vst [vmem:[%s12467_s28 + $0x28] sm:$0xff] %v8686_v0   ;;  %6774 = vmatmul.bf16.gmra.mxu3 %v6611_v5  ;;  %v5717_v17 = vmax.f32 %v5669_v13, 0.0  ;;  %v13636_v13 = vld [vmem:[#allocation49_spill] sm:$0xff] }
 0x4c6   : > { %v5495_v37 = vpop.f32.mrf.mxu0  ;;  %v12549_v29 = vpop.f32.mrf.mxu1  ;;  %v6890_v21 = vmul.f32 %v12436_v57, %v6841_v14 }
 0x4c7   : > { %v5572_v31 = vadd.f32 %v5495_v37, %v5301_v43  ;;  %v5765_v41 = vsel %vm13490_vm14, %v5717_v17, 0.0 }
 0x4c8   : > { %v6735_v30 = vpop.f32.mrf.mxu3  ;;  %v6939_v35 = vadd.f32 %v12444_v52, %v6890_v21 }
 0x4c9   : > { %v5621_v24 = vmul.f32 %v12153_v39, %v5572_v31  ;;  %v6478_v46 = vpop.f32.mrf.mxu2  ;;  %v9446_v45 = vld [vmem:[#allocation2 + $0x7c] sm:$0xff]   ;;  %v13637_v31 = vld [vmem:[#allocation46_spill] sm:$0xff] }
 0x4ca   : > { %v6479_v47 = vadd.f32 %v6478_v46, %v12483_v4  ;;  %v6356_v22 = vrot.slane %v9446_v45, 3  ;;  %v6987_v0 = vsel %vm10221_vm5, %v6939_v35, 0.0  ;;  %vm13638_vm5 = vmmov %vm13633_vm1 }
 0x4cb   : > { %v5670_v20 = vadd.f32 %v12163_v36, %v5621_v24  ;;  %v5306_v24 = vadd.f32 %v13637_v31, %v13636_v13 }
 0x4cc   : > { %v6842_v1 = vadd.f32 %v6732_v38, %v6479_v47  ;;  %v6357_v25 = vsel %vm13633_vm1, %v6354_v12, %v6356_v22 }
 0x4cd   : > { %v5718_v44 = vmax.f32 %v5670_v20, 0.0 }
 0x4ce   : > { %v6891_v6 = vmul.f32 %v12436_v57, %v6842_v1  ;;  %v5498_v28 = vpop.f32.mrf.mxu0  ;;  %6520 = vmatmul.bf16.gmra.mxu2 %v6357_v25  ;;  %v12563_v58 = vpop.f32.mrf.mxu1 }
 0x4cf   : > { %v5766_v4 = vsel %vm13492_vm12, %v5718_v44, 0.0  ;;  %v5573_v33 = vadd.f32 %v5498_v28, %v12182_v9  ;;  %v9615_v43 = vpack.c.bf16 %v5718_v44, %v5717_v17 }
 0x4d0   : > { %v8530_v38 = vpack.c.bf16 %v5766_v4, %v5765_v41  ;;  %v6940_v12 = vadd.f32 %v12444_v52, %v6891_v6  ;;  %v6737_v54 = vpop.f32.mrf.mxu3 }
 0x4d1   : > { %5537 = vmatmul.bf16.gmra.mxu0 %v7976_v61  ;;  %v6481_v15 = vpop.f32.mrf.mxu2  ;;  %9616 = vmatmul.msk.bf16.gmra.mxu1 %vm13634_vm7, %v9615_v43  ;;  %v5622_v37 = vmul.f32 %v12153_v39, %v5573_v33  ;;  %vm13645_vm7 = vmmov %vm13635_vm10 }
 0x4d2   : > { %9146 = vst [vmem:[#allocation2 + $0x88] sm:$0xff] %v8530_v38   ;;  %v6988_v49 = vsel %vm10229_vm4, %v6940_v12, 0.0  ;;  %v6482_v5 = vadd.f32 %v6481_v15, %v12497_v48  ;;  %v6612_v9 = vrot.slane %v8530_v38, 1  ;;  %v13639_v38 = vld [vmem:[#allocation34_spill] sm:$0xff]  ;;  %v13641_v15 = vld [vmem:[#allocation36_spill] sm:$0xff] }
 0x4d3   : > { %v8691_v14 = vpack.c.bf16 %v6988_v49, %v6987_v0  ;;  %v5671_v46 = vadd.f32 %v12163_v36, %v5622_v37  ;;  %vm13640_vm4 = vnez %v13639_v38  ;;  %vm13642_vm2 = vnez %v13641_v15  ;;  %v13643_v0 = vld [vmem:[#allocation50_spill] sm:$0xff] }
 0x4d4   : > { %v6613_v32 = vsel %vm13635_vm10, %v6610_v2, %v6612_v9  ;;  %v6843_v18 = vadd.f32 %v6735_v30, %v6482_v5  ;;  %vm13644_vm1 = vmpackc.low %vm13642_vm2, %vm13640_vm4 }
 0x4d5   : > { %9302 = vst [vmem:[%s12467_s28 + $0x30] sm:$0xff] %v8691_v14   ;;  %6779 = vmatmul.bf16.gmra.mxu3 %v6613_v32  ;;  %v5719_v25 = vmax.f32 %v5671_v46, 0.0  ;;  %v13646_v46 = vld [vmem:[#allocation54_spill] sm:$0xff] }
 0x4d6   : > { %v5500_v48 = vpop.f32.mrf.mxu0  ;;  %v12582_v21 = vpop.f32.mrf.mxu1  ;;  %v6892_v44 = vmul.f32 %v12436_v57, %v6843_v18 }
 0x4d7   : > { %v5574_v45 = vadd.f32 %v5500_v48, %v5306_v24  ;;  %v5767_v12 = vsel %vm13640_vm4, %v5719_v25, 0.0 }
 0x4d8   : > { %v6740_v47 = vpop.f32.mrf.mxu3  ;;  %v6941_v41 = vadd.f32 %v12444_v52, %v6892_v44 }
 0x4d9   : > { %v5623_v17 = vmul.f32 %v12153_v39, %v5574_v45  ;;  %v6483_v20 = vpop.f32.mrf.mxu2  ;;  %v9448_v1 = vld [vmem:[#allocation2 + $0x84] sm:$0xff]  }
 0x4da   : > { %v6484_v2 = vadd.f32 %v6483_v20, %v12516_v3  ;;  %v6358_v35 = vrot.slane %v9448_v1, 3  ;;  %v6989_v37 = vsel %vm13552_vm3, %v6941_v41, 0.0  ;;  %v13647_v45 = vld [vmem:[#allocation52_spill] sm:$0xff] }
 0x4db   : > { %v5672_v61 = vadd.f32 %v12163_v36, %v5623_v17  ;;  %v5311_v17 = vadd.f32 %v13647_v45, %v13646_v46 }
 0x4dc   : > { %v6844_v30 = vadd.f32 %v6737_v54, %v6484_v2  ;;  %v6359_v28 = vsel %vm13638_vm5, %v6356_v22, %v6358_v35 }
 0x4dd   : > { %v5720_v6 = vmax.f32 %v5672_v61, 0.0 }
 0x4de   : > { %v6893_v4 = vmul.f32 %v12436_v57, %v6844_v30  ;;  %v5503_v33 = vpop.f32.mrf.mxu0  ;;  %6525 = vmatmul.bf16.gmra.mxu2 %v6359_v28  ;;  %v12596_v5 = vpop.f32.mrf.mxu1 }
 0x4df   : > { %v5768_v3 = vsel %vm13642_vm2, %v5720_v6, 0.0  ;;  %v5575_v49 = vadd.f32 %v5503_v33, %v13643_v0  ;;  %v9618_v31 = vpack.c.bf16 %v5720_v6, %v5719_v25 }
 0x4e0   : > { %v8535_v54 = vpack.c.bf16 %v5768_v3, %v5767_v12  ;;  %v6942_v22 = vadd.f32 %v12444_v52, %v6893_v4  ;;  %v6742_v43 = vpop.f32.mrf.mxu3 }
 0x4e1   : > { %v6486_v14 = vpop.f32.mrf.mxu2  ;;  %9619 = vmatmul.msk.bf16.gmra.mxu1 %vm13644_vm1, %v9618_v31  ;;  %v5624_v48 = vmul.f32 %v12153_v39, %v5575_v49  ;;  %vm13655_vm1 = vnez %v13562_v8 }
 0x4e2   : > { %9147 = vst [vmem:[#allocation2 + $0x90] sm:$0xff] %v8535_v54   ;;  %v6990_v32 = vsel %vm13554_vm9, %v6942_v22, 0.0  ;;  %v6487_v13 = vadd.f32 %v6486_v14, %v12530_v59  ;;  %v6614_v24 = vrot.slane %v8535_v54, 1  ;;  %vm13648_vm9 = vmmov %vm13638_vm5  ;;  %v13649_v54 = vld [vmem:[#allocation39_spill] sm:$0xff]  ;;  %v13651_v14 = vld [vmem:[#allocation40_spill] sm:$0xff]  ;;  %vm13654_vm5 = vnez %v13560_v10 }
 0x4e3   : > { %v8696_v18 = vpack.c.bf16 %v6990_v32, %v6989_v37  ;;  %v5673_v20 = vadd.f32 %v12163_v36, %v5624_v48  ;;  %vm13650_vm3 = vnez %v13649_v54  ;;  %vm13652_vm10 = vnez %v13651_v14  ;;  %v13653_v37 = vld [vmem:[#allocation55_spill] sm:$0xff] }
 0x4e4   : > { %v6615_v11 = vsel %vm13645_vm7, %v6612_v9, %v6614_v24  ;;  %v6845_v34 = vadd.f32 %v6740_v47, %v6487_v13  ;;  %vm13656_vm7 = vmpackc.low %vm13652_vm10, %vm13650_vm3 }
 0x4e5   : > { %9303 = vst [vmem:[%s12467_s28 + $0x38] sm:$0xff] %v8696_v18   ;;  %6784 = vmatmul.bf16.gmra.mxu3 %v6615_v11  ;;  %v5721_v28 = vmax.f32 %v5673_v20, 0.0  ;;  %v13658_v20 = vld [vmem:[#allocation59_spill] sm:$0xff] }
 0x4e6   : > { %v5505_v59 = vpop.f32.mrf.mxu0  ;;  %v12615_v44 = vpop.f32.mrf.mxu1  ;;  %v6894_v6 = vmul.f32 %v12436_v57, %v6845_v34 }
 0x4e7   : > { %v5576_v1 = vadd.f32 %v5505_v59, %v5311_v17  ;;  %v5769_v22 = vsel %vm13650_vm3, %v5721_v28, 0.0  ;;  %vm13668_vm3 = vcmask 1046528  }
 0x4e8   : > { %v6745_v2 = vpop.f32.mrf.mxu3  ;;  %v6943_v3 = vadd.f32 %v12444_v52, %v6894_v6 }
 0x4e9   : > { %v5625_v25 = vmul.f32 %v12153_v39, %v5576_v1  ;;  %v6488_v61 = vpop.f32.mrf.mxu2  ;;  %v9450_v30 = vld [vmem:[#allocation2 + $0x8c] sm:$0xff]  }
 0x4ea   : > { %v6489_v9 = vadd.f32 %v6488_v61, %v12549_v29  ;;  %v6360_v4 = vrot.slane %v9450_v30, 3  ;;  %v6991_v48 = vsel %vm13654_vm5, %v6943_v3, 0.0  ;;  %v13659_v1 = vld [vmem:[#allocation58_spill] sm:$0xff]  ;;  %vm13660_vm5 = vcmask 1044480  }
 0x4eb   : > { %v5674_v41 = vadd.f32 %v12163_v36, %v5625_v25  ;;  %v5316_v25 = vadd.f32 %v13659_v1, %v13658_v20 }
 0x4ec   : > { %v6846_v47 = vadd.f32 %v6742_v43, %v6489_v9  ;;  %v6361_v12 = vsel %vm13648_vm9, %v6358_v35, %v6360_v4  ;;  %vm13657_vm9 = vcmask 1046528  }
 0x4ed   : > { %v5722_v33 = vmax.f32 %v5674_v41, 0.0 }
 0x4ee   : > { %v6895_v0 = vmul.f32 %v12436_v57, %v6846_v47  ;;  %v5508_v49 = vpop.f32.mrf.mxu0  ;;  %6530 = vmatmul.bf16.gmra.mxu2 %v6361_v12  ;;  %v12629_v13 = vpop.f32.mrf.mxu1 }
 0x4ef   : > { %v5770_v29 = vsel %vm13652_vm10, %v5722_v33, 0.0  ;;  %v5577_v32 = vadd.f32 %v5508_v49, %v13653_v37  ;;  %v9621_v45 = vpack.c.bf16 %v5722_v33, %v5721_v28 }
 0x4f0   : > { %v8540_v43 = vpack.c.bf16 %v5770_v29, %v5769_v22  ;;  %v6944_v35 = vadd.f32 %v12444_v52, %v6895_v0  ;;  %v6747_v31 = vpop.f32.mrf.mxu3 }
 0x4f1   : > { %v6491_v18 = vpop.f32.mrf.mxu2  ;;  %9622 = vmatmul.msk.bf16.gmra.mxu1 %vm13656_vm7, %v9621_v45  ;;  %v5626_v59 = vmul.f32 %v12153_v39, %v5577_v32 }
 0x4f2   : > { %9148 = vst [vmem:[#allocation2 + $0x98] sm:$0xff] %v8540_v43   ;;  %v6992_v11 = vsel %vm13655_vm1, %v6944_v35, 0.0  ;;  %v6492_v46 = vadd.f32 %v6491_v18, %v12563_v58  ;;  %v6616_v17 = vrot.slane %v8540_v43, 1  ;;  %v13661_v43 = vld [vmem:[#allocation42_spill] sm:$0xff]  ;;  %v13663_v18 = vld [vmem:[#allocation44_spill] sm:$0xff] }
 0x4f3   : > { %v8701_v34 = vpack.c.bf16 %v6992_v11, %v6991_v48  ;;  %v5675_v61 = vadd.f32 %v12163_v36, %v5626_v59  ;;  %vm13662_vm1 = vnez %v13661_v43  ;;  %vm13664_vm7 = vnez %v13663_v18 }
 0x4f4   : > { %v6617_v10 = vsel %vm13657_vm9, %v6614_v24, %v6616_v17  ;;  %v6847_v8 = vadd.f32 %v6745_v2, %v6492_v46  ;;  %vm13665_vm9 = vnez %v13569_v55  ;;  %vm13667_vm10 = vmpackc.low %vm13664_vm7, %vm13662_vm1 }
 0x4f5   : > { %9304 = vst [vmem:[%s12467_s28 + $0x40] sm:$0xff] %v8701_v34   ;;  %6789 = vmatmul.bf16.gmra.mxu3 %v6617_v10  ;;  %v5723_v12 = vmax.f32 %v5675_v61, 0.0 }
 0x4f6   : > { %v5510_v58 = vpop.f32.mrf.mxu0  ;;  %v12648_v6 = vpop.f32.mrf.mxu1  ;;  %v6896_v33 = vmul.f32 %v12436_v57, %v6847_v8  ;;  %v13669_v8 = vld [vmem:[#allocation63_spill] sm:$0xff] }
 0x4f7   : > { %v5578_v30 = vadd.f32 %v5510_v58, %v5316_v25  ;;  %v5771_v35 = vsel %vm13662_vm1, %v5723_v12, 0.0  ;;  %v13670_v58 = vld [vmem:[#allocation62_spill] sm:$0xff]  ;;  %vm13679_vm1 = vcmask 1046528  }
 0x4f8   : > { %v6750_v9 = vpop.f32.mrf.mxu3  ;;  %v6945_v29 = vadd.f32 %v12444_v52, %v6896_v33  ;;  %v5321_v61 = vadd.f32 %v13670_v58, %v13669_v8 }
 0x4f9   : > { %v5627_v28 = vmul.f32 %v12153_v39, %v5578_v30  ;;  %v6493_v41 = vpop.f32.mrf.mxu2  ;;  %v9452_v47 = vld [vmem:[#allocation2 + $0x94] sm:$0xff]  }
 0x4fa   : > { %v6494_v24 = vadd.f32 %v6493_v41, %v12582_v21  ;;  %v6362_v0 = vrot.slane %v9452_v47, 3  ;;  %v6993_v34 = vsel %vm13665_vm9, %v6945_v29, 0.0 }
 0x4fb   : > { %v5676_v3 = vadd.f32 %v12163_v36, %v5627_v28 }
 0x4fc   : > { %v6848_v2 = vadd.f32 %v6747_v31, %v6494_v24  ;;  %v6363_v22 = vsel %vm13660_vm5, %v6360_v4, %v6362_v0  ;;  %vm13666_vm5 = vnez %v13571_v42 }
 0x4fd   : > { %v5724_v49 = vmax.f32 %v5676_v3, 0.0 }
 0x4fe   : > { %v6897_v37 = vmul.f32 %v12436_v57, %v6848_v2  ;;  %v5513_v32 = vpop.f32.mrf.mxu0  ;;  %6535 = vmatmul.bf16.gmra.mxu2 %v6363_v22  ;;  %v12662_v11 = vpop.f32.mrf.mxu1 }
 0x4ff   : > { %v5772_v21 = vsel %vm13664_vm7, %v5724_v49, 0.0  ;;  %v5579_v48 = vadd.f32 %v5513_v32, %v12252_v53  ;;  %v9624_v20 = vpack.c.bf16 %v5724_v49, %v5723_v12 }
 0x500   : > { %v8545_v31 = vpack.c.bf16 %v5772_v21, %v5771_v35  ;;  %v6946_v4 = vadd.f32 %v12444_v52, %v6897_v37  ;;  %v6752_v46 = vpop.f32.mrf.mxu3 }
 0x501   : > { %v6496_v45 = vpop.f32.mrf.mxu2  ;;  %9625 = vmatmul.msk.bf16.gmra.mxu1 %vm13667_vm10, %v9624_v20  ;;  %v5628_v25 = vmul.f32 %v12153_v39, %v5579_v48  ;;  %v13672_v48 = vld [vmem:[#allocation47_spill] sm:$0xff] }
 0x502   : > { %9149 = vst [vmem:[#allocation2 + $0xa0] sm:$0xff] %v8545_v31   ;;  %v6994_v59 = vsel %vm13666_vm5, %v6946_v4, 0.0  ;;  %v6497_v10 = vadd.f32 %v6496_v45, %v12596_v5  ;;  %v6618_v53 = vrot.slane %v8545_v31, 1  ;;  %vm13673_vm10 = vnez %v13672_v48  ;;  %v13674_v4 = vld [vmem:[#allocation48_spill] sm:$0xff] }
 0x503   : > { %v8706_v1 = vpack.c.bf16 %v6994_v59, %v6993_v34  ;;  %v5677_v30 = vadd.f32 %v12163_v36, %v5628_v25  ;;  %vm13675_vm9 = vnez %v13674_v4  ;;  %vm13676_vm5 = vnez %v13579_v16 }
 0x504   : > { %v6619_v55 = vsel %vm13668_vm3, %v6616_v17, %v6618_v53  ;;  %v6849_v42 = vadd.f32 %v6750_v9, %v6497_v10  ;;  %vm13671_vm3 = vcmask 1044480   ;;  %vm13678_vm7 = vmpackc.low %vm13675_vm9, %vm13673_vm10 }
 0x505   : > { %9305 = vst [vmem:[%s12467_s28 + $0x48] sm:$0xff] %v8706_v1   ;;  %6794 = vmatmul.bf16.gmra.mxu3 %v6619_v55  ;;  %v5725_v2 = vmax.f32 %v5677_v30, 0.0 }
 0x506   : > { %v5515_v5 = vpop.f32.mrf.mxu0  ;;  %v12681_v41 = vpop.f32.mrf.mxu1  ;;  %v6898_v3 = vmul.f32 %v12436_v57, %v6849_v42  ;;  %v13681_v42 = vld [vmem:[#allocation65_spill] sm:$0xff] }
 0x507   : > { %v5580_v28 = vadd.f32 %v5515_v5, %v5321_v61  ;;  %v5773_v31 = vsel %vm13673_vm10, %v5725_v2, 0.0  ;;  %v13680_v61 = vld [vmem:[#allocation31_spill] sm:$0xff]  ;;  %vm13691_vm10 = vcmask 1046528  }
 0x508   : > { %v6755_v47 = vpop.f32.mrf.mxu3  ;;  %v6947_v32 = vadd.f32 %v12444_v52, %v6898_v3  ;;  %v5326_v5 = vadd.f32 %v13681_v42, %v13680_v61 }
 0x509   : > { %v5629_v33 = vmul.f32 %v12153_v39, %v5580_v28  ;;  %v6498_v24 = vpop.f32.mrf.mxu2  ;;  %v9454_v12 = vld [vmem:[#allocation2 + $0x9c] sm:$0xff]  }
 0x50a   : > { %v6499_v17 = vadd.f32 %v6498_v24, %v12615_v44  ;;  %v6364_v22 = vrot.slane %v9454_v12, 3  ;;  %v6995_v20 = vsel %vm13676_vm5, %v6947_v32, 0.0 }
 0x50b   : > { %v5678_v49 = vadd.f32 %v12163_v36, %v5629_v33 }
 0x50c   : > { %v6850_v9 = vadd.f32 %v6752_v46, %v6499_v17  ;;  %v6365_v37 = vsel %vm13671_vm3, %v6362_v0, %v6364_v22  ;;  %vm13677_vm3 = vnez %v13581_v62 }
 0x50d   : > { %v5726_v29 = vmax.f32 %v5678_v49, 0.0 }
 0x50e   : > { %v6899_v35 = vmul.f32 %v12436_v57, %v6850_v9  ;;  %v5518_v21 = vpop.f32.mrf.mxu0  ;;  %6540 = vmatmul.bf16.gmra.mxu2 %v6365_v37  ;;  %v12695_v34 = vpop.f32.mrf.mxu1 }
 0x50f   : > { %v5774_v44 = vsel %vm13675_vm9, %v5726_v29, 0.0  ;;  %v5581_v45 = vadd.f32 %v5518_v21, %v12276_v56  ;;  %v9627_v55 = vpack.c.bf16 %v5726_v29, %v5725_v2 }
 0x510   : > { %v8550_v46 = vpack.c.bf16 %v5774_v44, %v5773_v31  ;;  %v6948_v0 = vadd.f32 %v12444_v52, %v6899_v35  ;;  %v6757_v59 = vpop.f32.mrf.mxu3  ;;  %v13683_v44 = vld [vmem:[#allocation51_spill] sm:$0xff] }
 0x511   : > { %v6501_v10 = vpop.f32.mrf.mxu2  ;;  %9628 = vmatmul.msk.bf16.gmra.mxu1 %vm13678_vm7, %v9627_v55  ;;  %v5630_v58 = vmul.f32 %v12153_v39, %v5581_v45  ;;  %vm13684_vm7 = vnez %v13683_v44  ;;  %v13688_v55 = vld [vmem:[#allocation20_spill] sm:$0xff] }
 0x512   : > { %9150 = vst [vmem:[#allocation2 + $0xa8] sm:$0xff] %v8550_v46   ;;  %v6996_v1 = vsel %vm13677_vm3, %v6948_v0, 0.0  ;;  %v6502_v25 = vadd.f32 %v6501_v10, %v12629_v13  ;;  %v6620_v56 = vrot.slane %v8550_v46, 1  ;;  %v13685_v46 = vld [vmem:[#allocation53_spill] sm:$0xff]  ;;  %vm13687_vm3 = vnez %v13589_v7 }
 0x513   : > { %v8711_v8 = vpack.c.bf16 %v6996_v1, %v6995_v20  ;;  %v5679_v30 = vadd.f32 %v12163_v36, %v5630_v58  ;;  %vm13686_vm5 = vnez %v13685_v46 }
 0x514   : > { %v6621_v16 = vsel %vm13679_vm1, %v6618_v53, %v6620_v56  ;;  %v6851_v62 = vadd.f32 %v6755_v47, %v6502_v25  ;;  %vm13682_vm1 = vcmask 1044480   ;;  %vm13690_vm9 = vmpackc.low %vm13686_vm5, %vm13684_vm7 }
 0x515   : > { %9306 = vst [vmem:[%s12467_s28 + $0x50] sm:$0xff] %v8711_v8   ;;  %6799 = vmatmul.bf16.gmra.mxu3 %v6621_v16  ;;  %v5727_v49 = vmax.f32 %v5679_v30, 0.0 }
 0x516   : > { %v5520_v13 = vpop.f32.mrf.mxu0  ;;  %v12714_v33 = vpop.f32.mrf.mxu1  ;;  %v6900_v2 = vmul.f32 %v12436_v57, %v6851_v62  ;;  %v13693_v62 = vld [vmem:[#allocation32_spill] sm:$0xff] }
 0x517   : > { %v5582_v28 = vadd.f32 %v5520_v13, %v5326_v5  ;;  %v5775_v45 = vsel %vm13684_vm7, %v5727_v49, 0.0  ;;  %v13692_v5 = vld [vmem:[#allocation4_spill] sm:$0xff]  ;;  %vm13705_vm7 = vcmask 1046528  }
 0x518   : > { %v6760_v24 = vpop.f32.mrf.mxu3  ;;  %v6949_v35 = vadd.f32 %v12444_v52, %v6900_v2  ;;  %v5331_v13 = vadd.f32 %v13693_v62, %v13692_v5 }
 0x519   : > { %v5631_v12 = vmul.f32 %v12153_v39, %v5582_v28  ;;  %v6503_v3 = vpop.f32.mrf.mxu2  ;;  %v9456_v17 = vld [vmem:[#allocation2 + $0xa4] sm:$0xff]  }
 0x51a   : > { %v6504_v53 = vadd.f32 %v6503_v3, %v12648_v6  ;;  %v6366_v29 = vrot.slane %v9456_v17, 3  ;;  %v6997_v25 = vsel %vm13687_vm3, %v6949_v35, 0.0 }
 0x51b   : > { %v5680_v9 = vadd.f32 %v12163_v36, %v5631_v12 }
 0x51c   : > { %v6852_v47 = vadd.f32 %v6757_v59, %v6504_v53  ;;  %v6367_v32 = vsel %vm13682_vm1, %v6364_v22, %v6366_v29  ;;  %vm13689_vm1 = vnez %v13688_v55 }
 0x51d   : > { %v5728_v37 = vmax.f32 %v5680_v9, 0.0 }
 0x51e   : > { %v6901_v21 = vmul.f32 %v12436_v57, %v6852_v47  ;;  %v5523_v31 = vpop.f32.mrf.mxu0  ;;  %6545 = vmatmul.bf16.gmra.mxu2 %v6367_v32  ;;  %v12728_v10 = vpop.f32.mrf.mxu1 }
 0x51f   : > { %v5776_v6 = vsel %vm13686_vm5, %v5728_v37, 0.0  ;;  %v5583_v0 = vadd.f32 %v5523_v31, %v12300_v19  ;;  %v9630_v16 = vpack.c.bf16 %v5728_v37, %v5727_v49 }
 0x520   : > { %v8555_v59 = vpack.c.bf16 %v5776_v6, %v5775_v45  ;;  %v6950_v22 = vadd.f32 %v12444_v52, %v6901_v21  ;;  %v6762_v20 = vpop.f32.mrf.mxu3 }
 0x521   : > { %v6506_v1 = vpop.f32.mrf.mxu2  ;;  %9631 = vmatmul.msk.bf16.gmra.mxu1 %vm13690_vm9, %v9630_v16  ;;  %v5632_v42 = vmul.f32 %v12153_v39, %v5583_v0  ;;  %v13695_v0 = vld [vmem:[#allocation56_spill] sm:$0xff]  ;;  %v13700_v16 = vld [vmem:[#allocation21_spill] sm:$0xff] }
 0x522   : > { %9151 = vst [vmem:[#allocation2 + $0xb0] sm:$0xff] %v8555_v59   ;;  %v6998_v8 = vsel %vm13689_vm1, %v6950_v22, 0.0  ;;  %v6507_v58 = vadd.f32 %v6506_v1, %v12662_v11  ;;  %v6622_v19 = vrot.slane %v8555_v59, 1  ;;  %vm13696_vm9 = vnez %v13695_v0  ;;  %v13697_v22 = vld [vmem:[#allocation57_spill] sm:$0xff] }
 0x523   : > { %v8716_v61 = vpack.c.bf16 %v6998_v8, %v6997_v25  ;;  %v5681_v28 = vadd.f32 %v12163_v36, %v5632_v42  ;;  %vm13698_vm3 = vnez %v13697_v22  ;;  %v13699_v1 = vld [vmem:[#allocation33_spill] sm:$0xff]  ;;  %vm13701_vm1 = vnez %v13700_v16  ;;  %v13702_v42 = vld [vmem:[#allocation22_spill] sm:$0xff] }
 0x524   : > { %v6623_v7 = vsel %vm13691_vm10, %v6620_v56, %v6622_v19  ;;  %v6853_v30 = vadd.f32 %v6760_v24, %v6507_v58  ;;  %vm13694_vm10 = vcmask 1044480   ;;  %vm13704_vm5 = vmpackc.low %vm13698_vm3, %vm13696_vm9 }
 0x525   : > { %9307 = vst [vmem:[%s12467_s28 + $0x58] sm:$0xff] %v8716_v61   ;;  %6804 = vmatmul.bf16.gmra.mxu3 %v6623_v7  ;;  %v5729_v47 = vmax.f32 %v5681_v28, 0.0 }
 0x526   : > { %v5525_v11 = vpop.f32.mrf.mxu0  ;;  %v12747_v3 = vpop.f32.mrf.mxu1  ;;  %v6902_v9 = vmul.f32 %v12436_v57, %v6853_v30 }
 0x527   : > { %v5584_v12 = vadd.f32 %v5525_v11, %v5331_v13  ;;  %v5777_v59 = vsel %vm13696_vm9, %v5729_v47, 0.0 }
 0x528   : > { %v6765_v17 = vpop.f32.mrf.mxu3  ;;  %v6951_v31 = vadd.f32 %v12444_v52, %v6902_v9 }
 0x529   : > { %v5633_v2 = vmul.f32 %v12153_v39, %v5584_v12  ;;  %v6508_v53 = vpop.f32.mrf.mxu2  ;;  %v9458_v49 = vld [vmem:[#allocation2 + $0xac] sm:$0xff]  }
 0x52a   : > { %v6509_v56 = vadd.f32 %v6508_v53, %v12681_v41  ;;  %v6368_v32 = vrot.slane %v9458_v49, 3  ;;  %v6999_v61 = vsel %vm13701_vm1, %v6951_v31, 0.0  ;;  %v13706_v12 = vld [vmem:[#allocation5_spill] sm:$0xff] }
 0x52b   : > { %v5682_v37 = vadd.f32 %v12163_v36, %v5633_v2  ;;  %v13707_v2 = vld [vmem:[#allocation35_spill] sm:$0xff] }
 0x52c   : > { %v6854_v24 = vadd.f32 %v6762_v20, %v6509_v56  ;;  %v6369_v21 = vsel %vm13694_vm10, %v6366_v29, %v6368_v32  ;;  %vm13703_vm10 = vnez %v13702_v42  ;;  %v5336_v53 = vadd.f32 %v13707_v2, %v13706_v12  ;;  %v13713_v42 = vld [vmem:[#allocation6_spill] sm:$0xff]  ;;  %v13715_v12 = vld [vmem:[#allocation24_spill] sm:$0xff] }
 0x52d   : > { %v5730_v35 = vmax.f32 %v5682_v37, 0.0 }
 0x52e   : > { %v6903_v45 = vmul.f32 %v12436_v57, %v6854_v24  ;;  %v5528_v6 = vpop.f32.mrf.mxu0  ;;  %6550 = vmatmul.bf16.gmra.mxu2 %v6369_v21  ;;  %v12761_v55 = vpop.f32.mrf.mxu1 }
 0x52f   : > { %v5778_v41 = vsel %vm13698_vm3, %v5730_v35, 0.0  ;;  %v5585_v25 = vadd.f32 %v5528_v6, %v13699_v1  ;;  %v9633_v62 = vpack.c.bf16 %v5730_v35, %v5729_v47  ;;  %vm13718_vm3 = vcmask 1046528  }
 0x530   : > { %v8560_v20 = vpack.c.bf16 %v5778_v41, %v5777_v59  ;;  %v6952_v29 = vadd.f32 %v12444_v52, %v6903_v45  ;;  %v6767_v8 = vpop.f32.mrf.mxu3 }
 0x531   : > { %v6511_v58 = vpop.f32.mrf.mxu2  ;;  %9634 = vmatmul.msk.bf16.gmra.mxu1 %vm13704_vm5, %v9633_v62  ;;  %v5634_v11 = vmul.f32 %v12153_v39, %v5585_v25 }
 0x532   : > { %9152 = vst [vmem:[#allocation2 + $0xb8] sm:$0xff] %v8560_v20   ;;  %v7000_v7 = vsel %vm13703_vm10, %v6952_v29, 0.0  ;;  %v6512_v5 = vadd.f32 %v6511_v58, %v12695_v34  ;;  %v6624_v13 = vrot.slane %v8560_v20, 1  ;;  %v13709_v58 = vld [vmem:[#allocation60_spill] sm:$0xff]  ;;  %vm13716_vm10 = vnez %v13715_v12 }
 0x533   : > { %v8721_v30 = vpack.c.bf16 %v7000_v7, %v6999_v61  ;;  %v5683_v9 = vadd.f32 %v12163_v36, %v5634_v11  ;;  %vm13710_vm5 = vnez %v13709_v58  ;;  %v13711_v61 = vld [vmem:[#allocation61_spill] sm:$0xff] }
 0x534   : > { %v6625_v28 = vsel %vm13705_vm7, %v6622_v19, %v6624_v13  ;;  %v6855_v49 = vadd.f32 %v6765_v17, %v6512_v5  ;;  %vm13708_vm7 = vcmask 1044480   ;;  %vm13712_vm1 = vnez %v13711_v61 }
 0x535   : > { %9308 = vst [vmem:[%s12467_s28 + $0x60] sm:$0xff] %v8721_v30   ;;  %6809 = vmatmul.bf16.gmra.mxu3 %v6625_v28  ;;  %v5731_v45 = vmax.f32 %v5683_v9, 0.0 }
 0x536   : > { %v5530_v34 = vpop.f32.mrf.mxu0  ;;  %v12780_v47 = vpop.f32.mrf.mxu1  ;;  %v6904_v31 = vmul.f32 %v12436_v57, %v6855_v49 }
 0x537   : > { %v5586_v56 = vadd.f32 %v5530_v34, %v5336_v53  ;;  %v5779_v16 = vsel %vm13710_vm5, %v5731_v45, 0.0 }
 0x538   : > { %v6770_v37 = vpop.f32.mrf.mxu3  ;;  %v6953_v25 = vadd.f32 %v12444_v52, %v6904_v31 }
 0x539   : > { %v5635_v24 = vmul.f32 %v12153_v39, %v5586_v56  ;;  %v6513_v35 = vpop.f32.mrf.mxu2  ;;  %v9460_v21 = vld [vmem:[#allocation2 + $0xb4] sm:$0xff]  }
 0x53a   : > { %v6514_v19 = vadd.f32 %v6513_v35, %v12714_v33  ;;  %v6370_v59 = vrot.slane %v9460_v21, 3  ;;  %v7001_v28 = vsel %vm13607_vm8, %v6953_v25, 0.0  ;;  %v13719_v35 = vld [vmem:[#allocation38_spill] sm:$0xff]  ;;  %v13720_v21 = vld [vmem:[#allocation37_spill] sm:$0xff]  ;;  %vm13721_vm8 = vcmask 1044480  }
 0x53b   : > { %v5684_v6 = vadd.f32 %v12163_v36, %v5635_v24  ;;  %v5341_v31 = vadd.f32 %v13720_v21, %v13719_v35 }
 0x53c   : > { %v6856_v17 = vadd.f32 %v6767_v8, %v6514_v19  ;;  %v6371_v1 = vsel %vm13708_vm7, %v6368_v32, %v6370_v59  ;;  %vm13717_vm7 = vmpackc.low %vm13712_vm1, %vm13710_vm5 }
 0x53d   : > { %v5732_v41 = vmax.f32 %v5684_v6, 0.0 }
 0x53e   : > { %v6905_v20 = vmul.f32 %v12436_v57, %v6856_v17  ;;  %v5533_v29 = vpop.f32.mrf.mxu0  ;;  %6555 = vmatmul.bf16.gmra.mxu2 %v6371_v1  ;;  %v12794_v5 = vpop.f32.mrf.mxu1 }
 0x53f   : > { %v5780_v33 = vsel %vm13712_vm1, %v5732_v41, 0.0  ;;  %v5587_v7 = vadd.f32 %v5533_v29, %v13713_v42  ;;  %v9636_v49 = vpack.c.bf16 %v5732_v41, %v5731_v45  ;;  %vm13729_vm1 = vcmask 1046528  }
 0x540   : > { %v8565_v8 = vpack.c.bf16 %v5780_v33, %v5779_v16  ;;  %v6954_v32 = vadd.f32 %v12444_v52, %v6905_v20  ;;  %v6772_v62 = vpop.f32.mrf.mxu3 }
 0x541   : > { %v6516_v30 = vpop.f32.mrf.mxu2  ;;  %9637 = vmatmul.msk.bf16.gmra.mxu1 %vm13717_vm7, %v9636_v49  ;;  %v5636_v56 = vmul.f32 %v12153_v39, %v5587_v7  ;;  %vm13727_vm7 = vnez %v13615_v50 }
 0x542   : > { %9153 = vst [vmem:[#allocation2 + $0xc0] sm:$0xff] %v8565_v8   ;;  %v7002_v2 = vsel %vm13716_vm10, %v6954_v32, 0.0  ;;  %v6517_v53 = vadd.f32 %v6516_v30, %v12728_v10  ;;  %v6626_v34 = vrot.slane %v8565_v8, 1 }
 0x543   : > { %v8726_v9 = vpack.c.bf16 %v7002_v2, %v7001_v28  ;;  %v5685_v45 = vadd.f32 %v12163_v36, %v5636_v56  ;;  %v13722_v28 = vld [vmem:[#allocation64_spill] sm:$0xff]  ;;  %v13724_v2 = vld [vmem:[#allocation66_spill] sm:$0xff] }
 0x544   : > { %v6627_v24 = vsel %vm13718_vm3, %v6624_v13, %v6626_v34  ;;  %v6857_v19 = vadd.f32 %v6770_v37, %v6517_v53  ;;  %vm13723_vm3 = vnez %v13722_v28  ;;  %vm13725_vm10 = vnez %v13724_v2  ;;  %v13726_v53 = vld [vmem:[#allocation7_spill] sm:$0xff] }
 0x545   : > { %9309 = vst [vmem:[%s12467_s28 + $0x68] sm:$0xff] %v8726_v9   ;;  %6814 = vmatmul.bf16.gmra.mxu3 %v6627_v24  ;;  %v5733_v16 = vmax.f32 %v5685_v45, 0.0 }
 0x546   : > { %v5535_v10 = vpop.f32.mrf.mxu0  ;;  %v12813_v17 = vpop.f32.mrf.mxu1  ;;  %v6906_v29 = vmul.f32 %v12436_v57, %v6857_v19 }
 0x547   : > { %v5588_v6 = vadd.f32 %v5535_v10, %v5341_v31  ;;  %v5781_v12 = vsel %vm13723_vm3, %v5733_v16, 0.0 }
 0x548   : > { %v6775_v41 = vpop.f32.mrf.mxu3  ;;  %v6955_v32 = vadd.f32 %v12444_v52, %v6906_v29 }
 0x549   : > { %v5637_v1 = vmul.f32 %v12153_v39, %v5588_v6  ;;  %v6518_v25 = vpop.f32.mrf.mxu2  ;;  %v9462_v20 = vld [vmem:[#allocation2 + $0xbc] sm:$0xff]  }
 0x54a   : > { %v6519_v13 = vadd.f32 %v6518_v25, %v12747_v3  ;;  %v6372_v42 = vrot.slane %v9462_v20, 3  ;;  %v7003_v35 = vsel %vm13614_vm0, %v6955_v32, 0.0  ;;  %v13731_v25 = vld [vmem:[#allocation8_spill] sm:$0xff]  ;;  %vm13732_vm0 = vcmask 1044480  }
 0x54b   : > { %v5686_v33 = vadd.f32 %v12163_v36, %v5637_v1  ;;  %v13730_v1 = vld [vmem:[#allocation41_spill] sm:$0xff] }
 0x54c   : > { %v6858_v37 = vadd.f32 %v6772_v62, %v6519_v13  ;;  %v6373_v8 = vsel %vm13721_vm8, %v6370_v59, %v6372_v42  ;;  %vm13728_vm8 = vmpackc.low %vm13725_vm10, %vm13723_vm3  ;;  %v5346_v20 = vadd.f32 %v13731_v25, %v13730_v1 }
 0x54d   : > { %v5734_v7 = vmax.f32 %v5686_v33, 0.0 }
 0x54e   : > { %v6907_v30 = vmul.f32 %v12436_v57, %v6858_v37  ;;  %v5538_v11 = vpop.f32.mrf.mxu0  ;;  %6560 = vmatmul.bf16.gmra.mxu2 %v6373_v8  ;;  %v12827_v9 = vpop.f32.mrf.mxu1 }
 0x54f   : > { %v5782_v3 = vsel %vm13725_vm10, %v5734_v7, 0.0  ;;  %v5589_v49 = vadd.f32 %v5538_v11, %v13726_v53  ;;  %v9639_v19 = vpack.c.bf16 %v5734_v7, %v5733_v16 }
 0x550   : > { %v8570_v62 = vpack.c.bf16 %v5782_v3, %v5781_v12  ;;  %v6956_v59 = vadd.f32 %v12444_v52, %v6907_v30  ;;  %v6777_v56 = vpop.f32.mrf.mxu3 }
 0x551   : > { %v6521_v24 = vpop.f32.mrf.mxu2  ;;  %9640 = vmatmul.msk.bf16.gmra.mxu1 %vm13728_vm8, %v9639_v19  ;;  %v5638_v6 = vmul.f32 %v12153_v39, %v5589_v49 }
 0x552   : > { %9154 = vst [vmem:[#allocation2 + $0xc8] sm:$0xff] %v8570_v62   ;;  %v7004_v21 = vsel %vm13727_vm7, %v6956_v59, 0.0  ;;  %v6522_v31 = vadd.f32 %v6521_v24, %v12761_v55  ;;  %v6628_v10 = vrot.slane %v8570_v62, 1  ;;  %v13735_v24 = vld [vmem:[#allocation68_spill] sm:$0xff] }
 0x553   : > { %v8731_v45 = vpack.c.bf16 %v7004_v21, %v7003_v35  ;;  %v5687_v29 = vadd.f32 %v12163_v36, %v5638_v6  ;;  %vm13736_vm7 = vnez %v13735_v24 }
 0x554   : > { %v6629_v27 = vsel %vm13729_vm1, %v6626_v34, %v6628_v10  ;;  %v6859_v50 = vadd.f32 %v6775_v41, %v6522_v31 }
 0x555   : > { %9310 = vst [vmem:[%s12467_s28 + $0x70] sm:$0xff] %v8731_v45   ;;  %6819 = vmatmul.bf16.gmra.mxu3 %v6629_v27  ;;  %v5735_v30 = vmax.f32 %v5687_v29, 0.0 }
 0x556   : > { %v5540_v55 = vpop.f32.mrf.mxu0  ;;  %v12846_v16 = vpop.f32.mrf.mxu1  ;;  %v6908_v32 = vmul.f32 %v12436_v57, %v6859_v50 }
 0x557   : > { %v5590_v13 = vadd.f32 %v5540_v55, %v5346_v20 }
 0x558   : > { %v6780_v33 = vpop.f32.mrf.mxu3  ;;  %v6957_v49 = vadd.f32 %v12444_v52, %v6908_v32  ;;  %v6583_v32 = vpack.c.b16 %v6582_v23, %v6582_v23 }
 0x559   : > { %v5639_v37 = vmul.f32 %v12153_v39, %v5590_v13  ;;  %v6523_v7 = vpop.f32.mrf.mxu2  ;;  %v9464_v8 = vld [vmem:[#allocation2 + $0xc4] sm:$0xff]   ;;  %v13733_v39 = vld [vmem:[#allocation67_spill] sm:$0xff] }
 0x55a   : > { %v6524_v34 = vadd.f32 %v6523_v7, %v12780_v47  ;;  %v6374_v12 = vrot.slane %v9464_v8, 3  ;;  %vm13734_vm1 = vnez %v13733_v39 }
 0x55b   : > { %v5688_v11 = vadd.f32 %v12163_v36, %v5639_v37  ;;  %v5783_v59 = vsel %vm13734_vm1, %v5735_v30, 0.0  ;;  %vm13737_vm8 = vmpackc.low %vm13736_vm7, %vm13734_vm1 }
 0x55c   : > { %v6860_v41 = vadd.f32 %v6777_v56, %v6524_v34  ;;  %v6375_v53 = vsel %vm13732_vm0, %v6372_v42, %v6374_v12  ;;  %v7005_v42 = vsel %vm13621_vm13, %v6957_v49, 0.0  ;;  %vm13738_vm0 = vcmask 1046528  }
 0x55d   : > { %v5736_v3 = vmax.f32 %v5688_v11, 0.0  ;;  %vm13739_vm13 = vcmask 1044480  }
 0x55e   : > { %v6909_v62 = vmul.f32 %v12436_v57, %v6860_v41  ;;  %6565 = vmatmul.bf16.gmra.mxu2 %v6375_v53  ;;  %v12859_v35 = vpop.f32.mrf.mxu1  ;;  %v6632_v41 = vrot.slane %v6583_v32, 1 }
 0x55f   : > { %v5784_v47 = vsel %vm13736_vm7, %v5736_v3, 0.0  ;;  %v9642_v6 = vpack.c.bf16 %v5736_v3, %v5735_v30 }
 0x560   : > { %v8575_v36 = vpack.c.bf16 %v5784_v47, %v5783_v59  ;;  %v6958_v56 = vadd.f32 %v12444_v52, %v6909_v62  ;;  %v6782_v21 = vpop.f32.mrf.mxu3 }
 0x561   : > { %v6526_v31 = vpop.f32.mrf.mxu2  ;;  %9643 = vmatmul.msk.bf16.gmra.mxu1 %vm13737_vm8, %v9642_v6  ;;  %vm13747_vm8 = vnez %v13674_v4 }
 0x562   : > { %9155 = vst [vmem:[#allocation2 + $0xd0] sm:$0xff] %v8575_v36   ;;  %v7006_v19 = vsel %vm13623_vm11, %v6958_v56, 0.0  ;;  %v6527_v45 = vadd.f32 %v6526_v31, %v12794_v5  ;;  %v6630_v27 = vrot.slane %v8575_v36, 1  ;;  %v8672_v62 = vunpack.c.h.b16 %v8575_v36  ;;  %vm13740_vm11 = vmmov %vm13738_vm0 }
 0x563   : > { %v8736_v1 = vpack.c.bf16 %v7006_v19, %v7005_v42 }
 0x564   : > { %v6631_v25 = vsel %vm13738_vm0, %v6628_v10, %v6630_v27  ;;  %v6861_v20 = vadd.f32 %v6780_v33, %v6527_v45  ;;  %v6633_v47 = vsel %vm13740_vm11, %v6630_v27, %v6632_v41  ;;  %vm13748_vm0 = vnez %v13683_v44 }
 0x565   : > { %9311 = vst [vmem:[%s12467_s28 + $0x78] sm:$0xff] %v8736_v1   ;;  %6824 = vmatmul.bf16.gmra.mxu3 %v6631_v25  ;;  %vm13750_vm11 = vnez %v13697_v22 }
 0x566   : > { %v6260_v29 = vpop.f32.mrf.mxu1  ;;  %v6910_v13 = vmul.f32 %v12436_v57, %v6861_v20 }
 0x568   : > { %v6785_v50 = vpop.f32.mrf.mxu3  ;;  %v6959_v10 = vadd.f32 %v12444_v52, %v6910_v13 }
 0x569   : > { %v6528_v55 = vpop.f32.mrf.mxu2  ;;  %v9465_v5 = vld [vmem:[#allocation2 + $0xcc] sm:$0xff]  }
 0x56a   : > { %v6529_v37 = vadd.f32 %v6528_v55, %v12813_v17  ;;  %v6376_v7 = vrot.slane %v9465_v5, 3  ;;  %v7007_v53 = vsel %vm13628_vm6, %v6959_v10, 0.0  ;;  %vm13741_vm6 = vmmov %vm13739_vm13 }
 0x56c   : > { %v6862_v8 = vadd.f32 %v6782_v21, %v6529_v37  ;;  %v6377_v34 = vsel %vm13739_vm13, %v6374_v12, %v6376_v7  ;;  %v6329_v21 = vpack.c.b16 %v8672_v62, %v8672_v62  ;;  %vm13749_vm13 = vnez %v13685_v46 }
 0x56e   : > { %v6911_v30 = vmul.f32 %v12436_v57, %v6862_v8  ;;  %6570 = vmatmul.bf16.gmra.mxu2 %v6377_v34  ;;  %v6263_v59 = vpop.f32.mrf.mxu1  ;;  %v6378_v60 = vrot.slane %v6329_v21, 3 }
 0x570   : > { %v6960_v33 = vadd.f32 %v12444_v52, %v6911_v30  ;;  %v6787_v11 = vpop.f32.mrf.mxu3 }
 0x571   : > { %v6531_v3 = vpop.f32.mrf.mxu2 }
 0x572   : > { %v7008_v17 = vsel %vm13630_vm15, %v6960_v33, 0.0  ;;  %v6532_v49 = vadd.f32 %v6531_v3, %v12827_v9  ;;  %v6379_v9 = vsel %vm13741_vm6, %v6376_v7, %v6378_v60  ;;  %vm13744_vm15 = vnez %v13661_v43 }
 0x573   : > { %v8741_v12 = vpack.c.bf16 %v7008_v17, %v7007_v53 }
 0x574   : > { %v6863_v56 = vadd.f32 %v6785_v50, %v6532_v49 }
 0x575   : > { %9312 = vst [vmem:[%s12467_s28 + $0x80] sm:$0xff] %v8741_v12   ;;  %6829 = vmatmul.bf16.gmra.mxu3 %v6633_v47 }
 0x576   : > { %v6912_v19 = vmul.f32 %v12436_v57, %v6863_v56  ;;  %v6265_v6 = vpop.f32.mrf.mxu1 }
 0x578   : > { %v6790_v31 = vpop.f32.mrf.mxu3  ;;  %v6961_v36 = vadd.f32 %v12444_v52, %v6912_v19 }
 0x579   : > { %v6533_v42 = vpop.f32.mrf.mxu2 }
 0x57a   : > { %v6534_v63 = vadd.f32 %v6533_v42, %v12846_v16  ;;  %v7009_v20 = vsel %vm13490_vm14, %v6961_v36, 0.0  ;;  %vm13742_vm14 = vnez %v13649_v54 }
 0x57c   : > { %v6864_v45 = vadd.f32 %v6787_v11, %v6534_v63 }
 0x57e   : > { %v6913_v27 = vmul.f32 %v12436_v57, %v6864_v45  ;;  %6575 = vmatmul.bf16.gmra.mxu2 %v6379_v9  ;;  %v6268_v5 = vpop.f32.mrf.mxu1 }
 0x580   : > { %v6962_v1 = vadd.f32 %v12444_v52, %v6913_v27  ;;  %v6792_v25 = vpop.f32.mrf.mxu3 }
 0x581   : > { %v6536_v40 = vpop.f32.mrf.mxu2 }
 0x582   : > { %v7010_v16 = vsel %vm13492_vm12, %v6962_v1, 0.0  ;;  %v6537_v50 = vadd.f32 %v6536_v40, %v12859_v35  ;;  %vm13743_vm12 = vnez %v13651_v14 }
 0x583   : > { %v8746_v23 = vpack.c.bf16 %v7010_v16, %v7009_v20 }
 0x584   : > { %v6865_v55 = vadd.f32 %v6790_v31, %v6537_v50 }
 0x585   : > { %9313 = vst [vmem:[%s12467_s28 + $0x88] sm:$0xff] %v8746_v23  }
 0x586   : > { %v6914_v7 = vmul.f32 %v12436_v57, %v6865_v55  ;;  %v6270_v30 = vpop.f32.mrf.mxu1 }
 0x588   : > { %v6795_v13 = vpop.f32.mrf.mxu3  ;;  %v6963_v34 = vadd.f32 %v12444_v52, %v6914_v7 }
 0x589   : > { %v6538_v37 = vpop.f32.mrf.mxu2 }
 0x58a   : > { %v6539_v8 = vadd.f32 %v6538_v37, %v6260_v29  ;;  %v7011_v33 = vsel %vm13640_vm4, %v6963_v34, 0.0  ;;  %vm13745_vm4 = vnez %v13663_v18 }
 0x58c   : > { %v6866_v32 = vadd.f32 %v6792_v25, %v6539_v8 }
 0x58e   : > { %v6915_v51 = vmul.f32 %v12436_v57, %v6866_v32  ;;  %v6273_v12 = vpop.f32.mrf.mxu1 }
 0x590   : > { %v6964_v26 = vadd.f32 %v12444_v52, %v6915_v51  ;;  %v6797_v10 = vpop.f32.mrf.mxu3 }
 0x591   : > { %v6541_v35 = vpop.f32.mrf.mxu2 }
 0x592   : > { %v7012_v11 = vsel %vm13642_vm2, %v6964_v26, 0.0  ;;  %v6542_v41 = vadd.f32 %v6541_v35, %v6263_v59  ;;  %vm13746_vm2 = vnez %v13672_v48 }
 0x593   : > { %v8751_v3 = vpack.c.bf16 %v7012_v11, %v7011_v33 }
 0x594   : > { %v6867_v29 = vadd.f32 %v6795_v13, %v6542_v41 }
 0x595   : > { %9314 = vst [vmem:[%s12467_s28 + $0x90] sm:$0xff] %v8751_v3  }
 0x596   : > { %v6916_v49 = vmul.f32 %v12436_v57, %v6867_v29  ;;  %v6275_v60 = vpop.f32.mrf.mxu1 }
 0x598   : > { %v6800_v53 = vpop.f32.mrf.mxu3  ;;  %v6965_v56 = vadd.f32 %v12444_v52, %v6916_v49 }
 0x599   : > { %v6543_v17 = vpop.f32.mrf.mxu2 }
 0x59a   : > { %v6544_v62 = vadd.f32 %v6543_v17, %v6265_v6  ;;  %v7013_v59 = vsel %vm13742_vm14, %v6965_v56, 0.0 }
 0x59c   : > { %v6868_v47 = vadd.f32 %v6797_v10, %v6544_v62 }
 0x59e   : > { %v6917_v38 = vmul.f32 %v12436_v57, %v6868_v47  ;;  %v6278_v40 = vpop.f32.mrf.mxu1 }
 0x5a0   : > { %v6966_v21 = vadd.f32 %v12444_v52, %v6917_v38  ;;  %v6802_v15 = vpop.f32.mrf.mxu3 }
 0x5a1   : > { %v6546_v31 = vpop.f32.mrf.mxu2 }
 0x5a2   : > { %v7014_v42 = vsel %vm13743_vm12, %v6966_v21, 0.0  ;;  %v6547_v19 = vadd.f32 %v6546_v31, %v6268_v5 }
 0x5a3   : > { %v8756_v63 = vpack.c.bf16 %v7014_v42, %v7013_v59 }
 0x5a4   : > { %v6869_v45 = vadd.f32 %v6800_v53, %v6547_v19 }
 0x5a5   : > { %9315 = vst [vmem:[%s12467_s28 + $0x98] sm:$0xff] %v8756_v63  }
 0x5a6   : > { %v6918_v36 = vmul.f32 %v12436_v57, %v6869_v45  ;;  %v6280_v7 = vpop.f32.mrf.mxu1 }
 0x5a8   : > { %v6805_v6 = vpop.f32.mrf.mxu3  ;;  %v6967_v25 = vadd.f32 %v12444_v52, %v6918_v36 }
 0x5a9   : > { %v6548_v9 = vpop.f32.mrf.mxu2 }
 0x5aa   : > { %v6549_v27 = vadd.f32 %v6548_v9, %v6270_v30  ;;  %v7015_v50 = vsel %vm13744_vm15, %v6967_v25, 0.0 }
 0x5ac   : > { %v6870_v1 = vadd.f32 %v6802_v15, %v6549_v27 }
 0x5ae   : > { %v6919_v54 = vmul.f32 %v12436_v57, %v6870_v1  ;;  %v6283_v41 = vpop.f32.mrf.mxu1 }
 0x5b0   : > { %v6968_v14 = vadd.f32 %v12444_v52, %v6919_v54  ;;  %v6807_v20 = vpop.f32.mrf.mxu3 }
 0x5b1   : > { %v6551_v16 = vpop.f32.mrf.mxu2 }
 0x5b2   : > { %v7016_v23 = vsel %vm13745_vm4, %v6968_v14, 0.0  ;;  %v6552_v55 = vadd.f32 %v6551_v16, %v6273_v12 }
 0x5b3   : > { %v8761_v5 = vpack.c.bf16 %v7016_v23, %v7015_v50 }
 0x5b4   : > { %v6871_v13 = vadd.f32 %v6805_v6, %v6552_v55 }
 0x5b5   : > { %9316 = vst [vmem:[%s12467_s28 + $0xa0] sm:$0xff] %v8761_v5  }
 0x5b6   : > { %v6920_v32 = vmul.f32 %v12436_v57, %v6871_v13  ;;  %v6285_v47 = vpop.f32.mrf.mxu1 }
 0x5b8   : > { %v6810_v37 = vpop.f32.mrf.mxu3  ;;  %v6969_v26 = vadd.f32 %v12444_v52, %v6920_v32 }
 0x5b9   : > { %v6553_v8 = vpop.f32.mrf.mxu2 }
 0x5ba   : > { %v6554_v34 = vadd.f32 %v6553_v8, %v6275_v60  ;;  %v7017_v35 = vsel %vm13746_vm2, %v6969_v26, 0.0 }
 0x5bc   : > { %v6872_v51 = vadd.f32 %v6807_v20, %v6554_v34 }
 0x5be   : > { %v6921_v43 = vmul.f32 %v12436_v57, %v6872_v51  ;;  %v6288_v63 = vpop.f32.mrf.mxu1 }
 0x5c0   : > { %v6970_v10 = vadd.f32 %v12444_v52, %v6921_v43  ;;  %v6812_v18 = vpop.f32.mrf.mxu3 }
 0x5c1   : > { %v6556_v30 = vpop.f32.mrf.mxu2 }
 0x5c2   : > { %v7018_v33 = vsel %vm13747_vm8, %v6970_v10, 0.0  ;;  %v6557_v11 = vadd.f32 %v6556_v30, %v6278_v40 }
 0x5c3   : > { %v8766_v3 = vpack.c.bf16 %v7018_v33, %v7017_v35 }
 0x5c4   : > { %v6873_v29 = vadd.f32 %v6810_v37, %v6557_v11 }
 0x5c5   : > { %9317 = vst [vmem:[%s12467_s28 + $0xa8] sm:$0xff] %v8766_v3  }
 0x5c6   : > { %v6922_v49 = vmul.f32 %v12436_v57, %v6873_v29  ;;  %v6290_v46 = vpop.f32.mrf.mxu1 }
 0x5c8   : > { %v6815_v53 = vpop.f32.mrf.mxu3  ;;  %v6971_v56 = vadd.f32 %v12444_v52, %v6922_v49 }
 0x5c9   : > { %v6558_v17 = vpop.f32.mrf.mxu2 }
 0x5ca   : > { %v6559_v62 = vadd.f32 %v6558_v17, %v6280_v7  ;;  %v7019_v15 = vsel %vm13748_vm0, %v6971_v56, 0.0 }
 0x5cc   : > { %v6874_v12 = vadd.f32 %v6812_v18, %v6559_v62 }
 0x5ce   : > { %v6923_v48 = vmul.f32 %v12436_v57, %v6874_v12  ;;  %v6293_v13 = vpop.f32.mrf.mxu1 }
 0x5d0   : > { %v6972_v4 = vadd.f32 %v12444_v52, %v6923_v48  ;;  %v6817_v38 = vpop.f32.mrf.mxu3 }
 0x5d1   : > { %v6561_v21 = vpop.f32.mrf.mxu2 }
 0x5d2   : > { %v7020_v31 = vsel %vm13749_vm13, %v6972_v4, 0.0  ;;  %v6562_v59 = vadd.f32 %v6561_v21, %v6283_v41 }
 0x5d3   : > { %v8771_v42 = vpack.c.bf16 %v7020_v31, %v7019_v15 }
 0x5d4   : > { %v6875_v19 = vadd.f32 %v6815_v53, %v6562_v59 }
 0x5d5   : > { %9318 = vst [vmem:[%s12467_s28 + $0xb0] sm:$0xff] %v8771_v42  }
 0x5d6   : > { %v6924_v6 = vmul.f32 %v12436_v57, %v6875_v19  ;;  %v6295_v10 = vpop.f32.mrf.mxu1 }
 0x5d8   : > { %v6820_v45 = vpop.f32.mrf.mxu3  ;;  %v6973_v27 = vadd.f32 %v12444_v52, %v6924_v6 }
 0x5d9   : > { %v6563_v60 = vpop.f32.mrf.mxu2 }
 0x5da   : > { %v6564_v9 = vadd.f32 %v6563_v60, %v6285_v47  ;;  %v7021_v54 = vsel %vm13696_vm9, %v6973_v27, 0.0  ;;  %vm13751_vm9 = vnez %v13711_v61 }
 0x5dc   : > { %v6876_v36 = vadd.f32 %v6817_v38, %v6564_v9 }
 0x5de   : > { %v6925_v44 = vmul.f32 %v12436_v57, %v6876_v36  ;;  %v6298_v29 = vpop.f32.mrf.mxu1 }
 0x5e0   : > { %v6974_v1 = vadd.f32 %v12444_v52, %v6925_v44  ;;  %v6822_v16 = vpop.f32.mrf.mxu3 }
 0x5e1   : > { %v6566_v25 = vpop.f32.mrf.mxu2 }
 0x5e2   : > { %v7022_v40 = vsel %vm13750_vm11, %v6974_v1, 0.0  ;;  %v6567_v14 = vadd.f32 %v6566_v25, %v6288_v63 }
 0x5e3   : > { %v8776_v20 = vpack.c.bf16 %v7022_v40, %v7021_v54 }
 0x5e4   : > { %v6877_v50 = vadd.f32 %v6820_v45, %v6567_v14 }
 0x5e5   : > { %9319 = vst [vmem:[%s12467_s28 + $0xb8] sm:$0xff] %v8776_v20  }
 0x5e6   : > { %v6926_v55 = vmul.f32 %v12436_v57, %v6877_v50  ;;  %v6300_v48 = vpop.f32.mrf.mxu1 }
 0x5e8   : > { %v6825_v7 = vpop.f32.mrf.mxu3  ;;  %v6975_v8 = vadd.f32 %v12444_v52, %v6926_v55 }
 0x5e9   : > { %v6568_v23 = vpop.f32.mrf.mxu2 }
 0x5ea   : > { %v6569_v5 = vadd.f32 %v6568_v23, %v6290_v46  ;;  %v7023_v34 = vsel %vm13710_vm5, %v6975_v8, 0.0 }
 0x5ec   : > { %v6878_v37 = vadd.f32 %v6822_v16, %v6569_v5 }
 0x5ee   : > { %v6927_v0 = vmul.f32 %v12436_v57, %v6878_v37 }
 0x5f0   : > { %v6976_v22 = vadd.f32 %v12444_v52, %v6927_v0  ;;  %v6827_v30 = vpop.f32.mrf.mxu3 }
 0x5f1   : > { %v6571_v32 = vpop.f32.mrf.mxu2 }
 0x5f2   : > { %v7024_v51 = vsel %vm13751_vm9, %v6976_v22, 0.0  ;;  %v6572_v26 = vadd.f32 %v6571_v32, %v6293_v13 }
 0x5f3   : > { %v8781_v43 = vpack.c.bf16 %v7024_v51, %v7023_v34 }
 0x5f4   : > { %v6879_v18 = vadd.f32 %v6825_v7, %v6572_v26 }
 0x5f5   : > { %9320 = vst [vmem:[%s12467_s28 + $0xc0] sm:$0xff] %v8781_v43  }
 0x5f6   : > { %v6928_v33 = vmul.f32 %v12436_v57, %v6879_v18 }
 0x5f8   : > { %v6977_v3 = vadd.f32 %v12444_v52, %v6928_v33  ;;  %v6830_v53 = vpop.f32.mrf.mxu3 }
 0x5f9   : > { %v6573_v35 = vpop.f32.mrf.mxu2 }
 0x5fa   : > { %v6574_v11 = vadd.f32 %v6573_v35, %v6295_v10  ;;  %v7025_v49 = vsel %vm13723_vm3, %v6977_v3, 0.0 }
 0x5fc   : > { %v6880_v41 = vadd.f32 %v6827_v30, %v6574_v11 }
 0x5fe   : > { %v6929_v58 = vmul.f32 %v12436_v57, %v6880_v41 }
 0x600   : > { %v6978_v61 = vadd.f32 %v12444_v52, %v6929_v58  ;;  %v6832_v15 = vpop.f32.mrf.mxu3 }
 0x601   : > { %v6576_v17 = vpop.f32.mrf.mxu2 }
 0x602   : > { %v7026_v62 = vsel %vm13725_vm10, %v6978_v61, 0.0  ;;  %v6577_v12 = vadd.f32 %v6576_v17, %v6298_v29 }
 0x603   : > { %v8786_v47 = vpack.c.bf16 %v7026_v62, %v7025_v49 }
 0x604   : > { %v6881_v56 = vadd.f32 %v6830_v53, %v6577_v12 }
 0x605   : > { %9321 = vst [vmem:[%s12467_s28 + $0xc8] sm:$0xff] %v8786_v47  }
 0x606   : > { %v6930_v38 = vmul.f32 %v12436_v57, %v6881_v56 }
 0x608   : > { %v6979_v59 = vadd.f32 %v12444_v52, %v6930_v38 }
 0x609   : > { %v6578_v4 = vpop.f32.mrf.mxu2 }
 0x60a   : > { %v6579_v21 = vadd.f32 %v6578_v4, %v6300_v48  ;;  %v7027_v2 = vsel %vm13734_vm1, %v6979_v59, 0.0 }
 0x60c   : > { %v6882_v31 = vadd.f32 %v6832_v15, %v6579_v21 }
 0x60e   : > { %v6931_v28 = vmul.f32 %v12436_v57, %v6882_v31 }
 0x610   : > { %v6980_v42 = vadd.f32 %v12444_v52, %v6931_v28 }
 0x612   : > { %v7028_v19 = vsel %vm13736_vm7, %v6980_v42, 0.0 }
 0x613   : > { %v8791_v63 = vpack.c.bf16 %v7028_v19, %v7027_v2 }
 0x615   : > { %9322 = vst [vmem:[%s12467_s28 + $0xd0] sm:$0xff] %v8791_v63  }
 0x616 PF: > { %s13_s12 = sadd.s32 1, %s9650_s12  }
 0x617   : > { %p10_p4 = scmp.ge.s32.totalorder %s13_s12, 4  }
 0x619   :  { %12 = sbr.rel (!%p10_p4) target bundleno = 1 (0x1), region = 69 }

</bundles_post_ra>
